<compile_context>
chip_gen: v7x
topology: tpu7x:2x2x1
jax: 0.10.0
libtpu: 0.0.40
codegen_flags: <defaults>
</compile_context>

<pallas_src>
import jax
import jax.numpy as jnp
from jax.experimental import pallas as pl
from jax.experimental.pallas import tpu as pltpu

EPS = 1e-5  # PyTorch InstanceNorm2d default


def _reflect_fill(pad_ref, img_flat, H, W):
    """Stage an (H*W, C) image into the flat halo scratch with H-reflection rows.

    pad_ref rows (stride W):
      [W-1]            dummy (read by the -1 shifted slice, never selected)
      [W   : 2W)       reflect top    = image row 1
      [2W  : 2W+R)     image rows 0..H-1
      [(H+2)W:(H+3)W)  reflect bottom = image row H-2
      [(H+3)W]         dummy (read by the +1 shifted slice, never selected)
    """
    R = H * W
    pad_ref[2 * W:2 * W + R, :] = img_flat
    pad_ref[W:2 * W, :] = img_flat[W:2 * W]
    pad_ref[(H + 2) * W:(H + 3) * W, :] = img_flat[(H - 2) * W:(H - 1) * W]


def _conv3x3_instance_norm(pad_ref, w_ref, left_edge, right_edge, H, W):
    """3x3 conv (reflect-padded input already staged in pad_ref, no bias) ->
    InstanceNorm2d(affine=False).  Returns an (H*W, C_out) f32 value.

    pad_ref: ((H+4)*W, C_in) halo scratch (compute dtype).
    w_ref:   (3, 3*C_in, C_out) packed so row dj*C_in + ci of w_ref[di] is the
             PyTorch weight[co, ci, di, dj].
    """
    R = H * W
    acc = None
    for di in range(3):                      # static, unrolled
        base = (di + 1) * W                  # flat row of H-padded image row di
        ctr = pad_ref[base:base + R, :]                  # tap dj == 1
        gm1 = pad_ref[base - 1:base - 1 + R, :]          # flat shift -1
        gp1 = pad_ref[base + 1:base + 1 + R, :]          # flat shift +1
        left = jnp.where(left_edge, gp1, gm1)            # tap dj == 0 (W-reflect @ j==0)
        right = jnp.where(right_edge, gm1, gp1)          # tap dj == 2 (W-reflect @ j==W-1)
        # One deep-K matmul per row offset: (R, 3C) @ (3C, C), f32 accumulation.
        operand = jnp.concatenate([left, ctr, right], axis=-1)
        part = jnp.dot(operand, w_ref[di], preferred_element_type=jnp.float32)
        acc = part if acc is None else acc + part
    # NOTE: the PyTorch conv bias is intentionally omitted — a per-channel constant is
    # exactly removed by the affine-free InstanceNorm below (validated vs the reference).

    # InstanceNorm2d(affine=False): centered (two-pass) per-channel spatial stats, f32.
    inv_hw = jnp.float32(1.0 / R)
    mean = jnp.sum(acc, axis=0, keepdims=True) * inv_hw
    centered = acc - mean
    var = jnp.sum(centered * centered, axis=0, keepdims=True) * inv_hw
    return centered * jax.lax.rsqrt(var + EPS)


def _residual_block_kernel(x_ref, w1_ref, w2_ref, o_ref, pad_ref):
    # x_ref/o_ref: (1, H, W, C)   w*_ref: (3, 3C, C)   pad_ref: ((H+4)*W, C) scratch.
    _, H, W, C = x_ref.shape
    R = H * W
    cdt = pad_ref.dtype

    # W-boundary reflect masks: computed once, reused by both stages / all row offsets.
    col = jax.lax.broadcasted_iota(jnp.int32, (R, C), 0) % W
    left_edge = col == 0
    right_edge = col == W - 1

    # The two dummy halo rows are read by the +-1 shifted slices but never selected;
    # zero them once so the reads are defined.
    zero_row = jnp.zeros((1, C), cdt)
    pad_ref[W - 1:W, :] = zero_row
    pad_ref[(H + 3) * W:(H + 3) * W + 1, :] = zero_row

    # ---- stage 1: reflect-pad(x) -> conv3x3 -> InstanceNorm -> ReLU --------------
    _reflect_fill(pad_ref, x_ref[0].reshape(R, C).astype(cdt), H, W)
    y1 = jnp.maximum(
        _conv3x3_instance_norm(pad_ref, w1_ref, left_edge, right_edge, H, W), 0.0)
    # TODO(synk): nn.Dropout(0.5) (use_dropout=True) is identity at inference; a training
    # variant would use pltpu.prng_seed + pltpu.stateful_bernoulli here.

    # ---- stage 2: reflect-pad(y1) -> conv3x3 -> InstanceNorm ---------------------
    _reflect_fill(pad_ref, y1.astype(cdt), H, W)
    y2 = _conv3x3_instance_norm(pad_ref, w2_ref, left_edge, right_edge, H, W)

    # Residual add: re-read x from its (still resident) input block in f32 instead of
    # keeping an f32 copy live across both stages.
    o_ref[...] = (x_ref[...].astype(jnp.float32)
                  + y2.reshape(1, H, W, C)).astype(o_ref.dtype)


def _prep_weight(w_hwio, c_pad, compute_dtype):
    """(3, 3, C, C) HWIO -> zero-pad channels to c_pad -> (3, 3*c_pad, c_pad)."""
    c = w_hwio.shape[2]
    if c_pad != c:
        w_hwio = jnp.pad(w_hwio, ((0, 0), (0, 0), (0, c_pad - c), (0, c_pad - c)))
    return w_hwio.astype(compute_dtype).reshape(3, 3 * c_pad, c_pad)


def residual_block(x_nchw, params, *, compute_dtype=jnp.bfloat16):
    """x_nchw: (N, C, H, W) like PyTorch.  Returns (N, C, H, W) in x's dtype.

    compute_dtype controls the MXU operand dtype (bf16 default for throughput);
    accumulation, InstanceNorm and the residual add are always f32.
    """
    w1, _b1, w2, _b2 = params   # biases are provably cancelled by InstanceNorm -> unused
    x = jnp.transpose(x_nchw, (0, 2, 3, 1))        # NHWC: channels on the lane dim
    N, H, W, C = x.shape

    # Lane density: pad channels to a multiple of 128 (real CycleGAN C=256 is untouched).
    # Zero-padded channels stay exactly zero through conv / IN / ReLU / residual.
    c_pad = pl.cdiv(C, 128) * 128
    if c_pad != C:
        x = jnp.pad(x, ((0, 0), (0, 0), (0, 0), (0, c_pad - C)))
    w1p = _prep_weight(w1, c_pad, compute_dtype)
    w2p = _prep_weight(w2, c_pad, compute_dtype)

    # NOTE: one whole image per grid step (InstanceNorm needs full-image statistics).
    # For H=W >> 64 / v7x's 64 MiB VMEM this should become H-tiled with a two-pass IN
    # (cross-tile sum/sumsq scratch) -- left as a follow-up.  grid=(N,) is "parallel"
    # so batch elements shard across the two v7x TensorCores.  Weights use constant-
    # index blocks; at prod sizes they could be single-buffered since they never rotate.
    out = pl.pallas_call(
        _residual_block_kernel,
        out_shape=jax.ShapeDtypeStruct((N, H, W, c_pad), x.dtype),
        grid_spec=pltpu.PrefetchScalarGridSpec(
            num_scalar_prefetch=0,
            grid=(N,),
            in_specs=[
                pl.BlockSpec((1, H, W, c_pad), lambda n: (n, 0, 0, 0)),
                pl.BlockSpec((3, 3 * c_pad, c_pad), lambda n: (0, 0, 0)),
                pl.BlockSpec((3, 3 * c_pad, c_pad), lambda n: (0, 0, 0)),
            ],
            out_specs=pl.BlockSpec((1, H, W, c_pad), lambda n: (n, 0, 0, 0)),
            scratch_shapes=[pltpu.VMEM(((H + 4) * W, c_pad), compute_dtype)],
        ),
        compiler_params=pltpu.CompilerParams(
            dimension_semantics=("parallel",),
            vmem_limit_bytes=48 * 1024 * 1024,
        ),
    )(x, w1p, w2p)
    if c_pad != C:
        out = out[..., :C]
    return jnp.transpose(out, (0, 3, 1, 2))


# ---------------- pure-JAX reference for verification ----------------
def _reference(x_nchw, params, compute_dtype=jnp.float32):
    w1, b1, w2, b2 = params
    x = jnp.transpose(x_nchw, (0, 2, 3, 1)).astype(jnp.float32)

    def block(inp, w, b, relu):
        p = jnp.pad(inp, ((0, 0), (1, 1), (1, 1), (0, 0)), mode="reflect")
        y = jax.lax.conv_general_dilated(
            p.astype(compute_dtype), w.astype(compute_dtype),
            window_strides=(1, 1), padding="VALID",
            dimension_numbers=("NHWC", "HWIO", "NHWC"),
            preferred_element_type=jnp.float32)
        y = y + b.reshape(1, 1, 1, -1).astype(jnp.float32)   # bias cancels in IN below
        mean = jnp.mean(y, axis=(1, 2), keepdims=True)
        var = jnp.var(y, axis=(1, 2), keepdims=True)
        y = (y - mean) * jax.lax.rsqrt(var + EPS)
        return jnp.maximum(y, 0.0) if relu else y

    y1 = block(x, w1, b1, True)
    y2 = block(y1, w2, b2, False)
    return jnp.transpose(x + y2, (0, 3, 1, 2))


def make_params(key, c):
    k1, k2, k3, k4 = jax.random.split(key, 4)
    fan_in = c * 3 * 3
    bound = 1.0 / jnp.sqrt(fan_in)
    # PyTorch layout (C_out, C_in, 3, 3) -> kernel layout (3, 3, C_in, C_out)
    w1_pt = jax.random.uniform(k1, (c, c, 3, 3), jnp.float32, -bound, bound)
    w2_pt = jax.random.uniform(k2, (c, c, 3, 3), jnp.float32, -bound, bound)
    b1 = jax.random.uniform(k3, (1, c), jnp.float32, -bound, bound)
    b2 = jax.random.uniform(k4, (1, c), jnp.float32, -bound, bound)
    w1 = jnp.transpose(w1_pt, (2, 3, 1, 0))
    w2 = jnp.transpose(w2_pt, (2, 3, 1, 0))
    return (w1, b1, w2, b2)


if __name__ == "__main__":
    key = jax.random.PRNGKey(0)
    kx, kp = jax.random.split(key)

    N, C, H, W = 2, 4, 16, 16  # PyTorch NCHW input (test-sized)
    x = jax.random.normal(kx, (N, C, H, W), jnp.float32)
    params = make_params(kp, C)

    # Production default: bf16 MXU operands (f32 accumulate / normalize / residual),
    # checked against a bf16-consistent reference.
    out_bf16 = jax.block_until_ready(residual_block(x, params))
    ref_bf16 = jax.block_until_ready(_reference(x, params, compute_dtype=jnp.bfloat16))
    assert out_bf16.shape == (N, C, H, W)
    assert jnp.allclose(out_bf16, ref_bf16, atol=2e-2, rtol=2e-2), "bf16 mismatch vs reference"

    # f32 path: matches the PyTorch module numerics.
    out_f32 = jax.block_until_ready(residual_block(x, params, compute_dtype=jnp.float32))
    ref_f32 = jax.block_until_ready(_reference(x, params, compute_dtype=jnp.float32))
    assert jnp.allclose(out_f32, ref_f32, atol=1e-3, rtol=1e-3), "f32 mismatch vs reference"

    print("KERNEL_OK")
</pallas_src>

<mosaic_0001>
module attributes {stable_mosaic.version = 11 : i64} {
  func.func @_residual_block_kernel(%arg0: i32, %arg1: memref<1x16x16x128xf32, #tpu.memory_space<vmem>>, %arg2: memref<3x384x128xbf16, #tpu.memory_space<vmem>>, %arg3: memref<3x384x128xbf16, #tpu.memory_space<vmem>>, %arg4: memref<1x16x16x128xf32, #tpu.memory_space<vmem>>, %arg5: memref<320x128xbf16, #tpu.memory_space<vmem>>) attributes {dimension_semantics = [#tpu.dimension_semantics<parallel>], iteration_bounds = array<i64: 2>, scalar_prefetch = 0 : i64, scratch_operands = 1 : i64, tpu.core_type = #tpu.core_type<tc>, window_params = [{transform_indices = @transform_0, window_bounds = array<i64: 1, 16, 16, 128>}, {pipeline_mode = #tpu.pipeline_mode<synchronous>, transform_indices = @transform_1, window_bounds = array<i64: 3, 384, 128>}, {pipeline_mode = #tpu.pipeline_mode<synchronous>, transform_indices = @transform_2, window_bounds = array<i64: 3, 384, 128>}, {transform_indices = @transform_3, window_bounds = array<i64: 1, 16, 16, 128>}]} {
    %0 = tpu.iota {dimensions = array<i32: 0>} : vector<256x128xi32>
    %c16_i32 = arith.constant 16 : i32
    %c0_i32 = arith.constant 0 : i32
    %1 = arith.cmpi eq, %c16_i32, %c0_i32 : i32
    %c1_i32 = arith.constant 1 : i32
    %2 = arith.select %1, %c1_i32, %c16_i32 : i32
    %3 = vector.broadcast %2 : i32 to vector<256x128xi32>
    %4 = arith.remsi %0, %3 : vector<256x128xi32>
    %c0_i32_0 = arith.constant 0 : i32
    %5 = vector.broadcast %c0_i32_0 : i32 to vector<256x128xi32>
    %6 = arith.cmpi ne, %4, %5 : vector<256x128xi32>
    %c0_i32_1 = arith.constant 0 : i32
    %7 = vector.broadcast %c0_i32_1 : i32 to vector<256x128xi32>
    %8 = arith.cmpi slt, %4, %7 : vector<256x128xi32>
    %c0_i32_2 = arith.constant 0 : i32
    %9 = arith.cmpi slt, %2, %c0_i32_2 : i32
    %10 = vector.broadcast %9 : i1 to vector<256x128xi1>
    %11 = vector.broadcast %10 : vector<256x128xi1> to vector<256x128xi1>
    %12 = arith.xori %8, %11 : vector<256x128xi1>
    %13 = arith.andi %12, %6 : vector<256x128xi1>
    %14 = vector.broadcast %2 : i32 to vector<256x128xi32>
    %15 = arith.addi %4, %14 : vector<256x128xi32>
    %16 = arith.select %13, %15, %4 : vector<256x128xi1>, vector<256x128xi32>
    %c0_i32_3 = arith.constant 0 : i32
    %17 = vector.broadcast %c0_i32_3 : i32 to vector<256x128xi32>
    %18 = arith.cmpi eq, %16, %17 : vector<256x128xi32>
    %c15_i32 = arith.constant 15 : i32
    %19 = vector.broadcast %c15_i32 : i32 to vector<256x128xi32>
    %20 = arith.cmpi eq, %16, %19 : vector<256x128xi32>
    %cst = arith.constant 0.000000e+00 : bf16
    %21 = vector.broadcast %cst : bf16 to vector<1x128xbf16>
    %c15 = arith.constant 15 : index
    %c0 = arith.constant 0 : index
    %22 = vector.load %arg5[%c15, %c0] : memref<320x128xbf16, #tpu.memory_space<vmem>>, vector<1x128xbf16>
    tpu.vector_store %arg5[%c15, %c0], %21 {strides = array<i32>} : memref<320x128xbf16, #tpu.memory_space<vmem>>, vector<1x128xbf16>,
    %c304 = arith.constant 304 : index
    %c0_4 = arith.constant 0 : index
    %23 = vector.load %arg5[%c304, %c0_4] : memref<320x128xbf16, #tpu.memory_space<vmem>>, vector<1x128xbf16>
    tpu.vector_store %arg5[%c304, %c0_4], %21 {strides = array<i32>} : memref<320x128xbf16, #tpu.memory_space<vmem>>, vector<1x128xbf16>,
    %c0_5 = arith.constant 0 : index
    %c0_6 = arith.constant 0 : index
    %c0_7 = arith.constant 0 : index
    %c0_8 = arith.constant 0 : index
    %24 = vector.load %arg1[%c0_5, %c0_6, %c0_7, %c0_8] : memref<1x16x16x128xf32, #tpu.memory_space<vmem>>, vector<1x16x16x128xf32>
    %25 = vector.shape_cast %24 : vector<1x16x16x128xf32> to vector<16x16x128xf32>
    %26 = vector.shape_cast %25 : vector<16x16x128xf32> to vector<256x128xf32>
    %27 = arith.truncf %26 : vector<256x128xf32> to vector<256x128xbf16>
    %c32 = arith.constant 32 : index
    %c0_9 = arith.constant 0 : index
    %28 = vector.load %arg5[%c32, %c0_9] : memref<320x128xbf16, #tpu.memory_space<vmem>>, vector<256x128xbf16>
    tpu.vector_store %arg5[%c32, %c0_9], %27 {strides = array<i32>} : memref<320x128xbf16, #tpu.memory_space<vmem>>, vector<256x128xbf16>,
    %29 = vector.extract_strided_slice %27 {offsets = [16, 0], sizes = [16, 128], strides = [1, 1]} : vector<256x128xbf16> to vector<16x128xbf16>
    %c16 = arith.constant 16 : index
    %c0_10 = arith.constant 0 : index
    %30 = vector.load %arg5[%c16, %c0_10] : memref<320x128xbf16, #tpu.memory_space<vmem>>, vector<16x128xbf16>
    tpu.vector_store %arg5[%c16, %c0_10], %29 {strides = array<i32>} : memref<320x128xbf16, #tpu.memory_space<vmem>>, vector<16x128xbf16>,
    %31 = vector.extract_strided_slice %27 {offsets = [224, 0], sizes = [16, 128], strides = [1, 1]} : vector<256x128xbf16> to vector<16x128xbf16>
    %c288 = arith.constant 288 : index
    %c0_11 = arith.constant 0 : index
    %32 = vector.load %arg5[%c288, %c0_11] : memref<320x128xbf16, #tpu.memory_space<vmem>>, vector<16x128xbf16>
    tpu.vector_store %arg5[%c288, %c0_11], %31 {strides = array<i32>} : memref<320x128xbf16, #tpu.memory_space<vmem>>, vector<16x128xbf16>,
    %c16_12 = arith.constant 16 : index
    %c0_13 = arith.constant 0 : index
    %33 = vector.load %arg5[%c16_12, %c0_13] : memref<320x128xbf16, #tpu.memory_space<vmem>>, vector<256x128xbf16>
    %c15_14 = arith.constant 15 : index
    %c0_15 = arith.constant 0 : index
    %34 = vector.load %arg5[%c15_14, %c0_15] : memref<320x128xbf16, #tpu.memory_space<vmem>>, vector<256x128xbf16>
    %c17 = arith.constant 17 : index
    %c0_16 = arith.constant 0 : index
    %35 = vector.load %arg5[%c17, %c0_16] : memref<320x128xbf16, #tpu.memory_space<vmem>>, vector<256x128xbf16>
    %36 = arith.select %18, %35, %34 : vector<256x128xi1>, vector<256x128xbf16>
    %37 = arith.select %20, %34, %35 : vector<256x128xi1>, vector<256x128xbf16>
    %38 = tpu.concatenate %36, %33, %37 in 1 : vector<256x128xbf16>, vector<256x128xbf16>, vector<256x128xbf16> -> vector<256x384xbf16>
    %c0_17 = arith.constant 0 : index
    %c0_18 = arith.constant 0 : index
    %c0_19 = arith.constant 0 : index
    %39 = vector.load %arg2[%c0_17, %c0_18, %c0_19] : memref<3x384x128xbf16, #tpu.memory_space<vmem>>, vector<1x384x128xbf16>
    %40 = vector.shape_cast %39 : vector<1x384x128xbf16> to vector<384x128xbf16>
    %cst_20 = arith.constant dense<0.000000e+00> : vector<256x128xf32>
    %41 = tpu.matmul %38, %40, %cst_20 {dimension_numbers = #tpu.dot_dimension_numbers<[1], [0], [0], [1], [0, 0, 1, 1], [], []>} : vector<256x384xbf16>, vector<384x128xbf16>, vector<256x128xf32> -> vector<256x128xf32>
    %c32_21 = arith.constant 32 : index
    %c0_22 = arith.constant 0 : index
    %42 = vector.load %arg5[%c32_21, %c0_22] : memref<320x128xbf16, #tpu.memory_space<vmem>>, vector<256x128xbf16>
    %c31 = arith.constant 31 : index
    %c0_23 = arith.constant 0 : index
    %43 = vector.load %arg5[%c31, %c0_23] : memref<320x128xbf16, #tpu.memory_space<vmem>>, vector<256x128xbf16>
    %c33 = arith.constant 33 : index
    %c0_24 = arith.constant 0 : index
    %44 = vector.load %arg5[%c33, %c0_24] : memref<320x128xbf16, #tpu.memory_space<vmem>>, vector<256x128xbf16>
    %45 = arith.select %18, %44, %43 : vector<256x128xi1>, vector<256x128xbf16>
    %46 = arith.select %20, %43, %44 : vector<256x128xi1>, vector<256x128xbf16>
    %47 = tpu.concatenate %45, %42, %46 in 1 : vector<256x128xbf16>, vector<256x128xbf16>, vector<256x128xbf16> -> vector<256x384xbf16>
    %c1 = arith.constant 1 : index
    %c0_25 = arith.constant 0 : index
    %c0_26 = arith.constant 0 : index
    %48 = vector.load %arg2[%c1, %c0_25, %c0_26] : memref<3x384x128xbf16, #tpu.memory_space<vmem>>, vector<1x384x128xbf16>
    %49 = vector.shape_cast %48 : vector<1x384x128xbf16> to vector<384x128xbf16>
    %cst_27 = arith.constant dense<0.000000e+00> : vector<256x128xf32>
    %50 = tpu.matmul %47, %49, %cst_27 {dimension_numbers = #tpu.dot_dimension_numbers<[1], [0], [0], [1], [0, 0, 1, 1], [], []>} : vector<256x384xbf16>, vector<384x128xbf16>, vector<256x128xf32> -> vector<256x128xf32>
    %51 = arith.addf %41, %50 : vector<256x128xf32>
    %c48 = arith.constant 48 : index
    %c0_28 = arith.constant 0 : index
    %52 = vector.load %arg5[%c48, %c0_28] : memref<320x128xbf16, #tpu.memory_space<vmem>>, vector<256x128xbf16>
    %c47 = arith.constant 47 : index
    %c0_29 = arith.constant 0 : index
    %53 = vector.load %arg5[%c47, %c0_29] : memref<320x128xbf16, #tpu.memory_space<vmem>>, vector<256x128xbf16>
    %c49 = arith.constant 49 : index
    %c0_30 = arith.constant 0 : index
    %54 = vector.load %arg5[%c49, %c0_30] : memref<320x128xbf16, #tpu.memory_space<vmem>>, vector<256x128xbf16>
    %55 = arith.select %18, %54, %53 : vector<256x128xi1>, vector<256x128xbf16>
    %56 = arith.select %20, %53, %54 : vector<256x128xi1>, vector<256x128xbf16>
    %57 = tpu.concatenate %55, %52, %56 in 1 : vector<256x128xbf16>, vector<256x128xbf16>, vector<256x128xbf16> -> vector<256x384xbf16>
    %c2 = arith.constant 2 : index
    %c0_31 = arith.constant 0 : index
    %c0_32 = arith.constant 0 : index
    %58 = vector.load %arg2[%c2, %c0_31, %c0_32] : memref<3x384x128xbf16, #tpu.memory_space<vmem>>, vector<1x384x128xbf16>
    %59 = vector.shape_cast %58 : vector<1x384x128xbf16> to vector<384x128xbf16>
    %cst_33 = arith.constant dense<0.000000e+00> : vector<256x128xf32>
    %60 = tpu.matmul %57, %59, %cst_33 {dimension_numbers = #tpu.dot_dimension_numbers<[1], [0], [0], [1], [0, 0, 1, 1], [], []>} : vector<256x384xbf16>, vector<384x128xbf16>, vector<256x128xf32> -> vector<256x128xf32>
    %61 = arith.addf %51, %60 : vector<256x128xf32>
    %cst_34 = arith.constant dense<0.000000e+00> : vector<128xf32>
    %62 = vector.multi_reduction <add>, %61, %cst_34 [0] : vector<256x128xf32> to vector<128xf32>
    %63 = vector.shape_cast %62 : vector<128xf32> to vector<1x128xf32>
    %cst_35 = arith.constant 3.906250e-03 : f32
    %64 = vector.broadcast %cst_35 : f32 to vector<1x128xf32>
    %65 = arith.mulf %63, %64 : vector<1x128xf32>
    %66 = vector.broadcast %65 : vector<1x128xf32> to vector<256x128xf32>
    %67 = arith.subf %61, %66 : vector<256x128xf32>
    %68 = arith.mulf %67, %67 : vector<256x128xf32>
    %cst_36 = arith.constant dense<0.000000e+00> : vector<128xf32>
    %69 = vector.multi_reduction <add>, %68, %cst_36 [0] : vector<256x128xf32> to vector<128xf32>
    %70 = vector.shape_cast %69 : vector<128xf32> to vector<1x128xf32>
    %cst_37 = arith.constant 3.906250e-03 : f32
    %71 = vector.broadcast %cst_37 : f32 to vector<1x128xf32>
    %72 = arith.mulf %70, %71 : vector<1x128xf32>
    %cst_38 = arith.constant 9.99999974E-6 : f32
    %73 = vector.broadcast %cst_38 : f32 to vector<1x128xf32>
    %74 = arith.addf %72, %73 : vector<1x128xf32>
    %75 = math.rsqrt %74 : vector<1x128xf32>
    %76 = vector.broadcast %75 : vector<1x128xf32> to vector<256x128xf32>
    %77 = arith.mulf %67, %76 : vector<256x128xf32>
    %cst_39 = arith.constant 0.000000e+00 : f32
    %78 = vector.broadcast %cst_39 : f32 to vector<256x128xf32>
    %79 = arith.maximumf %77, %78 : vector<256x128xf32>
    %80 = arith.truncf %79 : vector<256x128xf32> to vector<256x128xbf16>
    %c32_40 = arith.constant 32 : index
    %c0_41 = arith.constant 0 : index
    %81 = vector.load %arg5[%c32_40, %c0_41] : memref<320x128xbf16, #tpu.memory_space<vmem>>, vector<256x128xbf16>
    tpu.vector_store %arg5[%c32_40, %c0_41], %80 {strides = array<i32>} : memref<320x128xbf16, #tpu.memory_space<vmem>>, vector<256x128xbf16>,
    %82 = vector.extract_strided_slice %80 {offsets = [16, 0], sizes = [16, 128], strides = [1, 1]} : vector<256x128xbf16> to vector<16x128xbf16>
    %c16_42 = arith.constant 16 : index
    %c0_43 = arith.constant 0 : index
    %83 = vector.load %arg5[%c16_42, %c0_43] : memref<320x128xbf16, #tpu.memory_space<vmem>>, vector<16x128xbf16>
    tpu.vector_store %arg5[%c16_42, %c0_43], %82 {strides = array<i32>} : memref<320x128xbf16, #tpu.memory_space<vmem>>, vector<16x128xbf16>,
    %84 = vector.extract_strided_slice %80 {offsets = [224, 0], sizes = [16, 128], strides = [1, 1]} : vector<256x128xbf16> to vector<16x128xbf16>
    %c288_44 = arith.constant 288 : index
    %c0_45 = arith.constant 0 : index
    %85 = vector.load %arg5[%c288_44, %c0_45] : memref<320x128xbf16, #tpu.memory_space<vmem>>, vector<16x128xbf16>
    tpu.vector_store %arg5[%c288_44, %c0_45], %84 {strides = array<i32>} : memref<320x128xbf16, #tpu.memory_space<vmem>>, vector<16x128xbf16>,
    %c16_46 = arith.constant 16 : index
    %c0_47 = arith.constant 0 : index
    %86 = vector.load %arg5[%c16_46, %c0_47] : memref<320x128xbf16, #tpu.memory_space<vmem>>, vector<256x128xbf16>
    %c15_48 = arith.constant 15 : index
    %c0_49 = arith.constant 0 : index
    %87 = vector.load %arg5[%c15_48, %c0_49] : memref<320x128xbf16, #tpu.memory_space<vmem>>, vector<256x128xbf16>
    %c17_50 = arith.constant 17 : index
    %c0_51 = arith.constant 0 : index
    %88 = vector.load %arg5[%c17_50, %c0_51] : memref<320x128xbf16, #tpu.memory_space<vmem>>, vector<256x128xbf16>
    %89 = arith.select %18, %88, %87 : vector<256x128xi1>, vector<256x128xbf16>
    %90 = arith.select %20, %87, %88 : vector<256x128xi1>, vector<256x128xbf16>
    %91 = tpu.concatenate %89, %86, %90 in 1 : vector<256x128xbf16>, vector<256x128xbf16>, vector<256x128xbf16> -> vector<256x384xbf16>
    %c0_52 = arith.constant 0 : index
    %c0_53 = arith.constant 0 : index
    %c0_54 = arith.constant 0 : index
    %92 = vector.load %arg3[%c0_52, %c0_53, %c0_54] : memref<3x384x128xbf16, #tpu.memory_space<vmem>>, vector<1x384x128xbf16>
    %93 = vector.shape_cast %92 : vector<1x384x128xbf16> to vector<384x128xbf16>
    %cst_55 = arith.constant dense<0.000000e+00> : vector<256x128xf32>
    %94 = tpu.matmul %91, %93, %cst_55 {dimension_numbers = #tpu.dot_dimension_numbers<[1], [0], [0], [1], [0, 0, 1, 1], [], []>} : vector<256x384xbf16>, vector<384x128xbf16>, vector<256x128xf32> -> vector<256x128xf32>
    %c32_56 = arith.constant 32 : index
    %c0_57 = arith.constant 0 : index
    %95 = vector.load %arg5[%c32_56, %c0_57] : memref<320x128xbf16, #tpu.memory_space<vmem>>, vector<256x128xbf16>
    %c31_58 = arith.constant 31 : index
    %c0_59 = arith.constant 0 : index
    %96 = vector.load %arg5[%c31_58, %c0_59] : memref<320x128xbf16, #tpu.memory_space<vmem>>, vector<256x128xbf16>
    %c33_60 = arith.constant 33 : index
    %c0_61 = arith.constant 0 : index
    %97 = vector.load %arg5[%c33_60, %c0_61] : memref<320x128xbf16, #tpu.memory_space<vmem>>, vector<256x128xbf16>
    %98 = arith.select %18, %97, %96 : vector<256x128xi1>, vector<256x128xbf16>
    %99 = arith.select %20, %96, %97 : vector<256x128xi1>, vector<256x128xbf16>
    %100 = tpu.concatenate %98, %95, %99 in 1 : vector<256x128xbf16>, vector<256x128xbf16>, vector<256x128xbf16> -> vector<256x384xbf16>
    %c1_62 = arith.constant 1 : index
    %c0_63 = arith.constant 0 : index
    %c0_64 = arith.constant 0 : index
    %101 = vector.load %arg3[%c1_62, %c0_63, %c0_64] : memref<3x384x128xbf16, #tpu.memory_space<vmem>>, vector<1x384x128xbf16>
    %102 = vector.shape_cast %101 : vector<1x384x128xbf16> to vector<384x128xbf16>
    %cst_65 = arith.constant dense<0.000000e+00> : vector<256x128xf32>
    %103 = tpu.matmul %100, %102, %cst_65 {dimension_numbers = #tpu.dot_dimension_numbers<[1], [0], [0], [1], [0, 0, 1, 1], [], []>} : vector<256x384xbf16>, vector<384x128xbf16>, vector<256x128xf32> -> vector<256x128xf32>
    %104 = arith.addf %94, %103 : vector<256x128xf32>
    %c48_66 = arith.constant 48 : index
    %c0_67 = arith.constant 0 : index
    %105 = vector.load %arg5[%c48_66, %c0_67] : memref<320x128xbf16, #tpu.memory_space<vmem>>, vector<256x128xbf16>
    %c47_68 = arith.constant 47 : index
    %c0_69 = arith.constant 0 : index
    %106 = vector.load %arg5[%c47_68, %c0_69] : memref<320x128xbf16, #tpu.memory_space<vmem>>, vector<256x128xbf16>
    %c49_70 = arith.constant 49 : index
    %c0_71 = arith.constant 0 : index
    %107 = vector.load %arg5[%c49_70, %c0_71] : memref<320x128xbf16, #tpu.memory_space<vmem>>, vector<256x128xbf16>
    %108 = arith.select %18, %107, %106 : vector<256x128xi1>, vector<256x128xbf16>
    %109 = arith.select %20, %106, %107 : vector<256x128xi1>, vector<256x128xbf16>
    %110 = tpu.concatenate %108, %105, %109 in 1 : vector<256x128xbf16>, vector<256x128xbf16>, vector<256x128xbf16> -> vector<256x384xbf16>
    %c2_72 = arith.constant 2 : index
    %c0_73 = arith.constant 0 : index
    %c0_74 = arith.constant 0 : index
    %111 = vector.load %arg3[%c2_72, %c0_73, %c0_74] : memref<3x384x128xbf16, #tpu.memory_space<vmem>>, vector<1x384x128xbf16>
    %112 = vector.shape_cast %111 : vector<1x384x128xbf16> to vector<384x128xbf16>
    %cst_75 = arith.constant dense<0.000000e+00> : vector<256x128xf32>
    %113 = tpu.matmul %110, %112, %cst_75 {dimension_numbers = #tpu.dot_dimension_numbers<[1], [0], [0], [1], [0, 0, 1, 1], [], []>} : vector<256x384xbf16>, vector<384x128xbf16>, vector<256x128xf32> -> vector<256x128xf32>
    %114 = arith.addf %104, %113 : vector<256x128xf32>
    %cst_76 = arith.constant dense<0.000000e+00> : vector<128xf32>
    %115 = vector.multi_reduction <add>, %114, %cst_76 [0] : vector<256x128xf32> to vector<128xf32>
    %116 = vector.shape_cast %115 : vector<128xf32> to vector<1x128xf32>
    %cst_77 = arith.constant 3.906250e-03 : f32
    %117 = vector.broadcast %cst_77 : f32 to vector<1x128xf32>
    %118 = arith.mulf %116, %117 : vector<1x128xf32>
    %119 = vector.broadcast %118 : vector<1x128xf32> to vector<256x128xf32>
    %120 = arith.subf %114, %119 : vector<256x128xf32>
    %121 = arith.mulf %120, %120 : vector<256x128xf32>
    %cst_78 = arith.constant dense<0.000000e+00> : vector<128xf32>
    %122 = vector.multi_reduction <add>, %121, %cst_78 [0] : vector<256x128xf32> to vector<128xf32>
    %123 = vector.shape_cast %122 : vector<128xf32> to vector<1x128xf32>
    %cst_79 = arith.constant 3.906250e-03 : f32
    %124 = vector.broadcast %cst_79 : f32 to vector<1x128xf32>
    %125 = arith.mulf %123, %124 : vector<1x128xf32>
    %cst_80 = arith.constant 9.99999974E-6 : f32
    %126 = vector.broadcast %cst_80 : f32 to vector<1x128xf32>
    %127 = arith.addf %125, %126 : vector<1x128xf32>
    %128 = math.rsqrt %127 : vector<1x128xf32>
    %129 = vector.broadcast %128 : vector<1x128xf32> to vector<256x128xf32>
    %130 = arith.mulf %120, %129 : vector<256x128xf32>
    %c0_81 = arith.constant 0 : index
    %c0_82 = arith.constant 0 : index
    %c0_83 = arith.constant 0 : index
    %c0_84 = arith.constant 0 : index
    %131 = vector.load %arg1[%c0_81, %c0_82, %c0_83, %c0_84] : memref<1x16x16x128xf32, #tpu.memory_space<vmem>>, vector<1x16x16x128xf32>
    %132 = vector.shape_cast %130 : vector<256x128xf32> to vector<1x16x16x128xf32>
    %133 = arith.addf %131, %132 : vector<1x16x16x128xf32>
    %c0_85 = arith.constant 0 : index
    %c0_86 = arith.constant 0 : index
    %c0_87 = arith.constant 0 : index
    %c0_88 = arith.constant 0 : index
    %134 = vector.load %arg4[%c0_85, %c0_86, %c0_87, %c0_88] : memref<1x16x16x128xf32, #tpu.memory_space<vmem>>, vector<1x16x16x128xf32>
    tpu.vector_store %arg4[%c0_85, %c0_86, %c0_87, %c0_88], %133 {strides = array<i32>} : memref<1x16x16x128xf32, #tpu.memory_space<vmem>>, vector<1x16x16x128xf32>,
    return
  }
  func.func @transform_0(%arg0: i32) -> (i32, i32, i32, i32) {
    %c0_i32 = arith.constant 0 : i32
    %c0_i32_0 = arith.constant 0 : i32
    %c0_i32_1 = arith.constant 0 : i32
    %c0_i32_2 = arith.constant 0 : i32
    return %arg0, %c0_i32, %c0_i32_0, %c0_i32_1 : i32, i32, i32, i32
  }
  func.func @transform_1(%arg0: i32) -> (i32, i32, i32) {
    %c0_i32 = arith.constant 0 : i32
    %c0_i32_0 = arith.constant 0 : i32
    %c0_i32_1 = arith.constant 0 : i32
    %c0_i32_2 = arith.constant 0 : i32
    return %c0_i32, %c0_i32_0, %c0_i32_1 : i32, i32, i32
  }
  func.func @transform_2(%arg0: i32) -> (i32, i32, i32) {
    %c0_i32 = arith.constant 0 : i32
    %c0_i32_0 = arith.constant 0 : i32
    %c0_i32_1 = arith.constant 0 : i32
    %c0_i32_2 = arith.constant 0 : i32
    return %c0_i32, %c0_i32_0, %c0_i32_1 : i32, i32, i32
  }
  func.func @transform_3(%arg0: i32) -> (i32, i32, i32, i32) {
    %c0_i32 = arith.constant 0 : i32
    %c0_i32_0 = arith.constant 0 : i32
    %c0_i32_1 = arith.constant 0 : i32
    %c0_i32_2 = arith.constant 0 : i32
    return %arg0, %c0_i32, %c0_i32_0, %c0_i32_1 : i32, i32, i32, i32
  }
}

</mosaic_0001>

<bundles_post_ra>
// kernel: tpu_custom_call.1
= control target key start
LH: loop header
LB: loop body
LE: loop exit
PB: predicated region body
PF: predicated region fallthrough
CT: control target
= control target key end

     0   :  { %8 = vsyncpa [#allocation4], 0  ;;  %s15365_s0 = inlined_call_operand.hbm [shape: f32[2,16,16,128], index: 0, kind: input, shape index: {}]   ;;  %s15366_s1 = inlined_call_operand.hbm [shape: bf16[3,384,128], index: 1, kind: input, shape index: {}]   ;;  %s15367_s2 = inlined_call_operand.hbm [shape: bf16[3,384,128], index: 2, kind: input, shape index: {}]   ;;  %s15368_s3 = inlined_call_operand.hbm [shape: f32[2,16,16,128], index: 3, kind: output, shape index: {}]  }
   0x1   :  { %10 = vsyncpa [#allocation4 + $0x1], 0 }
   0x2   :  { %11 = vsyncpa [#allocation7], 0 }
   0x3   :  { %12 = vsyncpa [#allocation5], 0 }
   0x4   :  { %14 = vsyncpa [#allocation5 + $0x1], 0  ;;  %s10603_s12 = smov 0   ;;  %s10605_s13 = smov 0  }
   0x5   :  { %s10607_s14 = smov 0   ;;  %s10609_s15 = smov 0  }
   0x6 LB: > { %s10624_s16 = sadd.s32 4294967295, %s10569_s15   ;;  %s8522_s17 = sadd.s32 4294967294, %s10569_s15   ;;  %s10569_s15 = sphi %s10609_s15, %s16234_s15   ;;  %s10565_s14 = sphi %s10607_s14, %s16233_s14   ;;  %s10561_s13 = sphi %s10605_s13, %s16232_s13   ;;  %s10557_s12 = sphi %s10603_s12, %s16231_s12  }
   0x7   : > { %p40_p0 = scmp.ne.s32.totalorder %s10561_s13, %s10557_s12  ;;  %p15369_p1 = scmp.eq.s32.totalorder %s10624_s16, 0 }
   0x8   : > { %p112_p3 = scmp.eq.s32.totalorder %s8522_s17, 1  ;;  %p8523_p5 = scmp.ge.s32.totalorder %s10569_s15, 1 }
   0x9   : > { %p10633_p4 = por %p15369_p1, %p40_p0  ;;  %p119_p7 = scmp.lt.s32.totalorder %s10569_s15, 3 }
   0xa   : > { %p10638_p6 = por %p112_p3, %p40_p0  ;;  %s10571_s21 = smov [#allocation6]  }
   0xb   : > { %s15595_s18 = scalar_select %p10633_p4, 1, 0 }
   0xc   : > { %s15596_s19 = scalar_select %p10638_p6, 1, 0 }
   0xd   : > { %p10643_p8 = pnand %p8523_p5, %p119_p7  ;;  %s131_s22 = sshll.u32 %s10571_s21, 4  ;;  %s10647_s22 = int_to_ptr.vmem [resolvable:$true] %s131_s22 }
   0xe   : > { %s10572_s24 = smov [#allocation8]   ;;  %s10413_s28 = scalar_lea.hbm %s15366_s1, 9216 }
   0xf   : > { %p10154_p9 = pneg %p10643_p8  ;;  %s144_s25 = sshll.u32 %s10572_s24, 4  ;;  %s10658_s25 = int_to_ptr.vmem [resolvable:$true] %s144_s25 }
  0x10   : > { %p10414_p12 = scmp.ne.s32.totalorder %s15366_s1, %s10413_s28  ;;  %p10420_p5 = scmp.lt.u32.totalorder %s10413_s28, %s15366_s1 }
  0x11   : > { %p10654_p11 = pnand %p10154_p9, %p15369_p1 }
  0x13   : > { %p10415_p13 = pneg %p10654_p11 }
  0x15   : > { %p10416_p0 = pnand %p10415_p13, %p10414_p12 }
  0x17   : > { %p10417_p3 = pneg %p10416_p0 }
  0x19   : > { %p10422_p7 = pnand %p10420_p5, %p10417_p3 }
  0x1b   : > { %10425 = shalt.err (!%p10422_p7)
}
  0x1c   : > { %s10426_s6 = scalar_lea.vmem %s10647_s22, 9216  ;;  %p10434_p2 = scmp.lt.s32.totalorder %s10647_s22, %s10647_s22 }
  0x1d   : > { %p10427_p9 = scmp.ne.s32.totalorder %s10647_s22, %s10426_s6  ;;  %p10435_p12 = scmp.lt.s32.totalorder %s10426_s6, %s10426_s6 }
  0x1f   : > { %p10429_p10 = pnand %p10427_p9, %p10415_p13  ;;  %p10436_p0 = por %p10435_p12, %p10434_p2 }
  0x21   : > { %p10430_p1 = pneg %p10429_p10 }
  0x23   : > { %p10437_p6 = pnand %p10436_p0, %p10430_p1 }
  0x25   : > { %10440 = shalt.err (!%p10437_p6)
}
  0x26   : > { %s10573_s7 = smov 64   ;;  %s10574_s8 = smov 4  }
  0x27   : > { %10157 = dma.hbm_to_vmem [thread:$0]  (!%p10654_p11), %s15366_s1, 9216, %s10647_s22, [#allocation7], %s10573_s7, %s10573_s7, %s10574_s8  }
  0x28   : > { %s10441_s21 = scalar_lea.hbm %s15367_s2, 9216 }
  0x29   : > { %p10442_p2 = scmp.ne.s32.totalorder %s15367_s2, %s10441_s21  ;;  %p10448_p10 = scmp.lt.u32.totalorder %s10441_s21, %s15367_s2 }
  0x2b   : > { %p10444_p1 = pnand %p10442_p2, %p10415_p13 }
  0x2d   : > { %p10445_p6 = pneg %p10444_p1 }
  0x2f   : > { %p10450_p3 = pnand %p10448_p10, %p10445_p6 }
  0x31   : > { %10453 = shalt.err (!%p10450_p3)
}
  0x32   : > { %s10454_s22 = scalar_lea.vmem %s10658_s25, 9216  ;;  %p10462_p12 = scmp.lt.s32.totalorder %s10658_s25, %s10658_s25 }
  0x33   : > { %p10455_p5 = scmp.ne.s32.totalorder %s10658_s25, %s10454_s22  ;;  %p10463_p0 = scmp.lt.s32.totalorder %s10454_s22, %s10454_s22 }
  0x35   : > { %p10457_p7 = pnand %p10455_p5, %p10415_p13  ;;  %p10464_p2 = por %p10463_p0, %p10462_p12 }
  0x37   : > { %p10458_p9 = pneg %p10457_p7 }
  0x39   : > { %p10465_p1 = pnand %p10464_p2, %p10458_p9 }
  0x3b   : > { %10468 = shalt.err (!%p10465_p1)
}
  0x3c   : > { %10160 = dma.hbm_to_vmem [thread:$0]  (!%p10654_p11), %s15367_s2, 9216, %s10658_s25, [#allocation7], %s10573_s7, %s10573_s7, %s10574_s8  }
  0x3d   : > { %s10713_s4 = sadd.s32 1, %s10569_s15   ;;  %s27_s23 = sadd.s32 1, %s10565_s14 }
  0x3e   : > { %s24_s5 = ssub.s32 %s10569_s15, %s10713_s4  ;;  %p34_p13 = scmp.ne.s32.totalorder %s10565_s14, %s10561_s13 }
  0x3f   : > { %p25_p6 = scmp.eq.s32.totalorder %s24_s5, 0  ;;  %p35_p10 = scmp.eq.s32.totalorder %s10569_s15, 0 }
  0x40   : > { %p15599_p3 = scmp.eq.s32.totalorder %s10624_s16, 1  ;;  %p10171_p7 = scmp.lt.s32.totalorder %s10569_s15, 2 }
  0x41   : > { %s10729_s9 = scalar_select %p25_p6, %s10565_s14, %s27_s23  }
  0x42   : > { %p10723_p5 = por %p15599_p3, %p34_p13  ;;  %p36_p9 = por %p35_p10, %p34_p13 }
  0x43   : > { %s158_s10 = sand.u32 1, %s10565_s14   ;;  %s8716_s25 = sshll.u32 %s10569_s15, 12 }
  0x44   : > { %s15600_s6 = scalar_select %p10723_p5, 1, 0 }
  0x45   : > { %s8527_s11 = sshll.u32 %s158_s10, 8  ;;  %s10736_s17 = scalar_lea.hbm %s15365_s0, %s8716_s25 }
  0x46   : > { %s162_s21 = scalar_lea.vmem [#allocation3], %s8527_s11  ;;  %p10740_p11 = pnand %p10171_p7, %p36_p9 }
  0x47   : > { %s169_s24 = sshll.u32 %s162_s21, 4  ;;  %s10744_s27 = scalar_lea.sflag [#allocation4], %s158_s10  ;;  %s10738_s24 = int_to_ptr.vmem [resolvable:$true] %s169_s24 }
  0x48   : > { %s10469_s28 = scalar_lea.hbm %s10736_s17, 4096  ;;  %p10471_p0 = pneg %p10740_p11 }
  0x49   : > { %p10470_p12 = scmp.ne.s32.totalorder %s10736_s17, %s10469_s28  ;;  %s10474_s30 = scalar_lea.hbm %s15365_s0, 8192 }
  0x4a   : > { %p10475_p13 = scmp.lt.u32.totalorder %s10736_s17, %s15365_s0  ;;  %p10476_p6 = scmp.lt.u32.totalorder %s10474_s30, %s10469_s28 }
  0x4b   : > { %p10472_p2 = pnand %p10471_p0, %p10470_p12  ;;  %p10478_p3 = scmp.lt.u32.totalorder %s10469_s28, %s10736_s17 }
  0x4c   : > { %p10477_p10 = por %p10476_p6, %p10475_p13 }
  0x4d   : > { %p10473_p1 = pneg %p10472_p2 }
  0x4e   : > { %p10479_p7 = por %p10478_p3, %p10477_p10 }
  0x50   : > { %p10480_p9 = pnand %p10479_p7, %p10473_p1 }
  0x52   : > { %10483 = shalt.err (!%p10480_p9)
}
  0x53   : > { %s10484_s10 = scalar_lea.vmem %s10738_s24, 4096  ;;  %s10575_s11 = smov [#allocation3]  }
  0x54   : > { %p10485_p12 = scmp.ne.s32.totalorder %s10738_s24, %s10484_s10  ;;  %s10489_s25 = sshll.u32 %s10575_s11, 4  ;;  %s10490_s25 = int_to_ptr.vmem [resolvable:$false] %s10489_s25 }
  0x55   : > { %s10491_s7 = scalar_lea.vmem %s10490_s25, 8192  ;;  %p10492_p4 = scmp.lt.s32.totalorder %s10738_s24, %s10490_s25 }
  0x56   : > { %p10487_p2 = pnand %p10485_p12, %p10471_p0  ;;  %p10493_p13 = scmp.lt.s32.totalorder %s10491_s7, %s10484_s10 }
  0x58   : > { %p10488_p5 = pneg %p10487_p2  ;;  %p10494_p6 = por %p10493_p13, %p10492_p4 }
  0x5a   : > { %p10495_p10 = pnand %p10494_p6, %p10488_p5 }
  0x5c   : > { %10498 = shalt.err (!%p10495_p10)
}
  0x5d   : > { %s10576_s8 = smov 128   ;;  %s10577_s21 = smov 8  }
  0x5e   : > { %10164 = dma.hbm_to_vmem [thread:$0]  (!%p10740_p11), %s10736_s17, 4096, %s10738_s24, %s10744_s27, %s10576_s8, %s10576_s8, %s10577_s21  }
  0x5f   : > { %181 = sbr.rel (%p10643_p8) target bundleno = 1623 (0x657), region = 32 }
  0x66   : > { %s10775_s28 = sand.u32 1, %s10561_s13   ;;  %p15602_p4 = scmp.ne.s32.totalorder %s15595_s18, 0 }
  0x67   : > { %s8531_s22 = sshll.u32 %s10775_s28, 8  ;;  %s184_s29 = scalar_lea.sflag [#allocation4], %s10775_s28 }
  0x68   : > { %s10781_s30 = scalar_lea.vmem [#allocation3], %s8531_s22 }
  0x69   : > { %10544 = dma.done.wait (%p15602_p4), %s184_s29, 4096  }
  0x6a   : > { %10546 = vsyncadd (%p15602_p4), %s184_s29, 4294963200  ;;  %p15603_p5 = scmp.eq.s32.totalorder %s10624_s16, 0 }
  0x6c   : > { %10548 = dma.done.wait (%p15603_p5), [#allocation7], 18432   ;;  %p15604_p8 = pmov %p15603_p5 }
  0x6d   : > { %vm10578_vm0 = vmmov 0   ;;  %v10217_v1 = vld [vmem:[#allocation6 + $0x100] sm:$0xff]   ;;  %v221_v3 = vlaneseq  ;;  %v10221_v6 = vld [vmem:[#allocation6 + $0x108] sm:$0xff]   ;;  %v10225_v11 = vld [vmem:[#allocation6 + $0x110] sm:$0xff]   ;;  %v15374_v12 = vmov 0   ;;  %vm702_vm4 = vcmask 1047559  }
  0x6e   : > { %10550 = vsyncadd (%p15604_p8), [#allocation7], 4294948864  ;;  %v10218_v2 = vld [vmem:[#allocation6 + $0x40] sm:$0xff]   ;;  %8718 = vmatprep.subr.bf16.mxu0 %v10217_v1  ;;  %v10222_v7 = vld [vmem:[#allocation6 + $0x48] sm:$0xff]   ;;  %vm703_vm5 = vsmask.f32 7966 }
  0x6f   : > { %vm10791_vm1 = vmpackc.low %vm10578_vm0, %vm10578_vm0  ;;  %v10219_v4 = vld [vmem:[#allocation6 + $0xc0] sm:$0xff]   ;;  %8854 = vmatprep.subr.bf16.mxu1 %v10218_v2  ;;  %v10795_v8 = vshrl.u32 %v221_v3, 7  ;;  %v10223_v9 = vld [vmem:[#allocation6 + $0xc8] sm:$0xff]   ;;  %vm15408_vm7 = vsmask.f32 256  ;;  %vm708_vm8 = vcmask 1040384  }
  0x70   : > { %v10220_v5 = vld [vmem:[#allocation6] sm:$0xff]   ;;  %8719 = vmatpush3.bf16.msra.mxu0 %v10219_v4  ;;  %v10224_v10 = vld [vmem:[#allocation6 + $0x8] sm:$0xff]   ;;  %v10800_v13 = vsel %vm10791_vm1, 65537, %v15374_v12  ;;  %v10226_v14 = vld [vmem:[#allocation6 + $0x50] sm:$0xff]   ;;  %vm1250_vm12 = vsmask.f32 7424 }
  0x71   : > { %8855 = vmatpush3.bf16.msra.mxu1 %v10220_v5  ;;  %8720 = vmatprep.subr.bf16.mxu0 %v10221_v6  ;;  %v224_v15 = vadd.s32 16, %v10795_v8  ;;  %v10227_v16 = vld [vmem:[#allocation6 + $0xd0] sm:$0xff]   ;;  %v258_v17 = vand.u32 15, %v10795_v8  ;;  %v226_v19 = vadd.s32 32, %v10795_v8  ;;  %v10229_v20 = vld [vmem:[#allocation6 + $0x118] sm:$0xff]   ;;  %v10806_v21 = vadd.s32 48, %v10795_v8  ;;  %vm10893_vm11 = vmand %vm702_vm4, %vm703_vm5 }
  0x72   : > { %8856 = vmatprep.subr.bf16.mxu1 %v10222_v7  ;;  %v10228_v18 = vld [vmem:[#allocation6 + $0x10] sm:$0xff]   ;;  %v10230_v22 = vld [vmem:[#allocation6 + $0x58] sm:$0xff]   ;;  %v10809_v23 = vadd.s32 64, %v10795_v8  ;;  %v10812_v25 = vadd.s32 80, %v10795_v8  ;;  %v10815_v27 = vadd.s32 96, %v10795_v8  ;;  %v10233_v28 = vld [vmem:[#allocation6 + $0x120] sm:$0xff]  }
  0x73   : > { %v10231_v24 = vld [vmem:[#allocation6 + $0xd8] sm:$0xff]   ;;  %v10818_v29 = vadd.s32 112, %v10795_v8  ;;  %v10234_v30 = vld [vmem:[#allocation6 + $0x60] sm:$0xff]   ;;  %v272_v31 = vand.u32 15, %v224_v15  ;;  %v286_v33 = vand.u32 15, %v226_v19  ;;  %v300_v35 = vand.u32 15, %v10806_v21 }
  0x74   : > { %8721 = vmatpush3.bf16.msra.mxu0 %v10223_v9  ;;  %v10232_v26 = vld [vmem:[#allocation6 + $0x18] sm:$0xff]   ;;  %v10235_v32 = vld [vmem:[#allocation6 + $0xe0] sm:$0xff]   ;;  %v10237_v36 = vld [vmem:[#allocation6 + $0x128] sm:$0xff]   ;;  %v314_v37 = vand.u32 15, %v10809_v23  ;;  %v328_v39 = vand.u32 15, %v10812_v25  ;;  %vm10823_vm2 = vcmp.eq.s32.totalorder %v258_v17, 0 }
  0x75   : > { %8857 = vmatpush3.bf16.msra.mxu1 %v10224_v10  ;;  %8722 = vmatprep.subr.bf16.mxu0 %v10225_v11  ;;  %v10236_v34 = vld [vmem:[#allocation6 + $0x20] sm:$0xff]   ;;  %v10238_v38 = vld [vmem:[#allocation6 + $0x68] sm:$0xff]   ;;  %v342_v42 = vand.u32 15, %v10815_v27  ;;  %vm10828_vm3 = vcmp.eq.s32.totalorder %v272_v31, 0  ;;  %v356_v45 = vand.u32 15, %v10818_v29  ;;  %v10241_v46 = vld [vmem:[#allocation6 + $0x130] sm:$0xff]  }
  0x76   : > { %8858 = vmatprep.subr.bf16.mxu1 %v10226_v14  ;;  %v10239_v40 = vld [vmem:[#allocation6 + $0xe8] sm:$0xff]   ;;  %v10834_v47 = vadd.s32 128, %v10795_v8  ;;  %v10242_v48 = vld [vmem:[#allocation6 + $0x70] sm:$0xff]   ;;  %v10837_v49 = vadd.s32 144, %v10795_v8  ;;  %vm10839_vm6 = vcmp.eq.s32.totalorder %v286_v33, 0  ;;  %v10844_v52 = vadd.s32 160, %v10795_v8  ;;  %vm798_vm9 = vmpackc.low %vm10823_vm2, %vm10823_vm2 }
  0x77   : > { %v10240_v43 = vld [vmem:[#allocation6 + $0x28] sm:$0xff]   ;;  %v10243_v50 = vld [vmem:[#allocation6 + $0xf0] sm:$0xff]   ;;  %v10847_v54 = vadd.s32 176, %v10795_v8  ;;  %v10245_v55 = vld [vmem:[#allocation6 + $0x138] sm:$0xff]   ;;  %v10850_v56 = vadd.s32 192, %v10795_v8  ;;  %v10853_v58 = vadd.s32 208, %v10795_v8 }
  0x78   : > { %8723 = vmatpush3.bf16.msra.mxu0 %v10227_v16  ;;  %v10244_v53 = vld [vmem:[#allocation6 + $0x30] sm:$0xff]   ;;  %v10246_v57 = vld [vmem:[#allocation6 + $0x78] sm:$0xff]   ;;  %v10856_v60 = vadd.s32 224, %v10795_v8  ;;  %v10859_v62 = vadd.s32 240, %v10795_v8  ;;  %v714_v63 = vld [vmem:[%s10781_s30] sm:$0xff]  ;;  %v370_v2 = vand.u32 15, %v10834_v47 }
  0x79   : > { %8859 = vmatpush3.bf16.msra.mxu1 %v10228_v18  ;;  %8724 = vmatprep.subr.bf16.mxu0 %v10229_v20  ;;  %v10247_v59 = vld [vmem:[#allocation6 + $0xf8] sm:$0xff]   ;;  %v715_v0 = vld [vmem:[%s10781_s30 + $0x8] sm:$0xff]  ;;  %v716_v1 = vld [vmem:[%s10781_s30 + $0x10] sm:$0xff]  ;;  %v384_v3 = vand.u32 15, %v10837_v49  ;;  %v398_v4 = vand.u32 15, %v10844_v52  ;;  %v830_v14 = vsel %vm798_vm9, 65537, %v15374_v12 }
  0x7a   : > { %8860 = vmatprep.subr.bf16.mxu1 %v10230_v22  ;;  %v10248_v61 = vld [vmem:[#allocation6 + $0x38] sm:$0xff]   ;;  %v10868_v6 = vpack.c.bf16 %v715_v0, %v714_v63  ;;  %vm800_vm10 = vmpackc.low %vm10828_vm3, %vm10828_vm3  ;;  %v10882_v15 = vld [vmem:[#allocation6 + $0x140] sm:$0xff]   ;;  %v8535_v22 = vcombine.low %v830_v14, %v10800_v13  ;;  %vm10936_vm14 = vcmp.eq.s32.totalorder %v300_v35, 0  ;;  %vm10973_vm1 = vcmp.eq.s32.totalorder %v314_v37, 0  ;;  %s15192_s18 = scalar_lea.vmem [#allocation9], %s8531_s22  ;;  %s8717_s20 = sshll.u32 %s10624_s16, 12 }
  0x7b   : > { %v717_v5 = vld [vmem:[%s10781_s30 + $0x18] sm:$0xff]  ;;  %v832_v20 = vsel %vm800_vm10, 65537, %v15374_v12  ;;  %v718_v33 = vld [vmem:[%s10781_s30 + $0x20] sm:$0xff]  ;;  %vm802_vm13 = vmpackc.low %vm10839_vm6, %vm10839_vm6  ;;  %vm11057_vm5 = vcmp.eq.s32.totalorder %v328_v39, 0  ;;  %vm11104_vm9 = vcmp.eq.s32.totalorder %v342_v42, 0  ;;  %vm11115_vm10 = vcmp.eq.s32.totalorder %v356_v45, 0  ;;  %s15301_s27 = scalar_lea.hbm %s15368_s3, %s8717_s20 }
  0x7c   : > { %8725 = vmatpush3.bf16.msra.mxu0 %v10231_v24  ;;  %v10876_v11 = vpack.c.bf16 %v717_v5, %v716_v1  ;;  %762 = vst [vmem:[#allocation2 + $0x10] sm:$0xff] %v10868_v6  ;;  %v1472_v18 = vshrl.u32 %v10868_v6, 16  ;;  %v1475_v19 = vshll.u32 %v10868_v6, 16  ;;  %v8536_v31 = vcombine.low %v832_v20, %v10800_v13  ;;  %vm804_vm2 = vmpackc.low %vm10936_vm14, %vm10936_vm14  ;;  %v728_v9 = vld [vmem:[%s10781_s30 + $0x70] sm:$0xff]  ;;  %s8430_s17 = sshll.u32 %s15192_s18, 4  ;;  %s8417_s16 = scalar_lea.sflag [#allocation5], %s10775_s28  ;;  %s15305_s17 = int_to_ptr.vmem [resolvable:$true] %s8430_s17 }
  0x7d   : > { %8861 = vmatpush3.bf16.msra.mxu1 %v10232_v26  ;;  %8726 = vmatprep.subr.bf16.mxu0 %v10233_v28  ;;  %v705_v26 = vld [vmem:[#allocation2] sm:$0x80]  ;;  %v834_v63 = vsel %vm802_vm13, 65537, %v15374_v12  ;;  %vm806_vm4 = vmpackc.low %vm10973_vm1, %vm10973_vm1  ;;  %s10499_s23 = scalar_lea.vmem %s15305_s17, 4096  ;;  %p16228_p0 = scmp.ne.s32.totalorder %s15600_s6, 0 }
  0x7e   : > { %8862 = vmatprep.subr.bf16.mxu1 %v10234_v30  ;;  %763 = vst [vmem:[#allocation2 + $0x18] sm:$0xff] %v10876_v11  ;;  %v1480_v28 = vshrl.u32 %v10876_v11, 16  ;;  %v1483_v30 = vshll.u32 %v10876_v11, 16  ;;  %778 = vst [vmem:[#allocation2 + $0x8] sm:$0xff] %v10876_v11  ;;  %v10907_v41 = vrot.slane %v10876_v11, 7  ;;  %v918_v44 = vshrl.u32 %v8536_v31, 16  ;;  %p10500_p11 = scmp.ne.s32.totalorder %s15305_s17, %s10499_s23 }
  0x7f   : > { %v838_v25 = vsel %vm806_vm4, 65537, %v15374_v12  ;;  %vm810_vm14 = vmpackc.low %vm11104_vm9, %vm11104_vm9  ;;  %s10580_s5 = smov [#allocation9]  }
  0x80   : > { %8727 = vmatpush3.bf16.msra.mxu0 %v10235_v32  ;;  %v1074_v32 = vrot.slane %v10868_v6, 7  ;;  %vm812_vm1 = vmpackc.low %vm11115_vm10, %vm11115_vm10  ;;  %v842_v7 = vsel %vm810_vm14, 65537, %v15374_v12  ;;  %vm11316_vm14 = vcmp.eq.s32.totalorder %v398_v4, 0  ;;  %p10501_p1 = pnand %p10500_p11, %p16228_p0  ;;  %s10503_s10 = sshll.u32 %s10580_s5, 4  ;;  %s10504_s10 = int_to_ptr.vmem [resolvable:$false] %s10503_s10 }
  0x81   : > { %8863 = vmatpush3.bf16.msra.mxu1 %v10236_v34  ;;  %8728 = vmatprep.subr.bf16.mxu0 %v10237_v36  ;;  %v719_v34 = vld [vmem:[%s10781_s30 + $0x28] sm:$0xff]  ;;  %v1474_v36 = vrot.slane %v1472_v18, 7  ;;  %s10505_s11 = scalar_lea.vmem %s10504_s10, 8192  ;;  %p10506_p7 = scmp.lt.s32.totalorder %s15305_s17, %s10504_s10 }
  0x82   : > { %8864 = vmatprep.subr.bf16.mxu1 %v10238_v38  ;;  %v911_v38 = vshrl.u32 %v8535_v22, 16  ;;  %p10502_p3 = pneg %p10501_p1  ;;  %p10507_p9 = scmp.lt.s32.totalorder %s10505_s11, %s10499_s23 }
  0x84   : > { %8729 = vmatpush3.bf16.msra.mxu0 %v10239_v40  ;;  %v914_v40 = vshll.u32 %v8535_v22, 16  ;;  %p10508_p12 = por %p10507_p9, %p10506_p7 }
  0x85   : > { %8865 = vmatpush3.bf16.msra.mxu1 %v10240_v43  ;;  %8730 = vmatprep.subr.bf16.mxu0 %v10241_v46  ;;  %v10912_v43 = vrot.slane %v1480_v28, 7  ;;  %v921_v46 = vshll.u32 %v8536_v31, 16  ;;  %v1690_v31 = vld [vmem:[#allocation2 + $0x8] sm:$0x80] }
  0x86   : > { %8866 = vmatprep.subr.bf16.mxu1 %v10242_v48  ;;  %v706_v48 = vsel %vm10893_vm11, 0, %v705_v26  ;;  %vm808_vm11 = vmpackc.low %vm11057_vm5, %vm11057_vm5  ;;  %vm11258_vm5 = vcmp.eq.s32.totalorder %v384_v3, 0  ;;  %p10509_p2 = pnand %p10508_p12, %p10502_p3 }
  0x87   : > { %707 = vst [vmem:[#allocation2] sm:$0x80] %v706_v48  ;;  %v1485_v51 = vor.u32 %v1483_v30, %v10912_v43  ;;  %v1694_v48 = vrot.slane %v1690_v31, 7  ;;  %v10254_v31 = vld [vmem:[#allocation6 + $0x80] sm:$0xff]  }
  0x88   : > { %8731 = vmatpush3.bf16.msra.mxu0 %v10243_v50  ;;  %v1477_v50 = vor.u32 %v1475_v19, %v1474_v36 }
  0x89   : > { %8867 = vmatpush3.bf16.msra.mxu1 %v10244_v53  ;;  %8732 = vmatprep.subr.bf16.mxu0 %v10245_v55  ;;  %v913_v53 = vrot.slane %v911_v38, 7  ;;  %v10918_v55 = vsel %vm708_vm8, %v1074_v32, %v10907_v41  ;;  %v1486_v18 = vsel %vm15408_vm7, %v1474_v36, %v1485_v51  ;;  %v2773_v19 = vshrl.u32 %v1485_v51, 16 }
  0x8a   : > { %8868 = vmatprep.subr.bf16.mxu1 %v10246_v57  ;;  %v1075_v57 = vsel %vm708_vm8, %v10907_v41, %v1074_v32  ;;  %v1863_v0 = vshrl.u32 %v1477_v50, 16  ;;  %v1865_v1 = vshll.u32 %v1477_v50, 16  ;;  %v1478_v5 = vsel %vm15408_vm7, %v10912_v43, %v1477_v50 }
  0x8b   : > { %v10930_v14 = vor.u32 %v914_v40, %v913_v53  ;;  %v2775_v20 = vshll.u32 %v1485_v51, 16  ;;  %v2780_v22 = vshll.u32 %v1478_v5, 16  ;;  %v1870_v26 = vshll.u32 %v1486_v18, 16 }
  0x8c   : > { %8733 = vmatpush3.bf16.msra.mxu0 %v10247_v59  ;;  %v10923_v59 = vrot.slane %v918_v44, 7  ;;  %v1867_v24 = vrot.slane %v1865_v1, 1  ;;  %v1894_v28 = vshrl.u32 %v1486_v18, 16  ;;  %v2804_v30 = vshrl.u32 %v1478_v5, 16 }
  0x8d   : > { %8869 = vmatpush3.bf16.msra.mxu1 %v10248_v61  ;;  %9534 = vmatprep.subr.bf16.mxu0 %v10882_v15  ;;  %v10925_v61 = vpack.c.bf16 %v719_v34, %v718_v33  ;;  %15615 = vst [vmem:[#allocation13_spill] sm:$0xff] %v10930_v14  ;;  %v2777_v34 = vrot.slane %v2775_v20, 1  ;;  %v2782_v38 = vrot.slane %v2780_v22, 1  ;;  %vm1037_vm15 = vcmp.ne.s16.totalorder %v10930_v14, 0 }
  0x8e   : > { %v923_v36 = vor.u32 %v921_v46, %v10923_v59  ;;  %v1868_v40 = vor.u32 %v1867_v24, %v1863_v0  ;;  %v1872_v44 = vrot.slane %v1870_v26, 1  ;;  %v796_v21 = vld [vmem:[#allocation2] sm:$0x80]  ;;  %v1695_v46 = vsel %vm708_vm8, %v1694_v48, %v1074_v32  ;;  %9582 = vmatprep.subr.bf16.mxu1 %v10254_v31 }
  0x8f   : > { %764 = vst [vmem:[#allocation2 + $0x20] sm:$0xff] %v10925_v61  ;;  %v1488_v50 = vshrl.u32 %v10925_v61, 16  ;;  %v10943_v51 = vor.u32 %v2777_v34, %v2773_v19  ;;  %v1491_v35 = vshll.u32 %v10925_v61, 16  ;;  %v2806_v5 = vor.u32 %v2804_v30, %v2782_v38 }
  0x90   : > { %v10946_v1 = vsel %vm15408_vm7, %v913_v53, %v923_v36  ;;  %v1873_v18 = vsel %vm1250_vm12, %v1868_v40, %v1872_v44  ;;  %v1071_v0 = vrot.slane %v796_v21, 7  ;;  %v1701_v53 = vsel %vm1037_vm15, %v10868_v6, %v1695_v46 }
  0x91   : > { %15618 = vst [vmem:[#allocation14_spill] sm:$0xff] %v10946_v1  ;;  %vm1038_vm0 = vcmp.ne.s16.totalorder %v10946_v1, 0  ;;  %2470 = vmatprep.mubr.bf16.mxu0 %v1873_v18  ;;  %v2783_v20 = vsel %vm1250_vm12, %v10943_v51, %v2782_v38  ;;  %v1851_v32 = vshrl.u32 %v1701_v53, 16  ;;  %v1853_v24 = vshll.u32 %v1701_v53, 16 }
  0x92   : > { %v1702_v19 = vsel %vm1038_vm0, %v10876_v11, %v10918_v55  ;;  %v1122_v22 = vsel %vm1038_vm0, %v10868_v6, %v1075_v57  ;;  %3256 = vmatprep.mubr.bf16.mxu1 %v2783_v20  ;;  %v1073_v30 = vsel %vm708_vm8, %v1071_v0, %v10907_v41  ;;  %v10969_v36 = vrot.slane %v1488_v50, 7  ;;  %v10253_v6 = vld [vmem:[#allocation6 + $0x160] sm:$0xff]  }
  0x93   : > { %v1858_v26 = vshll.u32 %v1702_v19, 16  ;;  %v1121_v34 = vsel %vm1037_vm15, %v10876_v11, %v1073_v30  ;;  %v2768_v38 = vshll.u32 %v1122_v22, 16  ;;  %v1896_v40 = vor.u32 %v1894_v28, %v1872_v44  ;;  %v720_v28 = vld [vmem:[%s10781_s30 + $0x30] sm:$0xff] }
  0x94   : > { %v1855_v57 = vrot.slane %v1853_v24, 1  ;;  %v2761_v21 = vshrl.u32 %v1121_v34, 16  ;;  %v2763_v18 = vshll.u32 %v1121_v34, 16  ;;  %v1493_v0 = vor.u32 %v1491_v35, %v10969_v36  ;;  %v721_v24 = vld [vmem:[%s10781_s30 + $0x38] sm:$0xff] }
  0x95   : > { %v1860_v48 = vrot.slane %v1858_v26, 1  ;;  %v2770_v46 = vrot.slane %v2768_v38, 1  ;;  %v2807_v20 = vsel %vm1250_vm12, %v2806_v5, %v1872_v44  ;;  %v8537_v50 = vcombine.low %v834_v63, %v10800_v13  ;;  %v10250_v63 = vld [vmem:[#allocation6 + $0x148] sm:$0xff]  }
  0x96   : > { %v1856_v23 = vor.u32 %v1855_v57, %v1851_v32  ;;  %v2765_v37 = vrot.slane %v2763_v18, 1  ;;  %v1078_v53 = vrot.slane %v10925_v61, 7  ;;  %v1886_v30 = vshrl.u32 %v1702_v19, 16  ;;  %v722_v19 = vld [vmem:[%s10781_s30 + $0x40] sm:$0xff]  ;;  %v723_v57 = vld [vmem:[%s10781_s30 + $0x48] sm:$0xff] }
  0x97   : > { %v1494_v26 = vsel %vm15408_vm7, %v10912_v43, %v1493_v0  ;;  %v926_v34 = vshrl.u32 %v8537_v50, 16  ;;  %v929_v38 = vshll.u32 %v8537_v50, 16  ;;  %v2796_v17 = vshrl.u32 %v1122_v22, 16  ;;  %v10256_v50 = vld [vmem:[#allocation6 + $0x88] sm:$0xff]  }
  0x98   : > { %v1861_v44 = vsel %vm1250_vm12, %v1856_v23, %v1860_v48  ;;  %v2766_v35 = vor.u32 %v2765_v37, %v2761_v21  ;;  %v1898_v5 = vshll.u32 %v1494_v26, 16  ;;  %v10991_v32 = vsel %vm708_vm8, %v10907_v41, %v1078_v53  ;;  %v10251_v37 = vld [vmem:[#allocation6 + $0x150] sm:$0xff]  }
  0x99   : > { %2471 = vmatmul.mubr.bf16.vlgmr.msra.gmra.mrb[0].mxu0 %v1861_v44  ;;  %v928_v43 = vrot.slane %v926_v34, 7  ;;  %v10995_v18 = vor.u32 %v1886_v30, %v1860_v48  ;;  %v10997_v22 = vor.u32 %v2796_v17, %v2770_v46  ;;  %v10999_v0 = vpack.c.bf16 %v721_v24, %v720_v28 }
  0x9a   : > { %v2771_v16 = vsel %vm1250_vm12, %v2766_v35, %v2770_v46  ;;  %9535 = vmatpush3.bf16.msra.mxu0 %v10882_v15  ;;  %v11003_v21 = vrot.slane %v1898_v5, 1  ;;  %v1918_v23 = vshrl.u32 %v1494_v26, 16  ;;  %v836_v48 = vsel %vm804_vm2, 65537, %v15374_v12 }
  0x9b   : > { %3257 = vmatmul.mubr.bf16.vlgmr.msra.gmra.mrb[0].mxu1 %v2771_v16  ;;  %v931_v17 = vor.u32 %v929_v38, %v928_v43  ;;  %765 = vst [vmem:[#allocation2 + $0x28] sm:$0xff] %v10999_v0  ;;  %v1496_v28 = vshrl.u32 %v10999_v0, 16  ;;  %v1499_v46 = vshll.u32 %v10999_v0, 16  ;;  %v8538_v15 = vcombine.low %v836_v48, %v10800_v13  ;;  %9536 = vmatprep.subr.bf16.mxu0 %v10250_v63 }
  0x9c   : > { %v11017_v30 = vsel %vm1250_vm12, %v1896_v40, %v11003_v21  ;;  %3264 = vmatprep.mubr.bf16.mxu1 %v2807_v20  ;;  %v11020_v33 = vor.u32 %v1918_v23, %v11003_v21  ;;  %v1080_v16 = vrot.slane %v10999_v0, 7  ;;  %v11023_v24 = vpack.c.bf16 %v723_v57, %v722_v19  ;;  %9583 = vmatpush3.bf16.msra.mxu1 %v10254_v31  ;;  %v10258_v20 = vld [vmem:[#allocation6 + $0x90] sm:$0xff]   ;;  %v10252_v57 = vld [vmem:[#allocation6 + $0x158] sm:$0xff]  }
  0x9d   : > { %2478 = vmatprep.mubr.bf16.mxu0 %v11017_v30  ;;  %v11028_v26 = vsel %vm15408_vm7, %v10923_v59, %v931_v17  ;;  %v11030_v34 = vrot.slane %v1496_v28, 7  ;;  %v934_v38 = vshrl.u32 %v8538_v15, 16  ;;  %v937_v40 = vshll.u32 %v8538_v15, 16  ;;  %9584 = vmatprep.subr.bf16.mxu1 %v10256_v50  ;;  %v10260_v19 = vld [vmem:[#allocation6 + $0x178] sm:$0xff]  }
  0x9e   : > { %15621 = vst [vmem:[#allocation15_spill] sm:$0xff] %v11028_v26  ;;  %vm15469_vm3 = vcmp.ne.s16.totalorder %v11028_v26, 0  ;;  %v11036_v44 = vsel %vm708_vm8, %v1078_v53, %v1080_v16  ;;  %9537 = vmatpush3.bf16.msra.mxu0 %v10250_v63  ;;  %766 = vst [vmem:[#allocation2 + $0x30] sm:$0xff] %v11023_v24  ;;  %v1504_v31 = vshrl.u32 %v11023_v24, 16  ;;  %v1507_v59 = vshll.u32 %v11023_v24, 16 }
  0x9f   : > { %v1703_v35 = vsel %vm15469_vm3, %v10925_v61, %v10991_v32  ;;  %v1123_v53 = vsel %vm15469_vm3, %v10876_v11, %v10918_v55  ;;  %v1501_v63 = vor.u32 %v1499_v46, %v11030_v34  ;;  %v11053_v5 = vrot.slane %v934_v38, 7  ;;  %9538 = vmatprep.subr.bf16.mxu0 %v10251_v37 }
  0xa0   : > { %v1890_v23 = vshll.u32 %v1703_v35, 16  ;;  %v2800_v48 = vshll.u32 %v1123_v53, 16  ;;  %v1910_v17 = vshrl.u32 %v1703_v35, 16  ;;  %v2816_v28 = vshrl.u32 %v1123_v53, 16  ;;  %9585 = vmatpush3.bf16.msra.mxu1 %v10256_v50 }
  0xa1   : > { %v1502_v11 = vsel %vm15408_vm7, %v10969_v36, %v1501_v63  ;;  %v939_v55 = vor.u32 %v937_v40, %v11053_v5  ;;  %v11064_v46 = vrot.slane %v1504_v31, 7  ;;  %9586 = vmatprep.subr.bf16.mxu1 %v10258_v20  ;;  %v8539_v31 = vcombine.low %v838_v25, %v10800_v13  ;;  %v11095_v25 = vld [vmem:[#allocation6 + $0xa0] sm:$0xff]  }
  0xa2   : > { %v1892_v39 = vrot.slane %v1890_v23, 1  ;;  %v2802_v15 = vrot.slane %v2800_v48, 1  ;;  %v1922_v50 = vshll.u32 %v1502_v11, 16  ;;  %v1942_v38 = vshrl.u32 %v1502_v11, 16  ;;  %9539 = vmatpush3.bf16.msra.mxu0 %v10251_v37  ;;  %v724_v37 = vld [vmem:[%s10781_s30 + $0x50] sm:$0xff]  ;;  %v10259_v48 = vld [vmem:[#allocation6 + $0x98] sm:$0xff]  }
  0xa3   : > { %v11073_v36 = vsel %vm15408_vm7, %v928_v43, %v939_v55  ;;  %v1509_v40 = vor.u32 %v1507_v59, %v11064_v46  ;;  %v1082_v35 = vrot.slane %v11023_v24, 7  ;;  %9540 = vmatprep.subr.bf16.mxu0 %v10252_v57  ;;  %v725_v43 = vld [vmem:[%s10781_s30 + $0x58] sm:$0xff]  ;;  %v11093_v55 = vld [vmem:[#allocation6 + $0x168] sm:$0xff]   ;;  %v945_v10 = vshll.u32 %v8539_v31, 16 }
  0xa4   : > { %15624 = vst [vmem:[#allocation16_spill] sm:$0xff] %v11073_v36  ;;  %v1893_v53 = vsel %vm1250_vm12, %v10995_v18, %v1892_v39  ;;  %v2803_v63 = vsel %vm1250_vm12, %v10997_v22, %v2802_v15  ;;  %v1924_v23 = vrot.slane %v1922_v50, 1  ;;  %vm15446_vm6 = vcmp.ne.s16.totalorder %v11073_v36, 0  ;;  %9587 = vmatpush3.bf16.msra.mxu1 %v10258_v20 }
  0xa5   : > { %2479 = vmatmul.mubr.bf16.gmra.mrb[4].mxu0 %v1893_v53  ;;  %3265 = vmatmul.mubr.bf16.gmra.mrb[4].mxu1 %v2803_v63  ;;  %v1704_v59 = vsel %vm15446_vm6, %v10999_v0, %v11036_v44  ;;  %v1912_v11 = vor.u32 %v1910_v17, %v1892_v39  ;;  %v1124_v18 = vsel %vm15446_vm6, %v10925_v61, %v10991_v32  ;;  %v942_v22 = vshrl.u32 %v8539_v31, 16 }
  0xa6   : > { %v11099_v20 = vsel %vm1250_vm12, %v11020_v33, %v1924_v23  ;;  %3272 = vmatprep.mubr.bf16.mxu1 %v11017_v30  ;;  %v1914_v50 = vshll.u32 %v1704_v59, 16  ;;  %v2818_v53 = vor.u32 %v2816_v28, %v2802_v15  ;;  %v2820_v63 = vshll.u32 %v1124_v18, 16  ;;  %9541 = vmatpush3.bf16.msra.mxu0 %v10252_v57 }
  0xa7   : > { %2486 = vmatprep.mubr.bf16.mxu0 %v11099_v20  ;;  %v1510_v61 = vsel %vm15408_vm7, %v11030_v34, %v1509_v40  ;;  %v1944_v39 = vor.u32 %v1942_v38, %v1924_v23  ;;  %v11111_v33 = vrot.slane %v942_v22, 7  ;;  %9542 = vmatprep.subr.bf16.mxu0 %v10253_v6  ;;  %v11124_v34 = vsel %vm708_vm8, %v1080_v16, %v1082_v35  ;;  %v726_v16 = vld [vmem:[%s10781_s30 + $0x60] sm:$0xff]  ;;  %v727_v22 = vld [vmem:[%s10781_s30 + $0x68] sm:$0xff] }
  0xa8   : > { %v1916_v27 = vrot.slane %v1914_v50, 1  ;;  %v2822_v42 = vrot.slane %v2820_v63, 1  ;;  %v1946_v57 = vshll.u32 %v1510_v61, 16  ;;  %9588 = vmatprep.subr.bf16.mxu1 %v10259_v48  ;;  %v1934_v45 = vshrl.u32 %v1704_v59, 16  ;;  %v10257_v50 = vld [vmem:[#allocation6 + $0x170] sm:$0xff]   ;;  %v10262_v59 = vld [vmem:[#allocation6 + $0xa8] sm:$0xff]  }
  0xa9   : > { %v947_v29 = vor.u32 %v945_v10, %v11111_v33  ;;  %v2832_v28 = vshrl.u32 %v1124_v18, 16  ;;  %v11127_v15 = vpack.c.bf16 %v725_v43, %v724_v37  ;;  %9589 = vmatpush3.bf16.msra.mxu1 %v10259_v48  ;;  %v1966_v23 = vshrl.u32 %v1510_v61, 16 }
  0xaa   : > { %v1917_v38 = vsel %vm1250_vm12, %v1912_v11, %v1916_v27  ;;  %v2823_v40 = vsel %vm1250_vm12, %v2818_v53, %v2822_v42  ;;  %v1948_v31 = vrot.slane %v1946_v57, 1  ;;  %9543 = vmatpush3.bf16.msra.mxu0 %v10253_v6  ;;  %9590 = vmatprep.subr.bf16.mxu1 %v11095_v25  ;;  %v1936_v37 = vor.u32 %v1934_v45, %v1916_v27 }
  0xab   : > { %v11139_v10 = vsel %vm15408_vm7, %v11053_v5, %v947_v29  ;;  %v2834_v43 = vor.u32 %v2832_v28, %v2822_v42  ;;  %767 = vst [vmem:[#allocation2 + $0x38] sm:$0xff] %v11127_v15  ;;  %v1512_v48 = vshrl.u32 %v11127_v15, 16  ;;  %9544 = vmatprep.subr.bf16.mxu0 %v11093_v55  ;;  %v1515_v6 = vshll.u32 %v11127_v15, 16 }
  0xac   : > { %15629 = vst [vmem:[#allocation17_spill] sm:$0xff] %v11139_v10  ;;  %v11145_v11 = vsel %vm1250_vm12, %v1944_v39, %v1948_v31  ;;  %vm15433_vm13 = vcmp.ne.s16.totalorder %v11139_v10, 0  ;;  %v1968_v18 = vor.u32 %v1966_v23, %v1948_v31  ;;  %v840_v61 = vsel %vm808_vm11, 65537, %v15374_v12 }
  0xad   : > { %15630 = vst [vmem:[#allocation18_spill] sm:$0xff] %v11145_v11  ;;  %2487 = vmatmul.mubr.bf16.gmra.mrb[8].mxu0 %v1917_v38  ;;  %3273 = vmatmul.mubr.bf16.gmra.mrb[8].mxu1 %v2823_v40  ;;  %v1705_v5 = vsel %vm15433_vm13, %v11023_v24, %v11124_v34  ;;  %v1125_v53 = vsel %vm15433_vm13, %v10999_v0, %v11036_v44  ;;  %v11157_v63 = vrot.slane %v1512_v48, 7  ;;  %v1084_v0 = vrot.slane %v11127_v15, 7  ;;  %v10263_v38 = vld [vmem:[#allocation6 + $0xb0] sm:$0xff]  }
  0xae   : > { %2494 = vmatprep.mubr.bf16.mxu0 %v11145_v11  ;;  %3280 = vmatprep.mubr.bf16.mxu1 %v11099_v20  ;;  %v1938_v39 = vshll.u32 %v1705_v5, 16  ;;  %v2836_v27 = vshll.u32 %v1125_v53, 16  ;;  %v8540_v42 = vcombine.low %v840_v61, %v10800_v13  ;;  %v1958_v29 = vshrl.u32 %v1705_v5, 16  ;;  %v729_v61 = vld [vmem:[%s10781_s30 + $0x78] sm:$0xff] }
  0xaf   : > { %v1517_v57 = vor.u32 %v1515_v6, %v11157_v63  ;;  %v2848_v45 = vshrl.u32 %v1125_v53, 16  ;;  %v11170_v28 = vpack.c.bf16 %v727_v22, %v726_v16  ;;  %9545 = vmatpush3.bf16.msra.mxu0 %v11093_v55  ;;  %9591 = vmatpush3.bf16.msra.mxu1 %v11095_v25  ;;  %v11181_v16 = vsel %vm708_vm8, %v1082_v35, %v1084_v0 }
  0xb0   : > { %v1940_v40 = vrot.slane %v1938_v39, 1  ;;  %v2838_v31 = vrot.slane %v2836_v27, 1  ;;  %v950_v23 = vshrl.u32 %v8540_v42, 16  ;;  %v953_v48 = vshll.u32 %v8540_v42, 16  ;;  %9546 = vmatprep.subr.bf16.mxu0 %v10257_v50  ;;  %9592 = vmatprep.subr.bf16.mxu1 %v10262_v59 }
  0xb1   : > { %v1518_v6 = vsel %vm15408_vm7, %v11064_v46, %v1517_v57  ;;  %768 = vst [vmem:[#allocation2 + $0x40] sm:$0xff] %v11170_v28  ;;  %v1520_v55 = vshrl.u32 %v11170_v28, 16  ;;  %v1523_v25 = vshll.u32 %v11170_v28, 16  ;;  %vm11210_vm2 = vcmp.eq.s32.totalorder %v370_v2, 0 }
  0xb2   : > { %v1941_v22 = vsel %vm1250_vm12, %v1936_v37, %v1940_v40  ;;  %v2839_v5 = vsel %vm1250_vm12, %v2834_v43, %v2838_v31  ;;  %v1970_v46 = vshll.u32 %v1518_v6, 16  ;;  %v952_v53 = vrot.slane %v950_v23, 7  ;;  %v10265_v43 = vld [vmem:[#allocation6 + $0x1c0] sm:$0xff]   ;;  %vm814_vm10 = vmpackc.low %vm11210_vm2, %vm11210_vm2 }
  0xb3   : > { %v1960_v35 = vor.u32 %v1958_v29, %v1940_v40  ;;  %v2850_v39 = vor.u32 %v2848_v45, %v2838_v31  ;;  %v11194_v27 = vrot.slane %v1520_v55, 7  ;;  %v1990_v42 = vshrl.u32 %v1518_v6, 16  ;;  %9547 = vmatpush3.bf16.msra.mxu0 %v10257_v50  ;;  %9593 = vmatpush3.bf16.msra.mxu1 %v10262_v59  ;;  %v10264_v40 = vld [vmem:[#allocation6 + $0xb8] sm:$0xff]  }
  0xb4   : > { %v1972_v17 = vrot.slane %v1970_v46, 1  ;;  %v955_v57 = vor.u32 %v953_v48, %v952_v53  ;;  %v1086_v37 = vrot.slane %v11170_v28, 7  ;;  %9548 = vmatprep.subr.bf16.mxu0 %v10260_v19  ;;  %9594 = vmatprep.subr.bf16.mxu1 %v10263_v38  ;;  %v8541_v29 = vcombine.low %v842_v7, %v10800_v13 }
  0xb5   : > { %2495 = vmatmul.mubr.bf16.gmra.mrb[12].mxu0 %v1941_v22  ;;  %3281 = vmatmul.mubr.bf16.gmra.mrb[12].mxu1 %v2839_v5  ;;  %v1525_v23 = vor.u32 %v1523_v25, %v11194_v27  ;;  %v11200_v45 = vpack.c.bf16 %v729_v61, %v728_v9  ;;  %v844_v50 = vsel %vm812_vm1, 65537, %v15374_v12  ;;  %v846_v59 = vsel %vm814_vm10, 65537, %v15374_v12  ;;  %vm816_vm1 = vmpackc.low %vm11258_vm5, %vm11258_vm5 }
  0xb6   : > { %v11215_v31 = vsel %vm1250_vm12, %v1968_v18, %v1972_v17  ;;  %3288 = vmatprep.mubr.bf16.mxu1 %v11145_v11  ;;  %v11220_v7 = vsel %vm15408_vm7, %v11111_v33, %v955_v57  ;;  %v1992_v9 = vor.u32 %v1990_v42, %v1972_v17  ;;  %v11225_v30 = vsel %vm708_vm8, %v1084_v0, %v1086_v37  ;;  %vm818_vm10 = vmpackc.low %vm11316_vm14, %vm11316_vm14 }
  0xb7   : > { %15633 = vst [vmem:[#allocation19_spill] sm:$0xff] %v11215_v31  ;;  %15634 = vst [vmem:[#allocation20_spill] sm:$0xff] %v11220_v7  ;;  %2502 = vmatprep.mubr.bf16.mxu0 %v11215_v31  ;;  %vm15432_vm4 = vcmp.ne.s16.totalorder %v11220_v7, 0  ;;  %v1526_v47 = vsel %vm15408_vm7, %v11157_v63, %v1525_v23  ;;  %v958_v2 = vshrl.u32 %v8541_v29, 16  ;;  %v961_v18 = vshll.u32 %v8541_v29, 16  ;;  %9549 = vmatpush3.bf16.msra.mxu0 %v10260_v19  ;;  %v10287_v7 = vld [vmem:[#allocation6 + $0x1b8] sm:$0xff]  }
  0xb8   : > { %15635 = vst [vmem:[#allocation21_spill] sm:$0xff] %v11225_v30  ;;  %769 = vst [vmem:[#allocation2 + $0x48] sm:$0xff] %v11200_v45  ;;  %v1706_v33 = vsel %vm15432_vm4, %v11127_v15, %v11181_v16  ;;  %v1126_v0 = vsel %vm15432_vm4, %v11023_v24, %v11124_v34  ;;  %v1994_v48 = vshll.u32 %v1526_v47, 16  ;;  %v1528_v61 = vshrl.u32 %v11200_v45, 16  ;;  %9595 = vmatpush3.bf16.msra.mxu1 %v10263_v38 }
  0xb9   : > { %8990 = vmatprep.subr.bf16.mxu0 %v10265_v43  ;;  %v1962_v63 = vshll.u32 %v1706_v33, 16  ;;  %v2852_v6 = vshll.u32 %v1126_v0, 16  ;;  %v960_v55 = vrot.slane %v958_v2, 7  ;;  %v1982_v25 = vshrl.u32 %v1706_v33, 16  ;;  %9596 = vmatprep.subr.bf16.mxu1 %v10264_v40 }
  0xba   : > { %v1996_v19 = vrot.slane %v1994_v48, 1  ;;  %v2864_v22 = vshrl.u32 %v1126_v0, 16  ;;  %v11241_v5 = vrot.slane %v1528_v61, 7  ;;  %v1531_v46 = vshll.u32 %v11200_v45, 16 }
  0xbb   : > { %v1964_v42 = vrot.slane %v1962_v63, 1  ;;  %v2854_v17 = vrot.slane %v2852_v6, 1  ;;  %v963_v24 = vor.u32 %v961_v18, %v960_v55  ;;  %v2014_v57 = vshrl.u32 %v1526_v47, 16  ;;  %v730_v18 = vld [vmem:[%s10781_s30 + $0x80] sm:$0xff] }
  0xbc   : > { %v11245_v23 = vsel %vm1250_vm12, %v1992_v9, %v1996_v19  ;;  %v1533_v38 = vor.u32 %v1531_v46, %v11241_v5  ;;  %v8542_v43 = vcombine.low %v844_v50, %v10800_v13  ;;  %v1088_v29 = vrot.slane %v11200_v45, 7  ;;  %9597 = vmatpush3.bf16.msra.mxu1 %v10264_v40  ;;  %v732_v40 = vld [vmem:[%s10781_s30 + $0x90] sm:$0xff] }
  0xbd   : > { %15636 = vst [vmem:[#allocation22_spill] sm:$0xff] %v11245_v23  ;;  %v1965_v2 = vsel %vm1250_vm12, %v1960_v35, %v1964_v42  ;;  %v2855_v33 = vsel %vm1250_vm12, %v2850_v39, %v2854_v17  ;;  %v11253_v0 = vsel %vm15408_vm7, %v952_v53, %v963_v24  ;;  %v1984_v47 = vor.u32 %v1982_v25, %v1964_v42  ;;  %v731_v53 = vld [vmem:[%s10781_s30 + $0x88] sm:$0xff] }
  0xbe   : > { %15637 = vst [vmem:[#allocation23_spill] sm:$0xff] %v11253_v0  ;;  %2503 = vmatmul.mubr.bf16.gmra.mrb[16].mxu0 %v1965_v2  ;;  %3289 = vmatmul.mubr.bf16.gmra.mrb[16].mxu1 %v2855_v33  ;;  %vm15425_vm9 = vcmp.ne.s16.totalorder %v11253_v0, 0  ;;  %v2866_v50 = vor.u32 %v2864_v22, %v2854_v17  ;;  %v1534_v35 = vsel %vm15408_vm7, %v11194_v27, %v1533_v38  ;;  %v966_v61 = vshrl.u32 %v8542_v43, 16 }
  0xbf   : > { %v2016_v39 = vor.u32 %v2014_v57, %v1996_v19  ;;  %2510 = vmatprep.mubr.bf16.mxu0 %v11245_v23  ;;  %3296 = vmatprep.mubr.bf16.mxu1 %v11215_v31  ;;  %v1707_v49 = vsel %vm15425_vm9, %v11170_v28, %v11225_v30  ;;  %v1127_v3 = vsel %vm15425_vm9, %v11127_v15, %v11181_v16  ;;  %v2018_v48 = vshll.u32 %v1534_v35, 16  ;;  %v733_v19 = vld [vmem:[%s10781_s30 + $0x98] sm:$0xff] }
  0xc0   : > { %v1986_v27 = vshll.u32 %v1707_v49, 16  ;;  %v2868_v63 = vshll.u32 %v1127_v3, 16  ;;  %v969_v6 = vshll.u32 %v8542_v43, 16  ;;  %v11282_v25 = vsel %vm708_vm8, %v1086_v37, %v1088_v29 }
  0xc1   : > { %15640 = vst [vmem:[#allocation24_spill] sm:$0xff] %v11282_v25  ;;  %v2020_v22 = vrot.slane %v2018_v48, 1  ;;  %v11288_v46 = vrot.slane %v966_v61, 7  ;;  %v2006_v15 = vshrl.u32 %v1707_v49, 16  ;;  %v2880_v42 = vshrl.u32 %v1127_v3, 16  ;;  %v734_v61 = vld [vmem:[%s10781_s30 + $0xa0] sm:$0xff] }
  0xc2   : > { %v1988_v17 = vrot.slane %v1986_v27, 1  ;;  %v2870_v24 = vrot.slane %v2868_v63, 1  ;;  %v11290_v57 = vpack.c.bf16 %v731_v53, %v730_v18  ;;  %v2038_v38 = vshrl.u32 %v1534_v35, 16 }
  0xc3   : > { %v11293_v43 = vsel %vm1250_vm12, %v2016_v39, %v2020_v22  ;;  %v971_v37 = vor.u32 %v969_v6, %v11288_v46  ;;  %v11297_v2 = vpack.c.bf16 %v733_v19, %v732_v40 }
  0xc4   : > { %15641 = vst [vmem:[#allocation25_spill] sm:$0xff] %v11293_v43  ;;  %v1989_v33 = vsel %vm1250_vm12, %v1984_v47, %v1988_v17  ;;  %v2871_v49 = vsel %vm1250_vm12, %v2866_v50, %v2870_v24  ;;  %v2008_v3 = vor.u32 %v2006_v15, %v1988_v17  ;;  %v2882_v48 = vor.u32 %v2880_v42, %v2870_v24 }
  0xc5   : > { %770 = vst [vmem:[#allocation2 + $0x50] sm:$0xff] %v11290_v57  ;;  %v11303_v18 = vsel %vm15408_vm7, %v960_v55, %v971_v37  ;;  %v1536_v35 = vshrl.u32 %v11290_v57, 16  ;;  %v1539_v39 = vshll.u32 %v11290_v57, 16  ;;  %v2040_v53 = vor.u32 %v2038_v38, %v2020_v22  ;;  %771 = vst [vmem:[#allocation2 + $0x58] sm:$0xff] %v11297_v2  ;;  %v735_v55 = vld [vmem:[%s10781_s30 + $0xa8] sm:$0xff] }
  0xc6   : > { %15642 = vst [vmem:[#allocation26_spill] sm:$0xff] %v11303_v18  ;;  %2511 = vmatmul.mubr.bf16.gmra.mrb[20].mxu0 %v1989_v33  ;;  %3297 = vmatmul.mubr.bf16.gmra.mrb[20].mxu1 %v2871_v49  ;;  %vm15407_vm11 = vcmp.ne.s16.totalorder %v11303_v18, 0  ;;  %v8543_v47 = vcombine.low %v846_v59, %v10800_v13  ;;  %v1090_v50 = vrot.slane %v11290_v57, 7  ;;  %v1544_v40 = vshrl.u32 %v11297_v2, 16 }
  0xc7   : > { %2518 = vmatprep.mubr.bf16.mxu0 %v11293_v43  ;;  %3304 = vmatprep.mubr.bf16.mxu1 %v11245_v23  ;;  %v1708_v63 = vsel %vm15407_vm11, %v11200_v45, %v11282_v25  ;;  %v1128_v6 = vsel %vm15407_vm11, %v11170_v28, %v11225_v30  ;;  %v1538_v19 = vrot.slane %v1536_v35, 7  ;;  %v1547_v52 = vshll.u32 %v11297_v2, 16 }
  0xc8   : > { %v2010_v4 = vshll.u32 %v1708_v63, 16  ;;  %v2884_v22 = vshll.u32 %v1128_v6, 16  ;;  %v974_v15 = vshrl.u32 %v8543_v47, 16  ;;  %v977_v42 = vshll.u32 %v8543_v47, 16 }
  0xc9   : > { %v15645_v17 = vand.u32 15, %v10847_v54  ;;  %v1541_v38 = vor.u32 %v1539_v39, %v1538_v19  ;;  %v11343_v28 = vsel %vm708_vm8, %v1088_v29, %v1090_v50  ;;  %v2030_v37 = vshrl.u32 %v1708_v63, 16 }
  0xca   : > { %15648 = vst [vmem:[#allocation27_spill] sm:$0xff] %v11343_v28  ;;  %v2896_v59 = vshrl.u32 %v1128_v6, 16  ;;  %v2012_v33 = vrot.slane %v2010_v4, 1  ;;  %v2886_v49 = vrot.slane %v2884_v22, 1  ;;  %v11345_v35 = vrot.slane %v974_v15, 7 }
  0xcb   : > { %vm11336_vm2 = vcmp.eq.s32.totalorder %v15645_v17, 0  ;;  %v1546_v9 = vrot.slane %v1544_v40, 7  ;;  %v1542_v54 = vsel %vm15408_vm7, %v11241_v5, %v1541_v38  ;;  %v848_v47 = vsel %vm816_vm1, 65537, %v15374_v12 }
  0xcc   : > { %v1092_v17 = vrot.slane %v11297_v2, 7  ;;  %v11351_v39 = vpack.c.bf16 %v735_v55, %v734_v61  ;;  %v2013_v18 = vsel %vm1250_vm12, %v2008_v3, %v2012_v33  ;;  %v2887_v29 = vsel %vm1250_vm12, %v2882_v48, %v2886_v49  ;;  %vm820_vm14 = vmpackc.low %vm11336_vm2, %vm11336_vm2 }
  0xcd   : > { %v2042_v63 = vshll.u32 %v1542_v54, 16  ;;  %v979_v6 = vor.u32 %v977_v42, %v11345_v35  ;;  %v2032_v4 = vor.u32 %v2030_v37, %v2012_v33  ;;  %v2898_v22 = vor.u32 %v2896_v59, %v2886_v49 }
  0xce   : > { %v1549_v15 = vor.u32 %v1547_v52, %v1546_v9  ;;  %v2062_v40 = vshrl.u32 %v1542_v54, 16  ;;  %772 = vst [vmem:[#allocation2 + $0x60] sm:$0xff] %v11351_v39  ;;  %2519 = vmatmul.mubr.bf16.gmra.mrb[24].mxu0 %v2013_v18  ;;  %3305 = vmatmul.mubr.bf16.gmra.mrb[24].mxu1 %v2887_v29  ;;  %v8544_v3 = vcombine.low %v848_v47, %v10800_v13  ;;  %v1552_v18 = vshrl.u32 %v11351_v39, 16 }
  0xcf   : > { %v2044_v5 = vrot.slane %v2042_v63, 1  ;;  %v11359_v61 = vsel %vm15408_vm7, %v11288_v46, %v979_v6  ;;  %v11365_v48 = vsel %vm708_vm8, %v1090_v50, %v1092_v17  ;;  %3312 = vmatprep.mubr.bf16.mxu1 %v11293_v43  ;;  %v1555_v52 = vshll.u32 %v11351_v39, 16 }
  0xd0   : > { %15649 = vst [vmem:[#allocation28_spill] sm:$0xff] %v11359_v61  ;;  %15650 = vst [vmem:[#allocation29_spill] sm:$0xff] %v11365_v48  ;;  %vm15405_vm5 = vcmp.ne.s16.totalorder %v11359_v61, 0  ;;  %v1550_v55 = vsel %vm15408_vm7, %v1538_v19, %v1549_v15  ;;  %v982_v33 = vshrl.u32 %v8544_v3, 16  ;;  %v11387_v47 = vrot.slane %v1552_v18, 7 }
  0xd1   : > { %v11373_v46 = vsel %vm1250_vm12, %v2040_v53, %v2044_v5  ;;  %v1709_v42 = vsel %vm15405_vm5, %v11290_v57, %v11343_v28  ;;  %v1129_v50 = vsel %vm15405_vm5, %v11200_v45, %v11282_v25  ;;  %v2064_v38 = vor.u32 %v2062_v40, %v2044_v5  ;;  %v736_v5 = vld [vmem:[%s10781_s30 + $0xb0] sm:$0xff]  ;;  %v10268_v25 = vld [vmem:[#allocation6 + $0x188] sm:$0xff]  }
  0xd2   : > { %15651 = vst [vmem:[#allocation30_spill] sm:$0xff] %v11373_v46  ;;  %2526 = vmatprep.mubr.bf16.mxu0 %v11373_v46  ;;  %v2034_v19 = vshll.u32 %v1709_v42, 16  ;;  %v2900_v37 = vshll.u32 %v1129_v50, 16  ;;  %v2066_v59 = vshll.u32 %v1550_v55, 16  ;;  %v985_v53 = vshll.u32 %v8544_v3, 16 }
  0xd3   : > { %v2054_v49 = vshrl.u32 %v1709_v42, 16  ;;  %v2912_v54 = vshrl.u32 %v1129_v50, 16  ;;  %v15652_v45 = vand.u32 15, %v10850_v56  ;;  %v984_v40 = vrot.slane %v982_v33, 7  ;;  %v737_v42 = vld [vmem:[%s10781_s30 + $0xb8] sm:$0xff] }
  0xd4   : > { %v2036_v63 = vrot.slane %v2034_v19, 1  ;;  %v2902_v6 = vrot.slane %v2900_v37, 1  ;;  %v2068_v15 = vrot.slane %v2066_v59, 1  ;;  %v1557_v27 = vor.u32 %v1555_v52, %v11387_v47 }
  0xd5   : > { %vm11391_vm1 = vcmp.eq.s32.totalorder %v15652_v45, 0  ;;  %v2086_v3 = vshrl.u32 %v1550_v55, 16  ;;  %v850_v18 = vsel %vm818_vm10, 65537, %v15374_v12  ;;  %v1094_v56 = vrot.slane %v11351_v39, 7 }
  0xd6   : > { %v2037_v50 = vsel %vm1250_vm12, %v2032_v4, %v2036_v63  ;;  %v2903_v19 = vsel %vm1250_vm12, %v2898_v22, %v2902_v6  ;;  %v11406_v37 = vsel %vm1250_vm12, %v2064_v38, %v2068_v15  ;;  %v987_v59 = vor.u32 %v985_v53, %v984_v40  ;;  %vm822_vm10 = vmpackc.low %vm11391_vm1, %vm11391_vm1 }
  0xd7   : > { %15655 = vst [vmem:[#allocation31_spill] sm:$0xff] %v11406_v37  ;;  %2527 = vmatmul.mubr.bf16.gmra.mrb[28].mxu0 %v2037_v50  ;;  %3313 = vmatmul.mubr.bf16.gmra.mrb[28].mxu1 %v2903_v19  ;;  %v2056_v24 = vor.u32 %v2054_v49, %v2036_v63  ;;  %v2914_v33 = vor.u32 %v2912_v54, %v2902_v6  ;;  %v852_v55 = vsel %vm820_vm14, 65537, %v15374_v12  ;;  %v738_v19 = vld [vmem:[%s10781_s30 + $0xc0] sm:$0xff]  ;;  %v739_v12 = vld [vmem:[%s10781_s30 + $0xc8] sm:$0xff] }
  0xd8   : > { %v1558_v52 = vsel %vm15408_vm7, %v1546_v9, %v1557_v27  ;;  %2534 = vmatprep.mubr.bf16.mxu0 %v11406_v37  ;;  %3320 = vmatprep.mubr.bf16.mxu1 %v11373_v46  ;;  %v11414_v4 = vsel %vm15408_vm7, %v11345_v35, %v987_v59  ;;  %v2088_v22 = vor.u32 %v2086_v3, %v2068_v15 }
  0xd9   : > { %15656 = vst [vmem:[#allocation32_spill] sm:$0xff] %v11414_v4  ;;  %v2090_v38 = vshll.u32 %v1558_v52, 16  ;;  %v8545_v53 = vcombine.low %v850_v18, %v10800_v13  ;;  %vm15379_vm2 = vcmp.ne.s16.totalorder %v11414_v4, 0  ;;  %v11421_v9 = vsel %vm708_vm8, %v1092_v17, %v1094_v56 }
  0xda   : > { %15657 = vst [vmem:[#allocation33_spill] sm:$0xff] %v11421_v9  ;;  %v11423_v49 = vpack.c.bf16 %v737_v42, %v736_v5  ;;  %v2110_v54 = vshrl.u32 %v1558_v52, 16  ;;  %v1710_v35 = vsel %vm15379_vm2, %v11297_v2, %v11365_v48  ;;  %v1130_v45 = vsel %vm15379_vm2, %v11290_v57, %v11343_v28 }
  0xdb   : > { %v2092_v63 = vrot.slane %v2090_v38, 1  ;;  %v990_v6 = vshrl.u32 %v8545_v53, 16  ;;  %v2058_v15 = vshll.u32 %v1710_v35, 16  ;;  %v2916_v17 = vshll.u32 %v1130_v45, 16 }
  0xdc   : > { %v993_v27 = vshll.u32 %v8545_v53, 16  ;;  %v2078_v3 = vshrl.u32 %v1710_v35, 16  ;;  %773 = vst [vmem:[#allocation2 + $0x68] sm:$0xff] %v11423_v49  ;;  %v2928_v42 = vshrl.u32 %v1130_v45, 16  ;;  %v1560_v50 = vshrl.u32 %v11423_v49, 16 }
  0xdd   : > { %v11435_v5 = vsel %vm1250_vm12, %v2088_v22, %v2092_v63  ;;  %v992_v18 = vrot.slane %v990_v6, 7  ;;  %v2060_v59 = vrot.slane %v2058_v15, 1  ;;  %v2918_v52 = vrot.slane %v2916_v17, 1 }
  0xde   : > { %15658 = vst [vmem:[#allocation34_spill] sm:$0xff] %v11435_v5  ;;  %v1563_v57 = vshll.u32 %v11423_v49, 16  ;;  %v2112_v38 = vor.u32 %v2110_v54, %v2092_v63  ;;  %v11441_v46 = vrot.slane %v1560_v50, 7  ;;  %v8546_v53 = vcombine.low %v852_v55, %v10800_v13 }
  0xdf   : > { %v995_v4 = vor.u32 %v993_v27, %v992_v18  ;;  %v15380_v35 = vrot.slane %v11423_v49, 7  ;;  %v2061_v22 = vsel %vm1250_vm12, %v2056_v24, %v2060_v59  ;;  %v2919_v45 = vsel %vm1250_vm12, %v2914_v33, %v2918_v52 }
  0xe0   : > { %v2080_v6 = vor.u32 %v2078_v3, %v2060_v59  ;;  %v2930_v15 = vor.u32 %v2928_v42, %v2918_v52  ;;  %2535 = vmatmul.mubr.bf16.gmra.mrb[32].mxu0 %v2061_v22  ;;  %3321 = vmatmul.mubr.bf16.gmra.mrb[32].mxu1 %v2919_v45  ;;  %v1565_v63 = vor.u32 %v1563_v57, %v11441_v46  ;;  %v998_v55 = vshrl.u32 %v8546_v53, 16 }
  0xe1   : > { %v11451_v54 = vsel %vm15408_vm7, %v984_v40, %v995_v4  ;;  %v1001_v17 = vshll.u32 %v8546_v53, 16  ;;  %2542 = vmatprep.mubr.bf16.mxu0 %v11435_v5  ;;  %3328 = vmatprep.mubr.bf16.mxu1 %v11406_v37  ;;  %v11460_v24 = vsel %vm708_vm8, %v1094_v56, %v15380_v35  ;;  %v11462_v33 = vpack.c.bf16 %v739_v12, %v738_v19 }
  0xe2   : > { %15659 = vst [vmem:[#allocation35_spill] sm:$0xff] %v11451_v54  ;;  %vm15387_vm14 = vcmp.ne.s16.totalorder %v11451_v54, 0  ;;  %15660 = vst [vmem:[#allocation36_spill] sm:$0xff] %v11460_v24  ;;  %v15661_v27 = vmov 0   ;;  %v15662_v4 = vand.u32 15, %v10853_v58  ;;  %v1566_v29 = vsel %vm15408_vm7, %v11387_v47, %v1565_v63 }
  0xe3   : > { %v854_v40 = vsel %vm822_vm10, 65537, %v15661_v27  ;;  %v1711_v56 = vsel %vm15387_vm14, %v11351_v39, %v11421_v9  ;;  %v1131_v12 = vsel %vm15387_vm14, %v11297_v2, %v11365_v48  ;;  %v1000_v42 = vrot.slane %v998_v55, 7  ;;  %774 = vst [vmem:[#allocation2 + $0x70] sm:$0xff] %v11462_v33 }
  0xe4   : > { %vm11472_vm2 = vcmp.eq.s32.totalorder %v15662_v4, 0  ;;  %v2082_v50 = vshll.u32 %v1711_v56, 16  ;;  %v2932_v58 = vshll.u32 %v1131_v12, 16  ;;  %v2114_v19 = vshll.u32 %v1566_v29, 16 }
  0xe5   : > { %v2102_v59 = vshrl.u32 %v1711_v56, 16  ;;  %v1003_v52 = vor.u32 %v1001_v17, %v1000_v42  ;;  %v2944_v57 = vshrl.u32 %v1131_v12, 16  ;;  %v1568_v53 = vshrl.u32 %v11462_v33, 16 }
  0xe6   : > { %v1571_v22 = vshll.u32 %v11462_v33, 16  ;;  %v2084_v45 = vrot.slane %v2082_v50, 1  ;;  %v2934_v2 = vrot.slane %v2932_v58, 1  ;;  %v2116_v4 = vrot.slane %v2114_v19, 1  ;;  %v741_v19 = vld [vmem:[%s10781_s30 + $0xd8] sm:$0xff] }
  0xe7   : > { %v2134_v35 = vshrl.u32 %v1566_v29, 16  ;;  %v11490_v47 = vsel %vm15408_vm7, %v992_v18, %v1003_v52  ;;  %v11492_v63 = vrot.slane %v1568_v53, 7  ;;  %v8547_v55 = vcombine.low %v854_v40, %v10800_v13  ;;  %v740_v18 = vld [vmem:[%s10781_s30 + $0xd0] sm:$0xff] }
  0xe8   : > { %15665 = vst [vmem:[#allocation37_spill] sm:$0xff] %v11490_v47  ;;  %v15666_v56 = vand.u32 15, %v10856_v60  ;;  %v2085_v50 = vsel %vm1250_vm12, %v2080_v6, %v2084_v45  ;;  %v2935_v58 = vsel %vm1250_vm12, %v2930_v15, %v2934_v2  ;;  %v11505_v29 = vsel %vm1250_vm12, %v2112_v38, %v2116_v4  ;;  %v11518_v38 = vld [vmem:[#allocation6 + $0x200] sm:$0xff]  }
  0xe9   : > { %15669 = vst [vmem:[#allocation38_spill] sm:$0xff] %v11505_v29  ;;  %vm15386_vm10 = vcmp.ne.s16.totalorder %v11490_v47, 0  ;;  %2543 = vmatmul.mubr.bf16.gmra.mrb[36].mxu0 %v2085_v50  ;;  %3329 = vmatmul.mubr.bf16.gmra.mrb[36].mxu1 %v2935_v58  ;;  %v2104_v40 = vor.u32 %v2102_v59, %v2084_v45  ;;  %v1006_v15 = vshrl.u32 %v8547_v55, 16  ;;  %v2946_v53 = vor.u32 %v2944_v57, %v2934_v2 }
  0xea   : > { %vm11498_vm1 = vcmp.eq.s32.totalorder %v15666_v56, 0  ;;  %v1712_v60 = vsel %vm15386_vm10, %v11423_v49, %v11460_v24  ;;  %v1132_v6 = vsel %vm15386_vm10, %v11351_v39, %v11421_v9  ;;  %2550 = vmatprep.mubr.bf16.mxu0 %v11505_v29  ;;  %3336 = vmatprep.mubr.bf16.mxu1 %v11435_v5  ;;  %v1573_v50 = vor.u32 %v1571_v22, %v11492_v63  ;;  %vm824_vm10 = vmpackc.low %vm11472_vm2, %vm11472_vm2 }
  0xeb   : > { %v2106_v52 = vshll.u32 %v1712_v60, 16  ;;  %v2948_v56 = vshll.u32 %v1132_v6, 16  ;;  %v2136_v58 = vor.u32 %v2134_v35, %v2116_v4  ;;  %v11523_v17 = vrot.slane %v1006_v15, 7  ;;  %9630 = vmatprep.subr.bf16.mxu1 %v11518_v38  ;;  %vm826_vm2 = vmpackc.low %vm11498_vm1, %vm11498_vm1 }
  0xec   : > { %v1009_v59 = vshll.u32 %v8547_v55, 16  ;;  %v15670_v45 = vrot.slane %v11462_v33, 7  ;;  %v15671_v39 = vrot.slane %v11423_v49, 7  ;;  %v1574_v57 = vsel %vm15408_vm7, %v11441_v46, %v1573_v50 }
  0xed   : > { %v2108_v54 = vrot.slane %v2106_v52, 1  ;;  %v2950_v5 = vrot.slane %v2948_v56, 1  ;;  %v2126_v2 = vshrl.u32 %v1712_v60, 16  ;;  %v2138_v22 = vshll.u32 %v1574_v57, 16 }
  0xee   : > { %v11530_v47 = vsel %vm708_vm8, %v15671_v39, %v15670_v45  ;;  %v1011_v35 = vor.u32 %v1009_v59, %v11523_v17  ;;  %v2960_v4 = vshrl.u32 %v1132_v6, 16  ;;  %v11536_v55 = vpack.c.bf16 %v741_v19, %v740_v18  ;;  %v744_v59 = vld [vmem:[%s10781_s30 + $0xf0] sm:$0xff] }
  0xef   : > { %15672 = vst [vmem:[#allocation39_spill] sm:$0xff] %v11530_v47  ;;  %v2109_v15 = vsel %vm1250_vm12, %v2104_v40, %v2108_v54  ;;  %v2951_v52 = vsel %vm1250_vm12, %v2946_v53, %v2950_v5  ;;  %v2128_v56 = vor.u32 %v2126_v2, %v2108_v54  ;;  %v2158_v46 = vshrl.u32 %v1574_v57, 16  ;;  %v742_v54 = vld [vmem:[%s10781_s30 + $0xe0] sm:$0xff]  ;;  %v743_v53 = vld [vmem:[%s10781_s30 + $0xe8] sm:$0xff]  ;;  %v745_v57 = vld [vmem:[%s10781_s30 + $0xf8] sm:$0xff] }
  0xf0   : > { %v2140_v60 = vrot.slane %v2138_v22, 1  ;;  %v11544_v50 = vsel %vm15408_vm7, %v1000_v42, %v1011_v35  ;;  %v2962_v6 = vor.u32 %v2960_v4, %v2950_v5  ;;  %775 = vst [vmem:[#allocation2 + $0x78] sm:$0xff] %v11536_v55  ;;  %v1576_v3 = vshrl.u32 %v11536_v55, 16 }
  0xf1   : > { %15673 = vst [vmem:[#allocation40_spill] sm:$0xff] %v11544_v50  ;;  %vm15404_vm14 = vcmp.ne.s16.totalorder %v11544_v50, 0  ;;  %v1579_v18 = vshll.u32 %v11536_v55, 16  ;;  %v856_v19 = vsel %vm824_vm10, 65537, %v15661_v27  ;;  %v1100_v40 = vrot.slane %v11536_v55, 7  ;;  %2551 = vmatmul.mubr.bf16.gmra.mrb[40].mxu0 %v2109_v15  ;;  %3337 = vmatmul.mubr.bf16.gmra.mrb[40].mxu1 %v2951_v52 }
  0xf2   : > { %v11556_v5 = vsel %vm1250_vm12, %v2136_v58, %v2140_v60  ;;  %v1713_v42 = vsel %vm15404_vm14, %v11462_v33, %v11530_v47  ;;  %v1133_v45 = vsel %vm15404_vm14, %v11423_v49, %v11460_v24  ;;  %v1578_v39 = vrot.slane %v1576_v3, 7  ;;  %3344 = vmatprep.mubr.bf16.mxu1 %v11505_v29 }
  0xf3   : > { %15674 = vst [vmem:[#allocation41_spill] sm:$0xff] %v11556_v5  ;;  %2558 = vmatprep.mubr.bf16.mxu0 %v11556_v5  ;;  %v2130_v2 = vshll.u32 %v1713_v42, 16  ;;  %v2964_v22 = vshll.u32 %v1133_v45, 16  ;;  %v2160_v58 = vor.u32 %v2158_v46, %v2140_v60  ;;  %v8548_v35 = vcombine.low %v856_v19, %v10800_v13 }
  0xf4   : > { %v1581_v4 = vor.u32 %v1579_v18, %v1578_v39  ;;  %v15675_v15 = vrot.slane %v11462_v33, 7  ;;  %v2150_v52 = vshrl.u32 %v1713_v42, 16  ;;  %v2976_v3 = vshrl.u32 %v1133_v45, 16 }
  0xf5   : > { %v2132_v50 = vrot.slane %v2130_v2, 1  ;;  %v2966_v24 = vrot.slane %v2964_v22, 1  ;;  %v1014_v29 = vshrl.u32 %v8548_v35, 16  ;;  %v1017_v37 = vshll.u32 %v8548_v35, 16 }
  0xf6   : > { %v11576_v49 = vsel %vm708_vm8, %v15675_v15, %v1100_v40  ;;  %v1582_v46 = vsel %vm15408_vm7, %v11492_v63, %v1581_v4  ;;  %v11580_v60 = vpack.c.bf16 %v743_v53, %v742_v54  ;;  %v858_v12 = vsel %vm826_vm2, 65537, %v15661_v27 }
  0xf7   : > { %15676 = vst [vmem:[#allocation42_spill] sm:$0xff] %v11576_v49  ;;  %v11583_v19 = vpack.c.bf16 %v745_v57, %v744_v59  ;;  %v2133_v18 = vsel %vm1250_vm12, %v2128_v56, %v2132_v50  ;;  %v2967_v15 = vsel %vm1250_vm12, %v2962_v6, %v2966_v24  ;;  %v2162_v9 = vshll.u32 %v1582_v46, 16 }
  0xf8   : > { %v1016_v42 = vrot.slane %v1014_v29, 7  ;;  %v2152_v45 = vor.u32 %v2150_v52, %v2132_v50  ;;  %v2978_v2 = vor.u32 %v2976_v3, %v2966_v24  ;;  %776 = vst [vmem:[#allocation2 + $0x80] sm:$0xff] %v11580_v60  ;;  %v1584_v22 = vshrl.u32 %v11580_v60, 16  ;;  %779 = vst [vmem:[#allocation2 + $0x90] sm:$0xff] %v11580_v60 }
  0xf9   : > { %v1587_v63 = vshll.u32 %v11580_v60, 16  ;;  %777 = vst [vmem:[#allocation2 + $0x88] sm:$0xff] %v11583_v19  ;;  %v2164_v54 = vrot.slane %v2162_v9, 1  ;;  %v2182_v59 = vshrl.u32 %v1582_v46, 16  ;;  %v8549_v56 = vcombine.low %v858_v12, %v10800_v13  ;;  %2559 = vmatmul.mubr.bf16.gmra.mrb[44].mxu0 %v2133_v18  ;;  %3345 = vmatmul.mubr.bf16.gmra.mrb[44].mxu1 %v2967_v15 }
  0xfa   : > { %v1019_v53 = vor.u32 %v1017_v37, %v1016_v42  ;;  %v11593_v29 = vrot.slane %v1584_v22, 7  ;;  %v11596_v24 = vrot.slane %v11580_v60, 7  ;;  %v1744_v50 = vshrl.u32 %v11583_v19, 16  ;;  %3352 = vmatprep.mubr.bf16.mxu1 %v11556_v5 }
  0xfb   : > { %v1747_v6 = vshll.u32 %v11583_v19, 16  ;;  %v11601_v57 = vsel %vm1250_vm12, %v2160_v58, %v2164_v54  ;;  %v2184_v9 = vor.u32 %v2182_v59, %v2164_v54  ;;  %v1022_v35 = vshrl.u32 %v8549_v56, 16 }
  0xfc   : > { %15677 = vst [vmem:[#allocation43_spill] sm:$0xff] %v11601_v57  ;;  %v11606_v37 = vsel %vm15408_vm7, %v11523_v17, %v1019_v53  ;;  %2566 = vmatprep.mubr.bf16.mxu0 %v11601_v57  ;;  %v1589_v4 = vor.u32 %v1587_v63, %v11593_v29  ;;  %v1025_v52 = vshll.u32 %v8549_v56, 16  ;;  %v11613_v3 = vsel %vm708_vm8, %v1100_v40, %v11596_v24 }
  0xfd   : > { %15678 = vst [vmem:[#allocation44_spill] sm:$0xff] %v11606_v37  ;;  %vm15399_vm1 = vcmp.ne.s16.totalorder %v11606_v37, 0  ;;  %15679 = vst [vmem:[#allocation45_spill] sm:$0xff] %v11613_v3  ;;  %v11623_v46 = vrot.slane %v1022_v35, 7  ;;  %v11625_v12 = vrot.slane %v1744_v50, 7 }
  0xfe   : > { %v1714_v58 = vsel %vm15399_vm1, %v11536_v55, %v11576_v49  ;;  %v1134_v17 = vsel %vm15399_vm1, %v11462_v33, %v11530_v47  ;;  %v1590_v22 = vsel %vm15408_vm7, %v1578_v39, %v1589_v4  ;;  %v15681_v33 = vand.u32 15, %v10859_v62 }
  0xff   : > { %15680 = vst [vmem:[#allocation46_spill] sm:$0xff] %v11625_v12  ;;  %v2154_v18 = vshll.u32 %v1714_v58, 16  ;;  %v2980_v15 = vshll.u32 %v1134_v17, 16  ;;  %v2174_v40 = vshrl.u32 %v1714_v58, 16  ;;  %v2186_v63 = vshll.u32 %v1590_v22, 16 }
 0x100   : > { %v1027_v54 = vor.u32 %v1025_v52, %v11623_v46  ;;  %v2992_v53 = vshrl.u32 %v1134_v17, 16  ;;  %v1749_v59 = vor.u32 %v1747_v6, %v11625_v12  ;;  %v2206_v61 = vshrl.u32 %v1590_v22, 16 }
 0x101   : > { %v2156_v56 = vrot.slane %v2154_v18, 1  ;;  %v2982_v5 = vrot.slane %v2980_v15, 1  ;;  %vm11632_vm10 = vcmp.eq.s32.totalorder %v15681_v33, 0  ;;  %v2188_v50 = vrot.slane %v2186_v63, 1 }
 0x102   : > { %v11637_v37 = vsel %vm15408_vm7, %v1016_v42, %v1027_v54  ;;  %v1750_v39 = vsel %vm15408_vm7, %v11593_v29, %v1749_v59  ;;  %v11642_v4 = vrot.slane %v11583_v19, 7  ;;  %vm828_vm1 = vmpackc.low %vm11632_vm10, %vm11632_vm10  ;;  %vm1396_vm10 = vcmask 1046528  }
 0x103   : > { %15684 = vst [vmem:[#allocation47_spill] sm:$0xff] %v11637_v37  ;;  %v2157_v6 = vsel %vm1250_vm12, %v2152_v45, %v2156_v56  ;;  %v2983_v52 = vsel %vm1250_vm12, %v2978_v2, %v2982_v5  ;;  %vm15403_vm2 = vcmp.ne.s16.totalorder %v11637_v37, 0  ;;  %v2176_v62 = vor.u32 %v2174_v40, %v2156_v56 }
 0x104   : > { %15685 = vst [vmem:[#allocation48_spill] sm:$0xff] %v11642_v4  ;;  %2567 = vmatmul.mubr.bf16.gmra.mrb[48].mxu0 %v2157_v6  ;;  %3353 = vmatmul.mubr.bf16.gmra.mrb[48].mxu1 %v2983_v52  ;;  %v11651_v42 = vsel %vm1250_vm12, %v2184_v9, %v2188_v50  ;;  %v1715_v58 = vsel %vm15403_vm2, %v11580_v60, %v11613_v3  ;;  %v2210_v2 = vshll.u32 %v1750_v39, 16  ;;  %v860_v40 = vsel %vm828_vm1, 65537, %v15661_v27 }
 0x105   : > { %15686 = vst [vmem:[#allocation49_spill] sm:$0xff] %v11651_v42  ;;  %v1135_v45 = vsel %vm15403_vm2, %v11536_v55, %v11576_v49  ;;  %2574 = vmatprep.mubr.bf16.mxu0 %v11651_v42  ;;  %3360 = vmatprep.mubr.bf16.mxu1 %v11601_v57  ;;  %v2178_v17 = vshll.u32 %v1715_v58, 16  ;;  %v2994_v18 = vor.u32 %v2992_v53, %v2982_v5  ;;  %v2198_v54 = vshrl.u32 %v1715_v58, 16  ;;  %v11677_v58 = vld [vmem:[#allocation2 + $0x90] sm:$0x1] }
 0x106   : > { %v2996_v15 = vshll.u32 %v1135_v45, 16  ;;  %v2208_v9 = vor.u32 %v2206_v61, %v2188_v50  ;;  %v2212_v22 = vrot.slane %v2210_v2, 1  ;;  %v11667_v63 = vsel %vm708_vm8, %v11596_v24, %v11642_v4 }
 0x107   : > { %15687 = vst [vmem:[#allocation50_spill] sm:$0xff] %v11667_v63  ;;  %v2180_v59 = vrot.slane %v2178_v17, 1  ;;  %v8550_v56 = vcombine.low %v860_v40, %v10800_v13  ;;  %v3008_v33 = vshrl.u32 %v1135_v45, 16  ;;  %v2230_v5 = vshrl.u32 %v1750_v39, 16  ;;  %v11679_v17 = vld [vmem:[#allocation2 + $0x88] sm:$0x1] }
 0x108   : > { %v2998_v55 = vrot.slane %v2996_v15, 1  ;;  %v11671_v35 = vsel %vm1250_vm12, %v2208_v9, %v2212_v22  ;;  %v2234_v61 = vshll.u32 %v11625_v12, 16  ;;  %v3033_v53 = vshll.u32 %v11593_v29, 16 }
 0x109   : > { %15688 = vst [vmem:[#allocation51_spill] sm:$0xff] %v11671_v35  ;;  %v2181_v50 = vsel %vm1250_vm12, %v2176_v62, %v2180_v59  ;;  %v1030_v52 = vshrl.u32 %v8550_v56, 16  ;;  %v1033_v2 = vshll.u32 %v8550_v56, 16  ;;  %v2200_v15 = vor.u32 %v2198_v54, %v2180_v59 }
 0x10a   : > { %v2999_v6 = vsel %vm1250_vm12, %v2994_v18, %v2998_v55  ;;  %v3010_v45 = vor.u32 %v3008_v33, %v2998_v55  ;;  %v11681_v40 = vor.u32 %v2230_v5, %v2212_v22  ;;  %v2236_v37 = vrot.slane %v2234_v61, 1 }
 0x10b   : > { %v11683_v39 = vrot.slane %v1030_v52, 7  ;;  %v3035_v12 = vrot.slane %v3033_v53, 1  ;;  %v223_v56 = vadd.s32 8, %v10795_v8  ;;  %v225_v54 = vadd.s32 24, %v10795_v8 }
 0x10c   : > { %15689 = vst [vmem:[#allocation52_spill] sm:$0xff] %v11681_v40  ;;  %2575 = vmatmul.mubr.bf16.gmra.mrb[52].mxu0 %v2181_v50  ;;  %3361 = vmatmul.mubr.bf16.gmra.mrb[52].mxu1 %v2999_v6  ;;  %v2237_v18 = vsel %vm1250_vm12, %v11681_v40, %v2236_v37  ;;  %v227_v22 = vadd.s32 40, %v10795_v8 }
 0x10d   : > { %15690 = vst [vmem:[#allocation53_spill] sm:$0xff] %v11683_v39  ;;  %2582 = vmatprep.mubr.bf16.mxu0 %v11671_v35  ;;  %3368 = vmatprep.mubr.bf16.mxu1 %v11651_v42  ;;  %v1035_v59 = vor.u32 %v1033_v2, %v11683_v39  ;;  %v3036_v55 = vsel %vm1250_vm12, %v2208_v9, %v3035_v12  ;;  %vm15406_vm1 = vcmp.ne.s16.totalorder %v11683_v39, 0  ;;  %v265_v5 = vand.u32 15, %v223_v56 }
 0x10e   : > { %v1717_v37 = vsel %vm15406_vm1, %v11677_v58, %v11642_v4  ;;  %v1137_v33 = vsel %vm15406_vm1, %v11679_v17, %v11596_v24  ;;  %v279_v61 = vand.u32 15, %v225_v54  ;;  %v293_v50 = vand.u32 15, %v227_v22  ;;  %v11718_v24 = vld [vmem:[#allocation2 + $0x10] sm:$0xff] }
 0x10f   : > { %v11707_v53 = vsel %vm15408_vm7, %v11623_v46, %v1035_v59  ;;  %v2226_v12 = vshll.u32 %v1717_v37, 16  ;;  %v3028_v9 = vshll.u32 %v1137_v33, 16  ;;  %vm11710_vm14 = vcmp.eq.s32.totalorder %v265_v5, 15 }
 0x110   : > { %15691 = vst [vmem:[#allocation54_spill] sm:$0xff] %v11707_v53  ;;  %vm15419_vm2 = vcmp.ne.s16.totalorder %v11707_v53, 0  ;;  %vm11714_vm5 = vcmp.eq.s32.totalorder %v279_v61, 15  ;;  %v1398_v2 = vrot.slane %v11718_v24, 1  ;;  %vm1139_vm1 = vmpackc.low %vm11710_vm14, %vm11710_vm14  ;;  %vm675_vm7 = vcmp.eq.s32.totalorder %v293_v50, 15  ;;  %v11744_v50 = vld [vmem:[#allocation2 + $0x20] sm:$0xff] }
 0x111   : > { %v1716_v46 = vsel %vm15419_vm2, %v11583_v19, %v11667_v63  ;;  %v1136_v56 = vsel %vm15419_vm2, %v11580_v60, %v11613_v3  ;;  %v2228_v54 = vrot.slane %v2226_v12, 1  ;;  %v3030_v22 = vrot.slane %v3028_v9, 1  ;;  %vm1141_vm11 = vmpackc.low %vm11714_vm5, %vm11714_vm5  ;;  %v11737_v60 = vld [vmem:[#allocation2 + $0x18] sm:$0xff] }
 0x112   : > { %v2202_v59 = vshll.u32 %v1716_v46, 16  ;;  %v3012_v37 = vshll.u32 %v1136_v56, 16  ;;  %v2222_v33 = vshrl.u32 %v1716_v46, 16  ;;  %v3024_v5 = vshrl.u32 %v1136_v56, 16  ;;  %vm1143_vm14 = vmpackc.low %vm675_vm7, %vm675_vm7 }
 0x113   : > { %v1171_v19 = vsel %vm1139_vm1, 65537, %v15661_v27  ;;  %v1173_v61 = vsel %vm1141_vm11, 65537, %v15661_v27  ;;  %v1400_v12 = vrot.slane %v11737_v60, 1  ;;  %v1175_v52 = vsel %vm1143_vm14, 65537, %v15661_v27 }
 0x114   : > { %v2204_v9 = vrot.slane %v2202_v59, 1  ;;  %v3014_v6 = vrot.slane %v3012_v37, 1  ;;  %v8551_v29 = vcombine.low %v10800_v13, %v1171_v19  ;;  %v8552_v46 = vcombine.low %v10800_v13, %v1173_v61 }
 0x115   : > { %v1401_v56 = vsel %vm1396_vm10, %v1398_v2, %v1400_v12  ;;  %v1402_v62 = vrot.slane %v11744_v50, 1  ;;  %v1399_v39 = vsel %vm1396_vm10, %v1400_v12, %v1398_v2  ;;  %v8553_v19 = vcombine.low %v10800_v13, %v1175_v52 }
 0x116   : > { %v2205_v40 = vsel %vm1250_vm12, %v2200_v15, %v2204_v9  ;;  %v3015_v59 = vsel %vm1250_vm12, %v3010_v45, %v3014_v6  ;;  %v2224_v37 = vor.u32 %v2222_v33, %v2204_v9  ;;  %v3026_v53 = vor.u32 %v3024_v5, %v3014_v6  ;;  %v11759_v6 = vld [vmem:[#allocation2 + $0x28] sm:$0xff] }
 0x117   : > { %2583 = vmatmul.mubr.bf16.gmra.mrb[56].mxu0 %v2205_v40  ;;  %3369 = vmatmul.mubr.bf16.gmra.mrb[56].mxu1 %v3015_v59  ;;  %v1252_v61 = vshll.u32 %v8551_v29, 16  ;;  %v1255_v35 = vshrl.u32 %v8551_v29, 16  ;;  %v1259_v4 = vshll.u32 %v8552_v46, 16  ;;  %v1263_v3 = vshrl.u32 %v8552_v46, 16  ;;  %v10371_v59 = vld [vmem:[#allocation2] sm:$0x80] }
 0x118   : > { %2590 = vmatprep.mubr.bf16.mxu0 %v2237_v18  ;;  %3376 = vmatprep.mubr.bf16.mxu1 %v3036_v55  ;;  %v2229_v63 = vsel %vm1250_vm12, %v2224_v37, %v2228_v54  ;;  %v3031_v42 = vsel %vm1250_vm12, %v3026_v53, %v3030_v22  ;;  %v11754_v15 = vsel %vm1396_vm10, %v1400_v12, %v1402_v62  ;;  %v1267_v40 = vshll.u32 %v8553_v19, 16  ;;  %v11763_v55 = vld [vmem:[#allocation2 + $0x30] sm:$0xff] }
 0x119   : > { %v11756_v45 = vrot.slane %v1252_v61, 1  ;;  %v1261_v33 = vrot.slane %v1259_v4, 1  ;;  %v1271_v5 = vshrl.u32 %v8553_v19, 16  ;;  %v229_v9 = vadd.s32 56, %v10795_v8  ;;  %v10370_v4 = vld [vmem:[#allocation2 + $0x8] sm:$0x80] }
 0x11a   : > { %v1404_v29 = vrot.slane %v11759_v6, 1  ;;  %v231_v18 = vadd.s32 72, %v10795_v8  ;;  %v1269_v46 = vrot.slane %v1267_v40, 1 }
 0x11b   : > { %15696 = vst [vmem:[#allocation55_spill] sm:$0xff] %v11756_v45  ;;  %v1257_v54 = vor.u32 %v1255_v35, %v11756_v45  ;;  %v1265_v22 = vor.u32 %v1263_v3, %v1261_v33  ;;  %vm1378_vm7 = vcmp.ne.s16.totalorder %v11756_v45, 0  ;;  %v307_v19 = vand.u32 15, %v229_v9 }
 0x11c   : > { %v1726_v52 = vsel %vm1378_vm7, %v10370_v4, %v1398_v2  ;;  %v1447_v37 = vsel %vm1378_vm7, %v10371_v59, %v1400_v12  ;;  %v11773_v61 = vsel %vm1396_vm10, %v1402_v62, %v1404_v29  ;;  %v1273_v35 = vor.u32 %v1271_v5, %v1269_v46 }
 0x11d   : > { %v11776_v53 = vsel %vm1250_vm12, %v1257_v54, %v1261_v33  ;;  %v11779_v3 = vsel %vm1250_vm12, %v1265_v22, %v1269_v46  ;;  %v1768_v40 = vrot.slane %v1726_v52, 7  ;;  %v1608_v2 = vrot.slane %v1447_v37, 7 }
 0x11e   : > { %15697 = vst [vmem:[#allocation56_spill] sm:$0xff] %v11776_v53  ;;  %15698 = vst [vmem:[#allocation57_spill] sm:$0xff] %v11779_v3  ;;  %vm1379_vm11 = vcmp.ne.s16.totalorder %v11776_v53, 0  ;;  %vm1380_vm5 = vcmp.ne.s16.totalorder %v11779_v3, 0  ;;  %vm677_vm1 = vcmp.eq.s32.totalorder %v307_v19, 15  ;;  %v321_v5 = vand.u32 15, %v231_v18 }
 0x11f   : > { %2591 = vmatmul.mubr.bf16.gmra.mrb[60].mxu0 %v2229_v63  ;;  %3377 = vmatmul.mubr.bf16.gmra.mrb[60].mxu1 %v3031_v42  ;;  %v1727_v62 = vsel %vm1379_vm11, %v11718_v24, %v1401_v56  ;;  %v11790_v12 = vsel %vm1380_vm5, %v11737_v60, %v11754_v15  ;;  %v1448_v33 = vsel %vm1379_vm11, %v11737_v60, %v1399_v39  ;;  %vm1145_vm14 = vmpackc.low %vm677_vm1, %vm677_vm1  ;;  %v15701_v52 = vrot.slane %v11763_v55, 1 }
 0x120   : > { %v1769_v9 = vrot.slane %v1727_v62, 7  ;;  %v1771_v63 = vrot.slane %v11790_v12, 7  ;;  %v1449_v42 = vsel %vm1380_vm5, %v11718_v24, %v1401_v56  ;;  %v1609_v54 = vrot.slane %v1448_v33, 7 }
 0x121   : > { %v1611_v22 = vrot.slane %v1449_v42, 7  ;;  %v1177_v46 = vsel %vm1145_vm14, 65537, %v15661_v27  ;;  %vm11800_vm2 = vcmp.eq.s32.totalorder %v321_v5, 15  ;;  %v11807_v39 = vsel %vm1396_vm10, %v1404_v29, %v15701_v52 }
 0x122   : > { %v1770_v18 = vsel %vm708_vm8, %v1768_v40, %v1769_v9  ;;  %v1772_v59 = vsel %vm708_vm8, %v1769_v9, %v1771_v63  ;;  %v1610_v37 = vsel %vm708_vm8, %v1608_v2, %v1609_v54  ;;  %v8554_v24 = vcombine.low %v10800_v13, %v1177_v46  ;;  %vm1147_vm1 = vmpackc.low %vm11800_vm2, %vm11800_vm2 }
 0x123   : > { %v1875_v56 = vshrl.u32 %v1770_v18, 16  ;;  %v1877_v19 = vshll.u32 %v1770_v18, 16  ;;  %v1882_v62 = vshll.u32 %v1772_v59, 16  ;;  %v1902_v12 = vshrl.u32 %v1772_v59, 16 }
 0x124   : > { %v1612_v33 = vsel %vm708_vm8, %v1609_v54, %v1611_v22  ;;  %v2785_v29 = vshrl.u32 %v1610_v37, 16  ;;  %v2787_v5 = vshll.u32 %v1610_v37, 16  ;;  %v1275_v42 = vshll.u32 %v8554_v24, 16 }
 0x125   : > { %v1879_v40 = vrot.slane %v1877_v19, 1  ;;  %v1884_v52 = vrot.slane %v1882_v62, 1  ;;  %v2792_v9 = vshll.u32 %v1612_v33, 16  ;;  %v2808_v57 = vshrl.u32 %v1612_v33, 16 }
 0x126   : > { %v2789_v2 = vrot.slane %v2787_v5, 1  ;;  %v1277_v49 = vrot.slane %v1275_v42, 1  ;;  %v1179_v46 = vsel %vm1147_vm1, 65537, %v15661_v27  ;;  %v1279_v18 = vshrl.u32 %v8554_v24, 16 }
 0x127   : > { %v1880_v47 = vor.u32 %v1879_v40, %v1875_v56  ;;  %v1904_v59 = vor.u32 %v1902_v12, %v1884_v52  ;;  %v2794_v48 = vrot.slane %v2792_v9, 1  ;;  %v8555_v4 = vcombine.low %v10800_v13, %v1179_v46 }
 0x128   : > { %v2790_v43 = vor.u32 %v2789_v2, %v2785_v29  ;;  %v11820_v54 = vsel %vm1250_vm12, %v1273_v35, %v1277_v49  ;;  %v1281_v37 = vor.u32 %v1279_v18, %v1277_v49  ;;  %v233_v19 = vadd.s32 88, %v10795_v8 }
 0x129   : > { %15702 = vst [vmem:[#allocation58_spill] sm:$0xff] %v11820_v54  ;;  %v1885_v62 = vsel %vm1250_vm12, %v1880_v47, %v1884_v52  ;;  %v2810_v33 = vor.u32 %v2808_v57, %v2794_v48  ;;  %vm1381_vm2 = vcmp.ne.s16.totalorder %v11820_v54, 0  ;;  %v1283_v5 = vshll.u32 %v8555_v4, 16  ;;  %v11842_v52 = vld [vmem:[#allocation2 + $0x40] sm:$0xff] }
 0x12a   : > { %9550 = vmatprep.mubr.bf16.mxu0 %v1885_v62  ;;  %v2795_v24 = vsel %vm1250_vm12, %v2790_v43, %v2794_v48  ;;  %v1729_v56 = vsel %vm1381_vm2, %v11744_v50, %v11773_v61  ;;  %v1450_v49 = vsel %vm1381_vm2, %v11737_v60, %v11754_v15  ;;  %v335_v35 = vand.u32 15, %v233_v19  ;;  %v11838_v43 = vld [vmem:[#allocation2 + $0x38] sm:$0xff] }
 0x12b   : > { %9598 = vmatprep.mubr.bf16.mxu1 %v2795_v24  ;;  %v1773_v47 = vrot.slane %v1729_v56, 7  ;;  %v1613_v57 = vrot.slane %v1450_v49, 7  ;;  %v1285_v12 = vrot.slane %v1283_v5, 1  ;;  %v1287_v29 = vshrl.u32 %v8555_v4, 16  ;;  %v10266_v56 = vld [vmem:[#allocation6 + $0x180] sm:$0xff]  }
 0x12c   : > { %vm11834_vm14 = vcmp.eq.s32.totalorder %v335_v35, 15  ;;  %v1408_v48 = vrot.slane %v11838_v43, 1  ;;  %v235_v40 = vadd.s32 104, %v10795_v8  ;;  %v15428_v60 = vrot.slane %v11842_v52, 1 }
 0x12d   : > { %v1774_v15 = vsel %vm708_vm8, %v1771_v63, %v1773_v47  ;;  %v1614_v9 = vsel %vm708_vm8, %v1611_v22, %v1613_v57  ;;  %v11848_v2 = vsel %vm1250_vm12, %v1281_v37, %v1285_v12  ;;  %vm1149_vm1 = vmpackc.low %vm11834_vm14, %vm11834_vm14  ;;  %v1289_v46 = vor.u32 %v1287_v29, %v1285_v12 }
 0x12e   : > { %15705 = vst [vmem:[#allocation59_spill] sm:$0xff] %v11848_v2  ;;  %v1906_v18 = vshll.u32 %v1774_v15, 16  ;;  %v2812_v4 = vshll.u32 %v1614_v9, 16  ;;  %vm1382_vm9 = vcmp.ne.s16.totalorder %v11848_v2, 0  ;;  %v1926_v19 = vshrl.u32 %v1774_v15, 16  ;;  %v10267_v15 = vld [vmem:[#allocation6 + $0x1c8] sm:$0xff]  }
 0x12f   : > { %v11858_v63 = vsel %vm1382_vm9, %v11759_v6, %v11807_v39  ;;  %v11864_v22 = vsel %vm1382_vm9, %v11744_v50, %v11773_v61  ;;  %v2824_v37 = vshrl.u32 %v1614_v9, 16  ;;  %v1181_v62 = vsel %vm1149_vm1, 65537, %v15661_v27  ;;  %v10276_v9 = vld [vmem:[#allocation6 + $0x208] sm:$0xff]  }
 0x130   : > { %v1908_v5 = vrot.slane %v1906_v18, 1  ;;  %v2814_v24 = vrot.slane %v2812_v4, 1  ;;  %v1775_v49 = vrot.slane %v11858_v63, 7  ;;  %v8556_v12 = vcombine.low %v10800_v13, %v1181_v62 }
 0x131   : > { %v15706_v29 = vrot.slane %v11763_v55, 1  ;;  %v349_v50 = vand.u32 15, %v235_v40  ;;  %v11878_v61 = vsel %vm1396_vm10, %v1408_v48, %v15428_v60  ;;  %v15707_v40 = vrot.slane %v11864_v22, 7 }
 0x132   : > { %v1909_v18 = vsel %vm1250_vm12, %v1904_v59, %v1908_v5  ;;  %v2815_v4 = vsel %vm1250_vm12, %v2810_v33, %v2814_v24  ;;  %v1776_v62 = vsel %vm708_vm8, %v1773_v47, %v1775_v49  ;;  %v1928_v35 = vor.u32 %v1926_v19, %v1908_v5 }
 0x133   : > { %v11873_v42 = vsel %vm1396_vm10, %v15706_v29, %v1408_v48  ;;  %9551 = vmatmul.mubr.bf16.vlgmr.msra.gmra.mrb[64].mxu0 %v1909_v18  ;;  %9599 = vmatmul.mubr.bf16.vlgmr.msra.gmra.mrb[64].mxu1 %v2815_v4  ;;  %v1930_v29 = vshll.u32 %v1776_v62, 16  ;;  %v1616_v28 = vsel %vm708_vm8, %v1613_v57, %v15707_v40  ;;  %v2826_v23 = vor.u32 %v2824_v37, %v2814_v24  ;;  %v10269_v18 = vld [vmem:[#allocation6 + $0x1d0] sm:$0xff]   ;;  %v11891_v24 = vld [vmem:[#allocation2 + $0x48] sm:$0xff] }
 0x134   : > { %v1291_v48 = vshll.u32 %v8556_v12, 16  ;;  %8991 = vmatpush3.bf16.msra.mxu0 %v10266_v56  ;;  %v2828_v60 = vshll.u32 %v1616_v28, 16  ;;  %v1950_v0 = vshrl.u32 %v1776_v62, 16  ;;  %v2840_v59 = vshrl.u32 %v1616_v28, 16  ;;  %9631 = vmatpush3.bf16.msra.mxu1 %v11518_v38  ;;  %v10278_v4 = vld [vmem:[#allocation6 + $0x210] sm:$0xff]  }
 0x135   : > { %vm683_vm14 = vcmp.eq.s32.totalorder %v349_v50, 15  ;;  %v1932_v33 = vrot.slane %v1930_v29, 1  ;;  %8992 = vmatprep.subr.bf16.mxu0 %v10267_v15  ;;  %v1295_v19 = vshrl.u32 %v8556_v12, 16  ;;  %v237_v5 = vadd.s32 120, %v10795_v8  ;;  %9632 = vmatprep.subr.bf16.mxu1 %v10276_v9  ;;  %v10270_v40 = vld [vmem:[#allocation6 + $0x190] sm:$0xff]  }
 0x136   : > { %v1293_v47 = vrot.slane %v1291_v48, 1  ;;  %vm1151_vm1 = vmpackc.low %vm683_vm14, %vm683_vm14  ;;  %v2830_v57 = vrot.slane %v2828_v60, 1  ;;  %v15434_v28 = vrot.slane %v11891_v24, 1  ;;  %v239_v56 = vadd.s32 136, %v10795_v8 }
 0x137   : > { %v1183_v37 = vsel %vm1151_vm1, 65537, %v15661_v27  ;;  %v1933_v38 = vsel %vm1250_vm12, %v1928_v35, %v1932_v33  ;;  %v1952_v15 = vor.u32 %v1950_v0, %v1932_v33  ;;  %v363_v48 = vand.u32 15, %v237_v5 }
 0x138   : > { %v11897_v50 = vsel %vm1250_vm12, %v1289_v46, %v1293_v47  ;;  %v8557_v12 = vcombine.low %v10800_v13, %v1183_v37  ;;  %9554 = vmatprep.mubr.bf16.mxu0 %v1933_v38  ;;  %v2831_v60 = vsel %vm1250_vm12, %v2826_v23, %v2830_v57  ;;  %v2842_v62 = vor.u32 %v2840_v59, %v2830_v57  ;;  %v10271_v23 = vld [vmem:[#allocation6 + $0x1d8] sm:$0xff]  }
 0x139   : > { %15708 = vst [vmem:[#allocation60_spill] sm:$0xff] %v11897_v50  ;;  %vm15472_vm14 = vcmp.ne.s16.totalorder %v11897_v50, 0  ;;  %8993 = vmatpush3.bf16.msra.mxu0 %v10268_v25  ;;  %v1297_v29 = vor.u32 %v1295_v19, %v1293_v47  ;;  %9602 = vmatprep.mubr.bf16.mxu1 %v2831_v60  ;;  %v15709_v47 = vrot.slane %v11842_v52, 1  ;;  %vm11917_vm1 = vcmp.eq.s32.totalorder %v363_v48, 15  ;;  %v11936_v60 = vld [vmem:[#allocation2 + $0x58] sm:$0xff]  ;;  %v10273_v48 = vld [vmem:[#allocation6 + $0x1e0] sm:$0xff]  }
 0x13a   : > { %v1731_v46 = vsel %vm15472_vm14, %v11763_v55, %v11873_v42  ;;  %v1452_v0 = vsel %vm15472_vm14, %v11759_v6, %v11807_v39  ;;  %v1299_v35 = vshll.u32 %v8557_v12, 16  ;;  %8994 = vmatprep.subr.bf16.mxu0 %v10269_v18  ;;  %v1303_v25 = vshrl.u32 %v8557_v12, 16  ;;  %9633 = vmatpush3.bf16.msra.mxu1 %v10276_v9  ;;  %v11921_v39 = vld [vmem:[#allocation2 + $0x50] sm:$0xff]  ;;  %v10280_v18 = vld [vmem:[#allocation6 + $0x218] sm:$0xff]   ;;  %vm1153_vm4 = vmpackc.low %vm11917_vm1, %vm11917_vm1 }
 0x13b   : > { %v1777_v33 = vrot.slane %v1731_v46, 7  ;;  %v1617_v59 = vrot.slane %v1452_v0, 7  ;;  %v11915_v19 = vsel %vm1396_vm10, %v15709_v47, %v15434_v28  ;;  %v377_v6 = vand.u32 15, %v239_v56  ;;  %9634 = vmatprep.subr.bf16.mxu1 %v10278_v4  ;;  %v10272_v0 = vld [vmem:[#allocation6 + $0x198] sm:$0xff]   ;;  %v10388_v50 = vld [vmem:[#allocation2 + $0x40] sm:$0xff] }
 0x13c   : > { %v1301_v57 = vrot.slane %v1299_v35, 1  ;;  %v1414_v5 = vrot.slane %v11921_v39, 1  ;;  %v15712_v12 = vrot.slane %v11864_v22, 7  ;;  %v11934_v56 = vadd.s32 152, %v10795_v8 }
 0x13d   : > { %v1778_v38 = vsel %vm708_vm8, %v1775_v49, %v1777_v33  ;;  %8995 = vmatpush3.bf16.msra.mxu0 %v10270_v40  ;;  %v1185_v40 = vsel %vm1153_vm4, 65537, %v15661_v27  ;;  %vm11959_vm4 = vcmp.eq.s32.totalorder %v377_v6, 15  ;;  %v15718_v31 = vrot.slane %v11936_v60, 1 }
 0x13e   : > { %v1618_v9 = vsel %vm708_vm8, %v15712_v12, %v1617_v59  ;;  %v1954_v63 = vshll.u32 %v1778_v38, 16  ;;  %v11940_v49 = vsel %vm1250_vm12, %v1297_v29, %v1301_v57  ;;  %v1974_v22 = vshrl.u32 %v1778_v38, 16  ;;  %8996 = vmatprep.subr.bf16.mxu0 %v10271_v23  ;;  %9635 = vmatpush3.bf16.msra.mxu1 %v10278_v4  ;;  %v10275_v38 = vld [vmem:[#allocation6 + $0x1a0] sm:$0xff]   ;;  %vm1155_vm1 = vmpackc.low %vm11959_vm4, %vm11959_vm4 }
 0x13f   : > { %v2844_v35 = vshll.u32 %v1618_v9, 16  ;;  %15713 = vst [vmem:[#allocation61_spill] sm:$0xff] %v11940_v49  ;;  %vm15438_vm13 = vcmp.ne.s16.totalorder %v11940_v49, 0  ;;  %v2856_v47 = vshrl.u32 %v1618_v9, 16  ;;  %v1305_v37 = vor.u32 %v1303_v25, %v1301_v57  ;;  %9636 = vmatprep.subr.bf16.mxu1 %v10280_v18  ;;  %v10282_v9 = vld [vmem:[#allocation6 + $0x220] sm:$0xff]   ;;  %v10277_v25 = vld [vmem:[#allocation6 + $0x1e8] sm:$0xff]  }
 0x140   : > { %v1956_v12 = vrot.slane %v1954_v63, 1  ;;  %v11948_v46 = vsel %vm15438_vm13, %v11838_v43, %v11878_v61  ;;  %v11954_v29 = vsel %vm15438_vm13, %v11763_v55, %v11873_v42  ;;  %v8558_v4 = vcombine.low %v10800_v13, %v1185_v40 }
 0x141   : > { %v2846_v28 = vrot.slane %v2844_v35, 1  ;;  %v15435_v23 = vrot.slane %v11948_v46, 7  ;;  %8997 = vmatpush3.bf16.msra.mxu0 %v10272_v0  ;;  %v15716_v0 = vrot.slane %v11954_v29, 7  ;;  %v15726_v11 = vrot.slane %v11936_v60, 1 }
 0x142   : > { %v1957_v63 = vsel %vm1250_vm12, %v1952_v15, %v1956_v12  ;;  %v1976_v55 = vor.u32 %v1974_v22, %v1956_v12  ;;  %8998 = vmatprep.subr.bf16.mxu0 %v10273_v48  ;;  %v1307_v40 = vshll.u32 %v8558_v4, 16  ;;  %9637 = vmatpush3.bf16.msra.mxu1 %v10280_v18  ;;  %v10279_v18 = vld [vmem:[#allocation6 + $0x1a8] sm:$0xff]  }
 0x143   : > { %v2847_v35 = vsel %vm1250_vm12, %v2842_v62, %v2846_v28  ;;  %v2858_v42 = vor.u32 %v2856_v47, %v2846_v28  ;;  %9555 = vmatmul.mubr.bf16.gmra.mrb[68].mxu0 %v1957_v63  ;;  %v1780_v6 = vsel %vm708_vm8, %v1777_v33, %v15435_v23  ;;  %v1620_v15 = vsel %vm708_vm8, %v1617_v59, %v15716_v0 }
 0x144   : > { %9603 = vmatmul.mubr.bf16.gmra.mrb[68].mxu1 %v2847_v35  ;;  %v1187_v62 = vsel %vm1155_vm1, 65537, %v15661_v27  ;;  %v1978_v28 = vshll.u32 %v1780_v6, 16  ;;  %v2860_v22 = vshll.u32 %v1620_v15, 16  ;;  %v1998_v47 = vshrl.u32 %v1780_v6, 16  ;;  %9638 = vmatprep.subr.bf16.mxu1 %v10282_v9 }
 0x145   : > { %v2872_v12 = vshrl.u32 %v1620_v15, 16  ;;  %v1309_v48 = vrot.slane %v1307_v40, 1  ;;  %v8559_v57 = vcombine.low %v10800_v13, %v1187_v62  ;;  %v1311_v63 = vshrl.u32 %v8558_v4, 16  ;;  %8999 = vmatpush3.bf16.msra.mxu0 %v10275_v38  ;;  %v10284_v15 = vld [vmem:[#allocation6 + $0x228] sm:$0xff]   ;;  %v10281_v38 = vld [vmem:[#allocation6 + $0x1f0] sm:$0xff]  }
 0x146   : > { %v15717_v35 = vrot.slane %v11891_v24, 1  ;;  %v1980_v59 = vrot.slane %v1978_v28, 1  ;;  %v2862_v0 = vrot.slane %v2860_v22, 1  ;;  %v391_v23 = vand.u32 15, %v11934_v56  ;;  %9000 = vmatprep.subr.bf16.mxu0 %v10277_v25  ;;  %9639 = vmatpush3.bf16.msra.mxu1 %v10282_v9 }
 0x147   : > { %v11985_v6 = vsel %vm1396_vm10, %v1414_v5, %v15718_v31  ;;  %v11988_v4 = vsel %vm1250_vm12, %v1305_v37, %v1309_v48  ;;  %v1313_v40 = vor.u32 %v1311_v63, %v1309_v48  ;;  %v1315_v62 = vshll.u32 %v8559_v57, 16  ;;  %9640 = vmatprep.subr.bf16.mxu1 %v10284_v15 }
 0x148   : > { %v11979_v33 = vsel %vm1396_vm10, %v15717_v35, %v1414_v5  ;;  %15719 = vst [vmem:[#allocation62_spill] sm:$0xff] %v11988_v4  ;;  %v1319_v35 = vshrl.u32 %v8559_v57, 16  ;;  %v1981_v28 = vsel %vm1250_vm12, %v1976_v55, %v1980_v59  ;;  %v2863_v22 = vsel %vm1250_vm12, %v2858_v42, %v2862_v0  ;;  %v10286_v55 = vld [vmem:[#allocation6 + $0x230] sm:$0xff]  }
 0x149   : > { %vm15437_vm4 = vcmp.ne.s16.totalorder %v11988_v4, 0  ;;  %v2000_v56 = vor.u32 %v1998_v47, %v1980_v59  ;;  %9558 = vmatprep.mubr.bf16.mxu0 %v1981_v28  ;;  %9606 = vmatprep.mubr.bf16.mxu1 %v2863_v22  ;;  %v2874_v37 = vor.u32 %v2872_v12, %v2862_v0  ;;  %v1317_v25 = vrot.slane %v1315_v62, 1  ;;  %v10283_v57 = vld [vmem:[#allocation6 + $0x1b0] sm:$0xff]   ;;  %v10285_v59 = vld [vmem:[#allocation6 + $0x1f8] sm:$0xff]  }
 0x14a   : > { %v1733_v31 = vsel %vm15437_vm4, %v11842_v52, %v11915_v19  ;;  %v1454_v5 = vsel %vm15437_vm4, %v11838_v43, %v11878_v61  ;;  %vm12001_vm1 = vcmp.eq.s32.totalorder %v391_v23, 15  ;;  %v243_v9 = vadd.s32 168, %v10795_v8  ;;  %9001 = vmatpush3.bf16.msra.mxu0 %v10279_v18  ;;  %v12012_v61 = vld [vmem:[#allocation2 + $0x60] sm:$0xff]  ;;  %9641 = vmatpush3.bf16.msra.mxu1 %v10284_v15 }
 0x14b   : > { %v1781_v42 = vrot.slane %v1733_v31, 7  ;;  %v1621_v48 = vrot.slane %v1454_v5, 7  ;;  %v12007_v63 = vsel %vm1250_vm12, %v1313_v40, %v1317_v25  ;;  %vm1157_vm4 = vmpackc.low %vm12001_vm1, %vm12001_vm1  ;;  %v1321_v43 = vor.u32 %v1319_v35, %v1317_v25  ;;  %9002 = vmatprep.subr.bf16.mxu0 %v10281_v38  ;;  %9642 = vmatprep.subr.bf16.mxu1 %v10286_v55  ;;  %v10288_v31 = vld [vmem:[#allocation6 + $0x238] sm:$0xff]  }
 0x14c   : > { %15722 = vst [vmem:[#allocation63_spill] sm:$0xff] %v12007_v63  ;;  %v245_v12 = vadd.s32 184, %v10795_v8  ;;  %v15723_v0 = vrot.slane %v11948_v46, 7  ;;  %v15724_v40 = vrot.slane %v11954_v29, 7  ;;  %vm15445_vm13 = vcmp.ne.s16.totalorder %v12007_v63, 0 }
 0x14d   : > { %v1189_v35 = vsel %vm1157_vm4, 65537, %v15661_v27  ;;  %v12028_v38 = vsel %vm15445_vm13, %v11891_v24, %v11979_v33  ;;  %v1455_v5 = vsel %vm15445_vm13, %v11842_v52, %v11915_v19  ;;  %v405_v23 = vand.u32 15, %v243_v9 }
 0x14e   : > { %v1782_v18 = vsel %vm708_vm8, %v15723_v0, %v1781_v42  ;;  %v1622_v62 = vsel %vm708_vm8, %v15724_v40, %v1621_v48  ;;  %v1783_v29 = vrot.slane %v12028_v38, 7  ;;  %v8560_v15 = vcombine.low %v10800_v13, %v1189_v35  ;;  %9003 = vmatpush3.bf16.msra.mxu0 %v10283_v57  ;;  %9643 = vmatpush3.bf16.msra.mxu1 %v10286_v55 }
 0x14f   : > { %v2002_v28 = vshll.u32 %v1782_v18, 16  ;;  %v2876_v22 = vshll.u32 %v1622_v62, 16  ;;  %v2022_v46 = vshrl.u32 %v1782_v18, 16  ;;  %v2888_v25 = vshrl.u32 %v1622_v62, 16  ;;  %9004 = vmatprep.subr.bf16.mxu0 %v10285_v59  ;;  %9644 = vmatprep.subr.bf16.mxu1 %v10288_v31 }
 0x150   : > { %v1623_v40 = vrot.slane %v1455_v5, 7  ;;  %v1784_v18 = vsel %vm708_vm8, %v1781_v42, %v1783_v29  ;;  %v1323_v30 = vshll.u32 %v8560_v15, 16  ;;  %v1327_v4 = vshrl.u32 %v8560_v15, 16 }
 0x151   : > { %v2004_v47 = vrot.slane %v2002_v28, 1  ;;  %v2878_v0 = vrot.slane %v2876_v22, 1  ;;  %v15725_v38 = vrot.slane %v12012_v61, 1  ;;  %v2026_v9 = vshll.u32 %v1784_v18, 16 }
 0x152   : > { %v1624_v42 = vsel %vm708_vm8, %v1621_v48, %v1623_v40  ;;  %v1325_v35 = vrot.slane %v1323_v30, 1  ;;  %v2046_v28 = vshrl.u32 %v1784_v18, 16  ;;  %vm12047_vm4 = vcmp.eq.s32.totalorder %v405_v23, 15  ;;  %9005 = vmatpush3.bf16.msra.mxu0 %v10287_v7  ;;  %v12057_v48 = vld [vmem:[#allocation2 + $0x68] sm:$0xff]  ;;  %9645 = vmatpush3.bf16.msra.mxu1 %v10288_v31 }
 0x153   : > { %v12042_v52 = vsel %vm1396_vm10, %v15726_v11, %v15725_v38  ;;  %v2005_v19 = vsel %vm1250_vm12, %v2000_v56, %v2004_v47  ;;  %v2879_v57 = vsel %vm1250_vm12, %v2874_v37, %v2878_v0  ;;  %v2024_v62 = vor.u32 %v2022_v46, %v2004_v47  ;;  %vm1159_vm1 = vmpackc.low %vm12047_vm4, %vm12047_vm4 }
 0x154   : > { %9559 = vmatmul.mubr.bf16.gmra.mrb[72].mxu0 %v2005_v19  ;;  %9607 = vmatmul.mubr.bf16.gmra.mrb[72].mxu1 %v2879_v57  ;;  %v2890_v59 = vor.u32 %v2888_v25, %v2878_v0  ;;  %v2028_v22 = vrot.slane %v2026_v9, 1  ;;  %v2892_v5 = vshll.u32 %v1624_v42, 16  ;;  %v2904_v15 = vshrl.u32 %v1624_v42, 16  ;;  %v12083_v42 = vld [vmem:[#allocation2 + $0x70] sm:$0xff] }
 0x155   : > { %v12052_v56 = vsel %vm1250_vm12, %v1321_v43, %v1325_v35  ;;  %v1329_v37 = vor.u32 %v1327_v4, %v1325_v35  ;;  %v419_v55 = vand.u32 15, %v245_v12  ;;  %v1420_v30 = vrot.slane %v12057_v48, 1 }
 0x156   : > { %15729 = vst [vmem:[#allocation64_spill] sm:$0xff] %v12052_v56  ;;  %v2029_v23 = vsel %vm1250_vm12, %v2024_v62, %v2028_v22  ;;  %v2894_v46 = vrot.slane %v2892_v5, 1  ;;  %vm1387_vm13 = vcmp.ne.s16.totalorder %v12052_v56, 0  ;;  %v2048_v7 = vor.u32 %v2046_v28, %v2028_v22 }
 0x157   : > { %9562 = vmatprep.mubr.bf16.mxu0 %v2029_v23  ;;  %v1735_v43 = vsel %vm1387_vm13, %v11921_v39, %v11985_v6  ;;  %v1456_v4 = vsel %vm1387_vm13, %v11891_v24, %v11979_v33  ;;  %v1191_v12 = vsel %vm1159_vm1, 65537, %v15661_v27  ;;  %vm693_vm4 = vcmp.eq.s32.totalorder %v419_v55, 15 }
 0x158   : > { %v2895_v31 = vsel %vm1250_vm12, %v2890_v59, %v2894_v46  ;;  %v1785_v25 = vrot.slane %v1735_v43, 7  ;;  %v1625_v47 = vrot.slane %v1456_v4, 7  ;;  %v2906_v0 = vor.u32 %v2904_v15, %v2894_v46  ;;  %vm1161_vm6 = vmpackc.low %vm693_vm4, %vm693_vm4 }
 0x159   : > { %9610 = vmatprep.mubr.bf16.mxu1 %v2895_v31  ;;  %v8561_v18 = vcombine.low %v10800_v13, %v1191_v12  ;;  %v1193_v38 = vsel %vm1161_vm6, 65537, %v15661_v27  ;;  %v15730_v19 = vrot.slane %v12012_v61, 1  ;;  %v247_v24 = vadd.s32 200, %v10795_v8 }
 0x15a   : > { %v1786_v33 = vsel %vm708_vm8, %v1783_v29, %v1785_v25  ;;  %v1626_v62 = vsel %vm708_vm8, %v1623_v40, %v1625_v47  ;;  %v8562_v9 = vcombine.low %v10800_v13, %v1193_v38  ;;  %v1422_v59 = vrot.slane %v12083_v42, 1 }
 0x15b   : > { %v12077_v57 = vsel %vm1396_vm10, %v15730_v19, %v1420_v30  ;;  %v2050_v35 = vshll.u32 %v1786_v33, 16  ;;  %v2908_v28 = vshll.u32 %v1626_v62, 16  ;;  %v1331_v22 = vshll.u32 %v8561_v18, 16 }
 0x15c   : > { %v2070_v5 = vshrl.u32 %v1786_v33, 16  ;;  %v2920_v15 = vshrl.u32 %v1626_v62, 16  ;;  %v1335_v11 = vshrl.u32 %v8561_v18, 16  ;;  %v1339_v55 = vshll.u32 %v8562_v9, 16 }
 0x15d   : > { %v433_v23 = vand.u32 15, %v247_v24  ;;  %v2052_v46 = vrot.slane %v2050_v35, 1  ;;  %v2910_v43 = vrot.slane %v2908_v28, 1  ;;  %v1333_v4 = vrot.slane %v1331_v22, 1 }
 0x15e   : > { %v1343_v29 = vshrl.u32 %v8562_v9, 16  ;;  %v1341_v12 = vrot.slane %v1339_v55, 1  ;;  %v12087_v40 = vsel %vm1396_vm10, %v1420_v30, %v1422_v59  ;;  %v249_v31 = vadd.s32 216, %v10795_v8  ;;  %v12110_v55 = vld [vmem:[#allocation2 + $0x78] sm:$0xff] }
 0x15f   : > { %vm695_vm6 = vcmp.eq.s32.totalorder %v433_v23, 15  ;;  %v2053_v38 = vsel %vm1250_vm12, %v2048_v7, %v2052_v46  ;;  %v2911_v19 = vsel %vm1250_vm12, %v2906_v0, %v2910_v43  ;;  %v12093_v33 = vsel %vm1250_vm12, %v1329_v37, %v1333_v4 }
 0x160   : > { %15731 = vst [vmem:[#allocation65_spill] sm:$0xff] %v12093_v33  ;;  %v2072_v18 = vor.u32 %v2070_v5, %v2052_v46  ;;  %vm1163_vm1 = vmpackc.low %vm695_vm6, %vm695_vm6  ;;  %9563 = vmatmul.mubr.bf16.gmra.mrb[76].mxu0 %v2053_v38  ;;  %9611 = vmatmul.mubr.bf16.gmra.mrb[76].mxu1 %v2911_v19  ;;  %vm15448_vm4 = vcmp.ne.s16.totalorder %v12093_v33, 0  ;;  %v2922_v24 = vor.u32 %v2920_v15, %v2910_v43  ;;  %v447_v5 = vand.u32 15, %v249_v31 }
 0x161   : > { %v1337_v62 = vor.u32 %v1335_v11, %v1333_v4  ;;  %v1195_v30 = vsel %vm1163_vm1, 65537, %v15661_v27  ;;  %v1736_v7 = vsel %vm15448_vm4, %v11936_v60, %v12042_v52  ;;  %v1457_v37 = vsel %vm15448_vm4, %v11921_v39, %v11985_v6 }
 0x162   : > { %v8563_v0 = vcombine.low %v10800_v13, %v1195_v30  ;;  %v1345_v9 = vor.u32 %v1343_v29, %v1341_v12  ;;  %v1787_v35 = vrot.slane %v1736_v7, 7  ;;  %v1627_v28 = vrot.slane %v1457_v37, 7 }
 0x163   : > { %v12107_v22 = vsel %vm1250_vm12, %v1337_v62, %v1341_v12  ;;  %v1424_v23 = vrot.slane %v12110_v55, 1  ;;  %vm12123_vm1 = vcmp.eq.s32.totalorder %v447_v5, 15 }
 0x164   : > { %15732 = vst [vmem:[#allocation66_spill] sm:$0xff] %v12107_v22  ;;  %vm15447_vm6 = vcmp.ne.s16.totalorder %v12107_v22, 0  ;;  %v1347_v15 = vshll.u32 %v8563_v0, 16  ;;  %v1351_v11 = vshrl.u32 %v8563_v0, 16  ;;  %v1788_v46 = vsel %vm708_vm8, %v1785_v25, %v1787_v35 }
 0x165   : > { %v1628_v39 = vsel %vm708_vm8, %v1625_v47, %v1627_v28  ;;  %v1737_v6 = vsel %vm15447_vm6, %v12012_v61, %v12077_v57  ;;  %v1458_v43 = vsel %vm15447_vm6, %v11936_v60, %v12042_v52  ;;  %v2074_v4 = vshll.u32 %v1788_v46, 16  ;;  %vm1165_vm6 = vmpackc.low %vm12123_vm1, %vm12123_vm1 }
 0x166   : > { %v2924_v29 = vshll.u32 %v1628_v39, 16  ;;  %v1789_v12 = vrot.slane %v1737_v6, 7  ;;  %v2094_v31 = vshrl.u32 %v1788_v46, 16  ;;  %v1629_v38 = vrot.slane %v1458_v43, 7 }
 0x167   : > { %v2936_v19 = vshrl.u32 %v1628_v39, 16  ;;  %v1349_v62 = vrot.slane %v1347_v15, 1  ;;  %v2076_v47 = vrot.slane %v2074_v4, 1  ;;  %v12129_v37 = vsel %vm1396_vm10, %v1422_v59, %v1424_v23 }
 0x168   : > { %v2926_v30 = vrot.slane %v2924_v29, 1  ;;  %v1790_v7 = vsel %vm708_vm8, %v1787_v35, %v1789_v12  ;;  %v1630_v60 = vsel %vm708_vm8, %v1627_v28, %v1629_v38 }
 0x169   : > { %v2098_v0 = vshll.u32 %v1790_v7, 16  ;;  %v12133_v52 = vsel %vm1250_vm12, %v1345_v9, %v1349_v62  ;;  %v2118_v46 = vshrl.u32 %v1790_v7, 16  ;;  %v2077_v5 = vsel %vm1250_vm12, %v2072_v18, %v2076_v47  ;;  %v12159_v7 = vld [vmem:[#allocation2 + $0x80] sm:$0xff] }
 0x16a   : > { %15735 = vst [vmem:[#allocation67_spill] sm:$0xff] %v12133_v52  ;;  %v2927_v15 = vsel %vm1250_vm12, %v2922_v24, %v2926_v30  ;;  %v2096_v39 = vor.u32 %v2094_v31, %v2076_v47  ;;  %v2938_v35 = vor.u32 %v2936_v19, %v2926_v30  ;;  %9566 = vmatprep.mubr.bf16.mxu0 %v2077_v5  ;;  %v2940_v6 = vshll.u32 %v1630_v60, 16 }
 0x16b   : > { %9614 = vmatprep.mubr.bf16.mxu1 %v2927_v15  ;;  %v2100_v59 = vrot.slane %v2098_v0, 1  ;;  %vm15451_vm4 = vcmp.ne.s16.totalorder %v12133_v52, 0  ;;  %v2952_v28 = vshrl.u32 %v1630_v60, 16  ;;  %v1197_v24 = vsel %vm1165_vm6, 65537, %v15661_v27 }
 0x16c   : > { %v12145_v9 = vsel %vm15451_vm4, %v12057_v48, %v12087_v40  ;;  %v12151_v18 = vsel %vm15451_vm4, %v12012_v61, %v12077_v57  ;;  %v1353_v43 = vor.u32 %v1351_v11, %v1349_v62  ;;  %v2942_v29 = vrot.slane %v2940_v6, 1 }
 0x16d   : > { %v2101_v4 = vsel %vm1250_vm12, %v2096_v39, %v2100_v59  ;;  %v1791_v31 = vrot.slane %v12145_v9, 7  ;;  %v2120_v19 = vor.u32 %v2118_v46, %v2100_v59  ;;  %v1631_v25 = vrot.slane %v12151_v18, 7 }
 0x16e   : > { %9567 = vmatmul.mubr.bf16.gmra.mrb[80].mxu0 %v2101_v4  ;;  %v8564_v47 = vcombine.low %v10800_v13, %v1197_v24  ;;  %v251_v30 = vadd.s32 232, %v10795_v8  ;;  %v1426_v57 = vrot.slane %v12159_v7, 1  ;;  %v2943_v0 = vsel %vm1250_vm12, %v2938_v35, %v2942_v29 }
 0x16f   : > { %v1792_v11 = vsel %vm708_vm8, %v1789_v12, %v1791_v31  ;;  %v2954_v62 = vor.u32 %v2952_v28, %v2942_v29  ;;  %v253_v60 = vadd.s32 248, %v10795_v8  ;;  %9615 = vmatmul.mubr.bf16.gmra.mrb[80].mxu1 %v2943_v0  ;;  %v1632_v5 = vsel %vm708_vm8, %v1629_v38, %v1631_v25  ;;  %v12173_v8 = vld [vmem:[#allocation2 + $0x88] sm:$0xff] }
 0x170   : > { %v2122_v46 = vshll.u32 %v1792_v11, 16  ;;  %v1355_v15 = vshll.u32 %v8564_v47, 16  ;;  %v2142_v39 = vshrl.u32 %v1792_v11, 16  ;;  %v2956_v59 = vshll.u32 %v1632_v5, 16 }
 0x171   : > { %v2968_v6 = vshrl.u32 %v1632_v5, 16  ;;  %v461_v9 = vand.u32 15, %v251_v30  ;;  %v1359_v18 = vshrl.u32 %v8564_v47, 16  ;;  %v12167_v52 = vsel %vm1396_vm10, %v1424_v23, %v1426_v57  ;;  %v12181_v47 = vpop.f32.mrb[0].mxu0 }
 0x172   : > { %v2124_v24 = vrot.slane %v2122_v46, 1  ;;  %v1357_v4 = vrot.slane %v1355_v15, 1  ;;  %v475_v35 = vand.u32 15, %v253_v60  ;;  %v2958_v12 = vrot.slane %v2956_v59, 1  ;;  %15739 = vst [vmem:[#allocation68_spill] sm:$0xff] %v12181_v47  ;;  %v12190_v46 = vpop.f32.mrb[1].mxu0 }
 0x173   : > { %vm12169_vm6 = vcmp.eq.s32.totalorder %v461_v9, 15  ;;  %v1719_v38 = vrot.slane %v12173_v8, 1  ;;  %v15738_v29 = vrot.slane %v11679_v17, 1  ;;  %15741 = vst [vmem:[#allocation70_spill] sm:$0xff] %v12190_v46  ;;  %v12224_v46 = vld [vmem:[#allocation2 + $0x10] sm:$0x80] }
 0x174   : > { %v2125_v23 = vsel %vm1250_vm12, %v2120_v19, %v2124_v24  ;;  %v12185_v0 = vsel %vm1250_vm12, %v1353_v43, %v1357_v4  ;;  %v2144_v11 = vor.u32 %v2142_v39, %v2124_v24  ;;  %vm1167_vm1 = vmpackc.low %vm12169_vm6, %vm12169_vm6  ;;  %v1361_v60 = vor.u32 %v1359_v18, %v1357_v4  ;;  %v12195_v19 = vpop.f32.mrb[2].mxu0  ;;  %v12197_v43 = vpop.f32.mrb[0].mxu1 }
 0x175   : > { %v12179_v30 = vsel %vm1396_vm10, %v1426_v57, %v15738_v29  ;;  %15740 = vst [vmem:[#allocation69_spill] sm:$0xff] %v12185_v0  ;;  %9570 = vmatprep.mubr.bf16.mxu0 %v2125_v23  ;;  %v2959_v17 = vsel %vm1250_vm12, %v2954_v62, %v2958_v12  ;;  %vm1391_vm4 = vcmp.ne.s16.totalorder %v12185_v0, 0  ;;  %v2970_v5 = vor.u32 %v2968_v6, %v2958_v12  ;;  %v12208_v6 = vpop.f32.mrb[3].mxu0  ;;  %v12210_v9 = vpop.f32.mrb[1].mxu1 }
 0x176   : > { %v1199_v15 = vsel %vm1167_vm1, 65537, %v15661_v27  ;;  %15742 = vst [vmem:[#allocation71_spill] sm:$0xff] %v12195_v19  ;;  %9618 = vmatprep.mubr.bf16.mxu1 %v2959_v17  ;;  %v1739_v39 = vsel %vm1391_vm4, %v12083_v42, %v12129_v37  ;;  %v1460_v62 = vsel %vm1391_vm4, %v12057_v48, %v12087_v40  ;;  %vm701_vm6 = vcmp.eq.s32.totalorder %v475_v35, 15  ;;  %15743 = vst [vmem:[#allocation72_spill] sm:$0xff] %v12208_v6  ;;  %v12216_v29 = vpop.f32.mrb[2].mxu1 }
 0x177   : > { %v8565_v59 = vcombine.low %v10800_v13, %v1199_v15  ;;  %v1793_v18 = vrot.slane %v1739_v39, 7  ;;  %v1633_v24 = vrot.slane %v1460_v62, 7  ;;  %vm1169_vm1 = vmpackc.low %vm701_vm6, %vm701_vm6  ;;  %v1720_v4 = vsel %vm1396_vm10, %v1426_v57, %v1719_v38  ;;  %15745 = vst [vmem:[#allocation73_spill] sm:$0xff] %v12216_v29  ;;  %v12219_v35 = vpop.f32.mrb[3].mxu1 }
 0x178   : > { %v15744_v12 = vrot.slane %v11677_v58, 1  ;;  %v1201_v40 = vsel %vm1169_vm1, 65537, %v15661_v27  ;;  %15746 = vst [vmem:[#allocation74_spill] sm:$0xff] %v12219_v35 }
 0x179   : > { %v1363_v23 = vshll.u32 %v8565_v59, 16  ;;  %v1367_v17 = vshrl.u32 %v8565_v59, 16  ;;  %v1794_v15 = vsel %vm708_vm8, %v1791_v31, %v1793_v18  ;;  %v1634_v39 = vsel %vm708_vm8, %v1631_v25, %v1633_v24 }
 0x17a   : > { %v1722_v28 = vsel %vm1396_vm10, %v1719_v38, %v15744_v12  ;;  %v8566_v62 = vcombine.low %v10800_v13, %v1201_v40  ;;  %v2146_v6 = vshll.u32 %v1794_v15, 16  ;;  %v2972_v57 = vshll.u32 %v1634_v39, 16 }
 0x17b   : > { %v1365_v19 = vrot.slane %v1363_v23, 1  ;;  %v2166_v58 = vshrl.u32 %v1794_v15, 16  ;;  %v2984_v38 = vshrl.u32 %v1634_v39, 16  ;;  %v12237_v15 = vld [vmem:[#allocation2 + $0x18] sm:$0xff]  ;;  %v12248_v39 = vpop.f32.mrb[4].mxu1 }
 0x17c   : > { %v1371_v12 = vshll.u32 %v8566_v62, 16  ;;  %v1375_v47 = vshrl.u32 %v8566_v62, 16  ;;  %v2148_v29 = vrot.slane %v2146_v6, 1  ;;  %v2974_v27 = vrot.slane %v2972_v57, 1  ;;  %15750 = vst [vmem:[#allocation78_spill] sm:$0xff] %v12248_v39 }
 0x17d   : > { %v12227_v59 = vsel %vm1250_vm12, %v1361_v60, %v1365_v19  ;;  %v1369_v35 = vor.u32 %v1367_v17, %v1365_v19  ;;  %v12256_v57 = vsel %vm1250_vm12, %v10943_v51, %v11003_v21 }
 0x17e   : > { %15747 = vst [vmem:[#allocation75_spill] sm:$0xff] %v12227_v59  ;;  %vm15490_vm6 = vcmp.ne.s16.totalorder %v12227_v59, 0  ;;  %v1373_v31 = vrot.slane %v1371_v12, 1  ;;  %v2149_v25 = vsel %vm1250_vm12, %v2144_v11, %v2148_v29  ;;  %v2975_v23 = vsel %vm1250_vm12, %v2970_v5, %v2974_v27  ;;  %v12246_v5 = vpop.f32.mrb[4].mxu0 }
 0x17f   : > { %v1740_v40 = vsel %vm15490_vm6, %v12110_v55, %v12167_v52  ;;  %v2168_v6 = vor.u32 %v2166_v58, %v2148_v29  ;;  %9571 = vmatmul.mubr.bf16.gmra.mrb[84].mxu0 %v2149_v25  ;;  %9619 = vmatmul.mubr.bf16.gmra.mrb[84].mxu1 %v2975_v23  ;;  %v1461_v19 = vsel %vm15490_vm6, %v12083_v42, %v12129_v37  ;;  %v12258_v58 = vpop.f32.mrb[5].mxu0  ;;  %v12260_v37 = vpop.f32.mrb[5].mxu1 }
 0x180   : > { %v1795_v60 = vrot.slane %v1740_v40, 7  ;;  %v2986_v17 = vor.u32 %v2984_v38, %v2974_v27  ;;  %v12244_v11 = vsel %vm1250_vm12, %v1369_v35, %v1373_v31  ;;  %15749 = vst [vmem:[#allocation77_spill] sm:$0xff] %v12246_v5  ;;  %v1635_v62 = vrot.slane %v1461_v19, 7  ;;  %15752 = vst [vmem:[#allocation80_spill] sm:$0xff] %v12258_v58  ;;  %v12271_v27 = vpop.f32.mrb[6].mxu0  ;;  %v12273_v51 = vpop.f32.mrb[6].mxu1 }
 0x181   : > { %15748 = vst [vmem:[#allocation76_spill] sm:$0xff] %v12244_v11  ;;  %vm15452_vm1 = vcmp.ne.s16.totalorder %v12244_v11, 0  ;;  %v12251_v29 = vor.u32 %v1375_v47, %v1373_v31  ;;  %15753 = vst [vmem:[#allocation81_spill] sm:$0xff] %v12260_v37  ;;  %v12276_v23 = vpop.f32.mrb[7].mxu0  ;;  %v12278_v40 = vpop.f32.mrb[7].mxu1 }
 0x182   : > { %v1796_v35 = vsel %vm708_vm8, %v1793_v18, %v1795_v60  ;;  %v1741_v38 = vsel %vm15452_vm1, %v12159_v7, %v1720_v4  ;;  %v1462_v47 = vsel %vm15452_vm1, %v12110_v55, %v12167_v52  ;;  %15754 = vst [vmem:[#allocation82_spill] sm:$0xff] %v12271_v27  ;;  %15755 = vst [vmem:[#allocation83_spill] sm:$0xff] %v12273_v51  ;;  %v12293_v37 = vpop.f32.mrb[8].mxu0 }
 0x183   : > { %15751 = vst [vmem:[#allocation79_spill] sm:$0xff] %v12251_v29  ;;  %v2170_v21 = vshll.u32 %v1796_v35, 16  ;;  %v1636_v31 = vsel %vm708_vm8, %v1633_v24, %v1635_v62  ;;  %v1797_v25 = vrot.slane %v1741_v38, 7  ;;  %v2190_v18 = vshrl.u32 %v1796_v35, 16  ;;  %15756 = vst [vmem:[#allocation84_spill] sm:$0xff] %v12276_v23 }
 0x184   : > { %15757 = vst [vmem:[#allocation85_spill] sm:$0xff] %v12278_v40  ;;  %v2988_v4 = vshll.u32 %v1636_v31, 16  ;;  %v1637_v19 = vrot.slane %v1462_v47, 7  ;;  %v3000_v13 = vshrl.u32 %v1636_v31, 16  ;;  %vm1394_vm1 = vcmp.ne.s16.totalorder %v12251_v29, 0  ;;  %15758 = vst [vmem:[#allocation86_spill] sm:$0xff] %v12293_v37 }
 0x185   : > { %v2172_v52 = vrot.slane %v2170_v21, 1  ;;  %v1798_v12 = vsel %vm708_vm8, %v1795_v60, %v1797_v25  ;;  %v1742_v27 = vsel %vm1394_vm1, %v12173_v8, %v1722_v28  ;;  %v1463_v24 = vsel %vm1394_vm1, %v12159_v7, %v12179_v30  ;;  %v12295_v30 = vpop.f32.mrb[8].mxu1 }
 0x186   : > { %v2990_v35 = vrot.slane %v2988_v4, 1  ;;  %v2194_v38 = vshll.u32 %v1798_v12, 16  ;;  %v1638_v23 = vsel %vm708_vm8, %v1635_v62, %v1637_v19  ;;  %v1799_v47 = vrot.slane %v1742_v27, 7 }
 0x187   : > { %v2173_v31 = vsel %vm1250_vm12, %v2168_v6, %v2172_v52  ;;  %v2192_v58 = vor.u32 %v2190_v18, %v2172_v52  ;;  %v3004_v21 = vshll.u32 %v1638_v23, 16  ;;  %v2214_v5 = vshrl.u32 %v1798_v12, 16  ;;  %v12297_v6 = vpop.f32.mrb[9].mxu0  ;;  %v12299_v18 = vpop.f32.mrb[9].mxu1 }
 0x188   : > { %9574 = vmatprep.mubr.bf16.mxu0 %v2173_v31  ;;  %v2991_v60 = vsel %vm1250_vm12, %v2986_v17, %v2990_v35  ;;  %v2196_v40 = vrot.slane %v2194_v38, 1  ;;  %v3002_v28 = vor.u32 %v3000_v13, %v2990_v35  ;;  %v1800_v51 = vsel %vm708_vm8, %v1797_v25, %v1799_v47  ;;  %15759 = vst [vmem:[#allocation87_spill] sm:$0xff] %v12297_v6  ;;  %v3549_v35 = vld [vmem:[#allocation2 + $0x20] sm:$0xff]  ;;  %v12302_v25 = vld [vmem:[#allocation2 + $0x28] sm:$0xff]  ;;  %v12304_v38 = vpop.f32.mrb[10].mxu0  ;;  %v12306_v31 = vpop.f32.mrb[10].mxu1 }
 0x189   : > { %9622 = vmatprep.mubr.bf16.mxu1 %v2991_v60  ;;  %v3006_v4 = vrot.slane %v3004_v21, 1  ;;  %v2218_v62 = vshll.u32 %v1800_v51, 16  ;;  %v1639_v27 = vrot.slane %v1463_v24, 7  ;;  %v3016_v39 = vshrl.u32 %v1638_v23, 16  ;;  %15760 = vst [vmem:[#allocation88_spill] sm:$0xff] %v12304_v38  ;;  %15761 = vst [vmem:[#allocation89_spill] sm:$0xff] %v12306_v31 }
 0x18a   : > { %v2197_v12 = vsel %vm1250_vm12, %v2192_v58, %v2196_v40  ;;  %v2216_v17 = vor.u32 %v2214_v5, %v2196_v40  ;;  %v2238_v52 = vshrl.u32 %v1800_v51, 16  ;;  %v2242_v13 = vshll.u32 %v1799_v47, 16  ;;  %v12310_v6 = vpop.f32.mrb[11].mxu0  ;;  %v12312_v58 = vpop.f32.mrb[11].mxu1 }
 0x18b   : > { %9575 = vmatmul.mubr.bf16.gmra.mrb[88].mxu0 %v2197_v12  ;;  %v3007_v24 = vsel %vm1250_vm12, %v3002_v28, %v3006_v4  ;;  %v2220_v23 = vrot.slane %v2218_v62, 1  ;;  %v1640_v21 = vsel %vm708_vm8, %v1637_v19, %v1639_v27  ;;  %v3018_v60 = vor.u32 %v3016_v39, %v3006_v4  ;;  %15762 = vst [vmem:[#allocation90_spill] sm:$0xff] %v12310_v6  ;;  %v10385_v6 = vld [vmem:[#allocation2 + $0x28] sm:$0xff] }
 0x18c   : > { %9623 = vmatmul.mubr.bf16.gmra.mrb[88].mxu1 %v3007_v24  ;;  %v3020_v5 = vshll.u32 %v1640_v21, 16  ;;  %v2244_v51 = vrot.slane %v2242_v13, 1  ;;  %v3037_v40 = vshrl.u32 %v1640_v21, 16  ;;  %v3041_v47 = vshll.u32 %v1639_v27, 16 }
 0x18d   : > { %v2221_v38 = vsel %vm1250_vm12, %v2216_v17, %v2220_v23  ;;  %v2240_v37 = vor.u32 %v2238_v52, %v2220_v23  ;;  %v3609_v31 = vrot.slane %v3549_v35, 1  ;;  %v3611_v12 = vrot.slane %v12302_v25, 1 }
 0x18e   : > { %9578 = vmatprep.mubr.bf16.mxu0 %v2221_v38  ;;  %v3022_v28 = vrot.slane %v3020_v5, 1  ;;  %v3043_v62 = vrot.slane %v3041_v47, 1  ;;  %v15763_v39 = vrot.slane %v12237_v15, 1  ;;  %v15764_v4 = vrot.slane %v12224_v46, 7  ;;  %v10383_v5 = vld [vmem:[#allocation2 + $0x18] sm:$0xff] }
 0x18f   : > { %v2245_v17 = vsel %vm1250_vm12, %v2240_v37, %v2244_v51  ;;  %v3612_v38 = vsel %vm1396_vm10, %v3609_v31, %v3611_v12  ;;  %v12337_v37 = vld [vmem:[#allocation2 + $0x38] sm:$0xff]  ;;  %v12339_v51 = vpop.f32.mrb[12].mxu0 }
 0x190   : > { %v3658_v19 = vsel %vm1378_vm7, %v12224_v46, %v15763_v39  ;;  %v3568_v27 = vsel %vm708_vm8, %v15764_v4, %v10907_v41  ;;  %v15765_v52 = vmov %v15763_v39  ;;  %v3023_v23 = vsel %vm1250_vm12, %v3018_v60, %v3022_v28  ;;  %v10384_v39 = vld [vmem:[#allocation2 + $0x20] sm:$0xff]  ;;  %v12335_v46 = vld [vmem:[#allocation2 + $0x30] sm:$0xff]  ;;  %15766 = vst [vmem:[#allocation91_spill] sm:$0xff] %v12339_v51  ;;  %v12341_v4 = vpop.f32.mrb[12].mxu1  ;;  %v15872_v29 = vld [vmem:[#allocation88_spill] sm:$0xff] }
 0x191   : > { %v3610_v13 = vsel %vm1396_vm10, %v15765_v52, %v3609_v31  ;;  %v3700_v24 = vrot.slane %v3658_v19, 7  ;;  %v3039_v21 = vor.u32 %v3037_v40, %v3022_v28  ;;  %v3660_v41 = vsel %vm1380_vm5, %v10384_v39, %v3612_v38  ;;  %9626 = vmatprep.mubr.bf16.mxu1 %v3023_v23  ;;  %v12349_v19 = vpop.f32.mrb[13].mxu0  ;;  %v12351_v52 = vpop.f32.mrb[13].mxu1 }
 0x192   : > { %v3659_v47 = vsel %vm1379_vm11, %v10383_v5, %v3610_v13  ;;  %v3703_v60 = vrot.slane %v3660_v41, 7  ;;  %v3574_v40 = vsel %vm1037_vm15, %v12237_v15, %v3568_v27  ;;  %v3575_v28 = vsel %vm1038_vm0, %v3549_v35, %v10991_v32  ;;  %15767 = vst [vmem:[#allocation92_spill] sm:$0xff] %v12349_v19  ;;  %v12354_v23 = vpop.f32.mrb[14].mxu0  ;;  %v12472_v19 = vld [vmem:[#allocation2 + $0x70] sm:$0xff] }
 0x193   : > { %v3701_v31 = vrot.slane %v3659_v47, 7  ;;  %v3044_v13 = vsel %vm1250_vm12, %v3039_v21, %v3043_v62  ;;  %v3783_v38 = vshrl.u32 %v3574_v40, 16  ;;  %v3785_v5 = vshll.u32 %v3574_v40, 16  ;;  %15768 = vst [vmem:[#allocation93_spill] sm:$0xff] %v12354_v23  ;;  %v12356_v47 = vpop.f32.mrb[14].mxu1  ;;  %9579 = vmatmul.mubr.bf16.gmra.mrb[92].mxu0 %v2245_v17  ;;  %v12362_v41 = vpop.f32.mrb[15].mxu0 }
 0x194   : > { %v3790_v39 = vshll.u32 %v3575_v28, 16  ;;  %v3613_v32 = vrot.slane %v12335_v46, 1  ;;  %v3615_v35 = vrot.slane %v12337_v37, 1  ;;  %15769 = vst [vmem:[#allocation94_spill] sm:$0xff] %v12362_v41  ;;  %v12364_v14 = vpop.f32.mrb[15].mxu1  ;;  %9627 = vmatmul.mubr.bf16.gmra.mrb[92].mxu1 %v3044_v13  ;;  %4278 = vmatprep.mubr.bf16.mxu0 %v12256_v57  ;;  %v10386_v23 = vld [vmem:[#allocation2 + $0x30] sm:$0xff] }
 0x195   : > { %v3702_v15 = vsel %vm708_vm8, %v3700_v24, %v3701_v31  ;;  %v3704_v27 = vsel %vm708_vm8, %v3701_v31, %v3703_v60  ;;  %v3787_v17 = vrot.slane %v3785_v5, 1  ;;  %v12373_v13 = vld [vmem:[#allocation2 + $0x40] sm:$0xff] }
 0x196   : > { %v3803_v62 = vshrl.u32 %v3702_v15, 16  ;;  %v3805_v21 = vshll.u32 %v3702_v15, 16  ;;  %v3810_v40 = vshll.u32 %v3704_v27, 16  ;;  %v3822_v45 = vshrl.u32 %v3704_v27, 16 }
 0x197   : > { %v3792_v3 = vrot.slane %v3790_v39, 1  ;;  %v3614_v24 = vsel %vm1396_vm10, %v3611_v12, %v3613_v32  ;;  %v3616_v31 = vsel %vm1396_vm10, %v3613_v32, %v3615_v35  ;;  %v3788_v15 = vor.u32 %v3787_v17, %v3783_v38  ;;  %v12383_v38 = vld [vmem:[#allocation2 + $0x48] sm:$0xff]  ;;  %v12387_v17 = vpop.f32.mrb[16].mxu1 }
 0x198   : > { %v3807_v53 = vrot.slane %v3805_v21, 1  ;;  %v3812_v1 = vrot.slane %v3810_v40, 1  ;;  %v3661_v41 = vsel %vm1381_vm2, %v10385_v6, %v3614_v24  ;;  %v3662_v57 = vsel %vm1382_vm9, %v10386_v23, %v3616_v31 }
 0x199   : > { %v3705_v27 = vrot.slane %v3661_v41, 7  ;;  %v3707_v5 = vrot.slane %v3662_v57, 7  ;;  %v3576_v12 = vsel %vm15469_vm3, %v12302_v25, %v11036_v44  ;;  %v3814_v21 = vshrl.u32 %v3575_v28, 16  ;;  %v12385_v41 = vpop.f32.mrb[16].mxu0 }
 0x19a   : > { %v3808_v39 = vor.u32 %v3807_v53, %v3803_v62  ;;  %v3824_v32 = vor.u32 %v3822_v45, %v3812_v1  ;;  %v3818_v40 = vshll.u32 %v3576_v12, 16  ;;  %v3793_v6 = vsel %vm1250_vm12, %v3788_v15, %v3792_v3  ;;  %15770 = vst [vmem:[#allocation95_spill] sm:$0xff] %v12385_v41  ;;  %v12390_v28 = vpop.f32.mrb[17].mxu0  ;;  %v12392_v62 = vpop.f32.mrb[17].mxu1 }
 0x19b   : > { %v3706_v24 = vsel %vm708_vm8, %v3703_v60, %v3705_v27  ;;  %v3708_v23 = vsel %vm708_vm8, %v3705_v27, %v3707_v5  ;;  %v3617_v31 = vrot.slane %v12373_v13, 1  ;;  %15771 = vst [vmem:[#allocation96_spill] sm:$0xff] %v12390_v28  ;;  %4279 = vmatmul.mubr.bf16.vlgmr.msra.gmra.mrb[96].mxu0 %v3793_v6  ;;  %v3816_v60 = vor.u32 %v3814_v21, %v3792_v3  ;;  %v12395_v26 = vpop.f32.mrb[18].mxu0  ;;  %v12397_v2 = vpop.f32.mrb[18].mxu1 }
 0x19c   : > { %v3813_v44 = vsel %vm1250_vm12, %v3808_v39, %v3812_v1  ;;  %v3826_v53 = vshll.u32 %v3706_v24, 16  ;;  %v3838_v45 = vshrl.u32 %v3706_v24, 16  ;;  %v3842_v25 = vshll.u32 %v3708_v23, 16  ;;  %15772 = vst [vmem:[#allocation97_spill] sm:$0xff] %v12395_v26  ;;  %4286 = vmatprep.mubr.bf16.mxu0 %v11099_v20  ;;  %v10387_v39 = vld [vmem:[#allocation2 + $0x38] sm:$0xff]  ;;  %v12403_v6 = vpop.f32.mrb[19].mxu0 }
 0x19d   : > { %9646 = vmatprep.mubr.bf16.mxu1 %v3813_v44  ;;  %v3820_v57 = vrot.slane %v3818_v40, 1  ;;  %v3618_v15 = vsel %vm1396_vm10, %v3615_v35, %v3617_v31  ;;  %v3854_v27 = vshrl.u32 %v3708_v23, 16  ;;  %v3619_v44 = vrot.slane %v12383_v38, 1  ;;  %15773 = vst [vmem:[#allocation98_spill] sm:$0xff] %v12403_v6  ;;  %v12405_v3 = vpop.f32.mrb[19].mxu1  ;;  %v15781_v26 = vld [vmem:[#allocation62_spill] sm:$0xff] }
 0x19e   : > { %v3828_v54 = vrot.slane %v3826_v53, 1  ;;  %v3844_v1 = vrot.slane %v3842_v25, 1  ;;  %v3663_v24 = vsel %vm15472_vm14, %v10387_v39, %v3618_v15  ;;  %vm15774_vm3 = vcmp.ne.s16.totalorder %v11073_v36, 0  ;;  %v12416_v15 = vld [vmem:[#allocation2 + $0x50] sm:$0xff]  ;;  %v12418_v39 = vld [vmem:[#allocation2 + $0x58] sm:$0xff] }
 0x19f   : > { %v3821_v35 = vsel %vm1250_vm12, %v3816_v60, %v3820_v57  ;;  %v3709_v21 = vrot.slane %v3663_v24, 7  ;;  %v12412_v40 = vsel %vm15774_vm3, %v12335_v46, %v11124_v34  ;;  %v3620_v53 = vsel %vm1396_vm10, %v3617_v31, %v3619_v44 }
 0x1a0   : > { %v3829_v20 = vsel %vm1250_vm12, %v3824_v32, %v3828_v54  ;;  %v3840_v23 = vor.u32 %v3838_v45, %v3828_v54  ;;  %v3830_v25 = vshrl.u32 %v3576_v12, 16  ;;  %v3856_v24 = vor.u32 %v3854_v27, %v3844_v1 }
 0x1a1   : > { %9647 = vmatmul.mubr.bf16.vlgmr.msra.gmra.mrb[64].mxu1 %v3829_v20  ;;  %v3710_v60 = vsel %vm708_vm8, %v3707_v5, %v3709_v21  ;;  %vm15775_vm14 = vcmp.ne.s16.totalorder %v11940_v49, 0  ;;  %v3834_v34 = vshll.u32 %v12412_v40, 16  ;;  %v3621_v12 = vrot.slane %v12416_v15, 1  ;;  %v12427_v20 = vpop.f32.mrb[20].mxu0  ;;  %v12429_v5 = vpop.f32.mrb[20].mxu1 }
 0x1a2   : > { %v3664_v36 = vsel %vm15775_vm14, %v10388_v50, %v3620_v53  ;;  %v3845_v46 = vsel %vm1250_vm12, %v3840_v23, %v3844_v1  ;;  %v3858_v54 = vshll.u32 %v3710_v60, 16  ;;  %v3870_v31 = vshrl.u32 %v3710_v60, 16  ;;  %15776 = vst [vmem:[#allocation99_spill] sm:$0xff] %v12427_v20  ;;  %v12432_v6 = vpop.f32.mrb[21].mxu0  ;;  %v12434_v1 = vpop.f32.mrb[21].mxu1 }
 0x1a3   : > { %v3711_v32 = vrot.slane %v3664_v36, 7  ;;  %9650 = vmatprep.mubr.bf16.mxu1 %v3845_v46  ;;  %v3623_v45 = vrot.slane %v12418_v39, 1  ;;  %v3832_v50 = vor.u32 %v3830_v25, %v3820_v57  ;;  %v3836_v53 = vrot.slane %v3834_v34, 1  ;;  %15777 = vst [vmem:[#allocation100_spill] sm:$0xff] %v12432_v6  ;;  %4287 = vmatmul.mubr.bf16.gmra.mrb[100].mxu0 %v3821_v35  ;;  %v12447_v57 = vpop.f32.mrb[22].mxu0  ;;  %v12449_v25 = vpop.f32.mrb[22].mxu1 }
 0x1a4   : > { %v3860_v27 = vrot.slane %v3858_v54, 1  ;;  %v3622_v23 = vsel %vm1396_vm10, %v3619_v44, %v3621_v12  ;;  %vm15778_vm3 = vcmp.ne.s16.totalorder %v11139_v10, 0  ;;  %v12443_v54 = vld [vmem:[#allocation2 + $0x60] sm:$0xff]  ;;  %15779 = vst [vmem:[#allocation101_spill] sm:$0xff] %v12447_v57  ;;  %v15780_v34 = vld [vmem:[#allocation18_spill] sm:$0xff]  ;;  %vm15782_vm14 = vcmp.ne.s16.totalorder %v15781_v26, 0 }
 0x1a5   : > { %v3712_v49 = vsel %vm708_vm8, %v3709_v21, %v3711_v32  ;;  %v12441_v46 = vsel %vm15778_vm3, %v12337_v37, %v11181_v16  ;;  %v12445_v21 = vld [vmem:[#allocation2 + $0x68] sm:$0xff]  ;;  %4294 = vmatprep.mubr.bf16.mxu0 %v15780_v34  ;;  %v3624_v16 = vsel %vm1396_vm10, %v3621_v12, %v3623_v45  ;;  %v12456_v37 = vpop.f32.mrb[23].mxu0  ;;  %v12458_v10 = vpop.f32.mrb[23].mxu1  ;;  %v10390_v57 = vld [vmem:[#allocation2 + $0x50] sm:$0xff]  ;;  %vm15784_vm3 = vcmp.ne.s16.totalorder %v12007_v63, 0 }
 0x1a6   : > { %v3874_v36 = vshll.u32 %v3712_v49, 16  ;;  %v3886_v60 = vshrl.u32 %v3712_v49, 16  ;;  %v3861_v35 = vsel %vm1250_vm12, %v3856_v24, %v3860_v27  ;;  %v3872_v44 = vor.u32 %v3870_v31, %v3860_v27  ;;  %v10389_v49 = vld [vmem:[#allocation2 + $0x48] sm:$0xff]  ;;  %15783 = vst [vmem:[#allocation18_spill] sm:$0xff] %v12456_v37 }
 0x1a7   : > { %v3665_v28 = vsel %vm15782_vm14, %v10389_v49, %v3622_v23  ;;  %v3666_v20 = vsel %vm15784_vm3, %v10390_v57, %v3624_v16  ;;  %v3846_v24 = vshrl.u32 %v12412_v40, 16  ;;  %v3850_v31 = vshll.u32 %v12441_v46, 16 }
 0x1a8   : > { %v3876_v41 = vrot.slane %v3874_v36, 1  ;;  %v3713_v6 = vrot.slane %v3665_v28, 7  ;;  %v3715_v34 = vrot.slane %v3666_v20, 7  ;;  %v3625_v27 = vrot.slane %v12443_v54, 1 }
 0x1a9   : > { %v3627_v23 = vrot.slane %v12445_v21, 1  ;;  %9651 = vmatmul.mubr.bf16.gmra.mrb[68].mxu1 %v3861_v35  ;;  %v3837_v49 = vsel %vm1250_vm12, %v3832_v50, %v3836_v53  ;;  %v3848_v16 = vor.u32 %v3846_v24, %v3836_v53  ;;  %v12474_v35 = vpop.f32.mrb[24].mxu0  ;;  %vm15786_vm14 = vcmp.ne.s16.totalorder %v12093_v33, 0 }
 0x1aa   : > { %v3877_v12 = vsel %vm1250_vm12, %v3872_v44, %v3876_v41  ;;  %v3714_v28 = vsel %vm708_vm8, %v3711_v32, %v3713_v6  ;;  %v3888_v36 = vor.u32 %v3886_v60, %v3876_v41  ;;  %v3716_v57 = vsel %vm708_vm8, %v3713_v6, %v3715_v34  ;;  %15785 = vst [vmem:[#allocation102_spill] sm:$0xff] %v12474_v35  ;;  %v12476_v44 = vpop.f32.mrb[24].mxu1  ;;  %v12483_v53 = vpop.f32.mrb[25].mxu0 }
 0x1ab   : > { %9654 = vmatprep.mubr.bf16.mxu1 %v3877_v12  ;;  %v3890_v63 = vshll.u32 %v3714_v28, 16  ;;  %v3902_v40 = vshrl.u32 %v3714_v28, 16  ;;  %v3906_v20 = vshll.u32 %v3716_v57, 16  ;;  %v3626_v26 = vsel %vm1396_vm10, %v3623_v45, %v3625_v27  ;;  %v10391_v12 = vld [vmem:[#allocation2 + $0x58] sm:$0xff]  ;;  %15787 = vst [vmem:[#allocation103_spill] sm:$0xff] %v12483_v53  ;;  %v12485_v45 = vpop.f32.mrb[25].mxu1  ;;  %4295 = vmatmul.mubr.bf16.gmra.mrb[104].mxu0 %v3837_v49 }
 0x1ac   : > { %v3628_v37 = vsel %vm1396_vm10, %v3625_v27, %v3627_v23  ;;  %v3852_v32 = vrot.slane %v3850_v31, 1  ;;  %v3667_v41 = vsel %vm1387_vm13, %v10391_v12, %v3626_v26  ;;  %v15788_v28 = vld [vmem:[#allocation21_spill] sm:$0xff]  ;;  %v12493_v56 = vpop.f32.mrb[26].mxu0  ;;  %v12495_v26 = vpop.f32.mrb[26].mxu1  ;;  %v3918_v33 = vshrl.u32 %v3716_v57, 16 }
 0x1ad   : > { %v3892_v50 = vrot.slane %v3890_v63, 1  ;;  %v3668_v6 = vsel %vm15786_vm14, %v12012_v61, %v3628_v37  ;;  %v3908_v60 = vrot.slane %v3906_v20, 1  ;;  %v3717_v24 = vrot.slane %v3667_v41, 7  ;;  %v15789_v63 = vld [vmem:[#allocation20_spill] sm:$0xff]  ;;  %15791 = vst [vmem:[#allocation21_spill] sm:$0xff] %v12493_v56  ;;  %v15792_v37 = vld [vmem:[#allocation19_spill] sm:$0xff] }
 0x1ae   : > { %v3719_v27 = vrot.slane %v3668_v6, 7  ;;  %vm15790_vm3 = vcmp.ne.s16.totalorder %v15789_v63, 0  ;;  %4302 = vmatprep.mubr.bf16.mxu0 %v15792_v37  ;;  %v3629_v49 = vrot.slane %v12472_v19, 1  ;;  %v12500_v20 = vld [vmem:[#allocation2 + $0x78] sm:$0xff]  ;;  %v12502_v41 = vpop.f32.mrb[27].mxu0  ;;  %v12504_v6 = vpop.f32.mrb[27].mxu1  ;;  %v3853_v53 = vsel %vm1250_vm12, %v3848_v16, %v3852_v32 }
 0x1af   : > { %v12491_v31 = vsel %vm15790_vm3, %v12373_v13, %v15788_v28  ;;  %v3893_v61 = vsel %vm1250_vm12, %v3888_v36, %v3892_v50  ;;  %v3904_v12 = vor.u32 %v3902_v40, %v3892_v50  ;;  %15793 = vst [vmem:[#allocation19_spill] sm:$0xff] %v12500_v20  ;;  %15794 = vst [vmem:[#allocation104_spill] sm:$0xff] %v12502_v41  ;;  %v3862_v63 = vshrl.u32 %v12441_v46, 16  ;;  %v12520_v51 = vpop.f32.mrb[28].mxu0  ;;  %v15798_v16 = vld [vmem:[#allocation67_spill] sm:$0xff] }
 0x1b0   : > { %v3718_v13 = vsel %vm708_vm8, %v3715_v34, %v3717_v24  ;;  %v3720_v28 = vsel %vm708_vm8, %v3717_v24, %v3719_v27  ;;  %v3866_v57 = vshll.u32 %v12491_v31, 16  ;;  %v3630_v50 = vsel %vm1396_vm10, %v3627_v23, %v3629_v49  ;;  %15797 = vst [vmem:[#allocation106_spill] sm:$0xff] %v12520_v51  ;;  %v12522_v23 = vpop.f32.mrb[28].mxu1 }
 0x1b1   : > { %v3909_v36 = vsel %vm1250_vm12, %v3904_v12, %v3908_v60  ;;  %v3922_v56 = vshll.u32 %v3718_v13, 16  ;;  %v3934_v37 = vshrl.u32 %v3718_v13, 16  ;;  %v3938_v40 = vshll.u32 %v3720_v28, 16  ;;  %9655 = vmatmul.mubr.bf16.gmra.mrb[72].mxu1 %v3893_v61  ;;  %v12518_v61 = vld [vmem:[#allocation2 + $0x80] sm:$0xff] }
 0x1b2   : > { %v3631_v41 = vrot.slane %v12500_v20, 1  ;;  %9658 = vmatprep.mubr.bf16.mxu1 %v3909_v36  ;;  %v3920_v34 = vor.u32 %v3918_v33, %v3908_v60  ;;  %vm15795_vm14 = vcmp.ne.s16.totalorder %v12107_v22, 0  ;;  %15796 = vst [vmem:[#allocation105_spill] sm:$0xff] %v12518_v61  ;;  %v3864_v36 = vor.u32 %v3862_v63, %v3852_v32  ;;  %v12527_v33 = vld [vmem:[#allocation2 + $0x88] sm:$0xff]  ;;  %v12529_v60 = vpop.f32.mrb[29].mxu0  ;;  %v15803_v22 = vld [vmem:[#allocation23_spill] sm:$0xff] }
 0x1b3   : > { %v3924_v35 = vrot.slane %v3922_v56, 1  ;;  %v3669_v46 = vsel %vm15795_vm14, %v12057_v48, %v3630_v50  ;;  %v3940_v24 = vrot.slane %v3938_v40, 1  ;;  %vm15799_vm3 = vcmp.ne.s16.totalorder %v15798_v16, 0  ;;  %15800 = vst [vmem:[#allocation107_spill] sm:$0xff] %v12527_v33  ;;  %15801 = vst [vmem:[#allocation108_spill] sm:$0xff] %v12529_v60  ;;  %v12531_v48 = vpop.f32.mrb[29].mxu1  ;;  %4303 = vmatmul.mubr.bf16.gmra.mrb[108].mxu0 %v3853_v53 }
 0x1b4   : > { %v3721_v12 = vrot.slane %v3669_v46, 7  ;;  %v3632_v13 = vsel %vm1396_vm10, %v3629_v49, %v3631_v41  ;;  %v3868_v49 = vrot.slane %v3866_v57, 1  ;;  %v15802_v46 = vld [vmem:[#allocation24_spill] sm:$0xff]  ;;  %vm15804_vm14 = vcmp.ne.s16.totalorder %v15803_v22, 0  ;;  %v12540_v63 = vpop.f32.mrb[30].mxu0 }
 0x1b5   : > { %v3936_v20 = vor.u32 %v3934_v37, %v3924_v35  ;;  %v3670_v56 = vsel %vm15799_vm3, %v12083_v42, %v3632_v13  ;;  %v12538_v32 = vsel %vm15804_vm14, %v12383_v38, %v15802_v46  ;;  %15805 = vst [vmem:[#allocation24_spill] sm:$0xff] %v12540_v63  ;;  %v12542_v42 = vpop.f32.mrb[30].mxu1  ;;  %v3925_v37 = vsel %vm1250_vm12, %v3920_v34, %v3924_v35  ;;  %v15806_v13 = vld [vmem:[#allocation22_spill] sm:$0xff] }
 0x1b6   : > { %v3722_v40 = vsel %vm708_vm8, %v3719_v27, %v3721_v12  ;;  %v3723_v50 = vrot.slane %v3670_v56, 7  ;;  %4310 = vmatprep.mubr.bf16.mxu0 %v15806_v13  ;;  %v3950_v16 = vshrl.u32 %v3720_v28, 16  ;;  %v3633_v57 = vrot.slane %v12518_v61, 1  ;;  %v12547_v27 = vpop.f32.mrb[31].mxu0  ;;  %v12549_v56 = vpop.f32.mrb[31].mxu1  ;;  %v12557_v13 = vld [vmem:[#allocation2 + $0x90] sm:$0xff] }
 0x1b7   : > { %v3954_v53 = vshll.u32 %v3722_v40, 16  ;;  %15807 = vst [vmem:[#allocation22_spill] sm:$0xff] %v12547_v27  ;;  %v3941_v22 = vsel %vm1250_vm12, %v3936_v20, %v3940_v24  ;;  %v3966_v46 = vshrl.u32 %v3722_v40, 16  ;;  %v3635_v63 = vrot.slane %v12527_v33, 1 }
 0x1b8   : > { %v3724_v38 = vsel %vm708_vm8, %v3721_v12, %v3723_v50  ;;  %v3878_v35 = vshrl.u32 %v12491_v31, 16  ;;  %v3882_v34 = vshll.u32 %v12538_v32, 16  ;;  %v3634_v28 = vsel %vm1396_vm10, %v3631_v41, %v3633_v57 }
 0x1b9   : > { %v3970_v60 = vshll.u32 %v3724_v38, 16  ;;  %9659 = vmatmul.mubr.bf16.gmra.mrb[76].mxu1 %v3925_v37  ;;  %v3956_v61 = vrot.slane %v3954_v53, 1  ;;  %v3671_v20 = vsel %vm1391_vm4, %v12110_v55, %v3634_v28  ;;  %v3636_v12 = vsel %vm1396_vm10, %v3633_v57, %v3635_v63  ;;  %v711_v55 = vld [vmem:[#allocation2 + $0x98] sm:$0x1]  ;;  %v15811_v28 = vld [vmem:[#allocation27_spill] sm:$0xff] }
 0x1ba   : > { %9662 = vmatprep.mubr.bf16.mxu1 %v3941_v22  ;;  %v3869_v40 = vsel %vm1250_vm12, %v3864_v36, %v3868_v49  ;;  %v3952_v33 = vor.u32 %v3950_v16, %v3940_v24  ;;  %v3725_v27 = vrot.slane %v3671_v20, 7  ;;  %v3672_v41 = vsel %vm15490_vm6, %v12159_v7, %v3636_v12  ;;  %v8782_v16 = vpop.f32.mrb[32].mxu0  ;;  %v15812_v20 = vld [vmem:[#allocation26_spill] sm:$0xff] }
 0x1bb   : > { %v3968_v31 = vor.u32 %v3966_v46, %v3956_v61  ;;  %v3972_v51 = vrot.slane %v3970_v60, 1  ;;  %v15491_v37 = vrot.slane %v12557_v13, 1  ;;  %vm15808_vm3 = vsmask.f32 256  ;;  %v12575_v60 = vpop.f32.mrb[32].mxu1  ;;  %4311 = vmatmul.mubr.bf16.gmra.mrb[112].mxu0 %v3869_v40 }
 0x1bc   : > { %vm12570_vm14 = vmand %vm708_vm8, %vm15808_vm3  ;;  %v3880_v22 = vor.u32 %v3878_v35, %v3868_v49  ;;  %v3884_v57 = vrot.slane %v3882_v34, 1  ;;  %v3726_v24 = vsel %vm708_vm8, %v3723_v50, %v3725_v27  ;;  %v3727_v36 = vrot.slane %v3672_v41, 7  ;;  %v8783_v35 = vpop.f32.mrb[33].mxu0  ;;  %v12586_v34 = vpop.f32.mrb[33].mxu1  ;;  %v15814_v41 = vld [vmem:[#allocation25_spill] sm:$0xff] }
 0x1bd   : > { %v3982_v46 = vshrl.u32 %v3724_v38, 16  ;;  %v3986_v7 = vshll.u32 %v3726_v24, 16  ;;  %vm15813_vm6 = vcmp.ne.s16.totalorder %v15812_v20, 0  ;;  %v3638_v49 = vsel %vm1396_vm10, %v3635_v63, %v15491_v37  ;;  %4318 = vmatprep.mubr.bf16.mxu0 %v15814_v41  ;;  %v12598_v20 = vpop.f32.mrb[34].mxu1 }
 0x1be   : > { %v12581_v12 = vsel %vm15813_vm6, %v12416_v15, %v15811_v28  ;;  %v3957_v50 = vsel %vm1250_vm12, %v3952_v33, %v3956_v61  ;;  %v3728_v38 = vsel %vm708_vm8, %v3725_v27, %v3727_v36  ;;  %vm15815_vm3 = vcmp.ne.s16.totalorder %v12244_v11, 0  ;;  %v8785_v28 = vpop.f32.mrb[34].mxu0  ;;  %v12602_v27 = vpop.f32.mrb[35].mxu1 }
 0x1bf   : > { %v12594_v40 = vsel %vm15815_vm3, %v12173_v8, %v3638_v49  ;;  %v712_v15 = vsel %vm12570_vm14, 0, %v711_v55  ;;  %v3973_v63 = vsel %vm1250_vm12, %v3968_v31, %v3972_v51  ;;  %v3998_v37 = vshrl.u32 %v3726_v24, 16  ;;  %v8786_v33 = vpop.f32.mrb[35].mxu0  ;;  %15816 = vst [vmem:[#allocation27_spill] sm:$0xff] %v12602_v27 }
 0x1c0   : > { %v4002_v59 = vshll.u32 %v3728_v38, 16  ;;  %v3729_v61 = vrot.slane %v12594_v40, 7  ;;  %713 = vst [vmem:[#allocation2 + $0x98] sm:$0x1] %v712_v15  ;;  %v3885_v8 = vsel %vm1250_vm12, %v3880_v22, %v3884_v57  ;;  %v3988_v49 = vrot.slane %v3986_v7, 1  ;;  %v8788_v0 = vpop.f32.mrb[36].mxu0 }
 0x1c1   : > { %9663 = vmatmul.mubr.bf16.gmra.mrb[80].mxu1 %v3957_v50  ;;  %v3984_v53 = vor.u32 %v3982_v46, %v3972_v51  ;;  %v3894_v55 = vshrl.u32 %v12538_v32, 16  ;;  %v3898_v41 = vshll.u32 %v12581_v12, 16  ;;  %v12608_v40 = vpop.f32.mrb[36].mxu1  ;;  %v4014_v15 = vshrl.u32 %v3728_v38, 16  ;;  %v15818_v50 = vld [vmem:[#allocation29_spill] sm:$0xff]  ;;  %v15819_v22 = vld [vmem:[#allocation28_spill] sm:$0xff] }
 0x1c2   : > { %9666 = vmatprep.mubr.bf16.mxu1 %v3973_v63  ;;  %v3730_v31 = vsel %vm708_vm8, %v3727_v36, %v3729_v61  ;;  %v4000_v24 = vor.u32 %v3998_v37, %v3988_v49  ;;  %v4004_v11 = vrot.slane %v4002_v59, 1  ;;  %15817 = vst [vmem:[#allocation25_spill] sm:$0xff] %v12608_v40  ;;  %vm15820_vm6 = vcmp.ne.s16.totalorder %v15819_v22, 0  ;;  %v8789_v51 = vpop.f32.mrb[37].mxu0  ;;  %v12616_v32 = vpop.f32.mrb[37].mxu1  ;;  %v15821_v36 = vld [vmem:[#allocation30_spill] sm:$0xff] }
 0x1c3   : > { %4319 = vmatmul.mubr.bf16.gmra.mrb[116].mxu0 %v3885_v8  ;;  %v4018_v27 = vshll.u32 %v3730_v31, 16  ;;  %v12614_v7 = vsel %vm15820_vm6, %v12418_v39, %v15818_v50  ;;  %v3989_v46 = vsel %vm1250_vm12, %v3984_v53, %v3988_v49  ;;  %v3896_v59 = vor.u32 %v3894_v55, %v3884_v57  ;;  %v8791_v8 = vpop.f32.mrb[38].mxu0  ;;  %v12626_v40 = vpop.f32.mrb[38].mxu1 }
 0x1c4   : > { %4326 = vmatprep.mubr.bf16.mxu0 %v15821_v36  ;;  %v3900_v37 = vrot.slane %v3898_v41, 1  ;;  %v12624_v38 = vadd.f32 %v12210_v9, %v12197_v43  ;;  %15824 = vst [vmem:[#allocation109_spill] sm:$0xff] %v12626_v40  ;;  %v4005_v39 = vsel %vm1250_vm12, %v4000_v24, %v4004_v11  ;;  %v3910_v22 = vshrl.u32 %v12581_v12, 16  ;;  %v8792_v49 = vpop.f32.mrb[39].mxu0  ;;  %v12631_v53 = vpop.f32.mrb[39].mxu1  ;;  %v15826_v41 = vld [vmem:[#allocation73_spill] sm:$0xff] }
 0x1c5   : > { %15825 = vst [vmem:[#allocation110_spill] sm:$0xff] %v12631_v53  ;;  %v3914_v57 = vshll.u32 %v12614_v7, 16  ;;  %v12634_v55 = vadd.f32 %v8783_v35, %v8782_v16  ;;  %v15827_v36 = vld [vmem:[#allocation74_spill] sm:$0xff]  ;;  %v12640_v9 = vadd.f32 %v8786_v33, %v8785_v28  ;;  %v4020_v24 = vrot.slane %v4018_v27, 1  ;;  %v15833_v27 = vld [vmem:[#allocation85_spill] sm:$0xff] }
 0x1c6   : > { %15823 = vst [vmem:[#allocation30_spill] sm:$0xff] %v12624_v38  ;;  %v12638_v43 = vadd.f32 %v15827_v36, %v15826_v41  ;;  %v4016_v38 = vor.u32 %v4014_v15, %v4004_v11  ;;  %v4035_v40 = vshrl.u32 %v3730_v31, 16  ;;  %v3901_v53 = vsel %vm1250_vm12, %v3896_v59, %v3900_v37  ;;  %v15830_v35 = vld [vmem:[#allocation78_spill] sm:$0xff]  ;;  %v15831_v41 = vld [vmem:[#allocation81_spill] sm:$0xff]  ;;  %v15832_v11 = vld [vmem:[#allocation83_spill] sm:$0xff] }
 0x1c7   : > { %v12620_v63 = vld [vmem:[#allocation2 + $0x98] sm:$0x1]  ;;  %15828 = vst [vmem:[#allocation73_spill] sm:$0xff] %v12640_v9  ;;  %v12651_v36 = vadd.f32 %v15831_v41, %v15830_v35  ;;  %v12653_v33 = vadd.f32 %v8789_v51, %v8788_v0  ;;  %v12657_v15 = vadd.f32 %v15833_v27, %v15832_v11  ;;  %v15834_v31 = vld [vmem:[#allocation33_spill] sm:$0xff]  ;;  %v3916_v35 = vrot.slane %v3914_v57, 1 }
 0x1c8   : > { %15822 = vst [vmem:[#allocation29_spill] sm:$0xff] %v12620_v63  ;;  %v3639_v50 = vrot.slane %v12620_v63, 1  ;;  %v15829_v63 = vrot.slane %v12557_v13, 1  ;;  %v4021_v0 = vsel %vm1250_vm12, %v4016_v38, %v4020_v24  ;;  %v15928_v9 = vld [vmem:[#allocation52_spill] sm:$0xff] }
 0x1c9   : > { %9667 = vmatmul.mubr.bf16.gmra.mrb[84].mxu1 %v3989_v46  ;;  %v3912_v46 = vor.u32 %v3910_v22, %v3900_v37  ;;  %v15837_v37 = vld [vmem:[#allocation31_spill] sm:$0xff] }
 0x1ca   : > { %v3640_v12 = vsel %vm1396_vm10, %v15829_v63, %v3639_v50  ;;  %9670 = vmatprep.mubr.bf16.mxu1 %v4005_v39  ;;  %v15835_v63 = vld [vmem:[#allocation32_spill] sm:$0xff]  ;;  %v12665_v39 = vadd.f32 %v8792_v49, %v8791_v8  ;;  %v8794_v50 = vpop.f32.mrb[40].mxu0  ;;  %v12676_v8 = vadd.f32 %v12299_v18, %v12295_v30  ;;  %v3926_v30 = vshrl.u32 %v12614_v7, 16 }
 0x1cb   : > { %v3674_v16 = vsel %vm1394_vm1, %v12557_v13, %v3640_v12  ;;  %vm15836_vm14 = vcmp.ne.s16.totalorder %v15835_v63, 0  ;;  %v12667_v12 = vpop.f32.mrb[40].mxu1  ;;  %4327 = vmatmul.mubr.bf16.gmra.mrb[120].mxu0 %v3901_v53  ;;  %v8795_v41 = vpop.f32.mrb[41].mxu0 }
 0x1cc   : > { %v3731_v28 = vrot.slane %v3674_v16, 7  ;;  %v12663_v59 = vsel %vm15836_vm14, %v12443_v54, %v15834_v31  ;;  %v4037_v16 = vor.u32 %v4035_v40, %v4020_v24  ;;  %v12671_v22 = vpop.f32.mrb[41].mxu1  ;;  %4334 = vmatprep.mubr.bf16.mxu0 %v15837_v37  ;;  %v8797_v49 = vpop.f32.mrb[42].mxu0  ;;  %v12680_v38 = vadd.f32 %v8795_v41, %v8794_v50  ;;  %v15839_v24 = vld [vmem:[#allocation89_spill] sm:$0xff] }
 0x1cd   : > { %v12678_v53 = vpop.f32.mrb[42].mxu1  ;;  %v12686_v31 = vadd.f32 %v12312_v58, %v15839_v24  ;;  %v3930_v18 = vshll.u32 %v12663_v59, 16  ;;  %v12695_v50 = vadd.f32 %v12351_v52, %v12341_v4  ;;  %v12700_v58 = vadd.f32 %v12364_v14, %v12356_v47 }
 0x1ce   : > { %v3732_v51 = vsel %vm708_vm8, %v3729_v61, %v3731_v28  ;;  %v4063_v27 = vshll.u32 %v3731_v28, 16  ;;  %15838 = vst [vmem:[#allocation74_spill] sm:$0xff] %v12680_v38  ;;  %v8798_v61 = vpop.f32.mrb[43].mxu0  ;;  %v12682_v40 = vpop.f32.mrb[43].mxu1  ;;  %v3917_v28 = vsel %vm1250_vm12, %v3912_v46, %v3916_v35  ;;  %v15842_v46 = vld [vmem:[#allocation35_spill] sm:$0xff]  ;;  %v12710_v4 = vadd.f32 %v12392_v62, %v12387_v17 }
 0x1cf   : > { %v4039_v11 = vshll.u32 %v3732_v51, 16  ;;  %v4059_v54 = vshrl.u32 %v3732_v51, 16  ;;  %v12688_v37 = vadd.f32 %v8798_v61, %v8797_v49  ;;  %vm15843_vm3 = vcmp.ne.s16.totalorder %v15842_v46, 0  ;;  %v8800_v49 = vpop.f32.mrb[44].mxu0  ;;  %v8936_v52 = vpop.f32.mrb[44].mxu1 }
 0x1d0   : > { %v8937_v14 = vpop.f32.mrb[45].mxu1  ;;  %v3928_v61 = vor.u32 %v3926_v30, %v3916_v35  ;;  %v3942_v17 = vshrl.u32 %v12663_v59, 16  ;;  %v15847_v35 = vld [vmem:[#allocation39_spill] sm:$0xff]  ;;  %v15848_v30 = vld [vmem:[#allocation37_spill] sm:$0xff] }
 0x1d1   : > { %v4041_v57 = vrot.slane %v4039_v11, 1  ;;  %15840 = vst [vmem:[#allocation78_spill] sm:$0xff] %v12688_v37  ;;  %9671 = vmatmul.mubr.bf16.gmra.mrb[88].mxu1 %v4021_v0  ;;  %v4065_v11 = vrot.slane %v4063_v27, 1  ;;  %v15841_v0 = vld [vmem:[#allocation36_spill] sm:$0xff]  ;;  %v15844_v27 = vld [vmem:[#allocation34_spill] sm:$0xff]  ;;  %vm15849_vm6 = vcmp.ne.s16.totalorder %v15848_v30, 0 }
 0x1d2   : > { %v12706_v7 = vsel %vm15843_vm3, %v12445_v21, %v15841_v0  ;;  %v3932_v21 = vrot.slane %v3930_v18, 1  ;;  %v12736_v59 = vsel %vm15849_vm6, %v12472_v19, %v15847_v35  ;;  %v12753_v19 = vadd.f32 %v12549_v56, %v12542_v42  ;;  %v15873_v37 = vld [vmem:[#allocation90_spill] sm:$0xff] }
 0x1d3   : > { %v4042_v51 = vsel %vm1250_vm12, %v4037_v16, %v4041_v57  ;;  %v4061_v41 = vor.u32 %v4059_v54, %v4041_v57  ;;  %4335 = vmatmul.mubr.bf16.gmra.mrb[124].mxu0 %v3917_v28  ;;  %v8801_v16 = vpop.f32.mrb[45].mxu0  ;;  %v12714_v54 = vadd.f32 %v12405_v3, %v12397_v2  ;;  %v3946_v62 = vshll.u32 %v12706_v7, 16 }
 0x1d4   : > { %9674 = vmatprep.mubr.bf16.mxu1 %v4042_v51  ;;  %4342 = vmatprep.mubr.bf16.mxu0 %v15844_v27  ;;  %v12718_v57 = vadd.f32 %v8801_v16, %v8800_v49  ;;  %v8803_v24 = vpop.f32.mrb[46].mxu0  ;;  %v8939_v51 = vpop.f32.mrb[46].mxu1  ;;  %v12726_v2 = vadd.f32 %v12434_v1, %v12429_v5  ;;  %v12730_v3 = vadd.f32 %v12458_v10, %v12449_v25  ;;  %v3958_v42 = vshrl.u32 %v12706_v7, 16  ;;  %v15862_v7 = vld [vmem:[#allocation91_spill] sm:$0xff] }
 0x1d5   : > { %v4066_v47 = vsel %vm1250_vm12, %v4061_v41, %v4065_v11  ;;  %v8804_v28 = vpop.f32.mrb[47].mxu0  ;;  %v8940_v0 = vpop.f32.mrb[47].mxu1  ;;  %v3933_v18 = vsel %vm1250_vm12, %v3928_v61, %v3932_v21  ;;  %v12741_v41 = vadd.f32 %v12485_v45, %v12476_v44  ;;  %v12745_v5 = vadd.f32 %v12504_v6, %v12495_v26  ;;  %v15850_v44 = vld [vmem:[#allocation77_spill] sm:$0xff]  ;;  %v15851_v45 = vld [vmem:[#allocation80_spill] sm:$0xff]  ;;  %v15853_v6 = vld [vmem:[#allocation70_spill] sm:$0xff] }
 0x1d6   : > { %15845 = vst [vmem:[#allocation81_spill] sm:$0xff] %v12718_v57  ;;  %v12722_v46 = vadd.f32 %v8804_v28, %v8803_v24  ;;  %v12749_v10 = vadd.f32 %v12531_v48, %v12522_v23  ;;  %v3944_v1 = vor.u32 %v3942_v17, %v3932_v21  ;;  %v3948_v25 = vrot.slane %v3946_v62, 1  ;;  %v15852_v26 = vld [vmem:[#allocation68_spill] sm:$0xff]  ;;  %v15854_v23 = vld [vmem:[#allocation27_spill] sm:$0xff]  ;;  %v15858_v21 = vld [vmem:[#allocation38_spill] sm:$0xff] }
 0x1d7   : > { %v12757_v11 = vadd.f32 %v12586_v34, %v12575_v60  ;;  %v12761_v49 = vadd.f32 %v15851_v45, %v15850_v44  ;;  %v12765_v16 = vadd.f32 %v15853_v6, %v15852_v26  ;;  %v12769_v48 = vadd.f32 %v15854_v23, %v12598_v20  ;;  %v15856_v60 = vld [vmem:[#allocation82_spill] sm:$0xff]  ;;  %v15857_v34 = vld [vmem:[#allocation84_spill] sm:$0xff]  ;;  %v8942_v61 = vpop.f32.mrb[48].mxu1  ;;  %v15859_v17 = vld [vmem:[#allocation71_spill] sm:$0xff] }
 0x1d8   : > { %15846 = vst [vmem:[#allocation83_spill] sm:$0xff] %v12722_v46  ;;  %v3962_v56 = vshll.u32 %v12736_v59, 16  ;;  %v12775_v27 = vadd.f32 %v15857_v34, %v15856_v60  ;;  %v15860_v62 = vld [vmem:[#allocation72_spill] sm:$0xff]  ;;  %v15861_v20 = vld [vmem:[#allocation25_spill] sm:$0xff]  ;;  %v15864_v45 = vld [vmem:[#allocation86_spill] sm:$0xff]  ;;  %v8943_v23 = vpop.f32.mrb[49].mxu1  ;;  %v3949_v60 = vsel %vm1250_vm12, %v3944_v1, %v3948_v25  ;;  %v12811_v1 = vadd.f32 %v12671_v22, %v12667_v12 }
 0x1d9   : > { %9675 = vmatmul.mubr.bf16.gmra.mrb[92].mxu1 %v4066_v47  ;;  %15855 = vst [vmem:[#allocation85_spill] sm:$0xff] %v12769_v48  ;;  %v8806_v47 = vpop.f32.mrb[48].mxu0  ;;  %v12780_v28 = vadd.f32 %v15860_v62, %v15859_v17  ;;  %v12784_v35 = vadd.f32 %v12616_v32, %v15861_v20  ;;  %v15865_v26 = vld [vmem:[#allocation87_spill] sm:$0xff]  ;;  %v15867_v17 = vld [vmem:[#allocation109_spill] sm:$0xff]  ;;  %v15868_v62 = vld [vmem:[#allocation110_spill] sm:$0xff]  ;;  %v12825_v46 = vadd.f32 %v12682_v40, %v12678_v53 }
 0x1da   : > { %v8807_v24 = vpop.f32.mrb[49].mxu0  ;;  %v12792_v6 = vadd.f32 %v15865_v26, %v15864_v45  ;;  %v12799_v30 = vadd.f32 %v15868_v62, %v15867_v17  ;;  %v15870_v32 = vld [vmem:[#allocation93_spill] sm:$0xff]  ;;  %v15871_v20 = vld [vmem:[#allocation94_spill] sm:$0xff]  ;;  %v12807_v45 = vadd.f32 %v15873_v37, %v15872_v29  ;;  %15874 = vst [vmem:[#allocation89_spill] sm:$0xff] %v12811_v1  ;;  %v15877_v17 = vld [vmem:[#allocation95_spill] sm:$0xff]  ;;  %v12845_v53 = vadd.f32 %v8940_v0, %v8939_v51 }
 0x1db   : > { %4343 = vmatmul.mubr.bf16.gmra.mrb[128].mxu0 %v3933_v18  ;;  %v15863_v18 = vld [vmem:[#allocation92_spill] sm:$0xff]  ;;  %v12795_v34 = vadd.f32 %v8807_v24, %v8806_v47  ;;  %v12803_v63 = vadd.f32 %v15871_v20, %v15870_v32  ;;  %v15875_v47 = vld [vmem:[#allocation99_spill] sm:$0xff]  ;;  %15880 = vst [vmem:[#allocation34_spill] sm:$0xff] %v12825_v46  ;;  %v15881_v29 = vld [vmem:[#allocation101_spill] sm:$0xff]  ;;  %v3964_v51 = vrot.slane %v3962_v56, 1 }
 0x1dc   : > { %4350 = vmatprep.mubr.bf16.mxu0 %v15858_v21  ;;  %v12788_v44 = vadd.f32 %v15863_v18, %v15862_v7  ;;  %v8809_v21 = vpop.f32.mrb[50].mxu0  ;;  %15869 = vst [vmem:[#allocation31_spill] sm:$0xff] %v12799_v30  ;;  %v8945_v7 = vpop.f32.mrb[50].mxu1  ;;  %v15876_v24 = vld [vmem:[#allocation100_spill] sm:$0xff]  ;;  %v15882_v37 = vld [vmem:[#allocation18_spill] sm:$0xff]  ;;  %v15883_v12 = vld [vmem:[#allocation97_spill] sm:$0xff] }
 0x1dd   : > { %15866 = vst [vmem:[#allocation33_spill] sm:$0xff] %v12795_v34  ;;  %v8810_v18 = vpop.f32.mrb[51].mxu0  ;;  %v12815_v26 = vadd.f32 %v15876_v24, %v15875_v47  ;;  %v15878_v62 = vld [vmem:[#allocation96_spill] sm:$0xff]  ;;  %v8946_v32 = vpop.f32.mrb[51].mxu1  ;;  %v12829_v38 = vadd.f32 %v15882_v37, %v15881_v29  ;;  %v15884_v22 = vld [vmem:[#allocation98_spill] sm:$0xff]  ;;  %v12835_v47 = vadd.f32 %v8937_v14, %v8936_v52  ;;  %15890 = vst [vmem:[#allocation77_spill] sm:$0xff] %v12845_v53 }
 0x1de   : > { %v12819_v34 = vadd.f32 %v15878_v62, %v15877_v17  ;;  %v12821_v20 = vadd.f32 %v8810_v18, %v8809_v21  ;;  %v12833_v1 = vadd.f32 %v15884_v22, %v15883_v12  ;;  %v15886_v24 = vld [vmem:[#allocation106_spill] sm:$0xff]  ;;  %v15887_v17 = vld [vmem:[#allocation108_spill] sm:$0xff]  ;;  %v15889_v18 = vld [vmem:[#allocation103_spill] sm:$0xff]  ;;  %v12855_v52 = vadd.f32 %v8943_v23, %v8942_v61 }
 0x1df   : > { %15885 = vst [vmem:[#allocation39_spill] sm:$0xff] %v12835_v47  ;;  %v12839_v62 = vadd.f32 %v15887_v17, %v15886_v24  ;;  %v15888_v21 = vld [vmem:[#allocation102_spill] sm:$0xff]  ;;  %v15891_v40 = vld [vmem:[#allocation24_spill] sm:$0xff]  ;;  %v15893_v37 = vld [vmem:[#allocation21_spill] sm:$0xff]  ;;  %v12857_v14 = vadd.f32 %v8946_v32, %v8945_v7  ;;  %v8812_v22 = vpop.f32.mrb[52].mxu0  ;;  %v8948_v24 = vpop.f32.mrb[52].mxu1 }
 0x1e0   : > { %15879 = vst [vmem:[#allocation36_spill] sm:$0xff] %v12821_v20  ;;  %v12843_v20 = vadd.f32 %v15889_v18, %v15888_v21  ;;  %v15892_v46 = vld [vmem:[#allocation22_spill] sm:$0xff]  ;;  %v15894_v57 = vld [vmem:[#allocation104_spill] sm:$0xff]  ;;  %15895 = vst [vmem:[#allocation80_spill] sm:$0xff] %v12855_v52  ;;  %v3960_v21 = vor.u32 %v3958_v42, %v3948_v25  ;;  %v8813_v0 = vpop.f32.mrb[53].mxu0  ;;  %v8949_v18 = vpop.f32.mrb[53].mxu1 }
 0x1e1   : > { %v12849_v29 = vadd.f32 %v15892_v46, %v15891_v40  ;;  %v12853_v12 = vadd.f32 %v15894_v57, %v15893_v37  ;;  %15896 = vst [vmem:[#allocation68_spill] sm:$0xff] %v12857_v14  ;;  %v15897_v17 = vld [vmem:[#allocation41_spill] sm:$0xff]  ;;  %v15898_v53 = vld [vmem:[#allocation42_spill] sm:$0xff]  ;;  %v15899_v46 = vld [vmem:[#allocation19_spill] sm:$0xff]  ;;  %v12864_v57 = vadd.f32 %v8813_v0, %v8812_v22  ;;  %v8815_v61 = vpop.f32.mrb[54].mxu0  ;;  %v12866_v23 = vadd.f32 %v8949_v18, %v8948_v24  ;;  %v8951_v7 = vpop.f32.mrb[54].mxu1 }
 0x1e2   : > { %v15900_v40 = vld [vmem:[#allocation40_spill] sm:$0xff]  ;;  %v8952_v32 = vpop.f32.mrb[55].mxu1  ;;  %v3965_v25 = vsel %vm1250_vm12, %v3960_v21, %v3964_v51  ;;  %v3974_v42 = vshrl.u32 %v12736_v59, 16  ;;  %v15907_v0 = vld [vmem:[#allocation45_spill] sm:$0xff]  ;;  %v15916_v48 = vld [vmem:[#allocation50_spill] sm:$0xff] }
 0x1e3   : > { %4351 = vmatmul.mubr.bf16.gmra.mrb[132].mxu0 %v3949_v60  ;;  %vm15901_vm14 = vcmp.ne.s16.totalorder %v15900_v40, 0  ;;  %15902 = vst [vmem:[#allocation70_spill] sm:$0xff] %v12864_v57  ;;  %15903 = vst [vmem:[#allocation27_spill] sm:$0xff] %v12866_v23  ;;  %v8816_v60 = vpop.f32.mrb[55].mxu0  ;;  %v3676_v40 = vshrl.u32 %v12557_v13, 16  ;;  %v15908_v18 = vld [vmem:[#allocation105_spill] sm:$0xff] }
 0x1e4   : > { %4358 = vmatprep.mubr.bf16.mxu0 %v15897_v17  ;;  %v3586_v47 = vsel %vm15901_vm14, %v15899_v46, %v15898_v53  ;;  %v12868_v37 = vadd.f32 %v8816_v60, %v8815_v61  ;;  %v12870_v17 = vadd.f32 %v8952_v32, %v8951_v7  ;;  %v15906_v53 = vld [vmem:[#allocation43_spill] sm:$0xff]  ;;  %v3976_v22 = vor.u32 %v3974_v42, %v3964_v51  ;;  %v15909_v46 = vld [vmem:[#allocation44_spill] sm:$0xff]  ;;  %v15915_v57 = vld [vmem:[#allocation49_spill] sm:$0xff] }
 0x1e5   : > { %v3978_v56 = vshll.u32 %v3586_v47, 16  ;;  %vm15910_vm3 = vcmp.ne.s16.totalorder %v15909_v46, 0  ;;  %v3678_v60 = vrot.slane %v3676_v40, 7  ;;  %v3679_v7 = vshll.u32 %v12557_v13, 16 }
 0x1e6   : > { %15904 = vst [vmem:[#allocation82_spill] sm:$0xff] %v12868_v37  ;;  %15905 = vst [vmem:[#allocation84_spill] sm:$0xff] %v12870_v17  ;;  %v3587_v61 = vsel %vm15910_vm3, %v15908_v18, %v15907_v0  ;;  %v3990_v14 = vshrl.u32 %v3586_v47, 16  ;;  %vm15921_vm14 = vsmask.f32 256 }
 0x1e7   : > { %v3980_v24 = vrot.slane %v3978_v56, 1  ;;  %v3994_v59 = vshll.u32 %v3587_v61, 16  ;;  %v3681_v0 = vor.u32 %v3679_v7, %v3678_v60 }
 0x1e9   : > { %v3992_v47 = vor.u32 %v3990_v14, %v3980_v24  ;;  %v3996_v23 = vrot.slane %v3994_v59, 1  ;;  %v4006_v14 = vshrl.u32 %v3587_v61, 16 }
 0x1ea   : > { %v8818_v32 = vpop.f32.mrb[56].mxu0  ;;  %v8954_v21 = vpop.f32.mrb[56].mxu1 }
 0x1eb   : > { %4359 = vmatmul.mubr.bf16.gmra.mrb[136].mxu0 %v3965_v25  ;;  %v8819_v17 = vpop.f32.mrb[57].mxu0  ;;  %v8955_v52 = vpop.f32.mrb[57].mxu1  ;;  %v3981_v25 = vsel %vm1250_vm12, %v3976_v22, %v3980_v24  ;;  %v15917_v22 = vld [vmem:[#allocation107_spill] sm:$0xff]  ;;  %v4008_v61 = vor.u32 %v4006_v14, %v3996_v23 }
 0x1ec   : > { %4366 = vmatprep.mubr.bf16.mxu0 %v15906_v53  ;;  %v12882_v37 = vadd.f32 %v8819_v17, %v8818_v32  ;;  %v8821_v51 = vpop.f32.mrb[58].mxu0  ;;  %v12884_v42 = vadd.f32 %v8955_v52, %v8954_v21  ;;  %v8957_v56 = vpop.f32.mrb[58].mxu1  ;;  %v15918_v17 = vld [vmem:[#allocation47_spill] sm:$0xff]  ;;  %v15920_v52 = vld [vmem:[#allocation46_spill] sm:$0xff] }
 0x1ed   : > { %v8822_v53 = vpop.f32.mrb[59].mxu0  ;;  %v8958_v46 = vpop.f32.mrb[59].mxu1  ;;  %vm15919_vm6 = vcmp.ne.s16.totalorder %v15918_v17, 0  ;;  %v3682_v21 = vsel %vm15921_vm14, %v15920_v52, %v3681_v0  ;;  %v15924_v0 = vld [vmem:[#allocation48_spill] sm:$0xff] }
 0x1ee   : > { %15911 = vst [vmem:[#allocation38_spill] sm:$0xff] %v12882_v37  ;;  %15912 = vst [vmem:[#allocation71_spill] sm:$0xff] %v12884_v42  ;;  %v12886_v40 = vadd.f32 %v8822_v53, %v8821_v51  ;;  %v12888_v18 = vadd.f32 %v8958_v46, %v8957_v56  ;;  %v3588_v32 = vsel %vm15919_vm6, %v15917_v22, %v15916_v48  ;;  %v3569_v42 = vrot.slane %v12557_v13, 7 }
 0x1ef   : > { %v3997_v46 = vsel %vm1250_vm12, %v3992_v47, %v3996_v23  ;;  %v4010_v24 = vshll.u32 %v3588_v32, 16  ;;  %v4031_v48 = vshll.u32 %v3682_v21, 16  ;;  %v15925_v47 = vld [vmem:[#allocation51_spill] sm:$0xff] }
 0x1f0   : > { %15913 = vst [vmem:[#allocation72_spill] sm:$0xff] %v12886_v40  ;;  %15914 = vst [vmem:[#allocation25_spill] sm:$0xff] %v12888_v18  ;;  %v3570_v52 = vsel %vm708_vm8, %v15924_v0, %v3569_v42 }
 0x1f2   : > { %v8824_v7 = vpop.f32.mrb[60].mxu0  ;;  %v8960_v51 = vpop.f32.mrb[60].mxu1 }
 0x1f3   : > { %4367 = vmatmul.mubr.bf16.gmra.mrb[140].mxu0 %v3981_v25  ;;  %v8825_v56 = vpop.f32.mrb[61].mxu0  ;;  %v8961_v25 = vpop.f32.mrb[61].mxu1 }
 0x1f4   : > { %4374 = vmatprep.mubr.bf16.mxu0 %v15915_v57  ;;  %v12899_v59 = vadd.f32 %v8825_v56, %v8824_v7  ;;  %v8827_v57 = vpop.f32.mrb[62].mxu0  ;;  %v12901_v53 = vadd.f32 %v8961_v25, %v8960_v51  ;;  %v8963_v17 = vpop.f32.mrb[62].mxu1  ;;  %v4012_v7 = vrot.slane %v4010_v24, 1  ;;  %v4033_v56 = vrot.slane %v4031_v48, 1  ;;  %v15926_v51 = vld [vmem:[#allocation54_spill] sm:$0xff]  ;;  %v15929_v24 = vld [vmem:[#allocation29_spill] sm:$0xff] }
 0x1f5   : > { %v8828_v22 = vpop.f32.mrb[63].mxu0  ;;  %v8964_v18 = vpop.f32.mrb[63].mxu1  ;;  %vm15927_vm3 = vcmp.ne.s16.totalorder %v15926_v51, 0  ;;  %v15930_v48 = vld [vmem:[#allocation53_spill] sm:$0xff] }
 0x1f6   : > { %15922 = vst [vmem:[#allocation91_spill] sm:$0xff] %v12899_v59  ;;  %15923 = vst [vmem:[#allocation92_spill] sm:$0xff] %v12901_v53  ;;  %v12905_v40 = vadd.f32 %v8828_v22, %v8827_v57  ;;  %v12907_v37 = vadd.f32 %v8964_v18, %v8963_v17  ;;  %v3589_v25 = vsel %vm15927_vm3, %v12557_v13, %v3570_v52  ;;  %v4022_v59 = vshrl.u32 %v3588_v32, 16 }
 0x1f7   : > { %v4013_v53 = vsel %vm1250_vm12, %v4008_v61, %v4012_v7  ;;  %v4026_v30 = vshll.u32 %v3589_v25, 16  ;;  %v4034_v57 = vsel %vm1250_vm12, %v15928_v9, %v4033_v56  ;;  %v4051_v22 = vshrl.u32 %v3682_v21, 16  ;;  %vm15969_vm3 = vmmov %vm15921_vm14 }
 0x1f8   : > { %v4055_v18 = vshll.u32 %v3678_v60, 16  ;;  %v4024_v17 = vor.u32 %v4022_v59, %v4012_v7  ;;  %vm15931_vm6 = vcmp.ne.s16.totalorder %v15930_v48, 0  ;;  %v4043_v52 = vshrl.u32 %v3589_v25, 16  ;;  %v15932_v25 = vld [vmem:[#allocation30_spill] sm:$0xff] }
 0x1f9   : > { %v4053_v23 = vor.u32 %v4051_v22, %v4033_v56  ;;  %v3590_v0 = vsel %vm15931_vm6, %v15929_v24, %v3569_v42 }
 0x1fa   : > { %v4057_v14 = vrot.slane %v4055_v18, 1  ;;  %v4047_v32 = vshll.u32 %v3590_v0, 16 }
 0x1fb   : > { %4375 = vmatmul.mubr.bf16.gmra.mrb[144].mxu0 %v3997_v46  ;;  %v4028_v46 = vrot.slane %v4026_v30, 1 }
 0x1fc   : > { %4382 = vmatprep.mubr.bf16.mxu0 %v15925_v47  ;;  %v4058_v47 = vsel %vm1250_vm12, %v4053_v23, %v4057_v14  ;;  %v4049_v30 = vrot.slane %v4047_v32, 1 }
 0x1fd   : > { %v4029_v13 = vsel %vm1250_vm12, %v4024_v17, %v4028_v46  ;;  %v4045_v21 = vor.u32 %v4043_v52, %v4028_v46 }
 0x1ff   : > { %v4050_v18 = vsel %vm1250_vm12, %v4045_v21, %v4049_v30 }
 0x203   : > { %4383 = vmatmul.mubr.bf16.gmra.mrb[148].mxu0 %v4013_v53 }
 0x204   : > { %4390 = vmatprep.mubr.bf16.mxu0 %v4034_v57 }
 0x206   : > { %v9552_v61 = vpop.f32.mrb[64].mxu0 }
 0x207   : > { %v2642_v9 = vadd.f32 %v9552_v61, %v12761_v49  ;;  %v2633_v60 = vpop.f32.mrb[65].mxu0 }
 0x208   : > { %v2634_v59 = vadd.f32 %v12765_v16, %v2633_v60  ;;  %v9553_v53 = vpop.f32.mrb[66].mxu0 }
 0x209   : > { %v12924_v7 = vadd.f32 %v12651_v36, %v2642_v9  ;;  %v2645_v42 = vadd.f32 %v9553_v53, %v12775_v27  ;;  %v2636_v56 = vpop.f32.mrb[67].mxu0 }
 0x20a   : > { %v12928_v57 = vadd.f32 %v15932_v25, %v2634_v59  ;;  %v2637_v22 = vadd.f32 %v12780_v28, %v2636_v56 }
 0x20b   : > { %4391 = vmatmul.mubr.bf16.gmra.mrb[152].mxu0 %v4029_v13  ;;  %v12932_v49 = vadd.f32 %v12657_v15, %v2645_v42 }
 0x20c   : > { %4398 = vmatprep.mubr.bf16.mxu0 %v4058_v47  ;;  %v12936_v17 = vadd.f32 %v12638_v43, %v2637_v22  ;;  %v15935_v22 = vld [vmem:[#allocation85_spill] sm:$0xff] }
 0x213   : > { %4399 = vmatmul.mubr.bf16.gmra.mrb[156].mxu0 %v4050_v18 }
 0x216   : > { %v9556_v16 = vpop.f32.mrb[68].mxu0 }
 0x217   : > { %v2658_v36 = vadd.f32 %v9556_v16, %v12788_v44  ;;  %v2649_v46 = vpop.f32.mrb[69].mxu0 }
 0x218   : > { %v2650_v27 = vadd.f32 %v12792_v6, %v2649_v46  ;;  %v9557_v23 = vpop.f32.mrb[70].mxu0 }
 0x219   : > { %v12941_v14 = vadd.f32 %v12695_v50, %v2658_v36  ;;  %v2661_v28 = vadd.f32 %v9557_v23, %v12803_v63  ;;  %v2652_v15 = vpop.f32.mrb[71].mxu0 }
 0x21a   : > { %v12945_v24 = vadd.f32 %v12676_v8, %v2650_v27  ;;  %v2653_v43 = vadd.f32 %v12807_v45, %v2652_v15 }
 0x21b   : > { %v12949_v0 = vadd.f32 %v12700_v58, %v2661_v28 }
 0x21c   : > { %v12952_v44 = vadd.f32 %v12686_v31, %v2653_v43  ;;  %v15940_v43 = vld [vmem:[#allocation89_spill] sm:$0xff] }
 0x227   : > { %v9560_v13 = vpop.f32.mrb[72].mxu0 }
 0x228   : > { %v2674_v6 = vadd.f32 %v9560_v13, %v12815_v26  ;;  %v2665_v52 = vpop.f32.mrb[73].mxu0 }
 0x229   : > { %v2666_v50 = vadd.f32 %v12819_v34, %v2665_v52  ;;  %v9561_v32 = vpop.f32.mrb[74].mxu0 }
 0x22a   : > { %v12957_v63 = vadd.f32 %v12726_v2, %v2674_v6  ;;  %v2677_v8 = vadd.f32 %v9561_v32, %v12829_v38  ;;  %v2668_v47 = vpop.f32.mrb[75].mxu0  ;;  %v15941_v6 = vld [vmem:[#allocation78_spill] sm:$0xff] }
 0x22b   : > { %v12961_v45 = vadd.f32 %v12710_v4, %v2666_v50  ;;  %v2669_v58 = vadd.f32 %v12833_v1, %v2668_v47  ;;  %v15942_v50 = vld [vmem:[#allocation77_spill] sm:$0xff] }
 0x22c   : > { %v12965_v31 = vadd.f32 %v12730_v3, %v2677_v8  ;;  %v15943_v8 = vld [vmem:[#allocation34_spill] sm:$0xff] }
 0x22d   : > { %v12968_v26 = vadd.f32 %v12714_v54, %v2669_v58 }
 0x233   : > { %v9564_v61 = vpop.f32.mrb[76].mxu0 }
 0x234   : > { %v2690_v34 = vadd.f32 %v9564_v61, %v12839_v62  ;;  %v2681_v9 = vpop.f32.mrb[77].mxu0  ;;  %v15944_v61 = vld [vmem:[#allocation70_spill] sm:$0xff] }
 0x235   : > { %v2682_v2 = vadd.f32 %v12843_v20, %v2681_v9  ;;  %v9565_v60 = vpop.f32.mrb[78].mxu0 }
 0x236   : > { %v12973_v38 = vadd.f32 %v12749_v10, %v2690_v34  ;;  %v2693_v4 = vadd.f32 %v9565_v60, %v12849_v29  ;;  %v2684_v21 = vpop.f32.mrb[79].mxu0 }
 0x237   : > { %v12977_v1 = vadd.f32 %v12741_v41, %v2682_v2  ;;  %v2685_v3 = vadd.f32 %v12853_v12, %v2684_v21  ;;  %v15945_v2 = vld [vmem:[#allocation33_spill] sm:$0xff]  ;;  %v15946_v21 = vld [vmem:[#allocation27_spill] sm:$0xff] }
 0x238   : > { %v12981_v54 = vadd.f32 %v12753_v19, %v2693_v4  ;;  %v15933_v19 = vld [vmem:[#allocation73_spill] sm:$0xff] }
 0x239   : > { %v12984_v62 = vadd.f32 %v12745_v5, %v2685_v3  ;;  %v15934_v5 = vld [vmem:[#allocation31_spill] sm:$0xff] }
 0x241   : > { %v9568_v30 = vpop.f32.mrb[80].mxu0 }
 0x242   : > { %v2706_v20 = vadd.f32 %v9568_v30, %v12653_v33  ;;  %v2697_v59 = vpop.f32.mrb[81].mxu0  ;;  %v15947_v30 = vld [vmem:[#allocation82_spill] sm:$0xff] }
 0x243   : > { %v2698_v10 = vadd.f32 %v12634_v55, %v2697_v59  ;;  %v9569_v53 = vpop.f32.mrb[82].mxu0  ;;  %v15936_v55 = vld [vmem:[#allocation81_spill] sm:$0xff] }
 0x244   : > { %v12989_v29 = vadd.f32 %v12784_v35, %v2706_v20  ;;  %v2709_v41 = vadd.f32 %v9569_v53, %v12665_v39  ;;  %v2700_v42 = vpop.f32.mrb[83].mxu0  ;;  %v15937_v35 = vld [vmem:[#allocation74_spill] sm:$0xff]  ;;  %v15938_v39 = vld [vmem:[#allocation39_spill] sm:$0xff] }
 0x245   : > { %v12993_v12 = vadd.f32 %v12757_v11, %v2698_v10  ;;  %v2701_v56 = vadd.f32 %v15933_v19, %v2700_v42  ;;  %v15939_v11 = vld [vmem:[#allocation83_spill] sm:$0xff]  ;;  %v15948_v10 = vld [vmem:[#allocation80_spill] sm:$0xff] }
 0x246   : > { %v12997_v25 = vadd.f32 %v15934_v5, %v2709_v41  ;;  %v15949_v41 = vld [vmem:[#allocation36_spill] sm:$0xff] }
 0x247   : > { %v13000_v33 = vadd.f32 %v15935_v22, %v2701_v56  ;;  %v15950_v19 = vld [vmem:[#allocation84_spill] sm:$0xff] }
 0x248   : > { %v15951_v5 = vld [vmem:[#allocation68_spill] sm:$0xff] }
 0x252   : > { %v9572_v18 = vpop.f32.mrb[84].mxu0 }
 0x253   : > { %v2722_v16 = vadd.f32 %v9572_v18, %v15936_v55  ;;  %v2713_v36 = vpop.f32.mrb[85].mxu0  ;;  %v15952_v55 = vld [vmem:[#allocation91_spill] sm:$0xff] }
 0x254   : > { %v2714_v46 = vadd.f32 %v15937_v35, %v2713_v36  ;;  %v9573_v27 = vpop.f32.mrb[86].mxu0  ;;  %v15953_v35 = vld [vmem:[#allocation38_spill] sm:$0xff] }
 0x255   : > { %v13005_v23 = vadd.f32 %v15938_v39, %v2722_v16  ;;  %v2725_v28 = vadd.f32 %v9573_v27, %v15939_v11  ;;  %v2716_v15 = vpop.f32.mrb[87].mxu0  ;;  %v15954_v39 = vld [vmem:[#allocation92_spill] sm:$0xff] }
 0x256   : > { %v13009_v13 = vadd.f32 %v15940_v43, %v2714_v46  ;;  %v2717_v52 = vadd.f32 %v15941_v6, %v2716_v15  ;;  %v15955_v43 = vld [vmem:[#allocation71_spill] sm:$0xff] }
 0x257   : > { %v13013_v32 = vadd.f32 %v15942_v50, %v2725_v28 }
 0x258   : > { %v13016_v47 = vadd.f32 %v15943_v8, %v2717_v52  ;;  %v15956_v52 = vld [vmem:[#allocation72_spill] sm:$0xff] }
 0x25e   : > { %v9576_v58 = vpop.f32.mrb[88].mxu0 }
 0x25f   : > { %v2738_v34 = vadd.f32 %v9576_v58, %v15944_v61  ;;  %v2729_v9 = vpop.f32.mrb[89].mxu0  ;;  %v15957_v58 = vld [vmem:[#allocation25_spill] sm:$0xff] }
 0x260   : > { %v2730_v60 = vadd.f32 %v15945_v2, %v2729_v9  ;;  %v9577_v4 = vpop.f32.mrb[90].mxu0 }
 0x261   : > { %v13021_v3 = vadd.f32 %v15946_v21, %v2738_v34  ;;  %v2741_v20 = vadd.f32 %v9577_v4, %v15947_v30  ;;  %v2732_v59 = vpop.f32.mrb[91].mxu0 }
 0x262   : > { %v13025_v53 = vadd.f32 %v15948_v10, %v2730_v60  ;;  %v2733_v42 = vadd.f32 %v15949_v41, %v2732_v59 }
 0x263   : > { %v13029_v56 = vadd.f32 %v15950_v19, %v2741_v20 }
 0x264   : > { %v13032_v22 = vadd.f32 %v15951_v5, %v2733_v42 }
 0x266   : > { %v9580_v18 = vpop.f32.mrb[92].mxu0 }
 0x267   : > { %v2754_v16 = vadd.f32 %v9580_v18, %v15952_v55  ;;  %v2745_v36 = vpop.f32.mrb[93].mxu0 }
 0x268   : > { %v2746_v46 = vadd.f32 %v15953_v35, %v2745_v36  ;;  %v9581_v27 = vpop.f32.mrb[94].mxu0 }
 0x269   : > { %v13037_v11 = vadd.f32 %v15954_v39, %v2754_v16  ;;  %v2757_v28 = vadd.f32 %v9581_v27, %v12905_v40  ;;  %v2748_v15 = vpop.f32.mrb[95].mxu0 }
 0x26a   : > { %v13041_v6 = vadd.f32 %v15955_v43, %v2746_v46  ;;  %v2749_v50 = vadd.f32 %v15956_v52, %v2748_v15 }
 0x26b   : > { %v13045_v8 = vadd.f32 %v12907_v37, %v2757_v28 }
 0x26c   : > { %v13048_v61 = vadd.f32 %v15957_v58, %v2749_v50 }
 0x26e   : > { %v9006_v34 = vpop.f32.mrb[96].mxu0 }
 0x26f   : > { %v9007_v9 = vpop.f32.mrb[97].mxu0 }
 0x270   : > { %v9008_v2 = vadd.f32 %v9007_v9, %v9006_v34  ;;  %v9009_v60 = vpop.f32.mrb[98].mxu0 }
 0x271   : > { %v9010_v4 = vpop.f32.mrb[99].mxu0 }
 0x272   : > { %v9828_v40 = vadd.f32 %v9008_v2, %v12928_v57  ;;  %v9011_v30 = vadd.f32 %v9010_v4, %v9009_v60 }
 0x274   : > { %v9648_v21 = vpop.f32.mrb[64].mxu1  ;;  %v9836_v41 = vadd.f32 %v9011_v30, %v12936_v17 }
 0x275   : > { %v4441_v20 = vpop.f32.mrb[65].mxu1 }
 0x276   : > { %v13051_v59 = vadd.f32 %v9828_v40, %v4441_v20  ;;  %v9649_v10 = vpop.f32.mrb[66].mxu1  ;;  %v9012_v19 = vpop.f32.mrb[100].mxu0 }
 0x277   : > { %v4444_v37 = vpop.f32.mrb[67].mxu1  ;;  %v9013_v5 = vpop.f32.mrb[101].mxu0 }
 0x278   : > { %v13054_v42 = vadd.f32 %v9836_v41, %v4444_v37  ;;  %v9014_v18 = vadd.f32 %v9013_v5, %v9012_v19  ;;  %v9015_v55 = vpop.f32.mrb[102].mxu0 }
 0x279   : > { %v9016_v16 = vpop.f32.mrb[103].mxu0 }
 0x27a   : > { %v9824_v35 = vadd.f32 %v9014_v18, %v12924_v7  ;;  %v9017_v46 = vadd.f32 %v9016_v16, %v9015_v55 }
 0x27c   : > { %v9652_v36 = vpop.f32.mrb[68].mxu1  ;;  %v13057_v27 = vadd.f32 %v9824_v35, %v9648_v21  ;;  %v9832_v28 = vadd.f32 %v9017_v46, %v12932_v49 }
 0x27d   : > { %v4457_v57 = vpop.f32.mrb[69].mxu1 }
 0x27e   : > { %v9653_v39 = vpop.f32.mrb[70].mxu1  ;;  %v13060_v17 = vadd.f32 %v9832_v28, %v9649_v10  ;;  %v9018_v43 = vpop.f32.mrb[104].mxu0 }
 0x27f   : > { %v4460_v15 = vpop.f32.mrb[71].mxu1  ;;  %v9019_v52 = vpop.f32.mrb[105].mxu0 }
 0x280   : > { %v9020_v50 = vadd.f32 %v9019_v52, %v9018_v43  ;;  %v9021_v58 = vpop.f32.mrb[106].mxu0 }
 0x281   : > { %v9022_v34 = vpop.f32.mrb[107].mxu0 }
 0x282   : > { %v9844_v2 = vadd.f32 %v9020_v50, %v12945_v24  ;;  %v9023_v60 = vadd.f32 %v9022_v34, %v9021_v58 }
 0x284   : > { %v9656_v9 = vpop.f32.mrb[72].mxu1  ;;  %v13063_v4 = vadd.f32 %v9844_v2, %v4457_v57  ;;  %v9852_v40 = vadd.f32 %v9023_v60, %v12952_v44  ;;  %v4600_v57 = vadd.f32 %v13054_v42, %v13051_v59 }
 0x285   : > { %v4473_v7 = vpop.f32.mrb[73].mxu1 }
 0x286   : > { %v9657_v21 = vpop.f32.mrb[74].mxu1  ;;  %v13066_v49 = vadd.f32 %v9852_v40, %v4460_v15  ;;  %v9024_v20 = vpop.f32.mrb[108].mxu0  ;;  %v4601_v52 = vadd.f32 %v13057_v27, %v4600_v57 }
 0x287   : > { %v4476_v30 = vpop.f32.mrb[75].mxu1  ;;  %v9025_v10 = vpop.f32.mrb[109].mxu0 }
 0x288   : > { %v9026_v41 = vadd.f32 %v9025_v10, %v9024_v20  ;;  %v9027_v37 = vpop.f32.mrb[110].mxu0 }
 0x289   : > { %v9028_v19 = vpop.f32.mrb[111].mxu0 }
 0x28a   : > { %v9840_v18 = vadd.f32 %v9026_v41, %v12941_v14  ;;  %v9029_v24 = vadd.f32 %v9028_v19, %v9027_v37 }
 0x28c   : > { %v13068_v5 = vpop.f32.mrb[76].mxu1  ;;  %v13071_v16 = vadd.f32 %v9840_v18, %v9652_v36  ;;  %v9848_v44 = vadd.f32 %v9029_v24, %v12949_v0  ;;  %v4602_v0 = vadd.f32 %v13060_v17, %v4601_v52 }
 0x28d   : > { %v4489_v55 = vpop.f32.mrb[77].mxu1 }
 0x28e   : > { %v13073_v35 = vpop.f32.mrb[78].mxu1  ;;  %v13078_v28 = vadd.f32 %v9848_v44, %v9653_v39  ;;  %v9030_v15 = vpop.f32.mrb[112].mxu0  ;;  %v4603_v41 = vadd.f32 %v13063_v4, %v4602_v0 }
 0x28f   : > { %v4492_v46 = vpop.f32.mrb[79].mxu1  ;;  %v9031_v43 = vpop.f32.mrb[113].mxu0 }
 0x290   : > { %v9032_v50 = vadd.f32 %v9031_v43, %v9030_v15  ;;  %v9033_v14 = vpop.f32.mrb[114].mxu0  ;;  %v4604_v57 = vadd.f32 %v13066_v49, %v4603_v41 }
 0x291   : > { %v9034_v58 = vpop.f32.mrb[115].mxu0 }
 0x292   : > { %v9860_v36 = vadd.f32 %v9032_v50, %v12961_v45  ;;  %v9035_v2 = vadd.f32 %v9034_v58, %v9033_v14 }
 0x294   : > { %v13081_v34 = vpop.f32.mrb[80].mxu1  ;;  %v13087_v40 = vadd.f32 %v9860_v36, %v4473_v7  ;;  %v9868_v20 = vadd.f32 %v9035_v2, %v12968_v26  ;;  %v4605_v26 = vadd.f32 %v13071_v16, %v4604_v57 }
 0x295   : > { %v13084_v60 = vpop.f32.mrb[81].mxu1 }
 0x296   : > { %v13089_v39 = vpop.f32.mrb[82].mxu1  ;;  %v13095_v37 = vadd.f32 %v9868_v20, %v4476_v30  ;;  %v9036_v19 = vpop.f32.mrb[116].mxu0  ;;  %v4606_v20 = vadd.f32 %v13078_v28, %v4605_v26 }
 0x297   : > { %v13092_v10 = vpop.f32.mrb[83].mxu1  ;;  %v9037_v18 = vpop.f32.mrb[117].mxu0 }
 0x298   : > { %v9038_v45 = vadd.f32 %v9037_v18, %v9036_v19  ;;  %v9039_v24 = vpop.f32.mrb[118].mxu0  ;;  %v4607_v18 = vadd.f32 %v13087_v40, %v4606_v20 }
 0x299   : > { %v9040_v44 = vpop.f32.mrb[119].mxu0 }
 0x29a   : > { %v9856_v7 = vadd.f32 %v9038_v45, %v12957_v63  ;;  %v9041_v43 = vadd.f32 %v9040_v44, %v9039_v24 }
 0x29c   : > { %v13098_v15 = vpop.f32.mrb[84].mxu1  ;;  %v13104_v50 = vadd.f32 %v9856_v7, %v9656_v9  ;;  %v9864_v14 = vadd.f32 %v9041_v43, %v12965_v31  ;;  %v4608_v43 = vadd.f32 %v13095_v37, %v4607_v18 }
 0x29d   : > { %v13101_v52 = vpop.f32.mrb[85].mxu1 }
 0x29e   : > { %v13106_v30 = vpop.f32.mrb[86].mxu1  ;;  %v13111_v36 = vadd.f32 %v9864_v14, %v9657_v21  ;;  %v9042_v2 = vpop.f32.mrb[120].mxu0 }
 0x29f   : > { %v13109_v58 = vpop.f32.mrb[87].mxu1  ;;  %v9043_v0 = vpop.f32.mrb[121].mxu0 }
 0x2a0   : > { %v9044_v63 = vadd.f32 %v9043_v0, %v9042_v2  ;;  %v9045_v41 = vpop.f32.mrb[122].mxu0  ;;  %v4609_v0 = vadd.f32 %v13104_v50, %v4608_v43 }
 0x2a1   : > { %v9046_v19 = vpop.f32.mrb[123].mxu0 }
 0x2a2   : > { %v9876_v9 = vadd.f32 %v9044_v63, %v12977_v1  ;;  %v9047_v24 = vadd.f32 %v9046_v19, %v9045_v41 }
 0x2a4   : > { %v13115_v45 = vpop.f32.mrb[88].mxu1  ;;  %v13120_v31 = vadd.f32 %v9876_v9, %v4489_v55  ;;  %v9884_v57 = vadd.f32 %v9047_v24, %v12984_v62  ;;  %v4610_v62 = vadd.f32 %v13111_v36, %v4609_v0 }
 0x2a5   : > { %v13118_v44 = vpop.f32.mrb[89].mxu1 }
 0x2a6   : > { %v13122_v21 = vpop.f32.mrb[90].mxu1  ;;  %v13128_v26 = vadd.f32 %v9884_v57, %v4492_v46  ;;  %v9048_v14 = vpop.f32.mrb[124].mxu0  ;;  %v4611_v43 = vadd.f32 %v13120_v31, %v4610_v62 }
 0x2a7   : > { %v13125_v7 = vpop.f32.mrb[91].mxu1  ;;  %v9049_v2 = vpop.f32.mrb[125].mxu0 }
 0x2a8   : > { %v9050_v1 = vadd.f32 %v9049_v2, %v9048_v14  ;;  %v9051_v20 = vpop.f32.mrb[126].mxu0  ;;  %v4612_v0 = vadd.f32 %v13128_v26, %v4611_v43 }
 0x2a9   : > { %v9052_v63 = vpop.f32.mrb[127].mxu0 }
 0x2aa   : > { %v9872_v55 = vadd.f32 %v9050_v1, %v12973_v38  ;;  %v9053_v19 = vadd.f32 %v9052_v63, %v9051_v20 }
 0x2ac   : > { %v13131_v41 = vpop.f32.mrb[92].mxu1  ;;  %v13138_v18 = vadd.f32 %v9872_v55, %v13068_v5  ;;  %v9880_v24 = vadd.f32 %v9053_v19, %v12981_v54 }
 0x2ad   : > { %v13134_v9 = vpop.f32.mrb[93].mxu1 }
 0x2ae   : > { %v13140_v46 = vpop.f32.mrb[94].mxu1  ;;  %v13147_v14 = vadd.f32 %v9880_v24, %v13073_v35  ;;  %v9054_v38 = vpop.f32.mrb[128].mxu0  ;;  %v4613_v48 = vadd.f32 %v13138_v18, %v4612_v0 }
 0x2af   : > { %v13143_v57 = vpop.f32.mrb[95].mxu1  ;;  %v9055_v2 = vpop.f32.mrb[129].mxu0 }
 0x2b0   : > { %v9056_v1 = vadd.f32 %v9055_v2, %v9054_v38  ;;  %v9057_v20 = vpop.f32.mrb[130].mxu0  ;;  %v4614_v38 = vadd.f32 %v13147_v14, %v4613_v48 }
 0x2b1   : > { %v9058_v63 = vpop.f32.mrb[131].mxu0 }
 0x2b2   : > { %v9892_v5 = vadd.f32 %v9056_v1, %v12993_v12  ;;  %v9059_v55 = vadd.f32 %v9058_v63, %v9057_v20 }
 0x2b4   : > { %v13153_v54 = vadd.f32 %v9892_v5, %v13084_v60  ;;  %v9900_v19 = vadd.f32 %v9059_v55, %v13000_v33 }
 0x2b6   : > { %v13157_v35 = vadd.f32 %v9900_v19, %v13092_v10  ;;  %v9060_v62 = vpop.f32.mrb[132].mxu0  ;;  %v4615_v12 = vadd.f32 %v13153_v54, %v4614_v38 }
 0x2b7   : > { %v9061_v24 = vpop.f32.mrb[133].mxu0 }
 0x2b8   : > { %v9062_v2 = vadd.f32 %v9061_v24, %v9060_v62  ;;  %v9063_v51 = vpop.f32.mrb[134].mxu0  ;;  %v4616_v10 = vadd.f32 %v13157_v35, %v4615_v12 }
 0x2b9   : > { %v9064_v43 = vpop.f32.mrb[135].mxu0 }
 0x2ba   : > { %v9888_v1 = vadd.f32 %v9062_v2, %v12989_v29  ;;  %v9065_v20 = vadd.f32 %v9064_v43, %v9063_v51 }
 0x2bc   : > { %v13163_v60 = vadd.f32 %v9888_v1, %v13081_v34  ;;  %v9896_v33 = vadd.f32 %v9065_v20, %v12997_v25 }
 0x2be   : > { %v13168_v63 = vadd.f32 %v9896_v33, %v13089_v39  ;;  %v9066_v0 = vpop.f32.mrb[136].mxu0  ;;  %v4617_v5 = vadd.f32 %v13163_v60, %v4616_v10 }
 0x2bf   : > { %v9067_v48 = vpop.f32.mrb[137].mxu0 }
 0x2c0   : > { %v9068_v55 = vadd.f32 %v9067_v48, %v9066_v0  ;;  %v9069_v19 = vpop.f32.mrb[138].mxu0  ;;  %v4618_v34 = vadd.f32 %v13168_v63, %v4617_v5 }
 0x2c1   : > { %v9070_v62 = vpop.f32.mrb[139].mxu0 }
 0x2c2   : > { %v9908_v29 = vadd.f32 %v9068_v55, %v13009_v13  ;;  %v9071_v51 = vadd.f32 %v9070_v62, %v9069_v19 }
 0x2c4   : > { %v13174_v24 = vadd.f32 %v9908_v29, %v13101_v52  ;;  %v9916_v25 = vadd.f32 %v9071_v51, %v13016_v47 }
 0x2c6   : > { %v4619_v39 = vadd.f32 %v13174_v24, %v4618_v34  ;;  %v13179_v38 = vadd.f32 %v9916_v25, %v13109_v58  ;;  %v9072_v2 = vpop.f32.mrb[140].mxu0 }
 0x2c7   : > { %v9073_v43 = vpop.f32.mrb[141].mxu0 }
 0x2c8   : > { %v4620_v12 = vadd.f32 %v13179_v38, %v4619_v39  ;;  %v9074_v1 = vadd.f32 %v9073_v43, %v9072_v2  ;;  %v9075_v20 = vpop.f32.mrb[142].mxu0 }
 0x2c9   : > { %v9076_v13 = vpop.f32.mrb[143].mxu0 }
 0x2ca   : > { %v9904_v33 = vadd.f32 %v9074_v1, %v13005_v23  ;;  %v9077_v10 = vadd.f32 %v9076_v13, %v9075_v20 }
 0x2cc   : > { %v13184_v52 = vadd.f32 %v9904_v33, %v13098_v15  ;;  %v9912_v47 = vadd.f32 %v9077_v10, %v13013_v32 }
 0x2ce   : > { %v4621_v0 = vadd.f32 %v13184_v52, %v4620_v12  ;;  %v13189_v58 = vadd.f32 %v9912_v47, %v13106_v30  ;;  %v9078_v48 = vpop.f32.mrb[144].mxu0 }
 0x2cf   : > { %v9079_v5 = vpop.f32.mrb[145].mxu0 }
 0x2d0   : > { %v4622_v55 = vadd.f32 %v13189_v58, %v4621_v0  ;;  %v9080_v19 = vadd.f32 %v9079_v5, %v9078_v48  ;;  %v9081_v62 = vpop.f32.mrb[146].mxu0 }
 0x2d1   : > { %v9082_v29 = vpop.f32.mrb[147].mxu0 }
 0x2d2   : > { %v9924_v23 = vadd.f32 %v9080_v19, %v13025_v53  ;;  %v9083_v51 = vadd.f32 %v9082_v29, %v9081_v62 }
 0x2d4   : > { %v13194_v15 = vadd.f32 %v9924_v23, %v13118_v44  ;;  %v9932_v32 = vadd.f32 %v9083_v51, %v13032_v22 }
 0x2d6   : > { %v4623_v34 = vadd.f32 %v13194_v15, %v4622_v55  ;;  %v13199_v30 = vadd.f32 %v9932_v32, %v13125_v7  ;;  %v9084_v25 = vpop.f32.mrb[148].mxu0 }
 0x2d7   : > { %v9085_v39 = vpop.f32.mrb[149].mxu0 }
 0x2d8   : > { %v4624_v2 = vadd.f32 %v13199_v30, %v4623_v34  ;;  %v9086_v43 = vadd.f32 %v9085_v39, %v9084_v25  ;;  %v9087_v12 = vpop.f32.mrb[150].mxu0 }
 0x2d9   : > { %v9088_v1 = vpop.f32.mrb[151].mxu0 }
 0x2da   : > { %v9920_v53 = vadd.f32 %v9086_v43, %v13021_v3  ;;  %v9089_v20 = vadd.f32 %v9088_v1, %v9087_v12 }
 0x2dc   : > { %v9921_v44 = vadd.f32 %v9920_v53, %v13115_v45  ;;  %v9928_v13 = vadd.f32 %v9089_v20, %v13029_v56 }
 0x2de   : > { %v4625_v22 = vadd.f32 %v9921_v44, %v4624_v2  ;;  %v9929_v33 = vadd.f32 %v9928_v13, %v13122_v21  ;;  %v9090_v10 = vpop.f32.mrb[152].mxu0 }
 0x2df   : > { %v9091_v7 = vpop.f32.mrb[153].mxu0 }
 0x2e0   : > { %v4626_v47 = vadd.f32 %v9929_v33, %v4625_v22  ;;  %v9092_v0 = vadd.f32 %v9091_v7, %v9090_v10  ;;  %v9093_v48 = vpop.f32.mrb[154].mxu0  ;;  %v10289_v22 = vld [vmem:[#allocation8 + $0x100] sm:$0xff]  }
 0x2e1   : > { %v9094_v5 = vpop.f32.mrb[155].mxu0  ;;  %v10290_v10 = vld [vmem:[#allocation8 + $0xc0] sm:$0xff]   ;;  %9126 = vmatprep.subr.bf16.mxu0 %v10289_v22 }
 0x2e2   : > { %v9940_v55 = vadd.f32 %v9092_v0, %v13041_v6  ;;  %v9095_v19 = vadd.f32 %v9094_v5, %v9093_v48  ;;  %v10291_v7 = vld [vmem:[#allocation8 + $0x140] sm:$0xff]   ;;  %9127 = vmatpush3.bf16.msra.mxu0 %v10290_v10  ;;  %v10309_v10 = vld [vmem:[#allocation8 + $0xf0] sm:$0xff]  }
 0x2e3   : > { %9678 = vmatprep.subr.bf16.mxu1 %v10291_v7 }
 0x2e4   : > { %v9941_v62 = vadd.f32 %v9940_v55, %v13134_v9  ;;  %v9948_v3 = vadd.f32 %v9095_v19, %v13048_v61  ;;  %9679 = vmatpush3.bf16.msra.mxu1 %v10291_v7  ;;  %v10297_v19 = vld [vmem:[#allocation8 + $0x110] sm:$0xff]  }
 0x2e6   : > { %v4627_v29 = vadd.f32 %v9941_v62, %v4626_v47  ;;  %v9949_v45 = vadd.f32 %v9948_v3, %v13143_v57  ;;  %v9096_v56 = vpop.f32.mrb[156].mxu0 }
 0x2e7   : > { %v9097_v23 = vpop.f32.mrb[157].mxu0 }
 0x2e8   : > { %v4628_v51 = vadd.f32 %v9949_v45, %v4627_v29  ;;  %v9098_v21 = vadd.f32 %v9097_v23, %v9096_v56  ;;  %v9099_v32 = vpop.f32.mrb[158].mxu0  ;;  %v10298_v29 = vld [vmem:[#allocation8 + $0xd0] sm:$0xff]   ;;  %v10302_v23 = vld [vmem:[#allocation8 + $0xd8] sm:$0xff]  }
 0x2e9   : > { %v9100_v34 = vpop.f32.mrb[159].mxu0 }
 0x2ea   : > { %v9936_v25 = vadd.f32 %v9098_v21, %v13037_v11  ;;  %v9101_v39 = vadd.f32 %v9100_v34, %v9099_v32  ;;  %v10292_v11 = vld [vmem:[#allocation8 + $0x148] sm:$0xff]   ;;  %v10303_v32 = vld [vmem:[#allocation8 + $0x120] sm:$0xff]  }
 0x2eb   : > { %9680 = vmatprep.subr.bf16.mxu1 %v10292_v11 }
 0x2ec   : > { %v9937_v2 = vadd.f32 %v9936_v25, %v13131_v41  ;;  %v9944_v6 = vadd.f32 %v9101_v39, %v13045_v8  ;;  %v10293_v41 = vld [vmem:[#allocation8 + $0x108] sm:$0xff]   ;;  %9681 = vmatpush3.bf16.msra.mxu1 %v10292_v11  ;;  %v10304_v25 = vld [vmem:[#allocation8 + $0xe0] sm:$0xff]  }
 0x2ed   : > { %v10294_v8 = vld [vmem:[#allocation8 + $0xc8] sm:$0xff]   ;;  %9128 = vmatprep.subr.bf16.mxu0 %v10293_v41 }
 0x2ee   : > { %v4629_v43 = vadd.f32 %v9937_v2, %v4628_v51  ;;  %v9945_v9 = vadd.f32 %v9944_v6, %v13140_v46  ;;  %v10295_v46 = vld [vmem:[#allocation8 + $0x150] sm:$0xff]   ;;  %9129 = vmatpush3.bf16.msra.mxu0 %v10294_v8  ;;  %v10306_v39 = vld [vmem:[#allocation8 + $0x128] sm:$0xff]  }
 0x2ef   : > { %9682 = vmatprep.subr.bf16.mxu1 %v10295_v46  ;;  %9130 = vmatprep.subr.bf16.mxu0 %v10297_v19 }
 0x2f0   : > { %v4630_v61 = vadd.f32 %v9945_v9, %v4629_v43  ;;  %9683 = vmatpush3.bf16.msra.mxu1 %v10295_v46  ;;  %v10300_v43 = vld [vmem:[#allocation8 + $0x168] sm:$0xff]  }
 0x2f2   : > { %v4631_v12 = vrot.slane %v4630_v61, 4  ;;  %9131 = vmatpush3.bf16.msra.mxu0 %v10298_v29  ;;  %v10312_v29 = vld [vmem:[#allocation8 + $0xf8] sm:$0xff]  }
 0x2f4   : > { %v4632_v1 = vadd.f32 %v4631_v12, %v4630_v61  ;;  %v10307_v12 = vld [vmem:[#allocation8 + $0xe8] sm:$0xff]  }
 0x2f6   : > { %v4633_v57 = vrot.slane %v4632_v1, 2 }
 0x2f8   : > { %v4634_v53 = vadd.f32 %v4633_v57, %v4632_v1 }
 0x2fa   : > { %v4635_v20 = vrot.slane %v4634_v53, 1 }
 0x2fc   : > { %v4636_v13 = vadd.f32 %v4635_v20, %v4634_v53 }
 0x2fe   : > { %v13214_v47 = vmul.f32 0.00390625, %v4636_v13 }
 0x300   : > { %v13218_v0 = vsub.f32 %v13174_v24, %v13214_v47  ;;  %v13222_v48 = vsub.f32 %v13179_v38, %v13214_v47  ;;  %v13226_v5 = vsub.f32 %v13184_v52, %v13214_v47  ;;  %v13230_v55 = vsub.f32 %v13189_v58, %v13214_v47 }
 0x301   : > { %v13234_v3 = vsub.f32 %v13194_v15, %v13214_v47  ;;  %v13238_v24 = vsub.f32 %v13199_v30, %v13214_v47  ;;  %v13241_v38 = vsub.f32 %v9921_v44, %v13214_v47  ;;  %v13244_v52 = vsub.f32 %v9929_v33, %v13214_v47 }
 0x302   : > { %v13247_v58 = vsub.f32 %v9941_v62, %v13214_v47  ;;  %v13250_v56 = vsub.f32 %v9949_v45, %v13214_v47  ;;  %v13253_v15 = vsub.f32 %v9937_v2, %v13214_v47  ;;  %v13256_v30 = vsub.f32 %v9945_v9, %v13214_v47  ;;  %v10296_v62 = vld [vmem:[#allocation8 + $0x158] sm:$0xff]  }
 0x303   : > { %v13260_v44 = vsub.f32 %v13051_v59, %v13214_v47  ;;  %v13264_v33 = vsub.f32 %v13054_v42, %v13214_v47  ;;  %v10301_v45 = vld [vmem:[#allocation8 + $0x118] sm:$0xff]   ;;  %v13268_v51 = vsub.f32 %v13057_v27, %v13214_v47  ;;  %9684 = vmatprep.subr.bf16.mxu1 %v10296_v62  ;;  %v10299_v42 = vld [vmem:[#allocation8 + $0x160] sm:$0xff]   ;;  %v13276_v34 = vsub.f32 %v13060_v17, %v13214_v47 }
 0x304   : > { %9132 = vmatprep.subr.bf16.mxu0 %v10301_v45  ;;  %9685 = vmatpush3.bf16.msra.mxu1 %v10296_v62  ;;  %v13280_v27 = vsub.f32 %v13063_v4, %v13214_v47  ;;  %v13286_v9 = vsub.f32 %v13066_v49, %v13214_v47  ;;  %v10308_v4 = vld [vmem:[#allocation8 + $0x130] sm:$0xff]   ;;  %v13292_v1 = vsub.f32 %v13071_v16, %v13214_v47  ;;  %v10311_v16 = vld [vmem:[#allocation8 + $0x138] sm:$0xff]  }
 0x305   : > { %v4670_v21 = vmul.f32 %v13260_v44, %v13260_v44  ;;  %v4671_v59 = vmul.f32 %v13264_v33, %v13264_v33  ;;  %9133 = vmatpush3.bf16.msra.mxu0 %v10302_v23  ;;  %v4672_v2 = vmul.f32 %v13268_v51, %v13268_v51  ;;  %9686 = vmatprep.subr.bf16.mxu1 %v10299_v42  ;;  %v10305_v49 = vld [vmem:[#allocation8 + $0x170] sm:$0xff]   ;;  %v13320_v23 = vld [vmem:[#allocation8 + $0x80] sm:$0xff]  }
 0x306   : > { %9134 = vmatprep.subr.bf16.mxu0 %v10303_v32  ;;  %v4673_v17 = vmul.f32 %v13276_v34, %v13276_v34  ;;  %v4674_v57 = vmul.f32 %v13280_v27, %v13280_v27  ;;  %v13298_v20 = vsub.f32 %v13078_v28, %v13214_v47  ;;  %v4675_v13 = vmul.f32 %v13286_v9, %v13286_v9  ;;  %v10310_v28 = vld [vmem:[#allocation8 + $0x178] sm:$0xff]  }
 0x307   : > { %v4702_v6 = vadd.f32 %v4671_v59, %v4670_v21  ;;  %v13304_v7 = vsub.f32 %v13087_v40, %v13214_v47  ;;  %v4676_v11 = vmul.f32 %v13292_v1, %v13292_v1  ;;  %v13310_v8 = vsub.f32 %v13095_v37, %v13214_v47 }
 0x308   : > { %9687 = vmatpush3.bf16.msra.mxu1 %v10299_v42  ;;  %v4677_v46 = vmul.f32 %v13298_v20, %v13298_v20  ;;  %v13316_v40 = vsub.f32 %v13104_v50, %v13214_v47  ;;  %v13324_v37 = vsub.f32 %v13111_v36, %v13214_v47  ;;  %v13330_v50 = vsub.f32 %v13120_v31, %v13214_v47 }
 0x309   : > { %v4703_v61 = vadd.f32 %v4702_v6, %v4672_v2  ;;  %9135 = vmatpush3.bf16.msra.mxu0 %v10304_v25  ;;  %9688 = vmatprep.subr.bf16.mxu1 %v10300_v43  ;;  %v4678_v62 = vmul.f32 %v13304_v7, %v13304_v7  ;;  %v4679_v21 = vmul.f32 %v13310_v8, %v13310_v8 }
 0x30a   : > { %9136 = vmatprep.subr.bf16.mxu0 %v10306_v39  ;;  %v4680_v42 = vmul.f32 %v13316_v40, %v13316_v40  ;;  %v13337_v36 = vsub.f32 %v13128_v26, %v13214_v47  ;;  %v4681_v25 = vmul.f32 %v13324_v37, %v13324_v37  ;;  %v13343_v2 = vsub.f32 %v13138_v18, %v13214_v47 }
 0x30b   : > { %v4704_v53 = vadd.f32 %v4703_v61, %v4673_v17  ;;  %v4682_v31 = vmul.f32 %v13330_v50, %v13330_v50  ;;  %v13355_v61 = vsub.f32 %v13153_v54, %v13214_v47 }
 0x30c   : > { %9689 = vmatpush3.bf16.msra.mxu1 %v10300_v43  ;;  %v13349_v43 = vsub.f32 %v13147_v14, %v13214_v47  ;;  %v4683_v26 = vmul.f32 %v13337_v36, %v13337_v36  ;;  %v4684_v18 = vmul.f32 %v13343_v2, %v13343_v2 }
 0x30d   : > { %v4705_v22 = vadd.f32 %v4704_v53, %v4674_v57  ;;  %9137 = vmatpush3.bf16.msra.mxu0 %v10307_v12  ;;  %9690 = vmatprep.subr.bf16.mxu1 %v10305_v49  ;;  %v13367_v53 = vsub.f32 %v13163_v60, %v13214_v47  ;;  %v4686_v54 = vmul.f32 %v13355_v61, %v13355_v61 }
 0x30e   : > { %9138 = vmatprep.subr.bf16.mxu0 %v10308_v4  ;;  %v13361_v4 = vsub.f32 %v13157_v35, %v13214_v47  ;;  %v4685_v14 = vmul.f32 %v13349_v43, %v13349_v43 }
 0x30f   : > { %v4706_v41 = vadd.f32 %v4705_v22, %v4675_v13  ;;  %v13373_v13 = vsub.f32 %v13168_v63, %v13214_v47  ;;  %v4691_v63 = vmul.f32 %v13222_v48, %v13222_v48 }
 0x310   : > { %9691 = vmatpush3.bf16.msra.mxu1 %v10305_v49  ;;  %v4687_v35 = vmul.f32 %v13361_v4, %v13361_v4 }
 0x311   : > { %v4707_v19 = vadd.f32 %v4706_v41, %v4676_v11  ;;  %9139 = vmatpush3.bf16.msra.mxu0 %v10309_v10  ;;  %9692 = vmatprep.subr.bf16.mxu1 %v10310_v28  ;;  %v4688_v10 = vmul.f32 %v13367_v53, %v13367_v53  ;;  %v4689_v60 = vmul.f32 %v13373_v13, %v13373_v13 }
 0x312   : > { %9140 = vmatprep.subr.bf16.mxu0 %v10311_v16  ;;  %v4690_v41 = vmul.f32 %v13218_v0, %v13218_v0 }
 0x313   : > { %v4708_v45 = vadd.f32 %v4707_v19, %v4677_v46  ;;  %v4692_v46 = vmul.f32 %v13226_v5, %v13226_v5 }
 0x314   : > { %9693 = vmatpush3.bf16.msra.mxu1 %v10310_v28 }
 0x315   : > { %v4709_v59 = vadd.f32 %v4708_v45, %v4678_v62  ;;  %9141 = vmatpush3.bf16.msra.mxu0 %v10312_v29  ;;  %9726 = vmatprep.subr.bf16.mxu1 %v13320_v23  ;;  %v4693_v29 = vmul.f32 %v13230_v55, %v13230_v55  ;;  %v4694_v45 = vmul.f32 %v13234_v3, %v13234_v3 }
 0x317   : > { %v4710_v32 = vadd.f32 %v4709_v59, %v4679_v21  ;;  %v4695_v59 = vmul.f32 %v13238_v24, %v13238_v24 }
 0x319   : > { %v4711_v39 = vadd.f32 %v4710_v32, %v4680_v42  ;;  %v4696_v32 = vmul.f32 %v13241_v38, %v13241_v38 }
 0x31b   : > { %v4712_v6 = vadd.f32 %v4711_v39, %v4681_v25  ;;  %v4697_v39 = vmul.f32 %v13244_v52, %v13244_v52 }
 0x31d   : > { %v4713_v17 = vadd.f32 %v4712_v6, %v4682_v31  ;;  %v4698_v6 = vmul.f32 %v13247_v58, %v13247_v58 }
 0x31f   : > { %v4714_v12 = vadd.f32 %v4713_v17, %v4683_v26  ;;  %v4699_v17 = vmul.f32 %v13250_v56, %v13250_v56 }
 0x321   : > { %v4715_v57 = vadd.f32 %v4714_v12, %v4684_v18  ;;  %v4700_v12 = vmul.f32 %v13253_v15, %v13253_v15 }
 0x323   : > { %v4716_v49 = vadd.f32 %v4715_v57, %v4685_v14  ;;  %v4701_v57 = vmul.f32 %v13256_v30, %v13256_v30 }
 0x325   : > { %v4717_v22 = vadd.f32 %v4716_v49, %v4686_v54 }
 0x327   : > { %v4718_v16 = vadd.f32 %v4717_v22, %v4687_v35 }
 0x329   : > { %v4719_v11 = vadd.f32 %v4718_v16, %v4688_v10 }
 0x32b   : > { %v4720_v28 = vadd.f32 %v4719_v11, %v4689_v60 }
 0x32d   : > { %v4721_v47 = vadd.f32 %v4720_v28, %v4690_v41 }
 0x32f   : > { %v4722_v19 = vadd.f32 %v4721_v47, %v4691_v63  ;;  %v10321_v63 = vld [vmem:[#allocation8 + $0x40] sm:$0xff]  }
 0x330   : > { %9262 = vmatprep.subr.bf16.mxu0 %v10321_v63 }
 0x331   : > { %v4723_v62 = vadd.f32 %v4722_v19, %v4692_v46 }
 0x333   : > { %v4724_v21 = vadd.f32 %v4723_v62, %v4693_v29 }
 0x335   : > { %v4725_v42 = vadd.f32 %v4724_v21, %v4694_v45 }
 0x337   : > { %v4726_v25 = vadd.f32 %v4725_v42, %v4695_v59 }
 0x339   : > { %v4727_v31 = vadd.f32 %v4726_v25, %v4696_v32 }
 0x33b   : > { %v4728_v26 = vadd.f32 %v4727_v31, %v4697_v39 }
 0x33d   : > { %v4729_v18 = vadd.f32 %v4728_v26, %v4698_v6 }
 0x33f   : > { %v4730_v14 = vadd.f32 %v4729_v18, %v4699_v17 }
 0x341   : > { %v4731_v54 = vadd.f32 %v4730_v14, %v4700_v12 }
 0x343   : > { %v4732_v49 = vadd.f32 %v4731_v54, %v4701_v57 }
 0x345   : > { %v4733_v35 = vrot.slane %v4732_v49, 4 }
 0x347   : > { %v4734_v22 = vadd.f32 %v4733_v35, %v4732_v49 }
 0x349   : > { %v4735_v10 = vrot.slane %v4734_v22, 2 }
 0x34b   : > { %v4736_v16 = vadd.f32 %v4735_v10, %v4734_v22 }
 0x34d   : > { %v4737_v60 = vrot.slane %v4736_v16, 1 }
 0x34f   : > { %v4738_v11 = vadd.f32 %v4737_v60, %v4736_v16 }
 0x351   : > { %v4739_v41 = vmul.f32 0.00390625, %v4738_v11 }
 0x353   : > { %v4740_v28 = vadd.f32 1e-05, %v4739_v41 }
 0x355   : > { %10361 = vrsqrt.f32 %v4740_v28 }
 0x35f   : > { %v10362_v47 = vpop.eup %10361 }
 0x360   : > { %v4772_v46 = vmul.f32 %v10362_v47, %v13253_v15  ;;  %v4773_v19 = vmul.f32 %v10362_v47, %v13256_v30  ;;  %v13408_v29 = vmul.f32 %v10362_v47, %v13260_v44  ;;  %v13411_v62 = vmul.f32 %v10362_v47, %v13264_v33 }
 0x361   : > { %v13414_v45 = vmul.f32 %v10362_v47, %v13268_v51  ;;  %v13417_v21 = vmul.f32 %v10362_v47, %v13276_v34  ;;  %v13420_v59 = vmul.f32 %v10362_v47, %v13280_v27  ;;  %v4747_v42 = vmul.f32 %v10362_v47, %v13286_v9 }
 0x362   : > { %v4804_v15 = vmax.f32 %v4772_v46, 0.0  ;;  %v4805_v32 = vmax.f32 %v4773_v19, 0.0  ;;  %v4748_v30 = vmul.f32 %v10362_v47, %v13292_v1  ;;  %v4749_v44 = vmul.f32 %v10362_v47, %v13298_v20 }
 0x363   : > { %v4750_v33 = vmul.f32 %v10362_v47, %v13304_v7  ;;  %v4751_v25 = vmul.f32 %v10362_v47, %v13310_v8  ;;  %v4752_v51 = vmul.f32 %v10362_v47, %v13316_v40  ;;  %v4753_v34 = vmul.f32 %v10362_v47, %v13324_v37 }
 0x364   : > { %v4821_v39 = vpack.c.bf16 %v4805_v32, %v4804_v15  ;;  %v4754_v27 = vmul.f32 %v10362_v47, %v13330_v50  ;;  %v4755_v31 = vmul.f32 %v10362_v47, %v13337_v36  ;;  %v4756_v9 = vmul.f32 %v10362_v47, %v13343_v2 }
 0x365   : > { %v4757_v6 = vmul.f32 %v10362_v47, %v13349_v43  ;;  %v4758_v1 = vmul.f32 %v10362_v47, %v13355_v61  ;;  %v4759_v20 = vmul.f32 %v10362_v47, %v13361_v4  ;;  %v4760_v7 = vmul.f32 %v10362_v47, %v13367_v53 }
 0x366   : > { %4837 = vst [vmem:[#allocation2 + $0x88] sm:$0xff] %v4821_v39  ;;  %v4761_v8 = vmul.f32 %v10362_v47, %v13373_v13  ;;  %v4762_v40 = vmul.f32 %v10362_v47, %v13218_v0  ;;  %v4763_v37 = vmul.f32 %v10362_v47, %v13222_v48  ;;  %v4764_v50 = vmul.f32 %v10362_v47, %v13226_v5 }
 0x367   : > { %v4765_v36 = vmul.f32 %v10362_v47, %v13230_v55  ;;  %v4766_v2 = vmul.f32 %v10362_v47, %v13234_v3  ;;  %v4767_v43 = vmul.f32 %v10362_v47, %v13238_v24  ;;  %v4768_v61 = vmul.f32 %v10362_v47, %v13241_v38 }
 0x368   : > { %v4769_v4 = vmul.f32 %v10362_v47, %v13244_v52  ;;  %v4770_v53 = vmul.f32 %v10362_v47, %v13247_v58  ;;  %v4771_v13 = vmul.f32 %v10362_v47, %v13250_v56  ;;  %v4774_v0 = vmax.f32 %v13408_v29, 0.0 }
 0x369   : > { %v4775_v48 = vmax.f32 %v13411_v62, 0.0  ;;  %v4776_v5 = vmax.f32 %v13414_v45, 0.0  ;;  %v4777_v55 = vmax.f32 %v13417_v21, 0.0  ;;  %v4778_v3 = vmax.f32 %v13420_v59, 0.0 }
 0x36a   : > { %v4779_v26 = vmax.f32 %v4747_v42, 0.0  ;;  %v4780_v24 = vmax.f32 %v4748_v30, 0.0  ;;  %v4781_v17 = vmax.f32 %v4749_v44, 0.0  ;;  %v4782_v38 = vmax.f32 %v4750_v33, 0.0 }
 0x36b   : > { %v4783_v18 = vmax.f32 %v4751_v25, 0.0  ;;  %v4784_v52 = vmax.f32 %v4752_v51, 0.0  ;;  %v4785_v12 = vmax.f32 %v4753_v34, 0.0  ;;  %v4786_v58 = vmax.f32 %v4754_v27, 0.0 }
 0x36c   : > { %v4787_v14 = vmax.f32 %v4755_v31, 0.0  ;;  %v4788_v56 = vmax.f32 %v4756_v9, 0.0  ;;  %v4789_v57 = vmax.f32 %v4757_v6, 0.0  ;;  %v4790_v54 = vmax.f32 %v4758_v1, 0.0 }
 0x36d   : > { %v4791_v49 = vmax.f32 %v4759_v20, 0.0  ;;  %v4792_v35 = vmax.f32 %v4760_v7, 0.0  ;;  %v4793_v22 = vmax.f32 %v4761_v8, 0.0  ;;  %v4794_v10 = vmax.f32 %v4762_v40, 0.0 }
 0x36e   : > { %v4795_v16 = vmax.f32 %v4763_v37, 0.0  ;;  %v4796_v60 = vmax.f32 %v4764_v50, 0.0  ;;  %v4797_v11 = vmax.f32 %v4765_v36, 0.0  ;;  %v4798_v41 = vmax.f32 %v4766_v2, 0.0 }
 0x36f   : > { %v4799_v28 = vmax.f32 %v4767_v43, 0.0  ;;  %v4800_v63 = vmax.f32 %v4768_v61, 0.0  ;;  %v4801_v47 = vmax.f32 %v4769_v4, 0.0  ;;  %v4802_v46 = vmax.f32 %v4770_v53, 0.0 }
 0x370   : > { %v4803_v19 = vmax.f32 %v4771_v13, 0.0  ;;  %v13452_v29 = vpack.c.bf16 %v4775_v48, %v4774_v0  ;;  %v13454_v62 = vpack.c.bf16 %v4777_v55, %v4776_v5  ;;  %v13456_v45 = vpack.c.bf16 %v4779_v26, %v4778_v3 }
 0x371   : > { %v13458_v21 = vpack.c.bf16 %v4781_v17, %v4780_v24  ;;  %v13460_v59 = vpack.c.bf16 %v4783_v18, %v4782_v38  ;;  %v13462_v42 = vpack.c.bf16 %v4785_v12, %v4784_v52  ;;  %v13464_v15 = vpack.c.bf16 %v4787_v14, %v4786_v58 }
 0x372   : > { %v13466_v32 = vpack.c.bf16 %v4789_v57, %v4788_v56  ;;  %v13468_v30 = vpack.c.bf16 %v4791_v49, %v4790_v54  ;;  %v13470_v44 = vpack.c.bf16 %v4793_v22, %v4792_v35  ;;  %v13472_v33 = vpack.c.bf16 %v4795_v16, %v4794_v10  ;;  %4822 = vst [vmem:[#allocation2 + $0x10] sm:$0xff] %v13452_v29 }
 0x373   : > { %4823 = vst [vmem:[#allocation2 + $0x18] sm:$0xff] %v13454_v62  ;;  %4824 = vst [vmem:[#allocation2 + $0x20] sm:$0xff] %v13456_v45  ;;  %v13478_v25 = vpack.c.bf16 %v4797_v11, %v4796_v60  ;;  %v13480_v51 = vpack.c.bf16 %v4799_v28, %v4798_v41  ;;  %v13482_v34 = vpack.c.bf16 %v4801_v47, %v4800_v63  ;;  %v5018_v27 = vshrl.u32 %v13452_v29, 16 }
 0x374   : > { %4838 = vst [vmem:[#allocation2 + $0x8] sm:$0xff] %v13454_v62  ;;  %v13484_v39 = vpack.c.bf16 %v4803_v19, %v4802_v46  ;;  %4825 = vst [vmem:[#allocation2 + $0x28] sm:$0xff] %v13458_v21  ;;  %v5021_v31 = vshll.u32 %v13452_v29, 16  ;;  %v5026_v9 = vshrl.u32 %v13454_v62, 16  ;;  %v5029_v6 = vshll.u32 %v13454_v62, 16 }
 0x375   : > { %4826 = vst [vmem:[#allocation2 + $0x30] sm:$0xff] %v13460_v59  ;;  %4827 = vst [vmem:[#allocation2 + $0x38] sm:$0xff] %v13462_v42  ;;  %v13504_v1 = vrot.slane %v13452_v29, 7  ;;  %v13507_v20 = vrot.slane %v13454_v62, 7  ;;  %v13510_v7 = vrot.slane %v13452_v29, 1  ;;  %v4946_v8 = vrot.slane %v13454_v62, 1 }
 0x376   : > { %4828 = vst [vmem:[#allocation2 + $0x40] sm:$0xff] %v13464_v15  ;;  %4829 = vst [vmem:[#allocation2 + $0x48] sm:$0xff] %v13466_v32  ;;  %v5020_v40 = vrot.slane %v5018_v27, 7  ;;  %v5028_v37 = vrot.slane %v5026_v9, 7  ;;  %v4948_v50 = vrot.slane %v13456_v45, 1  ;;  %v5034_v36 = vshrl.u32 %v13456_v45, 16 }
 0x377   : > { %4830 = vst [vmem:[#allocation2 + $0x50] sm:$0xff] %v13468_v30  ;;  %4831 = vst [vmem:[#allocation2 + $0x58] sm:$0xff] %v13470_v44  ;;  %v13518_v2 = vsel %vm708_vm8, %v13504_v1, %v13507_v20  ;;  %v13522_v43 = vsel %vm1396_vm10, %v13510_v7, %v4946_v8  ;;  %v5037_v61 = vshll.u32 %v13456_v45, 16  ;;  %v4950_v4 = vrot.slane %v13458_v21, 1 }
 0x378   : > { %4832 = vst [vmem:[#allocation2 + $0x60] sm:$0xff] %v13472_v33  ;;  %4833 = vst [vmem:[#allocation2 + $0x68] sm:$0xff] %v13478_v25  ;;  %v13526_v53 = vor.u32 %v5021_v31, %v5020_v40  ;;  %v13528_v13 = vor.u32 %v5029_v6, %v5028_v37  ;;  %v13534_v48 = vsel %vm1038_vm0, %v13454_v62, %v13518_v2  ;;  %v13548_v18 = vrot.slane %v5034_v36, 7 }
 0x379   : > { %4834 = vst [vmem:[#allocation2 + $0x70] sm:$0xff] %v13480_v51  ;;  %4835 = vst [vmem:[#allocation2 + $0x78] sm:$0xff] %v13482_v34  ;;  %v13537_v5 = vsel %vm1396_vm10, %v4946_v8, %v4948_v50  ;;  %v5404_v3 = vshll.u32 %v13534_v48, 16  ;;  %v5273_v24 = vsel %vm1379_vm11, %v13452_v29, %v13522_v43  ;;  %v5061_v41 = vshll.u32 %v13462_v42, 16 }
 0x37a   : > { %4836 = vst [vmem:[#allocation2 + $0x80] sm:$0xff] %v13484_v39  ;;  %4839 = vst [vmem:[#allocation2 + $0x90] sm:$0xff] %v13484_v39  ;;  %v5274_v38 = vsel %vm1380_vm5, %v13454_v62, %v13537_v5  ;;  %v5032_v52 = vsel %vm15921_vm14, %v5020_v40, %v13528_v13  ;;  %v5409_v12 = vshrl.u32 %v13526_v53, 16  ;;  %v5411_v58 = vshll.u32 %v13526_v53, 16 }
 0x37b   : > { %15958 = vst [vmem:[#allocation86_spill] sm:$0xff] %v13504_v1  ;;  %15959 = vst [vmem:[#allocation87_spill] sm:$0xff] %v13507_v20  ;;  %v5236_v55 = vld [vmem:[#allocation2 + $0x8] sm:$0x80]  ;;  %v5416_v56 = vshll.u32 %v5032_v52, 16  ;;  %v5406_v57 = vrot.slane %v5404_v3, 1  ;;  %v5039_v63 = vor.u32 %v5037_v61, %v13548_v18 }
 0x37c   : > { %15960 = vst [vmem:[#allocation109_spill] sm:$0xff] %v13518_v2  ;;  %15961 = vst [vmem:[#allocation110_spill] sm:$0xff] %v13526_v53  ;;  %v5240_v14 = vrot.slane %v5236_v55, 7  ;;  %v5272_v49 = vsel %vm1378_vm7, %v5236_v55, %v13510_v7  ;;  %v5315_v35 = vrot.slane %v5273_v24, 7  ;;  %v5413_v22 = vrot.slane %v5411_v58, 1 }
 0x37d   : > { %15962 = vst [vmem:[#allocation93_spill] sm:$0xff] %v13528_v13  ;;  %v5314_v16 = vrot.slane %v5272_v49, 7  ;;  %v5317_v60 = vrot.slane %v5274_v38, 7  ;;  %v13559_v11 = vrot.slane %v5416_v56, 1  ;;  %v5440_v47 = vshrl.u32 %v5032_v52, 16 }
 0x37e   : > { %v5241_v10 = vsel %vm708_vm8, %v5240_v14, %v13504_v1  ;;  %v5414_v46 = vor.u32 %v5413_v22, %v5409_v12  ;;  %v5040_v40 = vsel %vm15969_vm3, %v5028_v37, %v5039_v63  ;;  %v13572_v12 = vsel %vm1396_vm10, %v4948_v50, %v4950_v4 }
 0x37f   : > { %15967 = vst [vmem:[#allocation94_spill] sm:$0xff] %v13559_v11  ;;  %v5247_v28 = vsel %vm1037_vm15, %v13452_v29, %v5241_v10  ;;  %v5316_v31 = vsel %vm708_vm8, %v5314_v16, %v5315_v35  ;;  %v5318_v9 = vsel %vm708_vm8, %v5315_v35, %v5317_v60  ;;  %v5442_v38 = vor.u32 %v5440_v47, %v13559_v11 }
 0x380   : > { %v5397_v19 = vshrl.u32 %v5247_v28, 16  ;;  %v5399_v27 = vshll.u32 %v5247_v28, 16  ;;  %v5421_v6 = vshrl.u32 %v5316_v31, 16  ;;  %v5423_v8 = vshll.u32 %v5316_v31, 16  ;;  %v10322_v28 = vld [vmem:[#allocation8] sm:$0xff]  }
 0x381   : > { %v5419_v36 = vsel %vm1250_vm12, %v5414_v46, %v13559_v11  ;;  %v5428_v3 = vshll.u32 %v5318_v9, 16  ;;  %v5448_v24 = vshrl.u32 %v5318_v9, 16  ;;  %v5444_v52 = vshll.u32 %v5040_v40, 16 }
 0x382   : > { %v5401_v55 = vrot.slane %v5399_v27, 1  ;;  %6016 = vmatprep.mubr.bf16.mxu0 %v5419_v36  ;;  %v5425_v61 = vrot.slane %v5423_v8, 1  ;;  %v5275_v37 = vsel %vm1381_vm2, %v13456_v45, %v13572_v12  ;;  %v4952_v49 = vrot.slane %v13460_v59, 1 }
 0x383   : > { %v5430_v14 = vrot.slane %v5428_v3, 1  ;;  %v13579_v22 = vrot.slane %v5444_v52, 1  ;;  %v5319_v10 = vrot.slane %v5275_v37, 7  ;;  %v15501_v16 = vrot.slane %v13456_v45, 7  ;;  %v10328_v52 = vld [vmem:[#allocation8 + $0x8] sm:$0xff]  }
 0x384   : > { %v5402_v58 = vor.u32 %v5401_v55, %v5397_v19  ;;  %v5426_v35 = vor.u32 %v5425_v61, %v5421_v6  ;;  %v13584_v47 = vsel %vm1396_vm10, %v4950_v4, %v4952_v49  ;;  %v5432_v46 = vshrl.u32 %v13534_v48, 16  ;;  %v10327_v19 = vld [vmem:[#allocation8 + $0x48] sm:$0xff]  }
 0x385   : > { %15971 = vst [vmem:[#allocation88_spill] sm:$0xff] %v13579_v22  ;;  %v5450_v50 = vor.u32 %v5448_v24, %v5430_v14  ;;  %v13590_v31 = vsel %vm1250_vm12, %v5442_v38, %v13579_v22  ;;  %v5320_v9 = vsel %vm708_vm8, %v5317_v60, %v5319_v10  ;;  %v5276_v8 = vsel %vm1382_vm9, %v13458_v21, %v13584_v47  ;;  %v15975_v60 = vld [vmem:[#allocation15_spill] sm:$0xff] }
 0x386   : > { %v5407_v63 = vsel %vm1250_vm12, %v5402_v58, %v5406_v57  ;;  %v5431_v27 = vsel %vm1250_vm12, %v5426_v35, %v5430_v14  ;;  %15972 = vst [vmem:[#allocation90_spill] sm:$0xff] %v13590_v31  ;;  %v5452_v4 = vshll.u32 %v5320_v9, 16  ;;  %v5321_v48 = vrot.slane %v5276_v8, 7 }
 0x387   : > { %6017 = vmatmul.mubr.bf16.vlgmr.msra.gmra.mrb[160].mxu0 %v5407_v63  ;;  %9694 = vmatprep.mubr.bf16.mxu1 %v5431_v27  ;;  %v5472_v36 = vshrl.u32 %v5320_v9, 16  ;;  %v13602_v55 = vsel %vm708_vm8, %v13507_v20, %v15501_v16  ;;  %vm15976_vm6 = vcmp.ne.s16.totalorder %v15975_v60, 0  ;;  %v5434_v24 = vor.u32 %v5432_v46, %v5406_v57  ;;  %v10333_v63 = vld [vmem:[#allocation8 + $0x50] sm:$0xff]   ;;  %v10314_v57 = vld [vmem:[#allocation8 + $0x88] sm:$0xff]  }
 0x388   : > { %6024 = vmatprep.mubr.bf16.mxu0 %v13590_v31  ;;  %15974 = vst [vmem:[#allocation99_spill] sm:$0xff] %v13602_v55  ;;  %v5249_v3 = vsel %vm15976_vm6, %v13456_v45, %v13602_v55  ;;  %v5042_v61 = vshrl.u32 %v13458_v21, 16  ;;  %v5045_v38 = vshll.u32 %v13458_v21, 16  ;;  %9263 = vmatpush3.bf16.msra.mxu0 %v10322_v28  ;;  %v5454_v58 = vrot.slane %v5452_v4, 1  ;;  %v10342_v55 = vld [vmem:[#allocation8 + $0x20] sm:$0xff]  }
 0x389   : > { %v5322_v14 = vsel %vm708_vm8, %v5319_v10, %v5321_v48  ;;  %v5436_v37 = vshll.u32 %v5249_v3, 16  ;;  %v5464_v35 = vshrl.u32 %v5040_v40, 16  ;;  %9264 = vmatprep.subr.bf16.mxu0 %v10327_v19  ;;  %v4954_v8 = vrot.slane %v13462_v42, 1 }
 0x38a   : > { %v5476_v27 = vshll.u32 %v5322_v14, 16  ;;  %v13611_v9 = vrot.slane %v5042_v61, 7  ;;  %v5496_v16 = vshrl.u32 %v5322_v14, 16  ;;  %v5455_v46 = vsel %vm1250_vm12, %v5450_v50, %v5454_v58  ;;  %v10334_v61 = vld [vmem:[#allocation8 + $0x10] sm:$0xff]   ;;  %v15977_v50 = vld [vmem:[#allocation60_spill] sm:$0xff] }
 0x38b   : > { %v5474_v31 = vor.u32 %v5472_v36, %v5454_v58  ;;  %v5438_v11 = vrot.slane %v5436_v37, 1  ;;  %v5466_v28 = vor.u32 %v5464_v35, %v13579_v22  ;;  %9695 = vmatmul.mubr.bf16.vlgmr.msra.gmra.mrb[96].mxu1 %v5455_v46  ;;  %v13618_v40 = vsel %vm1396_vm10, %v4952_v49, %v4954_v8 }
 0x38c   : > { %v5478_v4 = vrot.slane %v5476_v27, 1  ;;  %v5047_v10 = vor.u32 %v5045_v38, %v13611_v9  ;;  %v4956_v19 = vrot.slane %v13464_v15, 1  ;;  %9265 = vmatpush3.bf16.msra.mxu0 %v10328_v52  ;;  %9727 = vmatpush3.bf16.msra.mxu1 %v13320_v23  ;;  %vm15978_vm14 = vcmp.ne.s16.totalorder %v15977_v50, 0  ;;  %v10339_v38 = vld [vmem:[#allocation8 + $0x58] sm:$0xff]  }
 0x38d   : > { %v5439_v14 = vsel %vm1250_vm12, %v5434_v24, %v5438_v11  ;;  %v5277_v36 = vsel %vm15978_vm14, %v13460_v59, %v13618_v40  ;;  %v15504_v58 = vrot.slane %v13458_v21, 7  ;;  %v5456_v37 = vshrl.u32 %v5249_v3, 16  ;;  %9266 = vmatprep.subr.bf16.mxu0 %v10333_v63  ;;  %9728 = vmatprep.subr.bf16.mxu1 %v10314_v57  ;;  %v10315_v24 = vld [vmem:[#allocation8 + $0x90] sm:$0xff]  }
 0x38e   : > { %v5479_v49 = vsel %vm1250_vm12, %v5474_v31, %v5478_v4  ;;  %v5048_v52 = vsel %vm15969_vm3, %v13548_v18, %v5047_v10  ;;  %v5323_v35 = vrot.slane %v5277_v36, 7  ;;  %v5498_v23 = vor.u32 %v5496_v16, %v5478_v4  ;;  %v15981_v18 = vld [vmem:[#allocation61_spill] sm:$0xff]  ;;  %v15983_v4 = vld [vmem:[#allocation16_spill] sm:$0xff] }
 0x38f   : > { %6025 = vmatmul.mubr.bf16.gmra.mrb[164].mxu0 %v5439_v14  ;;  %9698 = vmatprep.mubr.bf16.mxu1 %v5479_v49  ;;  %v5468_v27 = vshll.u32 %v5048_v52, 16  ;;  %v13632_v46 = vsel %vm1396_vm10, %v4954_v8, %v4956_v19  ;;  %v15979_v3 = vrot.slane %v13456_v45, 7  ;;  %v5458_v31 = vor.u32 %v5456_v37, %v5438_v11  ;;  %v10340_v36 = vld [vmem:[#allocation8 + $0x18] sm:$0xff]  }
 0x390   : > { %v5324_v14 = vsel %vm708_vm8, %v5321_v48, %v5323_v35  ;;  %vm15982_vm6 = vcmp.ne.s16.totalorder %v15981_v18, 0  ;;  %vm15984_vm14 = vcmp.ne.s16.totalorder %v15983_v4, 0  ;;  %v5050_v10 = vshrl.u32 %v13460_v59, 16  ;;  %9267 = vmatpush3.bf16.msra.mxu0 %v10334_v61  ;;  %9729 = vmatpush3.bf16.msra.mxu1 %v10314_v57  ;;  %v10341_v48 = vld [vmem:[#allocation8 + $0x60] sm:$0xff]  }
 0x391   : > { %v13639_v63 = vsel %vm708_vm8, %v15979_v3, %v15504_v58  ;;  %v5278_v16 = vsel %vm15982_vm6, %v13462_v42, %v13632_v46  ;;  %v5470_v49 = vrot.slane %v5468_v27, 1  ;;  %v5500_v3 = vshll.u32 %v5324_v14, 16  ;;  %9268 = vmatprep.subr.bf16.mxu0 %v10339_v38  ;;  %9730 = vmatprep.subr.bf16.mxu1 %v10315_v24 }
 0x392   : > { %15980 = vst [vmem:[#allocation100_spill] sm:$0xff] %v13639_v63  ;;  %v13650_v8 = vsel %vm15984_vm14, %v13458_v21, %v13639_v63  ;;  %v5325_v11 = vrot.slane %v5278_v16, 7  ;;  %v5520_v37 = vshrl.u32 %v5324_v14, 16  ;;  %v13654_v60 = vrot.slane %v5050_v10, 7  ;;  %v10316_v63 = vld [vmem:[#allocation8 + $0x98] sm:$0xff]  }
 0x393   : > { %v5460_v58 = vshll.u32 %v13650_v8, 16  ;;  %v5053_v2 = vshll.u32 %v13460_v59, 16  ;;  %v5488_v4 = vshrl.u32 %v5048_v52, 16  ;;  %v13658_v22 = vsel %vm1250_vm12, %v5466_v28, %v5470_v49 }
 0x394   : > { %15985 = vst [vmem:[#allocation95_spill] sm:$0xff] %v13658_v22  ;;  %v5502_v61 = vrot.slane %v5500_v3, 1  ;;  %v5326_v27 = vsel %vm708_vm8, %v5323_v35, %v5325_v11  ;;  %v4958_v14 = vrot.slane %v13466_v32, 1  ;;  %6032 = vmatprep.mubr.bf16.mxu0 %v13658_v22  ;;  %9269 = vmatpush3.bf16.msra.mxu0 %v10340_v36  ;;  %v16001_v53 = vrot.slane %v13460_v59, 7 }
 0x395   : > { %v5524_v57 = vshll.u32 %v5326_v27, 16  ;;  %v5462_v38 = vrot.slane %v5460_v58, 1  ;;  %v5055_v16 = vor.u32 %v5053_v2, %v13654_v60  ;;  %v5490_v10 = vor.u32 %v5488_v4, %v5470_v49  ;;  %9731 = vmatpush3.bf16.msra.mxu1 %v10315_v24  ;;  %9270 = vmatprep.subr.bf16.mxu0 %v10341_v48  ;;  %v15986_v2 = vld [vmem:[#allocation62_spill] sm:$0xff] }
 0x396   : > { %v5503_v52 = vsel %vm1250_vm12, %v5498_v23, %v5502_v61  ;;  %v5522_v20 = vor.u32 %v5520_v37, %v5502_v61  ;;  %v13666_v28 = vsel %vm1396_vm10, %v4956_v19, %v4958_v14  ;;  %v5544_v3 = vshrl.u32 %v5326_v27, 16  ;;  %9732 = vmatprep.subr.bf16.mxu1 %v10316_v63  ;;  %v10317_v23 = vld [vmem:[#allocation8 + $0xa0] sm:$0xff]   ;;  %v10345_v37 = vld [vmem:[#allocation8 + $0x68] sm:$0xff]  }
 0x397   : > { %9699 = vmatmul.mubr.bf16.gmra.mrb[100].mxu1 %v5503_v52  ;;  %v5526_v35 = vrot.slane %v5524_v57, 1  ;;  %v5463_v22 = vsel %vm1250_vm12, %v5458_v31, %v5462_v38  ;;  %v5056_v58 = vsel %vm15969_vm3, %v13611_v9, %v5055_v16  ;;  %vm15987_vm6 = vcmp.ne.s16.totalorder %v15986_v2, 0  ;;  %v10346_v27 = vld [vmem:[#allocation8 + $0x28] sm:$0xff]  }
 0x398   : > { %v5279_v4 = vsel %vm15987_vm6, %v13464_v15, %v13666_v28  ;;  %6033 = vmatmul.mubr.bf16.gmra.mrb[168].mxu0 %v5463_v22  ;;  %v5492_v19 = vshll.u32 %v5056_v58, 16  ;;  %v4960_v24 = vrot.slane %v13468_v30, 1  ;;  %v15514_v49 = vrot.slane %v13460_v59, 7 }
 0x399   : > { %v5327_v36 = vrot.slane %v5279_v4, 7  ;;  %v5527_v31 = vsel %vm1250_vm12, %v5522_v20, %v5526_v35  ;;  %v5546_v48 = vor.u32 %v5544_v3, %v5526_v35  ;;  %v5480_v9 = vshrl.u32 %v13650_v8, 16  ;;  %9271 = vmatpush3.bf16.msra.mxu0 %v10342_v55  ;;  %9733 = vmatpush3.bf16.msra.mxu1 %v10316_v63  ;;  %v10347_v8 = vld [vmem:[#allocation8 + $0x70] sm:$0xff]  }
 0x39a   : > { %v5058_v61 = vshrl.u32 %v13462_v42, 16  ;;  %9702 = vmatprep.mubr.bf16.mxu1 %v5527_v31  ;;  %v5494_v57 = vrot.slane %v5492_v19, 1  ;;  %v13682_v16 = vsel %vm1396_vm10, %v4958_v14, %v4960_v24  ;;  %v15988_v52 = vrot.slane %v13458_v21, 7  ;;  %v15990_v55 = vld [vmem:[#allocation63_spill] sm:$0xff]  ;;  %9734 = vmatprep.subr.bf16.mxu1 %v10317_v23  ;;  %v10318_v19 = vld [vmem:[#allocation8 + $0xa8] sm:$0xff]  }
 0x39b   : > { %v5328_v22 = vsel %vm708_vm8, %v5325_v11, %v5327_v36  ;;  %vm15991_vm14 = vcmp.ne.s16.totalorder %v15990_v55, 0  ;;  %v15992_v11 = vld [vmem:[#allocation17_spill] sm:$0xff]  ;;  %9272 = vmatprep.subr.bf16.mxu0 %v10345_v37  ;;  %v4962_v37 = vrot.slane %v13470_v44, 1  ;;  %vm15995_vm6 = vsmask.f32 256 }
 0x39c   : > { %v13689_v20 = vsel %vm708_vm8, %v15988_v52, %v15514_v49  ;;  %v5548_v3 = vshll.u32 %v5328_v22, 16  ;;  %v5280_v35 = vsel %vm15991_vm14, %v13466_v32, %v13682_v16  ;;  %v5568_v4 = vshrl.u32 %v5328_v22, 16 }
 0x39d   : > { %15989 = vst [vmem:[#allocation96_spill] sm:$0xff] %v13689_v20  ;;  %vm15993_vm3 = vcmp.ne.s16.totalorder %v15992_v11, 0  ;;  %v13702_v31 = vsel %vm1250_vm12, %v5490_v10, %v5494_v57  ;;  %v5329_v63 = vrot.slane %v5280_v35, 7  ;;  %v5482_v52 = vor.u32 %v5480_v9, %v5462_v38  ;;  %9273 = vmatpush3.bf16.msra.mxu0 %v10346_v27  ;;  %9735 = vmatpush3.bf16.msra.mxu1 %v10317_v23  ;;  %v10348_v38 = vld [vmem:[#allocation8 + $0x30] sm:$0xff]  }
 0x39e   : > { %v13699_v14 = vsel %vm15993_vm3, %v13460_v59, %v13689_v20  ;;  %15994 = vst [vmem:[#allocation101_spill] sm:$0xff] %v13702_v31  ;;  %6040 = vmatprep.mubr.bf16.mxu0 %v13702_v31  ;;  %v5550_v0 = vrot.slane %v5548_v3, 1  ;;  %v13706_v22 = vrot.slane %v5058_v61, 7  ;;  %v5512_v11 = vshrl.u32 %v5056_v58, 16  ;;  %9274 = vmatprep.subr.bf16.mxu0 %v10347_v8  ;;  %v10319_v31 = vld [vmem:[#allocation8 + $0xb0] sm:$0xff]   ;;  %v10351_v58 = vld [vmem:[#allocation8 + $0x78] sm:$0xff]  }
 0x39f   : > { %v5484_v49 = vshll.u32 %v13699_v14, 16  ;;  %v5330_v20 = vsel %vm708_vm8, %v5327_v36, %v5329_v63  ;;  %9736 = vmatprep.subr.bf16.mxu1 %v10318_v19  ;;  %v13716_v27 = vsel %vm1396_vm10, %v4960_v24, %v4962_v37  ;;  %v15997_v8 = vrot.slane %v13472_v33, 1  ;;  %v15999_v24 = vld [vmem:[#allocation65_spill] sm:$0xff] }
 0x3a0   : > { %v5551_v9 = vsel %vm1250_vm12, %v5546_v48, %v5550_v0  ;;  %v5570_v35 = vor.u32 %v5568_v4, %v5550_v0  ;;  %v5572_v3 = vshll.u32 %v5330_v20, 16  ;;  %v5063_v61 = vor.u32 %v5061_v41, %v13706_v22 }
 0x3a1   : > { %v5486_v1 = vrot.slane %v5484_v49, 1  ;;  %9703 = vmatmul.mubr.bf16.gmra.mrb[104].mxu1 %v5551_v9  ;;  %v5514_v49 = vor.u32 %v5512_v11, %v5494_v57  ;;  %v5592_v10 = vshrl.u32 %v5330_v20, 16  ;;  %v5281_v41 = vsel %vm1387_vm13, %v13468_v30, %v13716_v27  ;;  %9275 = vmatpush3.bf16.msra.mxu0 %v10348_v38 }
 0x3a2   : > { %v5574_v23 = vrot.slane %v5572_v3, 1  ;;  %v5064_v48 = vsel %vm15995_vm6, %v13654_v60, %v5063_v61  ;;  %v13727_v4 = vsel %vm1396_vm10, %v4962_v37, %v15997_v8  ;;  %v5331_v11 = vrot.slane %v5281_v41, 7  ;;  %9737 = vmatpush3.bf16.msra.mxu1 %v10318_v19  ;;  %9276 = vmatprep.subr.bf16.mxu0 %v10351_v58 }
 0x3a3   : > { %v5487_v36 = vsel %vm1250_vm12, %v5482_v52, %v5486_v1  ;;  %15998 = vst [vmem:[#allocation18_spill] sm:$0xff] %v13727_v4  ;;  %v5516_v57 = vshll.u32 %v5064_v48, 16  ;;  %vm16000_vm14 = vcmp.ne.s16.totalorder %v15999_v24, 0  ;;  %v4888_v60 = vrot.slane %v13462_v42, 7  ;;  %v10352_v52 = vld [vmem:[#allocation8 + $0x38] sm:$0xff]   ;;  %9738 = vmatprep.subr.bf16.mxu1 %v10319_v31 }
 0x3a4   : > { %6041 = vmatmul.mubr.bf16.gmra.mrb[172].mxu0 %v5487_v36  ;;  %v13733_v20 = vsel %vm16000_vm14, %v13470_v44, %v13727_v4  ;;  %v5575_v9 = vsel %vm1250_vm12, %v5570_v35, %v5574_v23  ;;  %v5594_v3 = vor.u32 %v5592_v10, %v5574_v23  ;;  %v5504_v37 = vshrl.u32 %v13699_v14, 16  ;;  %v10320_v36 = vld [vmem:[#allocation8 + $0xb8] sm:$0xff]  }
 0x3a5   : > { %v5333_v61 = vrot.slane %v13733_v20, 7  ;;  %9706 = vmatprep.mubr.bf16.mxu1 %v5575_v9  ;;  %v5518_v41 = vrot.slane %v5516_v57, 1  ;;  %v5332_v8 = vsel %vm708_vm8, %v5329_v63, %v5331_v11  ;;  %v13743_v19 = vsel %vm708_vm8, %v16001_v53, %v4888_v60  ;;  %v16003_v14 = vld [vmem:[#allocation20_spill] sm:$0xff]  ;;  %9277 = vmatpush3.bf16.msra.mxu0 %v10352_v52 }
 0x3a6   : > { %16002 = vst [vmem:[#allocation97_spill] sm:$0xff] %v13743_v19  ;;  %v5066_v38 = vshrl.u32 %v13464_v15, 16  ;;  %v5596_v35 = vshll.u32 %v5332_v8, 16  ;;  %v5616_v23 = vshrl.u32 %v5332_v8, 16  ;;  %vm16004_vm3 = vcmp.ne.s16.totalorder %v16003_v14, 0  ;;  %9739 = vmatpush3.bf16.msra.mxu1 %v10319_v31 }
 0x3a7   : > { %v5334_v10 = vsel %vm708_vm8, %v5331_v11, %v5333_v61  ;;  %v5252_v58 = vsel %vm16004_vm3, %v13462_v42, %v13743_v19  ;;  %v13752_v57 = vsel %vm1250_vm12, %v5514_v49, %v5518_v41  ;;  %v5506_v20 = vor.u32 %v5504_v37, %v5486_v1  ;;  %9740 = vmatprep.subr.bf16.mxu1 %v10320_v36  ;;  %v10323_v49 = vld [vmem:[#allocation8 + $0x1c0] sm:$0xff]  }
 0x3a8   : > { %16005 = vst [vmem:[#allocation98_spill] sm:$0xff] %v13752_v57  ;;  %v5620_v63 = vshll.u32 %v5334_v10, 16  ;;  %v5508_v59 = vshll.u32 %v5252_v58, 16  ;;  %6048 = vmatprep.mubr.bf16.mxu0 %v13752_v57  ;;  %v5598_v53 = vrot.slane %v5596_v35, 1  ;;  %v5068_v9 = vrot.slane %v5066_v38, 7 }
 0x3a9   : > { %v5069_v11 = vshll.u32 %v13464_v15, 16  ;;  %v5536_v8 = vshrl.u32 %v5064_v48, 16  ;;  %v4966_v42 = vrot.slane %v13478_v25, 1  ;;  %v5640_v14 = vshrl.u32 %v5334_v10, 16 }
 0x3aa   : > { %v5622_v13 = vrot.slane %v5620_v63, 1  ;;  %v5510_v4 = vrot.slane %v5508_v59, 1  ;;  %v5599_v19 = vsel %vm1250_vm12, %v5594_v3, %v5598_v53  ;;  %v5618_v1 = vor.u32 %v5616_v23, %v5598_v53  ;;  %9741 = vmatpush3.bf16.msra.mxu1 %v10320_v36 }
 0x3ab   : > { %v5071_v37 = vor.u32 %v5069_v11, %v5068_v9  ;;  %v5538_v31 = vor.u32 %v5536_v8, %v5518_v41  ;;  %9707 = vmatmul.mubr.bf16.gmra.mrb[108].mxu1 %v5599_v19  ;;  %v16006_v38 = vrot.slane %v13472_v33, 1  ;;  %v4968_v63 = vrot.slane %v13480_v51, 1  ;;  %v16008_v41 = vld [vmem:[#allocation66_spill] sm:$0xff]  ;;  %9398 = vmatprep.subr.bf16.mxu1 %v10323_v49 }
 0x3ac   : > { %v5511_v52 = vsel %vm1250_vm12, %v5506_v20, %v5510_v4  ;;  %v5642_v48 = vor.u32 %v5640_v14, %v5622_v13  ;;  %v5623_v59 = vsel %vm1250_vm12, %v5618_v1, %v5622_v13  ;;  %vm16009_vm14 = vcmp.ne.s16.totalorder %v16008_v41, 0  ;;  %v16011_v13 = vld [vmem:[#allocation67_spill] sm:$0xff] }
 0x3ad   : > { %v13762_v35 = vsel %vm1396_vm10, %v16006_v38, %v4966_v42  ;;  %6049 = vmatmul.mubr.bf16.gmra.mrb[176].mxu0 %v5511_v52  ;;  %v5072_v3 = vsel %vm15995_vm6, %v13706_v22, %v5071_v37  ;;  %v4890_v10 = vrot.slane %v13464_v15, 7  ;;  %9710 = vmatprep.mubr.bf16.mxu1 %v5623_v59  ;;  %v13774_v14 = vsel %vm1396_vm10, %v4966_v42, %v4968_v63 }
 0x3ae   : > { %16007 = vst [vmem:[#allocation106_spill] sm:$0xff] %v13762_v35  ;;  %v5283_v19 = vsel %vm16009_vm14, %v13472_v33, %v13762_v35  ;;  %v5540_v23 = vshll.u32 %v5072_v3, 16  ;;  %16010 = vst [vmem:[#allocation108_spill] sm:$0xff] %v13774_v14  ;;  %v5528_v53 = vshrl.u32 %v5252_v58, 16  ;;  %vm16012_vm3 = vcmp.ne.s16.totalorder %v16011_v13, 0  ;;  %v16014_v58 = vld [vmem:[#allocation23_spill] sm:$0xff] }
 0x3af   : > { %v5335_v20 = vrot.slane %v5283_v19, 7  ;;  %v5284_v22 = vsel %vm16012_vm3, %v13478_v25, %v13774_v14  ;;  %v13781_v11 = vsel %vm708_vm8, %v4888_v60, %v4890_v10  ;;  %v5074_v8 = vshrl.u32 %v13466_v32, 16 }
 0x3b0   : > { %16013 = vst [vmem:[#allocation102_spill] sm:$0xff] %v13781_v11  ;;  %v5077_v36 = vshll.u32 %v13466_v32, 16  ;;  %v5542_v1 = vrot.slane %v5540_v23, 1  ;;  %v5337_v52 = vrot.slane %v5284_v22, 7  ;;  %vm16015_vm6 = vcmp.ne.s16.totalorder %v16014_v58, 0 }
 0x3b1   : > { %v5336_v37 = vsel %vm708_vm8, %v5333_v61, %v5335_v20  ;;  %v5253_v42 = vsel %vm16015_vm6, %v13464_v15, %v13781_v11  ;;  %v5530_v59 = vor.u32 %v5528_v53, %v5510_v4  ;;  %v5076_v14 = vrot.slane %v5074_v8, 7 }
 0x3b2   : > { %v5644_v49 = vshll.u32 %v5336_v37, 16  ;;  %v5664_v38 = vshrl.u32 %v5336_v37, 16  ;;  %v5532_v19 = vshll.u32 %v5253_v42, 16  ;;  %v13791_v60 = vsel %vm1250_vm12, %v5538_v31, %v5542_v1 }
 0x3b3   : > { %16016 = vst [vmem:[#allocation103_spill] sm:$0xff] %v13791_v60  ;;  %v5338_v57 = vsel %vm708_vm8, %v5335_v20, %v5337_v52  ;;  %v5560_v13 = vshrl.u32 %v5072_v3, 16  ;;  %6056 = vmatprep.mubr.bf16.mxu0 %v13791_v60  ;;  %v4970_v35 = vrot.slane %v13482_v34, 1  ;;  %v5079_v58 = vor.u32 %v5077_v36, %v5076_v14 }
 0x3b4   : > { %v5646_v61 = vrot.slane %v5644_v49, 1  ;;  %v5668_v23 = vshll.u32 %v5338_v57, 16  ;;  %v5534_v22 = vrot.slane %v5532_v19, 1  ;;  %v13797_v37 = vrot.slane %v13484_v39, 1 }
 0x3b5   : > { %v5562_v15 = vor.u32 %v5560_v13, %v5542_v1  ;;  %vm16018_vm14 = vsmask.f32 256  ;;  %v13803_v8 = vsel %vm1396_vm10, %v4968_v63, %v4970_v35  ;;  %v4892_v13 = vrot.slane %v13466_v32, 7  ;;  %v16021_v63 = vld [vmem:[#allocation75_spill] sm:$0xff] }
 0x3b6   : > { %16017 = vst [vmem:[#allocation24_spill] sm:$0xff] %v13797_v37  ;;  %v5647_v4 = vsel %vm1250_vm12, %v5642_v48, %v5646_v61  ;;  %v5666_v31 = vor.u32 %v5664_v38, %v5646_v61  ;;  %v5670_v53 = vrot.slane %v5668_v23, 1  ;;  %v5535_v20 = vsel %vm1250_vm12, %v5530_v59, %v5534_v22 }
 0x3b7   : > { %9711 = vmatmul.mubr.bf16.gmra.mrb[112].mxu1 %v5647_v4  ;;  %6057 = vmatmul.mubr.bf16.gmra.mrb[180].mxu0 %v5535_v20  ;;  %v5080_v3 = vsel %vm16018_vm14, %v5068_v9, %v5079_v58  ;;  %v13807_v36 = vsel %vm1396_vm10, %v4970_v35, %v13797_v37  ;;  %v5285_v38 = vsel %vm1391_vm4, %v13480_v51, %v13803_v8  ;;  %v5688_v59 = vshrl.u32 %v5338_v57, 16  ;;  %v16024_v4 = vld [vmem:[#allocation26_spill] sm:$0xff] }
 0x3b8   : > { %16019 = vst [vmem:[#allocation22_spill] sm:$0xff] %v13807_v36  ;;  %v5671_v1 = vsel %vm1250_vm12, %v5666_v31, %v5670_v53  ;;  %v5564_v48 = vshll.u32 %v5080_v3, 16  ;;  %v5339_v9 = vrot.slane %v5285_v38, 7  ;;  %vm16022_vm3 = vcmp.ne.s16.totalorder %v16021_v63, 0  ;;  %v13828_v38 = vld [vmem:[#allocation2 + $0x88] sm:$0xff] }
 0x3b9   : > { %9714 = vmatprep.mubr.bf16.mxu1 %v5671_v1  ;;  %v5286_v58 = vsel %vm16022_vm3, %v13482_v34, %v13807_v36  ;;  %v13820_v35 = vsel %vm708_vm8, %v4890_v10, %v4892_v13  ;;  %v5552_v19 = vshrl.u32 %v5253_v42, 16  ;;  %vm16025_vm6 = vcmp.ne.s16.totalorder %v16024_v4, 0  ;;  %v13830_v34 = vld [vmem:[#allocation2 + $0x90] sm:$0x1] }
 0x3ba   : > { %16023 = vst [vmem:[#allocation21_spill] sm:$0xff] %v13820_v35  ;;  %v5566_v61 = vrot.slane %v5564_v48, 1  ;;  %v5341_v23 = vrot.slane %v5286_v58, 7  ;;  %v5254_v31 = vsel %vm16025_vm6, %v13466_v32, %v13820_v35  ;;  %v5082_v51 = vshrl.u32 %v13468_v30, 16  ;;  %16026 = vst [vmem:[#allocation104_spill] sm:$0xff] %v13830_v34 }
 0x3bb   : > { %v5340_v57 = vsel %vm708_vm8, %v5337_v52, %v5339_v9  ;;  %v5554_v20 = vor.u32 %v5552_v19, %v5534_v22  ;;  %v5556_v1 = vshll.u32 %v5254_v31, 16  ;;  %v5690_v42 = vor.u32 %v5688_v59, %v5670_v53 }
 0x3bc   : > { %v13833_v10 = vsel %vm1250_vm12, %v5562_v15, %v5566_v61  ;;  %v5692_v48 = vshll.u32 %v5340_v57, 16  ;;  %v5342_v58 = vsel %vm708_vm8, %v5339_v9, %v5341_v23  ;;  %v13837_v4 = vrot.slane %v5082_v51, 7 }
 0x3bd   : > { %16027 = vst [vmem:[#allocation41_spill] sm:$0xff] %v13833_v10  ;;  %6064 = vmatprep.mubr.bf16.mxu0 %v13833_v10  ;;  %v5716_v32 = vshll.u32 %v5342_v58, 16  ;;  %v5558_v60 = vrot.slane %v5556_v1, 1  ;;  %v5085_v52 = vshll.u32 %v13468_v30, 16  ;;  %v5712_v19 = vshrl.u32 %v5340_v57, 16 }
 0x3be   : > { %v5694_v22 = vrot.slane %v5692_v48, 1  ;;  %v5265_v35 = vrot.slane %v13828_v38, 1  ;;  %v5267_v11 = vrot.slane %v13830_v34, 1  ;;  %v5584_v9 = vshrl.u32 %v5080_v3, 16 }
 0x3bf   : > { %v5718_v15 = vrot.slane %v5716_v32, 1  ;;  %v5559_v53 = vsel %vm1250_vm12, %v5554_v20, %v5558_v60  ;;  %v5087_v59 = vor.u32 %v5085_v52, %v13837_v4  ;;  %v16028_v32 = vld [vmem:[#allocation76_spill] sm:$0xff]  ;;  %v13871_v52 = vld [vmem:[#allocation2 + $0x8] sm:$0xff] }
 0x3c0   : > { %v5695_v10 = vsel %vm1250_vm12, %v5690_v42, %v5694_v22  ;;  %v5714_v36 = vor.u32 %v5712_v19, %v5694_v22  ;;  %6065 = vmatmul.mubr.bf16.gmra.mrb[184].mxu0 %v5559_v53  ;;  %v5266_v51 = vsel %vm1396_vm10, %v13797_v37, %v5265_v35  ;;  %v5268_v1 = vsel %vm1396_vm10, %v5265_v35, %v5267_v11 }
 0x3c1   : > { %9715 = vmatmul.mubr.bf16.gmra.mrb[116].mxu1 %v5695_v10  ;;  %v5088_v57 = vsel %vm16018_vm14, %v5076_v14, %v5087_v59  ;;  %v5586_v48 = vor.u32 %v5584_v9, %v5566_v61  ;;  %vm16029_vm3 = vcmp.ne.s16.totalorder %v16028_v32, 0  ;;  %v5288_v3 = vsel %vm1394_vm1, %v13828_v38, %v5268_v1 }
 0x3c2   : > { %v5287_v20 = vsel %vm16029_vm3, %v13484_v39, %v5266_v51  ;;  %v5719_v42 = vsel %vm1250_vm12, %v5714_v36, %v5718_v15  ;;  %v5588_v22 = vshll.u32 %v5088_v57, 16  ;;  %v5345_v53 = vrot.slane %v5288_v3, 7 }
 0x3c3   : > { %v5343_v19 = vrot.slane %v5287_v20, 7  ;;  %9718 = vmatprep.mubr.bf16.mxu1 %v5719_v42  ;;  %v5736_v37 = vshrl.u32 %v5342_v58, 16  ;;  %v4894_v11 = vrot.slane %v13468_v30, 7  ;;  %v5090_v39 = vshrl.u32 %v13470_v44, 16  ;;  %v16032_v20 = vld [vmem:[#allocation28_spill] sm:$0xff] }
 0x3c4   : > { %v5590_v35 = vrot.slane %v5588_v22, 1  ;;  %v5576_v36 = vshrl.u32 %v5254_v31, 16  ;;  %vm16033_vm6 = vcmp.ne.s16.totalorder %v16032_v20, 0  ;;  %v5093_v31 = vshll.u32 %v13470_v44, 16 }
 0x3c5   : > { %v5344_v14 = vsel %vm708_vm8, %v5341_v23, %v5343_v19  ;;  %v5346_v61 = vsel %vm708_vm8, %v5343_v19, %v5345_v53  ;;  %v13861_v9 = vsel %vm708_vm8, %v4892_v13, %v4894_v11  ;;  %v5738_v1 = vor.u32 %v5736_v37, %v5718_v15 }
 0x3c6   : > { %v5740_v10 = vshll.u32 %v5344_v14, 16  ;;  %v5764_v59 = vshll.u32 %v5346_v61, 16  ;;  %v13864_v51 = vsel %vm1250_vm12, %v5586_v48, %v5590_v35  ;;  %v5760_v58 = vshrl.u32 %v5344_v14, 16 }
 0x3c7   : > { %16031 = vst [vmem:[#allocation42_spill] sm:$0xff] %v13864_v51  ;;  %v5255_v23 = vsel %vm16033_vm6, %v13468_v30, %v13861_v9  ;;  %6072 = vmatprep.mubr.bf16.mxu0 %v13864_v51  ;;  %v5578_v22 = vor.u32 %v5576_v36, %v5558_v60  ;;  %v5092_v13 = vrot.slane %v5090_v39, 7  ;;  %v5784_v14 = vshrl.u32 %v5346_v61, 16  ;;  %v13878_v36 = vld [vmem:[#allocation2] sm:$0x80]  ;;  %vm16037_vm6 = vmmov %vm16018_vm14 }
 0x3c8   : > { %v5742_v3 = vrot.slane %v5740_v10, 1  ;;  %v5766_v42 = vrot.slane %v5764_v59, 1  ;;  %v5580_v19 = vshll.u32 %v5255_v23, 16  ;;  %v5608_v20 = vshrl.u32 %v5088_v57, 16 }
 0x3c9   : > { %v5095_v34 = vor.u32 %v5093_v31, %v5092_v13  ;;  %v5788_v30 = vshll.u32 %v5345_v53, 16  ;;  %v4943_v51 = vrot.slane %v13871_v52, 1  ;;  %v4995_v39 = vsel %vm1380_vm5, %v13452_v29, %v13522_v43 }
 0x3ca   : > { %v5743_v48 = vsel %vm1250_vm12, %v5738_v1, %v5742_v3  ;;  %v5762_v37 = vor.u32 %v5760_v58, %v5742_v3  ;;  %v5582_v15 = vrot.slane %v5580_v19, 1  ;;  %v5786_v59 = vor.u32 %v5784_v14, %v5766_v42 }
 0x3cb   : > { %9719 = vmatmul.mubr.bf16.gmra.mrb[120].mxu1 %v5743_v48  ;;  %v5096_v57 = vsel %vm16018_vm14, %v13837_v4, %v5095_v34  ;;  %v4945_v53 = vsel %vm1396_vm10, %v4943_v51, %v13510_v7  ;;  %v4993_v61 = vsel %vm1378_vm7, %v13878_v36, %v4943_v51  ;;  %v5610_v1 = vor.u32 %v5608_v20, %v5590_v35 }
 0x3cc   : > { %v5767_v10 = vsel %vm1250_vm12, %v5762_v37, %v5766_v42  ;;  %v5583_v60 = vsel %vm1250_vm12, %v5578_v22, %v5582_v15  ;;  %v5612_v58 = vshll.u32 %v5096_v57, 16  ;;  %v4994_v3 = vsel %vm1379_vm11, %v13871_v52, %v4945_v53 }
 0x3cd   : > { %9722 = vmatprep.mubr.bf16.mxu1 %v5767_v10  ;;  %6073 = vmatmul.mubr.bf16.gmra.mrb[188].mxu0 %v5583_v60  ;;  %v5154_v42 = vrot.slane %v4993_v61, 7  ;;  %v5790_v29 = vrot.slane %v5788_v30, 1  ;;  %v5155_v43 = vrot.slane %v4994_v3, 7  ;;  %v5157_v22 = vrot.slane %v4995_v39, 7  ;;  %v16035_v30 = vld [vmem:[#allocation32_spill] sm:$0xff] }
 0x3ce   : > { %v4896_v19 = vrot.slane %v13470_v44, 7  ;;  %v5614_v4 = vrot.slane %v5612_v58, 1  ;;  %v5098_v34 = vshrl.u32 %v13472_v33, 16  ;;  %v5600_v14 = vshrl.u32 %v5255_v23, 16 }
 0x3cf   : > { %v5791_v7 = vsel %vm1250_vm12, %v5786_v59, %v5790_v29  ;;  %v5156_v31 = vsel %vm708_vm8, %v5154_v42, %v5155_v43  ;;  %v5158_v35 = vsel %vm708_vm8, %v5155_v43, %v5157_v22  ;;  %vm16036_vm3 = vcmp.ne.s16.totalorder %v16035_v30, 0 }
 0x3d0   : > { %v13900_v51 = vsel %vm708_vm8, %v4894_v11, %v4896_v19  ;;  %v13903_v20 = vsel %vm1250_vm12, %v5610_v1, %v5614_v4  ;;  %v6333_v48 = vshll.u32 %v5156_v31, 16  ;;  %v6338_v37 = vshll.u32 %v5158_v35, 16 }
 0x3d1   : > { %16034 = vst [vmem:[#allocation19_spill] sm:$0xff] %v13903_v20  ;;  %6080 = vmatprep.mubr.bf16.mxu0 %v13903_v20  ;;  %v5256_v10 = vsel %vm16036_vm3, %v13470_v44, %v13900_v51  ;;  %v13910_v60 = vrot.slane %v5098_v34, 7  ;;  %v5101_v59 = vshll.u32 %v13472_v33, 16  ;;  %v6331_v11 = vshrl.u32 %v5156_v31, 16 }
 0x3d2   : > { %v6335_v39 = vrot.slane %v6333_v48, 1  ;;  %v5602_v53 = vor.u32 %v5600_v14, %v5582_v15  ;;  %v5604_v61 = vshll.u32 %v5256_v10, 16  ;;  %v5632_v58 = vshrl.u32 %v5096_v57, 16 }
 0x3d3   : > { %9723 = vmatmul.mubr.bf16.gmra.mrb[124].mxu1 %v5791_v7  ;;  %v5103_v1 = vor.u32 %v5101_v59, %v13910_v60  ;;  %v4996_v23 = vsel %vm1381_vm2, %v13454_v62, %v13537_v5  ;;  %v6340_v42 = vrot.slane %v6338_v37, 1  ;;  %v6354_v29 = vshrl.u32 %v5158_v35, 16 }
 0x3d4   : > { %v6336_v3 = vor.u32 %v6335_v39, %v6331_v11  ;;  %v5606_v44 = vrot.slane %v5604_v61, 1  ;;  %v5159_v34 = vrot.slane %v4996_v23, 7  ;;  %v4997_v15 = vsel %vm1382_vm9, %v13456_v45, %v13572_v12  ;;  %v16038_v39 = vld [vmem:[#allocation35_spill] sm:$0xff] }
 0x3d5   : > { %v5104_v43 = vsel %vm16037_vm6, %v5092_v13, %v5103_v1  ;;  %v4898_v7 = vrot.slane %v13472_v33, 7  ;;  %v5634_v48 = vor.u32 %v5632_v58, %v5614_v4  ;;  %v5161_v35 = vrot.slane %v4997_v15, 7 }
 0x3d6   : > { %v6341_v57 = vsel %vm1250_vm12, %v6336_v3, %v6340_v42  ;;  %v5607_v31 = vsel %vm1250_vm12, %v5602_v53, %v5606_v44  ;;  %v5636_v62 = vshll.u32 %v5104_v43, 16  ;;  %v5160_v5 = vsel %vm708_vm8, %v5157_v22, %v5159_v34 }
 0x3d7   : > { %9742 = vmatprep.mubr.bf16.mxu1 %v6341_v57  ;;  %6081 = vmatmul.mubr.bf16.gmra.mrb[192].mxu0 %v5607_v31  ;;  %v13928_v13 = vsel %vm708_vm8, %v4896_v19, %v4898_v7  ;;  %v5624_v37 = vshrl.u32 %v5256_v10, 16  ;;  %v6356_v14 = vor.u32 %v6354_v29, %v6340_v42  ;;  %v6358_v45 = vshll.u32 %v5160_v5, 16  ;;  %v10324_v19 = vld [vmem:[#allocation8 + $0x180] sm:$0xff]  }
 0x3d8   : > { %v5638_v59 = vrot.slane %v5636_v62, 1  ;;  %v5162_v12 = vsel %vm708_vm8, %v5159_v34, %v5161_v35  ;;  %v6370_v11 = vshrl.u32 %v5160_v5, 16  ;;  %vm16039_vm14 = vcmp.ne.s16.totalorder %v16038_v39, 0  ;;  %v10325_v34 = vld [vmem:[#allocation8 + $0x1c8] sm:$0xff]  }
 0x3d9   : > { %v5257_v4 = vsel %vm16039_vm14, %v13472_v33, %v13928_v13  ;;  %v5626_v53 = vor.u32 %v5624_v37, %v5606_v44  ;;  %v6360_v22 = vrot.slane %v6358_v45, 1  ;;  %v6374_v1 = vshll.u32 %v5162_v12, 16  ;;  %v10326_v37 = vld [vmem:[#allocation8 + $0x188] sm:$0xff]   ;;  %v13951_v45 = vld [vmem:[#allocation2 + $0x30] sm:$0xff] }
 0x3da   : > { %v13936_v61 = vsel %vm1250_vm12, %v5634_v48, %v5638_v59  ;;  %v5628_v58 = vshll.u32 %v5257_v4, 16  ;;  %v5106_v10 = vshrl.u32 %v13478_v25, 16  ;;  %v5109_v44 = vshll.u32 %v13478_v25, 16 }
 0x3db   : > { %16040 = vst [vmem:[#allocation43_spill] sm:$0xff] %v13936_v61  ;;  %6088 = vmatprep.mubr.bf16.mxu0 %v13936_v61  ;;  %v6361_v23 = vsel %vm1250_vm12, %v6356_v14, %v6360_v22  ;;  %v6372_v3 = vor.u32 %v6370_v11, %v6360_v22  ;;  %v6376_v42 = vrot.slane %v6374_v1, 1  ;;  %v5656_v15 = vshrl.u32 %v5104_v43, 16  ;;  %v14026_v61 = vld [vmem:[#allocation2 + $0x48] sm:$0xff] }
 0x3dc   : > { %v5630_v29 = vrot.slane %v5628_v58, 1  ;;  %9743 = vmatmul.mubr.bf16.vlgmr.msra.gmra.mrb[96].mxu1 %v6361_v23  ;;  %v13941_v33 = vrot.slane %v5106_v10, 7  ;;  %vm16041_vm3 = vcmp.ne.s16.totalorder %v15977_v50, 0  ;;  %v6386_v5 = vshrl.u32 %v5162_v12, 16  ;;  %v14263_v50 = vld [vmem:[#allocation2 + $0x38] sm:$0xff] }
 0x3dd   : > { %v4998_v57 = vsel %vm16041_vm3, %v13458_v21, %v13584_v47  ;;  %v6377_v31 = vsel %vm1250_vm12, %v6372_v3, %v6376_v42  ;;  %9399 = vmatpush3.bf16.msra.mxu1 %v10324_v19  ;;  %vm16042_vm6 = vcmp.ne.s16.totalorder %v15981_v18, 0  ;;  %v4900_v21 = vrot.slane %v13478_v25, 7  ;;  %v10329_v47 = vld [vmem:[#allocation8 + $0x1d0] sm:$0xff]   ;;  %v13965_v25 = vld [vmem:[#allocation2 + $0x68] sm:$0xff] }
 0x3de   : > { %v5631_v48 = vsel %vm1250_vm12, %v5626_v53, %v5630_v29  ;;  %v5163_v62 = vrot.slane %v4998_v57, 7  ;;  %9746 = vmatprep.mubr.bf16.mxu1 %v6377_v31  ;;  %v5111_v14 = vor.u32 %v5109_v44, %v13941_v33  ;;  %v4999_v43 = vsel %vm16042_vm6, %v13951_v45, %v13618_v40  ;;  %9400 = vmatprep.subr.bf16.mxu1 %v10325_v34 }
 0x3df   : > { %6089 = vmatmul.mubr.bf16.gmra.mrb[196].mxu0 %v5631_v48  ;;  %v5658_v11 = vor.u32 %v5656_v15, %v5638_v59  ;;  %v6388_v22 = vor.u32 %v6386_v5, %v6376_v42  ;;  %v5165_v12 = vrot.slane %v4999_v43, 7  ;;  %vm16043_vm14 = vsmask.f32 256 }
 0x3e0   : > { %v5164_v53 = vsel %vm708_vm8, %v5161_v35, %v5163_v62  ;;  %v5112_v1 = vsel %vm16043_vm14, %v13910_v60, %v5111_v14  ;;  %v13962_v58 = vsel %vm708_vm8, %v4898_v7, %v4900_v21  ;;  %v5648_v10 = vshrl.u32 %v5257_v4, 16  ;;  %v16044_v35 = vld [vmem:[#allocation37_spill] sm:$0xff]  ;;  %v10330_v7 = vld [vmem:[#allocation8 + $0x190] sm:$0xff]  }
 0x3e1   : > { %v6390_v19 = vshll.u32 %v5164_v53, 16  ;;  %v5660_v23 = vshll.u32 %v5112_v1, 16  ;;  %v5166_v40 = vsel %vm708_vm8, %v5163_v62, %v5165_v12  ;;  %v6402_v3 = vshrl.u32 %v5164_v53, 16  ;;  %9401 = vmatpush3.bf16.msra.mxu1 %v10326_v37  ;;  %v13971_v4 = vld [vmem:[#allocation2 + $0x70] sm:$0xff]  ;;  %v10331_v37 = vld [vmem:[#allocation8 + $0x1d8] sm:$0xff]  }
 0x3e2   : > { %vm16045_vm3 = vcmp.ne.s16.totalorder %v16044_v35, 0  ;;  %v6406_v34 = vshll.u32 %v5166_v40, 16  ;;  %v5650_v60 = vor.u32 %v5648_v10, %v5630_v29  ;;  %9402 = vmatprep.subr.bf16.mxu1 %v10329_v47  ;;  %v5114_v57 = vshrl.u32 %v13971_v4, 16 }
 0x3e3   : > { %v5258_v59 = vsel %vm16045_vm3, %v13965_v25, %v13962_v58  ;;  %v6392_v42 = vrot.slane %v6390_v19, 1  ;;  %v5662_v15 = vrot.slane %v5660_v23, 1  ;;  %v5117_v29 = vshll.u32 %v13971_v4, 16  ;;  %v13984_v19 = vld [vmem:[#allocation2 + $0x38] sm:$0xff] }
 0x3e4   : > { %v5652_v44 = vshll.u32 %v5258_v59, 16  ;;  %v6408_v62 = vrot.slane %v6406_v34, 1  ;;  %v13978_v43 = vrot.slane %v5114_v57, 7  ;;  %16047 = vst [vmem:[#allocation105_spill] sm:$0xff] %v13984_v19  ;;  %vm16048_vm6 = vcmp.ne.s16.totalorder %v15986_v2, 0 }
 0x3e5   : > { %v6393_v31 = vsel %vm1250_vm12, %v6388_v22, %v6392_v42  ;;  %v6404_v48 = vor.u32 %v6402_v3, %v6392_v42  ;;  %v13976_v14 = vsel %vm1250_vm12, %v5658_v11, %v5662_v15  ;;  %v5000_v22 = vsel %vm16048_vm6, %v13984_v19, %v13632_v46  ;;  %9403 = vmatpush3.bf16.msra.mxu1 %v10330_v7  ;;  %v10332_v11 = vld [vmem:[#allocation8 + $0x198] sm:$0xff]   ;;  %v10335_v42 = vld [vmem:[#allocation8 + $0x1e0] sm:$0xff]  }
 0x3e6   : > { %v5654_v5 = vrot.slane %v5652_v44, 1  ;;  %16046 = vst [vmem:[#allocation45_spill] sm:$0xff] %v13976_v14  ;;  %9747 = vmatmul.mubr.bf16.gmra.mrb[100].mxu1 %v6393_v31  ;;  %6096 = vmatprep.mubr.bf16.mxu0 %v13976_v14  ;;  %v5119_v10 = vor.u32 %v5117_v29, %v13978_v43  ;;  %v5680_v23 = vshrl.u32 %v5112_v1, 16  ;;  %v5167_v3 = vrot.slane %v5000_v22, 7  ;;  %v13991_v44 = vld [vmem:[#allocation2 + $0x40] sm:$0xff] }
 0x3e7   : > { %v6409_v47 = vsel %vm1250_vm12, %v6404_v48, %v6408_v62  ;;  %v6418_v34 = vshrl.u32 %v5166_v40, 16  ;;  %16049 = vst [vmem:[#allocation49_spill] sm:$0xff] %v13991_v44  ;;  %vm16050_vm14 = vcmp.ne.s16.totalorder %v15990_v55, 0  ;;  %v15543_v46 = vrot.slane %v13971_v4, 7  ;;  %9404 = vmatprep.subr.bf16.mxu1 %v10331_v37  ;;  %v10350_v55 = vld [vmem:[#allocation8 + $0x1b8] sm:$0xff]  }
 0x3e8   : > { %v5655_v53 = vsel %vm1250_vm12, %v5650_v60, %v5654_v5  ;;  %9750 = vmatprep.mubr.bf16.mxu1 %v6409_v47  ;;  %v13997_v60 = vsel %vm16050_vm14, %v13991_v44, %v13666_v28  ;;  %vm16051_vm3 = vsmask.f32 256  ;;  %v5682_v57 = vor.u32 %v5680_v23, %v5662_v15  ;;  %v10336_v28 = vld [vmem:[#allocation8 + $0x1a0] sm:$0xff]  }
 0x3e9   : > { %6097 = vmatmul.mubr.bf16.gmra.mrb[200].mxu0 %v5655_v53  ;;  %v5120_v7 = vsel %vm16051_vm3, %v13941_v33, %v5119_v10  ;;  %v5168_v1 = vsel %vm708_vm8, %v5165_v12, %v5167_v3  ;;  %v5169_v31 = vrot.slane %v13997_v60, 7  ;;  %v6420_v48 = vor.u32 %v6418_v34, %v6408_v62  ;;  %9405 = vmatpush3.bf16.msra.mxu1 %v10332_v11  ;;  %v16052_v33 = vld [vmem:[#allocation40_spill] sm:$0xff]  ;;  %v10337_v34 = vld [vmem:[#allocation8 + $0x1e8] sm:$0xff]  }
 0x3ea   : > { %v5684_v40 = vshll.u32 %v5120_v7, 16  ;;  %v6422_v29 = vshll.u32 %v5168_v1, 16  ;;  %v14007_v47 = vsel %vm708_vm8, %v4900_v21, %v15543_v46  ;;  %v6434_v53 = vshrl.u32 %v5168_v1, 16  ;;  %9406 = vmatprep.subr.bf16.mxu1 %v10335_v42  ;;  %v14014_v21 = vld [vmem:[#allocation2 + $0x78] sm:$0xff] }
 0x3eb   : > { %v5170_v37 = vsel %vm708_vm8, %v5167_v3, %v5169_v31  ;;  %vm16053_vm6 = vcmp.ne.s16.totalorder %v16052_v33, 0  ;;  %v5672_v15 = vshrl.u32 %v5258_v59, 16  ;;  %v5122_v11 = vshrl.u32 %v14014_v21, 16  ;;  %v10338_v59 = vld [vmem:[#allocation8 + $0x1a8] sm:$0xff]  }
 0x3ec   : > { %v5259_v12 = vsel %vm16053_vm6, %v13971_v4, %v14007_v47  ;;  %v5686_v22 = vrot.slane %v5684_v40, 1  ;;  %v6424_v62 = vrot.slane %v6422_v29, 1  ;;  %v6438_v10 = vshll.u32 %v5170_v37, 16  ;;  %v10343_v29 = vld [vmem:[#allocation8 + $0x1f0] sm:$0xff]  }
 0x3ed   : > { %v5676_v23 = vshll.u32 %v5259_v12, 16  ;;  %v5674_v60 = vor.u32 %v5672_v15, %v5654_v5  ;;  %9407 = vmatpush3.bf16.msra.mxu1 %v10336_v28  ;;  %v14022_v40 = vrot.slane %v5122_v11, 7  ;;  %v5125_v5 = vshll.u32 %v14014_v21, 16 }
 0x3ee   : > { %v14018_v3 = vsel %vm1250_vm12, %v5682_v57, %v5686_v22  ;;  %v6425_v1 = vsel %vm1250_vm12, %v6420_v48, %v6424_v62  ;;  %v6436_v46 = vor.u32 %v6434_v53, %v6424_v62  ;;  %v6440_v14 = vrot.slane %v6438_v10, 1  ;;  %v14032_v48 = vld [vmem:[#allocation2 + $0x50] sm:$0xff]  ;;  %9408 = vmatprep.subr.bf16.mxu1 %v10337_v34 }
 0x3ef   : > { %16054 = vst [vmem:[#allocation50_spill] sm:$0xff] %v14018_v3  ;;  %6104 = vmatprep.mubr.bf16.mxu0 %v14018_v3  ;;  %9751 = vmatmul.mubr.bf16.gmra.mrb[104].mxu1 %v6425_v1  ;;  %v5678_v42 = vrot.slane %v5676_v23, 1  ;;  %v5002_v57 = vsel %vm1387_vm13, %v14026_v61, %v13682_v16  ;;  %16055 = vst [vmem:[#allocation107_spill] sm:$0xff] %v14032_v48  ;;  %vm16056_vm14 = vcmp.ne.s16.totalorder %v15999_v24, 0  ;;  %v5704_v62 = vshrl.u32 %v5120_v7, 16  ;;  %v10344_v16 = vld [vmem:[#allocation8 + $0x1b0] sm:$0xff]  }
 0x3f0   : > { %v6441_v15 = vsel %vm1250_vm12, %v6436_v46, %v6440_v14  ;;  %v5003_v28 = vsel %vm16056_vm14, %v14032_v48, %v13716_v27  ;;  %v5127_v46 = vor.u32 %v5125_v5, %v14022_v40  ;;  %v5171_v10 = vrot.slane %v5002_v57, 7  ;;  %v14043_v27 = vld [vmem:[#allocation2 + $0x80] sm:$0xff] }
 0x3f1   : > { %9754 = vmatprep.mubr.bf16.mxu1 %v6441_v15  ;;  %v5679_v53 = vsel %vm1250_vm12, %v5674_v60, %v5678_v42  ;;  %v5173_v23 = vrot.slane %v5003_v28, 7  ;;  %v4904_v11 = vrot.slane %v14014_v21, 7  ;;  %9409 = vmatpush3.bf16.msra.mxu1 %v10338_v59  ;;  %v5706_v3 = vor.u32 %v5704_v62, %v5686_v22  ;;  %v10349_v60 = vld [vmem:[#allocation8 + $0x1f8] sm:$0xff]  }
 0x3f2   : > { %6105 = vmatmul.mubr.bf16.gmra.mrb[204].mxu0 %v5679_v53  ;;  %v5128_v1 = vsel %vm16051_vm3, %v13978_v43, %v5127_v46  ;;  %v6450_v24 = vshrl.u32 %v5170_v37, 16  ;;  %v5130_v34 = vshrl.u32 %v14043_v27, 16  ;;  %9410 = vmatprep.subr.bf16.mxu1 %v10343_v29  ;;  %v5172_v7 = vsel %vm708_vm8, %v5169_v31, %v5171_v10  ;;  %v16059_v46 = vld [vmem:[#allocation44_spill] sm:$0xff] }
 0x3f3   : > { %v5708_v5 = vshll.u32 %v5128_v1, 16  ;;  %v5174_v15 = vsel %vm708_vm8, %v5171_v10, %v5173_v23  ;;  %v16057_v57 = vrot.slane %v13971_v4, 7  ;;  %v6454_v43 = vshll.u32 %v5172_v7, 16 }
 0x3f4   : > { %v6452_v28 = vor.u32 %v6450_v24, %v6440_v14  ;;  %v6470_v22 = vshll.u32 %v5174_v15, 16  ;;  %v5696_v37 = vshrl.u32 %v5259_v12, 16  ;;  %vm16060_vm6 = vcmp.ne.s16.totalorder %v16059_v46, 0 }
 0x3f5   : > { %v14051_v59 = vsel %vm708_vm8, %v16057_v57, %v4904_v11  ;;  %v5710_v53 = vrot.slane %v5708_v5, 1  ;;  %9411 = vmatpush3.bf16.msra.mxu1 %v10344_v16  ;;  %v6456_v62 = vrot.slane %v6454_v43, 1  ;;  %v6466_v31 = vshrl.u32 %v5172_v7, 16  ;;  %v14065_v43 = vld [vmem:[#allocation2 + $0x58] sm:$0xff] }
 0x3f6   : > { %16058 = vst [vmem:[#allocation46_spill] sm:$0xff] %v14051_v59  ;;  %v5260_v29 = vsel %vm16060_vm6, %v14014_v21, %v14051_v59  ;;  %v5698_v0 = vor.u32 %v5696_v37, %v5678_v42  ;;  %9412 = vmatprep.subr.bf16.mxu1 %v10349_v60  ;;  %v6472_v24 = vrot.slane %v6470_v22, 1  ;;  %v14060_v14 = vrot.slane %v5130_v34, 7  ;;  %16063 = vst [vmem:[#allocation52_spill] sm:$0xff] %v14065_v43  ;;  %v16064_v42 = vld [vmem:[#allocation18_spill] sm:$0xff] }
 0x3f7   : > { %v5700_v10 = vshll.u32 %v5260_v29, 16  ;;  %v14058_v57 = vsel %vm1250_vm12, %v5706_v3, %v5710_v53  ;;  %v5133_v12 = vshll.u32 %v14043_v27, 16  ;;  %v6457_v5 = vsel %vm1250_vm12, %v6452_v28, %v6456_v62  ;;  %v14071_v3 = vld [vmem:[#allocation8 + $0x200] sm:$0xff]  }
 0x3f8   : > { %16061 = vst [vmem:[#allocation48_spill] sm:$0xff] %v14058_v57  ;;  %16062 = vst [vmem:[#allocation51_spill] sm:$0xff] %v14060_v14  ;;  %6112 = vmatprep.mubr.bf16.mxu0 %v14058_v57  ;;  %v6468_v59 = vor.u32 %v6466_v31, %v6456_v62  ;;  %vm16065_vm14 = vcmp.ne.s16.totalorder %v16008_v41, 0  ;;  %9755 = vmatmul.mubr.bf16.gmra.mrb[108].mxu1 %v6457_v5  ;;  %v5728_v7 = vshrl.u32 %v5128_v1, 16  ;;  %v6482_v62 = vshrl.u32 %v5174_v15, 16  ;;  %v14076_v31 = vld [vmem:[#allocation2 + $0x60] sm:$0xff] }
 0x3f9   : > { %v5702_v16 = vrot.slane %v5700_v10, 1  ;;  %v5004_v60 = vsel %vm16065_vm14, %v14065_v43, %v16064_v42  ;;  %v5135_v34 = vor.u32 %v5133_v12, %v14060_v14  ;;  %16066 = vst [vmem:[#allocation29_spill] sm:$0xff] %v14076_v31  ;;  %v16067_v10 = vld [vmem:[#allocation106_spill] sm:$0xff]  ;;  %v16068_v57 = vld [vmem:[#allocation67_spill] sm:$0xff]  ;;  %9413 = vmatpush3.bf16.msra.mxu1 %v10350_v55  ;;  %vm16070_vm6 = vsmask.f32 256 }
 0x3fa   : > { %v5175_v22 = vrot.slane %v5004_v60, 7  ;;  %v6473_v37 = vsel %vm1250_vm12, %v6468_v59, %v6472_v24  ;;  %vm16069_vm3 = vcmp.ne.s16.totalorder %v16068_v57, 0  ;;  %v14086_v59 = vrot.slane %v14043_v27, 7  ;;  %9774 = vmatprep.subr.bf16.mxu1 %v14071_v3 }
 0x3fb   : > { %v5703_v28 = vsel %vm1250_vm12, %v5698_v0, %v5702_v16  ;;  %v5005_v41 = vsel %vm16069_vm3, %v14076_v31, %v16067_v10  ;;  %9758 = vmatprep.mubr.bf16.mxu1 %v6473_v37  ;;  %v5136_v12 = vsel %vm16070_vm6, %v14022_v40, %v5135_v34  ;;  %v5730_v0 = vor.u32 %v5728_v7, %v5710_v53  ;;  %v16071_v53 = vld [vmem:[#allocation47_spill] sm:$0xff] }
 0x3fc   : > { %6113 = vmatmul.mubr.bf16.gmra.mrb[208].mxu0 %v5703_v28  ;;  %v5176_v1 = vsel %vm708_vm8, %v5173_v23, %v5175_v22  ;;  %v5177_v5 = vrot.slane %v5005_v41, 7  ;;  %v5732_v15 = vshll.u32 %v5136_v12, 16  ;;  %v6484_v42 = vor.u32 %v6482_v62, %v6472_v24 }
 0x3fd   : > { %v6486_v60 = vshll.u32 %v5176_v1, 16  ;;  %v14092_v55 = vsel %vm708_vm8, %v4904_v11, %v14086_v59  ;;  %v5290_v40 = vshrl.u32 %v13828_v38, 16  ;;  %v6498_v41 = vshrl.u32 %v5176_v1, 16 }
 0x3fe   : > { %v5178_v10 = vsel %vm708_vm8, %v5175_v22, %v5177_v5  ;;  %v5734_v34 = vrot.slane %v5732_v15, 1  ;;  %vm16072_vm14 = vcmp.ne.s16.totalorder %v16071_v53, 0  ;;  %v5720_v7 = vshrl.u32 %v5260_v29, 16  ;;  %v16075_v29 = vld [vmem:[#allocation108_spill] sm:$0xff] }
 0x3ff   : > { %v6488_v23 = vrot.slane %v6486_v60, 1  ;;  %v6502_v37 = vshll.u32 %v5178_v10, 16  ;;  %v5261_v24 = vsel %vm16072_vm14, %v14043_v27, %v14092_v55  ;;  %v14104_v1 = vrot.slane %v5290_v40, 7 }
 0x400   : > { %v14100_v28 = vsel %vm1250_vm12, %v5730_v0, %v5734_v34  ;;  %v5722_v15 = vor.u32 %v5720_v7, %v5702_v16  ;;  %v5724_v60 = vshll.u32 %v5261_v24, 16  ;;  %v5293_v57 = vshll.u32 %v13828_v38, 16 }
 0x401   : > { %16073 = vst [vmem:[#allocation30_spill] sm:$0xff] %v14100_v28  ;;  %v6489_v22 = vsel %vm1250_vm12, %v6484_v42, %v6488_v23  ;;  %v6500_v62 = vor.u32 %v6498_v41, %v6488_v23  ;;  %v6504_v11 = vrot.slane %v6502_v37, 1  ;;  %6120 = vmatprep.mubr.bf16.mxu0 %v14100_v28  ;;  %16074 = vst [vmem:[#allocation73_spill] sm:$0xff] %v14104_v1  ;;  %v5752_v20 = vshrl.u32 %v5136_v12, 16 }
 0x402   : > { %9759 = vmatmul.mubr.bf16.gmra.mrb[112].mxu1 %v6489_v22  ;;  %v5006_v0 = vsel %vm1391_vm4, %v13965_v25, %v16075_v29  ;;  %v5726_v23 = vrot.slane %v5724_v60, 1  ;;  %v5295_v41 = vor.u32 %v5293_v57, %v14104_v1  ;;  %v6514_v40 = vshrl.u32 %v5178_v10, 16 }
 0x403   : > { %v6505_v2 = vsel %vm1250_vm12, %v6500_v62, %v6504_v11  ;;  %v5179_v16 = vrot.slane %v5006_v0, 7  ;;  %v14114_v37 = vor.u32 %v5752_v20, %v5734_v34  ;;  %vm16077_vm3 = vcmp.ne.s16.totalorder %v16021_v63, 0 }
 0x404   : > { %9762 = vmatprep.mubr.bf16.mxu1 %v6505_v2  ;;  %v5007_v12 = vsel %vm16077_vm3, %v13971_v4, %v13803_v8  ;;  %v14121_v7 = vrot.slane %v13828_v38, 7  ;;  %v5727_v22 = vsel %vm1250_vm12, %v5722_v15, %v5726_v23  ;;  %v5296_v2 = vsel %vm16070_vm6, %v14060_v14, %v5295_v41  ;;  %v16078_v15 = vld [vmem:[#allocation54_spill] sm:$0xff] }
 0x405   : > { %16076 = vst [vmem:[#allocation31_spill] sm:$0xff] %v14114_v37  ;;  %v5180_v62 = vsel %vm708_vm8, %v5177_v5, %v5179_v16  ;;  %v5181_v57 = vrot.slane %v5007_v12, 7  ;;  %6121 = vmatmul.mubr.bf16.gmra.mrb[212].mxu0 %v5727_v22  ;;  %v5756_v20 = vshll.u32 %v5296_v2, 16  ;;  %v6516_v34 = vor.u32 %v6514_v40, %v6504_v11  ;;  %v16080_v14 = vld [vmem:[#allocation22_spill] sm:$0xff] }
 0x406   : > { %v6518_v10 = vshll.u32 %v5180_v62, 16  ;;  %v14130_v60 = vsel %vm708_vm8, %v14086_v59, %v14121_v7  ;;  %v6530_v4 = vshrl.u32 %v5180_v62, 16  ;;  %vm16079_vm14 = vcmp.ne.s16.totalorder %v16078_v15, 0  ;;  %v14142_v62 = vld [vmem:[#allocation2 + $0x88] sm:$0x1] }
 0x407   : > { %v5182_v8 = vsel %vm708_vm8, %v5179_v16, %v5181_v57  ;;  %v5262_v29 = vsel %vm16079_vm14, %v13828_v38, %v14130_v60  ;;  %v5744_v0 = vshrl.u32 %v5261_v24, 16  ;;  %v5758_v5 = vrot.slane %v5756_v20, 1 }
 0x408   : > { %v6520_v41 = vrot.slane %v6518_v10, 1  ;;  %v6534_v12 = vshll.u32 %v5182_v8, 16  ;;  %v5748_v22 = vshll.u32 %v5262_v29, 16  ;;  %v5776_v40 = vshrl.u32 %v5296_v2, 16 }
 0x409   : > { %v5746_v11 = vor.u32 %v5744_v0, %v5726_v23  ;;  %v5780_v42 = vshll.u32 %v14104_v1, 16  ;;  %vm16081_vm3 = vcmp.ne.s16.totalorder %v16028_v32, 0  ;;  %v14146_v28 = vsel %vm1250_vm12, %v14114_v37, %v5758_v5  ;;  %v16084_v37 = vld [vmem:[#allocation104_spill] sm:$0xff]  ;;  %v16085_v32 = vld [vmem:[#allocation53_spill] sm:$0xff] }
 0x40a   : > { %v5008_v16 = vsel %vm16081_vm3, %v14014_v21, %v16080_v14  ;;  %16082 = vst [vmem:[#allocation85_spill] sm:$0xff] %v14146_v28  ;;  %v6521_v38 = vsel %vm1250_vm12, %v6516_v34, %v6520_v41  ;;  %v6532_v24 = vor.u32 %v6530_v4, %v6520_v41  ;;  %v6536_v20 = vrot.slane %v6534_v12, 1  ;;  %6128 = vmatprep.mubr.bf16.mxu0 %v14146_v28 }
 0x40b   : > { %9763 = vmatmul.mubr.bf16.gmra.mrb[116].mxu1 %v6521_v38  ;;  %v5750_v23 = vrot.slane %v5748_v22, 1  ;;  %v14150_v2 = vor.u32 %v5776_v40, %v5758_v5  ;;  %v5183_v10 = vrot.slane %v5008_v16, 7  ;;  %v6546_v0 = vshrl.u32 %v5182_v8, 16 }
 0x40c   : > { %v6537_v21 = vsel %vm1250_vm12, %v6532_v24, %v6536_v20  ;;  %v5782_v14 = vrot.slane %v5780_v42, 1  ;;  %v4974_v1 = vrot.slane %v14142_v62, 1  ;;  %vm16086_vm6 = vcmp.ne.s16.totalorder %v16085_v32, 0  ;;  %v16087_v42 = vld [vmem:[#allocation24_spill] sm:$0xff] }
 0x40d   : > { %16083 = vst [vmem:[#allocation81_spill] sm:$0xff] %v14150_v2  ;;  %v5263_v34 = vsel %vm16086_vm6, %v16084_v37, %v14121_v7  ;;  %9766 = vmatprep.mubr.bf16.mxu1 %v6537_v21  ;;  %v5751_v4 = vsel %vm1250_vm12, %v5746_v11, %v5750_v23  ;;  %v5184_v41 = vsel %vm708_vm8, %v5181_v57, %v5183_v10  ;;  %v5768_v5 = vshrl.u32 %v5262_v29, 16 }
 0x40e   : > { %v6548_v12 = vor.u32 %v6546_v0, %v6536_v20  ;;  %6129 = vmatmul.mubr.bf16.gmra.mrb[216].mxu0 %v5751_v4  ;;  %v5783_v8 = vsel %vm1250_vm12, %v14150_v2, %v5782_v14  ;;  %v6550_v22 = vshll.u32 %v5184_v41, 16  ;;  %v4975_v40 = vsel %vm1396_vm10, %v16087_v42, %v4974_v1  ;;  %v14168_v20 = vld [vmem:[#allocation2 + $0x10] sm:$0x80]  ;;  %v16089_v2 = vld [vmem:[#allocation93_spill] sm:$0xff] }
 0x40f   : > { %v5772_v16 = vshll.u32 %v5263_v34, 16  ;;  %6136 = vmatprep.mubr.bf16.mxu0 %v5783_v8  ;;  %v5009_v37 = vsel %vm1394_vm1, %v14043_v27, %v4975_v40  ;;  %v6562_v24 = vshrl.u32 %v5184_v41, 16  ;;  %v5770_v11 = vor.u32 %v5768_v5, %v5750_v23 }
 0x410   : > { %v5011_v57 = vshrl.u32 %v13871_v52, 16  ;;  %v6552_v29 = vrot.slane %v6550_v22, 1  ;;  %v5185_v0 = vrot.slane %v5009_v37, 7  ;;  %v5014_v14 = vshll.u32 %v13871_v52, 16  ;;  %v16090_v37 = vld [vmem:[#allocation110_spill] sm:$0xff] }
 0x411   : > { %v5774_v21 = vrot.slane %v5772_v16, 1  ;;  %v7341_v1 = vshrl.u32 %v16089_v2, 16  ;;  %v7343_v34 = vshll.u32 %v16089_v2, 16  ;;  %v4876_v8 = vrot.slane %v13871_v52, 7 }
 0x412   : > { %v5013_v4 = vrot.slane %v5011_v57, 7  ;;  %v6553_v42 = vsel %vm1250_vm12, %v6548_v12, %v6552_v29  ;;  %v5186_v23 = vsel %vm708_vm8, %v5183_v10, %v5185_v0  ;;  %v6564_v41 = vor.u32 %v6562_v24, %v6552_v29  ;;  %v16093_v29 = vld [vmem:[#allocation86_spill] sm:$0xff] }
 0x413   : > { %v7113_v5 = vrot.slane %v14168_v20, 7  ;;  %9767 = vmatmul.mubr.bf16.gmra.mrb[120].mxu1 %v6553_v42  ;;  %v6566_v22 = vshll.u32 %v5186_v23, 16  ;;  %v5775_v40 = vsel %vm1250_vm12, %v5770_v11, %v5774_v21  ;;  %vm16091_vm14 = vsmask.f32 256 }
 0x414   : > { %v5016_v16 = vor.u32 %v5014_v14, %v5013_v4  ;;  %v5024_v57 = vsel %vm16091_vm14, %v5013_v4, %v16090_v37  ;;  %v6587_v38 = vshll.u32 %v5185_v0, 16  ;;  %v7345_v2 = vrot.slane %v7343_v34, 1  ;;  %v10403_v37 = vld [vmem:[#allocation2 + $0x10] sm:$0xff]  ;;  %v14208_v14 = vld [vmem:[#allocation2 + $0x18] sm:$0xff] }
 0x415   : > { %v6326_v28 = vshll.u32 %v5024_v57, 16  ;;  %v16092_v63 = vrot.slane %v13878_v36, 7  ;;  %v6568_v49 = vrot.slane %v6566_v22, 1  ;;  %v6583_v24 = vshrl.u32 %v5186_v23, 16  ;;  %v14191_v23 = vld [vmem:[#allocation2 + $0x20] sm:$0xff]  ;;  %16099 = vst [vmem:[#allocation74_spill] sm:$0xff] %v14208_v14 }
 0x416   : > { %v6321_v10 = vshll.u32 %v5016_v16, 16  ;;  %v4879_v42 = vsel %vm708_vm8, %v4876_v8, %v16093_v29  ;;  %6137 = vmatmul.mubr.bf16.gmra.mrb[220].mxu0 %v5775_v40  ;;  %v6319_v18 = vshrl.u32 %v5016_v16, 16  ;;  %v7346_v21 = vor.u32 %v7345_v2, %v7341_v1  ;;  %v14193_v29 = vld [vmem:[#allocation2 + $0x18] sm:$0xff] }
 0x417   : > { %v4877_v12 = vsel %vm708_vm8, %v16092_v63, %v4876_v8  ;;  %v6328_v11 = vrot.slane %v6326_v28, 1  ;;  %v6569_v0 = vsel %vm1250_vm12, %v6564_v41, %v6568_v49  ;;  %v6585_v36 = vor.u32 %v6583_v24, %v6568_v49  ;;  %v16097_v24 = vld [vmem:[#allocation99_spill] sm:$0xff] }
 0x418   : > { %v4925_v4 = vsel %vm1037_vm15, %v13871_v52, %v4877_v12  ;;  %v6323_v34 = vrot.slane %v6321_v10, 1  ;;  %v4926_v22 = vsel %vm1038_vm0, %v10403_v37, %v4879_v42  ;;  %9770 = vmatprep.mubr.bf16.mxu1 %v6569_v0  ;;  %v6589_v8 = vrot.slane %v6587_v38, 1  ;;  %v16096_v52 = vld [vmem:[#allocation87_spill] sm:$0xff]  ;;  %v16100_v37 = vld [vmem:[#allocation109_spill] sm:$0xff] }
 0x419   : > { %v6309_v40 = vshll.u32 %v4925_v4, 16  ;;  %v6314_v16 = vshll.u32 %v4926_v22, 16  ;;  %v6307_v1 = vshrl.u32 %v4925_v4, 16  ;;  %v6350_v2 = vshrl.u32 %v5024_v57, 16  ;;  %v16098_v57 = vld [vmem:[#allocation88_spill] sm:$0xff] }
 0x41a   : > { %v6324_v28 = vor.u32 %v6323_v34, %v6319_v18  ;;  %v7114_v41 = vsel %vm708_vm8, %v7113_v5, %v16096_v52  ;;  %v6590_v49 = vsel %vm1250_vm12, %v6585_v36, %v6589_v8  ;;  %v7121_v38 = vsel %vm1038_vm0, %v14191_v23, %v16097_v24  ;;  %v16101_v8 = vld [vmem:[#allocation15_spill] sm:$0xff] }
 0x41b   : > { %v6311_v12 = vrot.slane %v6309_v40, 1  ;;  %v7120_v10 = vsel %vm1037_vm15, %v14193_v29, %v7114_v41  ;;  %9771 = vmatmul.mubr.bf16.gmra.mrb[124].mxu1 %v6590_v49  ;;  %v7347_v42 = vsel %vm1250_vm12, %v7346_v21, %v16098_v57  ;;  %v6352_v4 = vor.u32 %v6350_v2, %v6328_v11  ;;  %v14214_v40 = vld [vmem:[#allocation2 + $0x28] sm:$0xff]  ;;  %v14219_v2 = vld [vmem:[#allocation2 + $0x30] sm:$0xff]  ;;  %v16105_v57 = vld [vmem:[#allocation100_spill] sm:$0xff] }
 0x41c   : > { %v6329_v18 = vsel %vm1250_vm12, %v6324_v28, %v6328_v11  ;;  %7824 = vmatprep.mubr.bf16.mxu1 %v7347_v42  ;;  %v6316_v0 = vrot.slane %v6314_v16, 1  ;;  %v7331_v34 = vshll.u32 %v7120_v10, 16  ;;  %v7336_v36 = vshll.u32 %v7121_v38, 16  ;;  %v16103_v11 = vld [vmem:[#allocation94_spill] sm:$0xff]  ;;  %16104 = vst [vmem:[#allocation39_spill] sm:$0xff] %v14219_v2 }
 0x41d   : > { %6802 = vmatprep.mubr.bf16.mxu0 %v6329_v18  ;;  %v6312_v5 = vor.u32 %v6311_v12, %v6307_v1  ;;  %vm16102_vm15 = vcmp.ne.s16.totalorder %v16101_v8, 0  ;;  %v7329_v52 = vshrl.u32 %v7120_v10, 16  ;;  %v6353_v1 = vsel %vm1250_vm12, %v6352_v4, %v16103_v11  ;;  %v10354_v10 = vld [vmem:[#allocation8 + $0x208] sm:$0xff]   ;;  %v16112_v11 = vld [vmem:[#allocation16_spill] sm:$0xff] }
 0x41e   : > { %v4927_v63 = vsel %vm16102_vm15, %v14208_v14, %v16100_v37  ;;  %v7333_v21 = vrot.slane %v7331_v34, 1  ;;  %v6342_v16 = vshrl.u32 %v4926_v22, 16  ;;  %v7338_v49 = vrot.slane %v7336_v36, 1  ;;  %vm16106_vm0 = vmmov %vm16102_vm15  ;;  %v16109_v37 = vld [vmem:[#allocation95_spill] sm:$0xff] }
 0x41f   : > { %v6317_v28 = vsel %vm1250_vm12, %v6312_v5, %v6316_v0  ;;  %v6346_v12 = vshll.u32 %v4927_v63, 16  ;;  %v15573_v18 = vrot.slane %v14214_v40, 1  ;;  %v7122_v42 = vsel %vm16106_vm0, %v14214_v40, %v16105_v57  ;;  %v16131_v14 = vld [vmem:[#allocation23_spill] sm:$0xff] }
 0x420   : > { %6803 = vmatmul.mubr.bf16.vlgmr.msra.gmra.mrb[224].mxu0 %v6317_v28  ;;  %v7334_v41 = vor.u32 %v7333_v21, %v7329_v52  ;;  %v6344_v34 = vor.u32 %v6342_v16, %v6316_v0  ;;  %v15572_v4 = vrot.slane %v14219_v2, 1  ;;  %vm16107_vm3 = vcmp.ne.s16.totalorder %v16035_v30, 0  ;;  %v14245_v21 = vld [vmem:[#allocation2 + $0x20] sm:$0xff]  ;;  %v10355_v16 = vld [vmem:[#allocation8 + $0x210] sm:$0xff]  }
 0x421   : > { %6810 = vmatprep.mubr.bf16.mxu0 %v6353_v1  ;;  %v4934_v22 = vsel %vm16107_vm3, %v14032_v48, %v13861_v9  ;;  %vm16108_vm6 = vcmp.ne.s16.totalorder %v16038_v39, 0  ;;  %v6348_v8 = vrot.slane %v6346_v12, 1  ;;  %v7360_v28 = vshrl.u32 %v7121_v38, 16  ;;  %16111 = vst [vmem:[#allocation89_spill] sm:$0xff] %v14245_v21 }
 0x422   : > { %v7339_v5 = vsel %vm1250_vm12, %v7334_v41, %v7338_v49  ;;  %v4935_v36 = vsel %vm16108_vm6, %v14065_v43, %v13900_v51  ;;  %v7364_v0 = vshll.u32 %v7122_v42, 16  ;;  %v14243_v52 = vsel %vm1396_vm10, %v15573_v18, %v15572_v4 }
 0x423   : > { %7825 = vmatmul.mubr.bf16.vlgmr.msra.gmra.mrb[128].mxu1 %v7339_v5  ;;  %16110 = vst [vmem:[#allocation83_spill] sm:$0xff] %v14243_v52  ;;  %vm16113_vm14 = vcmp.ne.s16.totalorder %v16112_v11, 0  ;;  %vm16114_vm15 = vcmp.ne.s16.totalorder %v16078_v15, 0  ;;  %v6349_v41 = vsel %vm1250_vm12, %v6344_v34, %v6348_v8  ;;  %v7362_v12 = vor.u32 %v7360_v28, %v7338_v49  ;;  %v16118_v34 = vld [vmem:[#allocation96_spill] sm:$0xff] }
 0x424   : > { %7832 = vmatprep.mubr.bf16.mxu1 %v16109_v37  ;;  %9775 = vmatpush3.bf16.msra.mxu1 %v14071_v3  ;;  %v4928_v1 = vsel %vm16113_vm14, %v14245_v21, %v16097_v24  ;;  %v6462_v3 = vshll.u32 %v4934_v22, 16  ;;  %v4940_v38 = vsel %vm16114_vm15, %v14043_v27, %v14092_v55  ;;  %v6478_v5 = vshll.u32 %v4935_v36, 16  ;;  %v16117_v24 = vld [vmem:[#allocation90_spill] sm:$0xff]  ;;  %vm16119_vm3 = vmmov %vm16113_vm14  ;;  %v10356_v28 = vld [vmem:[#allocation8 + $0x218] sm:$0xff]  }
 0x425   : > { %9776 = vmatprep.subr.bf16.mxu1 %v10354_v10  ;;  %vm16115_vm0 = vcmp.ne.s16.totalorder %v16044_v35, 0  ;;  %v7366_v18 = vrot.slane %v7364_v0, 1  ;;  %v6362_v43 = vshrl.u32 %v4927_v63, 16  ;;  %v6366_v48 = vshll.u32 %v4928_v1, 16  ;;  %v14272_v0 = vld [vmem:[#allocation2 + $0x28] sm:$0xff]  ;;  %v16121_v63 = vld [vmem:[#allocation17_spill] sm:$0xff] }
 0x426   : > { %v14260_v4 = vsel %vm16115_vm0, %v14076_v31, %v13928_v13  ;;  %v6474_v27 = vshrl.u32 %v4934_v22, 16  ;;  %v6558_v6 = vshll.u32 %v4940_v38, 16  ;;  %v7123_v49 = vsel %vm16119_vm3, %v14219_v2, %v16118_v34  ;;  %16120 = vst [vmem:[#allocation77_spill] sm:$0xff] %v14272_v0  ;;  %v14278_v22 = vld [vmem:[#allocation2 + $0x40] sm:$0xff] }
 0x427   : > { %16116 = vst [vmem:[#allocation78_spill] sm:$0xff] %v14260_v4  ;;  %v7367_v31 = vsel %vm1250_vm12, %v7362_v12, %v7366_v18  ;;  %vm16122_vm6 = vcmp.ne.s16.totalorder %v16121_v63, 0  ;;  %v14280_v56 = vrot.slane %v6478_v5, 1  ;;  %v6490_v11 = vshrl.u32 %v4935_v36, 16  ;;  %v10357_v21 = vld [vmem:[#allocation8 + $0x220] sm:$0xff]  }
 0x428   : > { %6811 = vmatmul.mubr.bf16.gmra.mrb[228].mxu0 %v6349_v41  ;;  %9777 = vmatpush3.bf16.msra.mxu1 %v10354_v10  ;;  %v14269_v41 = vrot.slane %v6462_v3, 1  ;;  %v4929_v10 = vsel %vm16122_vm6, %v14272_v0, %v16105_v57  ;;  %v6494_v2 = vshll.u32 %v14260_v4, 16  ;;  %v16123_v3 = vld [vmem:[#allocation97_spill] sm:$0xff]  ;;  %vm16124_vm14 = vmmov %vm16122_vm6  ;;  %v6368_v12 = vrot.slane %v6366_v48, 1  ;;  %v16126_v57 = vld [vmem:[#allocation20_spill] sm:$0xff] }
 0x429   : > { %6818 = vmatprep.mubr.bf16.mxu0 %v16117_v24  ;;  %9778 = vmatprep.subr.bf16.mxu1 %v10355_v16  ;;  %v6364_v24 = vor.u32 %v6362_v43, %v6348_v8  ;;  %v7124_v43 = vsel %vm16124_vm14, %v14263_v50, %v16123_v3  ;;  %v16125_v8 = vld [vmem:[#allocation101_spill] sm:$0xff]  ;;  %v7376_v52 = vshrl.u32 %v7122_v42, 16  ;;  %v7380_v17 = vshll.u32 %v7123_v49, 16  ;;  %v16129_v0 = vld [vmem:[#allocation102_spill] sm:$0xff] }
 0x42a   : > { %vm16127_vm15 = vcmp.ne.s16.totalorder %v16126_v57, 0  ;;  %v14292_v36 = vrot.slane %v6558_v6, 1  ;;  %v6378_v4 = vshrl.u32 %v4928_v1, 16  ;;  %v7396_v26 = vshll.u32 %v7124_v43, 16  ;;  %v14309_v57 = vld [vmem:[#allocation2 + $0x48] sm:$0xff] }
 0x42b   : > { %7833 = vmatmul.mubr.bf16.gmra.mrb[132].mxu1 %v7367_v31  ;;  %v4930_v5 = vsel %vm16127_vm15, %v13951_v45, %v16118_v34  ;;  %v6382_v31 = vshll.u32 %v4929_v10, 16  ;;  %vm16130_vm0 = vmmov %vm16127_vm15  ;;  %v6369_v48 = vsel %vm1250_vm12, %v6364_v24, %v6368_v12  ;;  %v7378_v42 = vor.u32 %v7376_v52, %v7366_v18 }
 0x42c   : > { %7840 = vmatprep.mubr.bf16.mxu1 %v16125_v8  ;;  %9779 = vmatpush3.bf16.msra.mxu1 %v10355_v16  ;;  %16128 = vst [vmem:[#allocation34_spill] sm:$0xff] %v14292_v36  ;;  %v7125_v63 = vsel %vm16130_vm0, %v14278_v22, %v16129_v0  ;;  %vm16132_vm3 = vcmp.ne.s16.totalorder %v16131_v14, 0  ;;  %v14304_v6 = vor.u32 %v6474_v27, %v14269_v41  ;;  %v6570_v16 = vshrl.u32 %v4940_v38, 16 }
 0x42d   : > { %9780 = vmatprep.subr.bf16.mxu1 %v10356_v28  ;;  %v4931_v45 = vsel %vm16132_vm3, %v13984_v19, %v16123_v3  ;;  %v14307_v1 = vor.u32 %v6490_v11, %v14280_v56  ;;  %v6398_v34 = vshll.u32 %v4930_v5, 16  ;;  %v14311_v54 = vrot.slane %v6494_v2, 1  ;;  %v10358_v2 = vld [vmem:[#allocation8 + $0x228] sm:$0xff]   ;;  %vm16138_vm14 = vmmov %vm16132_vm3 }
 0x42e   : > { %v7382_v18 = vrot.slane %v7380_v17, 1  ;;  %v6380_v52 = vor.u32 %v6378_v4, %v6368_v12  ;;  %v7412_v24 = vshll.u32 %v7125_v63, 16  ;;  %vm16135_vm6 = vcmp.ne.s16.totalorder %v16052_v33, 0  ;;  %v16137_v4 = vld [vmem:[#allocation21_spill] sm:$0xff] }
 0x42f   : > { %16133 = vst [vmem:[#allocation70_spill] sm:$0xff] %v14307_v1  ;;  %16134 = vst [vmem:[#allocation33_spill] sm:$0xff] %v14311_v54  ;;  %v14318_v27 = vsel %vm16135_vm6, %v13965_v25, %v13962_v58  ;;  %v14321_v38 = vor.u32 %v6570_v16, %v14292_v36  ;;  %v6384_v11 = vrot.slane %v6382_v31, 1  ;;  %v6414_v3 = vshll.u32 %v4931_v45, 16  ;;  %v16139_v31 = vld [vmem:[#allocation26_spill] sm:$0xff]  ;;  %v14333_v36 = vld [vmem:[#allocation2 + $0x50] sm:$0xff] }
 0x430   : > { %6819 = vmatmul.mubr.bf16.gmra.mrb[232].mxu0 %v6369_v48  ;;  %9781 = vmatpush3.bf16.msra.mxu1 %v10356_v28  ;;  %16136 = vst [vmem:[#allocation27_spill] sm:$0xff] %v14318_v27  ;;  %v7383_v48 = vsel %vm1250_vm12, %v7378_v42, %v7382_v18  ;;  %v7398_v17 = vrot.slane %v7396_v26, 1  ;;  %v7126_v28 = vsel %vm16138_vm14, %v14309_v57, %v16137_v4  ;;  %v6394_v25 = vshrl.u32 %v4929_v10, 16  ;;  %v16141_v42 = vld [vmem:[#allocation98_spill] sm:$0xff]  ;;  %v10359_v54 = vld [vmem:[#allocation8 + $0x230] sm:$0xff]  }
 0x431   : > { %6826 = vmatprep.mubr.bf16.mxu0 %v16109_v37  ;;  %9782 = vmatprep.subr.bf16.mxu1 %v10357_v21  ;;  %v7392_v37 = vshrl.u32 %v7123_v49, 16  ;;  %v6400_v33 = vrot.slane %v6398_v34, 1  ;;  %vm16140_vm15 = vcmp.ne.s16.totalorder %v16139_v31, 0  ;;  %v6385_v26 = vsel %vm1250_vm12, %v6380_v52, %v6384_v11  ;;  %v14337_v34 = vld [vmem:[#allocation2 + $0x58] sm:$0xff] }
 0x432   : > { %v4932_v16 = vsel %vm16140_vm15, %v13991_v44, %v16129_v0  ;;  %v7408_v27 = vshrl.u32 %v7124_v43, 16  ;;  %v7414_v14 = vrot.slane %v7412_v24, 1  ;;  %v6396_v1 = vor.u32 %v6394_v25, %v6384_v11  ;;  %vm16142_vm0 = vmmov %vm16140_vm15  ;;  %v10360_v25 = vld [vmem:[#allocation8 + $0x238] sm:$0xff]   ;;  %v14361_v24 = vld [vmem:[#allocation2 + $0x80] sm:$0xff] }
 0x433   : > { %7841 = vmatmul.mubr.bf16.gmra.mrb[136].mxu1 %v7383_v48  ;;  %v7394_v49 = vor.u32 %v7392_v37, %v7382_v18  ;;  %v6410_v12 = vshrl.u32 %v4930_v5, 16  ;;  %v6416_v48 = vrot.slane %v6414_v3, 1  ;;  %v7428_v10 = vshll.u32 %v7126_v28, 16 }
 0x434   : > { %7848 = vmatprep.mubr.bf16.mxu1 %v16141_v42  ;;  %9783 = vmatpush3.bf16.msra.mxu1 %v10357_v21  ;;  %v7410_v19 = vor.u32 %v7408_v27, %v7398_v17  ;;  %v7424_v0 = vshrl.u32 %v7125_v63, 16  ;;  %v6430_v44 = vshll.u32 %v4932_v16, 16  ;;  %v7127_v52 = vsel %vm16142_vm0, %v14333_v36, %v13861_v9  ;;  %v16143_v63 = vld [vmem:[#allocation28_spill] sm:$0xff] }
 0x435   : > { %9784 = vmatprep.subr.bf16.mxu1 %v10358_v2  ;;  %v7155_v43 = vrot.slane %v14191_v23, 1  ;;  %v7161_v21 = vrot.slane %v14263_v50, 1  ;;  %v6412_v5 = vor.u32 %v6410_v12, %v6400_v33  ;;  %v6426_v18 = vshrl.u32 %v4931_v45, 16 }
 0x436   : > { %v7426_v11 = vor.u32 %v7424_v0, %v7414_v14  ;;  %vm16144_vm3 = vcmp.ne.s16.totalorder %v16143_v63, 0  ;;  %v7399_v3 = vsel %vm1250_vm12, %v7394_v49, %v7398_v17  ;;  %v7430_v37 = vrot.slane %v7428_v10, 1  ;;  %v16146_v10 = vld [vmem:[#allocation103_spill] sm:$0xff] }
 0x437   : > { %v4933_v27 = vsel %vm16144_vm3, %v14026_v61, %v16137_v4  ;;  %vm16145_vm6 = vmmov %vm16144_vm3  ;;  %v6428_v45 = vor.u32 %v6426_v18, %v6416_v48  ;;  %v7444_v12 = vshll.u32 %v7127_v52, 16  ;;  %v6401_v31 = vsel %vm1250_vm12, %v6396_v1, %v6400_v33 }
 0x438   : > { %6827 = vmatmul.mubr.bf16.gmra.mrb[236].mxu0 %v6385_v26  ;;  %v7128_v9 = vsel %vm16145_vm6, %v14337_v34, %v13900_v51  ;;  %9785 = vmatpush3.bf16.msra.mxu1 %v10358_v2  ;;  %v7415_v26 = vsel %vm1250_vm12, %v7410_v19, %v7414_v14  ;;  %v7165_v4 = vrot.slane %v14309_v57, 1  ;;  %v6432_v0 = vrot.slane %v6430_v44, 1  ;;  %v16179_v57 = vld [vmem:[#allocation62_spill] sm:$0xff] }
 0x439   : > { %6834 = vmatprep.mubr.bf16.mxu0 %v16125_v8  ;;  %v14356_v8 = vld [vmem:[#allocation2 + $0x60] sm:$0xff]  ;;  %9786 = vmatprep.subr.bf16.mxu1 %v10359_v54  ;;  %v6417_v51 = vsel %vm1250_vm12, %v6412_v5, %v6416_v48  ;;  %v7440_v2 = vshrl.u32 %v7126_v28, 16  ;;  %v6446_v17 = vshll.u32 %v4933_v27, 16  ;;  %v7460_v49 = vshll.u32 %v7128_v9, 16 }
 0x43a   : > { %v14366_v18 = vsel %vm1250_vm12, %v7426_v11, %v7430_v37  ;;  %v7167_v33 = vrot.slane %v14333_v36, 1  ;;  %v6442_v1 = vshrl.u32 %v4932_v16, 16  ;;  %vm16147_vm14 = vcmp.ne.s16.totalorder %v16035_v30, 0 }
 0x43b   : > { %7849 = vmatmul.mubr.bf16.gmra.mrb[140].mxu1 %v7399_v3  ;;  %v7129_v19 = vsel %vm16147_vm14, %v14356_v8, %v13928_v13  ;;  %v14374_v44 = vsel %vm1250_vm12, %v6428_v45, %v6432_v0  ;;  %v7442_v28 = vor.u32 %v7440_v2, %v7430_v37  ;;  %v7446_v14 = vrot.slane %v7444_v12, 1  ;;  %v14380_v3 = vld [vmem:[#allocation2 + $0x88] sm:$0xff]  ;;  %v14388_v12 = vld [vmem:[#allocation2 + $0x90] sm:$0xff] }
 0x43c   : > { %7856 = vmatprep.mubr.bf16.mxu1 %v16146_v10  ;;  %9787 = vmatpush3.bf16.msra.mxu1 %v10359_v54  ;;  %vm16148_vm15 = vcmp.ne.s16.totalorder %v16059_v46, 0  ;;  %v6444_v5 = vor.u32 %v6442_v1, %v6432_v0  ;;  %v6458_v11 = vshrl.u32 %v4933_v27, 16  ;;  %v7456_v16 = vshrl.u32 %v7127_v52, 16  ;;  %v14382_v45 = vld [vmem:[#allocation2 + $0x68] sm:$0xff] }
 0x43d   : > { %v7133_v48 = vsel %vm16148_vm15, %v14361_v24, %v14092_v55  ;;  %9788 = vmatprep.subr.bf16.mxu1 %v10360_v25  ;;  %v6448_v30 = vrot.slane %v6446_v17, 1  ;;  %v7462_v54 = vrot.slane %v7460_v49, 1  ;;  %v7476_v13 = vshll.u32 %v7129_v19, 16 }
 0x43e   : > { %v7540_v63 = vshll.u32 %v7133_v48, 16  ;;  %vm16149_vm0 = vcmp.ne.s16.totalorder %v16071_v53, 0  ;;  %v7169_v55 = vrot.slane %v14337_v34, 1  ;;  %v7552_v27 = vshrl.u32 %v7133_v48, 16 }
 0x43f   : > { %v7134_v37 = vsel %vm16149_vm0, %v14380_v3, %v14130_v60  ;;  %v14395_v0 = vsel %vm1250_vm12, %v7442_v28, %v7446_v14  ;;  %v7458_v2 = vor.u32 %v7456_v16, %v7446_v14  ;;  %v7171_v17 = vrot.slane %v14356_v8, 1 }
 0x440   : > { %6835 = vmatmul.mubr.bf16.gmra.mrb[240].mxu0 %v6401_v31  ;;  %v14392_v52 = vrot.slane %v7540_v63, 1  ;;  %v7556_v31 = vshll.u32 %v7134_v37, 16  ;;  %9789 = vmatpush3.bf16.msra.mxu1 %v10360_v25  ;;  %v7472_v49 = vshrl.u32 %v7128_v9, 16  ;;  %vm16150_vm3 = vcmp.ne.s16.totalorder %v16038_v39, 0  ;;  %v16151_v63 = vld [vmem:[#allocation41_spill] sm:$0xff] }
 0x441   : > { %6842 = vmatprep.mubr.bf16.mxu0 %v16141_v42  ;;  %v14402_v60 = vsel %vm16150_vm3, %v14382_v45, %v13962_v58  ;;  %v15594_v48 = vrot.slane %v14388_v12, 7  ;;  %v14407_v25 = vsel %vm1250_vm12, %v6444_v5, %v6448_v30  ;;  %v6460_v28 = vor.u32 %v6458_v11, %v6448_v30 }
 0x442   : > { %v7554_v42 = vor.u32 %v7552_v27, %v14392_v52  ;;  %v7558_v1 = vrot.slane %v7556_v31, 1  ;;  %v7474_v14 = vor.u32 %v7472_v49, %v7462_v54  ;;  %v7478_v16 = vrot.slane %v7476_v13, 1  ;;  %v14427_v13 = vld [vmem:[#allocation2 + $0x70] sm:$0xff]  ;;  %v14445_v31 = vld [vmem:[#allocation2 + $0x78] sm:$0xff] }
 0x443   : > { %7857 = vmatmul.mubr.bf16.gmra.mrb[144].mxu1 %v7415_v26  ;;  %v7116_v39 = vsel %vm708_vm8, %v14121_v7, %v15594_v48  ;;  %v7568_v58 = vshrl.u32 %v7134_v37, 16  ;;  %vm16152_vm6 = vcmp.ne.s16.totalorder %v16085_v32, 0  ;;  %v14424_v5 = vsel %vm1250_vm12, %v14304_v6, %v14280_v56 }
 0x444   : > { %7864 = vmatprep.mubr.bf16.mxu1 %v16151_v63  ;;  %v14411_v9 = vsel %vm1250_vm12, %v7554_v42, %v7558_v1  ;;  %v4941_v26 = vsel %vm16152_vm6, %v14142_v62, %v14086_v59  ;;  %v7488_v11 = vshrl.u32 %v7129_v19, 16  ;;  %v7492_v30 = vshll.u32 %v14402_v60, 16 }
 0x445   : > { %vm16153_vm14 = vcmp.ne.s16.totalorder %v16078_v15, 0  ;;  %v7173_v37 = vrot.slane %v14382_v45, 1  ;;  %v7570_v27 = vor.u32 %v7568_v58, %v7558_v1  ;;  %v6574_v62 = vshll.u32 %v4941_v26, 16 }
 0x446   : > { %v14432_v7 = vsel %vm16153_vm14, %v14388_v12, %v7116_v39  ;;  %v14437_v56 = vsel %vm1250_vm12, %v7458_v2, %v7462_v54  ;;  %v14441_v6 = vsel %vm1250_vm12, %v6460_v28, %v14269_v41  ;;  %v14443_v19 = vor.u32 %v7488_v11, %v7478_v16  ;;  %v16159_v11 = vld [vmem:[#allocation74_spill] sm:$0xff] }
 0x447   : > { %v7572_v59 = vshll.u32 %v14432_v7, 16  ;;  %v16154_v15 = vrot.slane %v14193_v29, 1  ;;  %vm16155_vm15 = vcmp.ne.s16.totalorder %v16044_v35, 0  ;;  %v7175_v54 = vrot.slane %v14427_v13, 1 }
 0x448   : > { %6843 = vmatmul.mubr.bf16.gmra.mrb[244].mxu0 %v6417_v51  ;;  %v14454_v51 = vsel %vm1250_vm12, %v7474_v14, %v7478_v16  ;;  %v14460_v41 = vsel %vm16155_vm15, %v14427_v13, %v14007_v47  ;;  %v14465_v42 = vrot.slane %v7492_v30, 1  ;;  %v6576_v1 = vrot.slane %v6574_v62, 1  ;;  %v16165_v16 = vld [vmem:[#allocation77_spill] sm:$0xff] }
 0x449   : > { %v7156_v49 = vsel %vm1396_vm10, %v16154_v15, %v7155_v43  ;;  %6850 = vmatprep.mubr.bf16.mxu0 %v16146_v10  ;;  %v14463_v2 = vrot.slane %v7572_v59, 1  ;;  %v16156_v28 = vrot.slane %v14214_v40, 1  ;;  %v16157_v14 = vmov %v16154_v15 }
 0x44a   : > { %v7204_v35 = vsel %vm1378_vm7, %v14168_v20, %v16157_v14  ;;  %v7177_v58 = vrot.slane %v14445_v31, 1  ;;  %v7205_v23 = vsel %vm1379_vm11, %v16159_v11, %v7156_v49  ;;  %v14489_v29 = vsel %vm1250_vm12, %v14321_v38, %v6576_v1  ;;  %v16161_v20 = vld [vmem:[#allocation89_spill] sm:$0xff]  ;;  %v16164_v1 = vld [vmem:[#allocation83_spill] sm:$0xff] }
 0x44b   : > { %v7158_v10 = vsel %vm1396_vm10, %v7155_v43, %v16156_v28  ;;  %v14481_v26 = vsel %vm1250_vm12, %v7570_v27, %v14463_v2  ;;  %7865 = vmatmul.mubr.bf16.gmra.mrb[148].mxu1 %v14366_v18  ;;  %v14491_v43 = vld [vmem:[#allocation2 + $0x98] sm:$0x1]  ;;  %v7246_v62 = vrot.slane %v7204_v35, 7  ;;  %v7247_v15 = vrot.slane %v7205_v23, 7  ;;  %v16163_v27 = vld [vmem:[#allocation42_spill] sm:$0xff]  ;;  %v16175_v18 = vld [vmem:[#allocation49_spill] sm:$0xff] }
 0x44c   : > { %v7206_v59 = vsel %vm1380_vm5, %v16161_v20, %v7158_v10  ;;  %7872 = vmatprep.mubr.bf16.mxu1 %v16163_v27  ;;  %v7179_v28 = vrot.slane %v14361_v24, 1  ;;  %v7207_v40 = vsel %vm1381_vm2, %v16165_v16, %v16164_v1  ;;  %v16167_v10 = vld [vmem:[#allocation39_spill] sm:$0xff]  ;;  %v16169_v20 = vrot.slane %v14278_v22, 1 }
 0x44d   : > { %v7249_v14 = vrot.slane %v7206_v59, 7  ;;  %v7248_v38 = vsel %vm708_vm8, %v7246_v62, %v7247_v15  ;;  %v16168_v35 = vrot.slane %v16167_v10, 1  ;;  %v7251_v11 = vrot.slane %v7207_v40, 7  ;;  %v10407_v10 = vld [vmem:[#allocation2 + $0x30] sm:$0xff] }
 0x44e   : > { %v7164_v30 = vsel %vm1396_vm10, %v7161_v21, %v16169_v20  ;;  %v7349_v48 = vshrl.u32 %v7248_v38, 16  ;;  %v7351_v39 = vshll.u32 %v7248_v38, 16  ;;  %v16172_v20 = vld [vmem:[#allocation60_spill] sm:$0xff]  ;;  %vm16180_vm11 = vcmp.ne.s16.totalorder %v16179_v57, 0  ;;  %v16188_v57 = vld [vmem:[#allocation65_spill] sm:$0xff] }
 0x44f   : > { %v7162_v23 = vsel %vm1396_vm10, %v16168_v35, %v7161_v21  ;;  %v7250_v62 = vsel %vm708_vm8, %v7247_v15, %v7249_v14  ;;  %v16171_v21 = vld [vmem:[#allocation105_spill] sm:$0xff]  ;;  %vm16173_vm7 = vcmp.ne.s16.totalorder %v16172_v20, 0  ;;  %v16174_v15 = vrot.slane %v14278_v22, 1 }
 0x450   : > { %6851 = vmatmul.mubr.bf16.gmra.mrb[248].mxu0 %v14374_v44  ;;  %v7356_v1 = vshll.u32 %v7250_v62, 16  ;;  %v7368_v16 = vshrl.u32 %v7250_v62, 16  ;;  %v7208_v35 = vsel %vm1382_vm9, %v10407_v10, %v7162_v23  ;;  %v7353_v50 = vrot.slane %v7351_v39, 1  ;;  %v16176_v23 = vld [vmem:[#allocation61_spill] sm:$0xff] }
 0x451   : > { %6858 = vmatprep.mubr.bf16.mxu0 %v16151_v63  ;;  %v7253_v49 = vrot.slane %v7208_v35, 7  ;;  %v7209_v59 = vsel %vm16173_vm7, %v16171_v21, %v7164_v30  ;;  %v7166_v44 = vsel %vm1396_vm10, %v16174_v15, %v7165_v4  ;;  %v7252_v40 = vsel %vm708_vm8, %v7249_v14, %v7251_v11 }
 0x452   : > { %v7358_v38 = vrot.slane %v7356_v1, 1  ;;  %v7255_v62 = vrot.slane %v7209_v59, 7  ;;  %vm16177_vm9 = vcmp.ne.s16.totalorder %v16176_v23, 0  ;;  %v7354_v39 = vor.u32 %v7353_v50, %v7349_v48  ;;  %v16178_v1 = vld [vmem:[#allocation19_spill] sm:$0xff] }
 0x453   : > { %v7210_v63 = vsel %vm16177_vm9, %v16175_v18, %v7166_v44  ;;  %v7372_v10 = vshll.u32 %v7252_v40, 16  ;;  %v7254_v35 = vsel %vm708_vm8, %v7251_v11, %v7253_v49  ;;  %v7384_v20 = vshrl.u32 %v7252_v40, 16  ;;  %7873 = vmatmul.mubr.bf16.gmra.mrb[152].mxu1 %v14395_v0 }
 0x454   : > { %v7370_v30 = vor.u32 %v7368_v16, %v7358_v38  ;;  %v7388_v21 = vshll.u32 %v7254_v35, 16  ;;  %v7256_v22 = vsel %vm708_vm8, %v7253_v49, %v7255_v62  ;;  %v7400_v15 = vshrl.u32 %v7254_v35, 16  ;;  %7880 = vmatprep.mubr.bf16.mxu1 %v16178_v1  ;;  %v16181_v35 = vld [vmem:[#allocation107_spill] sm:$0xff] }
 0x455   : > { %v14538_v14 = vsel %vm1250_vm12, %v7354_v39, %v7358_v38  ;;  %v7374_v59 = vrot.slane %v7372_v10, 1  ;;  %v7404_v23 = vshll.u32 %v7256_v22, 16  ;;  %v7257_v44 = vrot.slane %v7210_v63, 7 }
 0x456   : > { %v7390_v48 = vrot.slane %v7388_v21, 1  ;;  %v7416_v50 = vshrl.u32 %v7256_v22, 16  ;;  %v7168_v0 = vsel %vm1396_vm10, %v7165_v4, %v7167_v33  ;;  %v7170_v49 = vsel %vm1396_vm10, %v7167_v33, %v7169_v55 }
 0x457   : > { %v14551_v16 = vsel %vm1250_vm12, %v7370_v30, %v7374_v59  ;;  %v7386_v11 = vor.u32 %v7384_v20, %v7374_v59  ;;  %v7406_v38 = vrot.slane %v7404_v23, 1  ;;  %v7258_v40 = vsel %vm708_vm8, %v7255_v62, %v7257_v44  ;;  %v16182_v20 = vld [vmem:[#allocation63_spill] sm:$0xff] }
 0x458   : > { %6859 = vmatmul.mubr.bf16.gmra.mrb[252].mxu0 %v14407_v25  ;;  %v7402_v18 = vor.u32 %v7400_v15, %v7390_v48  ;;  %v7420_v63 = vshll.u32 %v7258_v40, 16  ;;  %v7211_v4 = vsel %vm16180_vm11, %v14026_v61, %v7168_v0  ;;  %v7432_v39 = vshrl.u32 %v7258_v40, 16  ;;  %v16184_v15 = vld [vmem:[#allocation52_spill] sm:$0xff] }
 0x459   : > { %6866 = vmatprep.mubr.bf16.mxu0 %v16163_v27  ;;  %v14560_v36 = vsel %vm1250_vm12, %v7386_v11, %v7390_v48  ;;  %v7418_v33 = vor.u32 %v7416_v50, %v7406_v38  ;;  %v7259_v10 = vrot.slane %v7211_v4, 7  ;;  %vm16183_vm5 = vcmp.ne.s16.totalorder %v16182_v20, 0  ;;  %v16186_v11 = vld [vmem:[#allocation43_spill] sm:$0xff] }
 0x45a   : > { %v7212_v62 = vsel %vm16183_vm5, %v16181_v35, %v7170_v49  ;;  %v14566_v25 = vsel %vm1250_vm12, %v7402_v18, %v7406_v38  ;;  %v7422_v30 = vrot.slane %v7420_v63, 1  ;;  %v7172_v61 = vsel %vm1396_vm10, %v7169_v55, %v7171_v17  ;;  %v9142_v27 = vpop.f32.mrb[160].mxu0 }
 0x45b   : > { %v7261_v21 = vrot.slane %v7212_v62, 7  ;;  %v7260_v22 = vsel %vm708_vm8, %v7257_v44, %v7259_v10  ;;  %v7213_v23 = vsel %vm1387_vm13, %v16184_v15, %v7172_v61  ;;  %v7174_v48 = vsel %vm1396_vm10, %v7171_v17, %v7173_v37  ;;  %7881 = vmatmul.mubr.bf16.gmra.mrb[156].mxu1 %v14437_v56  ;;  %v9143_v55 = vpop.f32.mrb[161].mxu0  ;;  %v16187_v56 = vld [vmem:[#allocation29_spill] sm:$0xff] }
 0x45c   : > { %v7176_v34 = vsel %vm1396_vm10, %v7173_v37, %v7175_v54  ;;  %v14589_v44 = vsel %vm1250_vm12, %v7418_v33, %v7422_v30  ;;  %v7434_v50 = vor.u32 %v7432_v39, %v7422_v30  ;;  %v7436_v0 = vshll.u32 %v7260_v22, 16  ;;  %7888 = vmatprep.mubr.bf16.mxu1 %v16186_v11  ;;  %v9145_v17 = vpop.f32.mrb[162].mxu0  ;;  %v10408_v33 = vld [vmem:[#allocation2 + $0x68] sm:$0xff] }
 0x45d   : > { %v7262_v49 = vsel %vm708_vm8, %v7259_v10, %v7261_v21  ;;  %v14593_v8 = vadd.f32 %v9143_v55, %v9142_v27  ;;  %v7448_v38 = vshrl.u32 %v7260_v22, 16  ;;  %v7263_v45 = vrot.slane %v7213_v23, 7  ;;  %v9146_v18 = vpop.f32.mrb[163].mxu0  ;;  %v16190_v39 = vld [vmem:[#allocation66_spill] sm:$0xff] }
 0x45e   : > { %v7452_v40 = vshll.u32 %v7262_v49, 16  ;;  %v7438_v37 = vrot.slane %v7436_v0, 1  ;;  %v7464_v63 = vshrl.u32 %v7262_v49, 16  ;;  %vm16189_vm13 = vcmp.ne.s16.totalorder %v16188_v57, 0  ;;  %v16195_v57 = vld [vmem:[#allocation45_spill] sm:$0xff] }
 0x45f   : > { %v7214_v4 = vsel %vm16189_vm13, %v16187_v56, %v7174_v48  ;;  %vm16191_vm2 = vcmp.ne.s16.totalorder %v16190_v39, 0  ;;  %v14600_v10 = vadd.f32 %v9146_v18, %v9145_v17  ;;  %v7264_v62 = vsel %vm708_vm8, %v7261_v21, %v7263_v45  ;;  %v16192_v17 = vld [vmem:[#allocation67_spill] sm:$0xff] }
 0x460   : > { %v7215_v35 = vsel %vm16191_vm2, %v10408_v33, %v7176_v34  ;;  %v7454_v20 = vrot.slane %v7452_v40, 1  ;;  %v7265_v30 = vrot.slane %v7214_v4, 7  ;;  %6867 = vmatmul.mubr.bf16.gmra.mrb[0].mxu0 %v14441_v6  ;;  %v14605_v61 = vsel %vm1250_vm12, %v7434_v50, %v7438_v37 }
 0x461   : > { %v7450_v27 = vor.u32 %v7448_v38, %v7438_v37  ;;  %v7468_v22 = vshll.u32 %v7264_v62, 16  ;;  %v7480_v15 = vshrl.u32 %v7264_v62, 16  ;;  %6874 = vmatprep.mubr.bf16.mxu0 %v16178_v1  ;;  %v7267_v48 = vrot.slane %v7215_v35, 7  ;;  %v14618_v1 = vld [vmem:[#allocation2 + $0x70] sm:$0xff]  ;;  %v14640_v35 = vld [vmem:[#allocation2 + $0x78] sm:$0xff] }
 0x462   : > { %v7466_v59 = vor.u32 %v7464_v63, %v7454_v20  ;;  %v7266_v23 = vsel %vm708_vm8, %v7263_v45, %v7265_v30  ;;  %v7178_v21 = vsel %vm1396_vm10, %v7175_v54, %v7177_v58  ;;  %v9148_v0 = vpop.f32.mrb[164].mxu0  ;;  %vm16193_vm0 = vcmp.ne.s16.totalorder %v16192_v17, 0 }
 0x463   : > { %v14615_v6 = vsel %vm1250_vm12, %v7450_v27, %v7454_v20  ;;  %v7470_v34 = vrot.slane %v7468_v22, 1  ;;  %v7484_v55 = vshll.u32 %v7266_v23, 16  ;;  %v7496_v50 = vshrl.u32 %v7266_v23, 16  ;;  %7889 = vmatmul.mubr.bf16.gmra.mrb[160].mxu1 %v14454_v51  ;;  %v9149_v45 = vpop.f32.mrb[165].mxu0  ;;  %v16197_v23 = vld [vmem:[#allocation75_spill] sm:$0xff] }
 0x464   : > { %v7268_v49 = vsel %vm708_vm8, %v7265_v30, %v7267_v48  ;;  %v7216_v38 = vsel %vm16193_vm0, %v14618_v1, %v7178_v21  ;;  %v7180_v13 = vsel %vm1396_vm10, %v7177_v58, %v7179_v28  ;;  %v16194_v54 = vrot.slane %v14380_v3, 1  ;;  %7896 = vmatprep.mubr.bf16.mxu1 %v16195_v57  ;;  %v9151_v58 = vpop.f32.mrb[166].mxu0 }
 0x465   : > { %v14635_v18 = vsel %vm1250_vm12, %v7466_v59, %v7470_v34  ;;  %v7482_v37 = vor.u32 %v7480_v15, %v7470_v34  ;;  %v7486_v63 = vrot.slane %v7484_v55, 1  ;;  %v7500_v56 = vshll.u32 %v7268_v49, 16  ;;  %v10411_v59 = vld [vmem:[#allocation2 + $0x80] sm:$0xff] }
 0x466   : > { %v7182_v40 = vsel %vm1396_vm10, %v7179_v28, %v16194_v54  ;;  %v14638_v4 = vadd.f32 %v9149_v45, %v9148_v0  ;;  %v7269_v33 = vrot.slane %v7216_v38, 7  ;;  %v7512_v39 = vshrl.u32 %v7268_v49, 16  ;;  %v9152_v28 = vpop.f32.mrb[167].mxu0 }
 0x467   : > { %v7217_v51 = vsel %vm1391_vm4, %v14640_v35, %v7180_v13  ;;  %v14646_v20 = vsel %vm1250_vm12, %v7482_v37, %v7486_v63  ;;  %v7498_v62 = vor.u32 %v7496_v50, %v7486_v63  ;;  %v7502_v30 = vrot.slane %v7500_v56, 1  ;;  %v10412_v37 = vld [vmem:[#allocation2 + $0x88] sm:$0xff] }
 0x468   : > { %v7271_v27 = vrot.slane %v7217_v51, 7  ;;  %v14648_v22 = vadd.f32 %v9152_v28, %v9151_v58  ;;  %v7270_v15 = vsel %vm708_vm8, %v7267_v48, %v7269_v33  ;;  %vm16198_vm3 = vcmp.ne.s16.totalorder %v16197_v23, 0  ;;  %6875 = vmatmul.mubr.bf16.gmra.mrb[4].mxu0 %v14424_v5  ;;  %v16201_v5 = vld [vmem:[#allocation76_spill] sm:$0xff]  ;;  %v16206_v23 = vld [vmem:[#allocation50_spill] sm:$0xff] }
 0x469   : > { %v7218_v21 = vsel %vm16198_vm3, %v10411_v59, %v7182_v40  ;;  %v16199_v34 = vrot.slane %v14388_v12, 1  ;;  %v16200_v55 = vmov %v16194_v54  ;;  %v14660_v50 = vsel %vm1250_vm12, %v7498_v62, %v7502_v30  ;;  %6882 = vmatprep.mubr.bf16.mxu0 %v16186_v11 }
 0x46a   : > { %v7514_v49 = vor.u32 %v7512_v39, %v7502_v30  ;;  %v7516_v17 = vshll.u32 %v7270_v15, 16  ;;  %v7272_v38 = vsel %vm708_vm8, %v7269_v33, %v7271_v27  ;;  %v7495_v48 = vsel %vm1250_vm12, %v14443_v19, %v14465_v42  ;;  %v16210_v19 = vld [vmem:[#allocation78_spill] sm:$0xff] }
 0x46b   : > { %v7184_v0 = vsel %vm1396_vm10, %v16200_v55, %v16199_v34  ;;  %v7528_v13 = vshrl.u32 %v7270_v15, 16  ;;  %v7532_v54 = vshll.u32 %v7272_v38, 16  ;;  %v7273_v3 = vrot.slane %v7218_v21, 7  ;;  %7897 = vmatmul.mubr.bf16.gmra.mrb[164].mxu1 %v7495_v48  ;;  %v9154_v62 = vpop.f32.mrb[168].mxu0 }
 0x46c   : > { %v7518_v40 = vrot.slane %v7516_v17, 1  ;;  %v7544_v45 = vshrl.u32 %v7272_v38, 16  ;;  %vm16202_vm4 = vcmp.ne.s16.totalorder %v16201_v5, 0  ;;  %v16203_v56 = vrot.slane %v14491_v43, 1  ;;  %7904 = vmatprep.mubr.bf16.mxu1 %v16206_v23  ;;  %v9155_v21 = vpop.f32.mrb[169].mxu0 }
 0x46d   : > { %v7219_v63 = vsel %vm16202_vm4, %v10412_v37, %v7184_v0  ;;  %v16204_v58 = vmov %v16199_v34  ;;  %v7534_v11 = vrot.slane %v7532_v54, 1  ;;  %v7274_v39 = vsel %vm708_vm8, %v7271_v27, %v7273_v3  ;;  %v9157_v38 = vpop.f32.mrb[170].mxu0  ;;  %v16207_v37 = vld [vmem:[#allocation33_spill] sm:$0xff] }
 0x46e   : > { %v7186_v33 = vsel %vm1396_vm10, %v16204_v58, %v16203_v56  ;;  %v7275_v24 = vrot.slane %v7219_v63, 7  ;;  %v7508_v28 = vshll.u32 %v14460_v41, 16  ;;  %v14682_v30 = vsel %vm1250_vm12, %v7514_v49, %v7518_v40 }
 0x46f   : > { %v14678_v51 = vsel %vm1394_vm1, %v14388_v12, %v7186_v33  ;;  %v7530_v15 = vor.u32 %v7528_v13, %v7518_v40  ;;  %v7548_v59 = vshll.u32 %v7274_v39, 16  ;;  %v7546_v34 = vor.u32 %v7544_v45, %v7534_v11  ;;  %v16208_v13 = vld [vmem:[#allocation70_spill] sm:$0xff] }
 0x470   : > { %v7276_v27 = vsel %vm708_vm8, %v7273_v3, %v7275_v24  ;;  %v7560_v55 = vshrl.u32 %v7274_v39, 16  ;;  %v7277_v0 = vrot.slane %v14678_v51, 7  ;;  %v14687_v17 = vadd.f32 %v9155_v21, %v9154_v62  ;;  %v9158_v3 = vpop.f32.mrb[171].mxu0  ;;  %v16213_v21 = vld [vmem:[#allocation40_spill] sm:$0xff] }
 0x471   : > { %v14690_v48 = vsel %vm1250_vm12, %v7530_v15, %v7534_v11  ;;  %v7550_v54 = vrot.slane %v7548_v59, 1  ;;  %v7564_v49 = vshll.u32 %v7276_v27, 16  ;;  %v6497_v40 = vsel %vm1250_vm12, %v16208_v13, %v16207_v37  ;;  %v16211_v15 = vld [vmem:[#allocation27_spill] sm:$0xff] }
 0x472   : > { %v16209_v45 = vshrl.u32 %v14402_v60, 16  ;;  %v14701_v63 = vsel %vm708_vm8, %v7275_v24, %v7277_v0  ;;  %v7581_v56 = vshrl.u32 %v7276_v27, 16  ;;  %6883 = vmatmul.mubr.bf16.gmra.mrb[8].mxu0 %v6497_v40  ;;  %v14703_v58 = vadd.f32 %v9158_v3, %v9157_v38  ;;  %v16212_v24 = vld [vmem:[#allocation46_spill] sm:$0xff] }
 0x473   : > { %v14706_v33 = vsel %vm1250_vm12, %v7546_v34, %v7550_v54  ;;  %v7562_v11 = vor.u32 %v7560_v55, %v7550_v54  ;;  %v7566_v39 = vrot.slane %v7564_v49, 1  ;;  %v6506_v62 = vshrl.u32 %v16210_v19, 16  ;;  %6890 = vmatprep.mubr.bf16.mxu0 %v16195_v57 }
 0x474   : > { %v7506_v5 = vor.u32 %v16209_v45, %v14465_v42  ;;  %v6510_v60 = vshll.u32 %v16211_v15, 16  ;;  %v7510_v42 = vrot.slane %v7508_v28, 1  ;;  %v7585_v59 = vshll.u32 %v14701_v63, 16  ;;  %v16215_v28 = vld [vmem:[#allocation48_spill] sm:$0xff] }
 0x475   : > { %vm16214_vm8 = vcmp.ne.s16.totalorder %v16213_v21, 0  ;;  %v14717_v38 = vsel %vm1250_vm12, %v7562_v11, %v7566_v39  ;;  %v7583_v34 = vor.u32 %v7581_v56, %v7566_v39  ;;  %v6508_v55 = vor.u32 %v6506_v62, %v16207_v37 }
 0x476   : > { %v7132_v27 = vsel %vm16214_vm8, %v14445_v31, %v16212_v24  ;;  %v7511_v54 = vsel %vm1250_vm12, %v7506_v5, %v7510_v42  ;;  %v14721_v49 = vrot.slane %v7585_v59, 1  ;;  %v6512_v57 = vrot.slane %v6510_v60, 1 }
 0x477   : > { %7905 = vmatmul.mubr.bf16.gmra.mrb[168].mxu1 %v7511_v54  ;;  %v7520_v13 = vshrl.u32 %v14460_v41, 16  ;;  %v7524_v40 = vshll.u32 %v7132_v27, 16  ;;  %v9160_v45 = vpop.f32.mrb[172].mxu0  ;;  %vm16216_vm10 = vcmp.ne.s16.totalorder %v16059_v46, 0  ;;  %v7222_v11 = vshrl.u32 %v14388_v12, 16 }
 0x478   : > { %7912 = vmatprep.mubr.bf16.mxu1 %v16215_v28  ;;  %v14727_v31 = vsel %vm1250_vm12, %v7583_v34, %v14721_v49  ;;  %v4938_v37 = vsel %vm16216_vm10, %v14618_v1, %v14007_v47  ;;  %v9161_v5 = vpop.f32.mrb[173].mxu0  ;;  %v6513_v3 = vsel %vm1250_vm12, %v6508_v55, %v6512_v57  ;;  %v6522_v62 = vshrl.u32 %v16211_v15, 16  ;;  %v16217_v34 = vld [vmem:[#allocation30_spill] sm:$0xff] }
 0x479   : > { %v7522_v56 = vor.u32 %v7520_v13, %v7510_v42  ;;  %v14735_v39 = vadd.f32 %v9161_v5, %v9160_v45  ;;  %v9163_v41 = vpop.f32.mrb[174].mxu0  ;;  %v6526_v60 = vshll.u32 %v4938_v37, 16  ;;  %v7526_v59 = vrot.slane %v7524_v40, 1 }
 0x47a   : > { %6891 = vmatmul.mubr.bf16.gmra.mrb[12].mxu0 %v6513_v3  ;;  %v9164_v19 = vpop.f32.mrb[175].mxu0  ;;  %v6524_v47 = vor.u32 %v6522_v62, %v6512_v57  ;;  %v7224_v1 = vrot.slane %v7222_v11, 7  ;;  %v7536_v55 = vshrl.u32 %v7132_v27, 16  ;;  %v7225_v54 = vshll.u32 %v14388_v12, 16 }
 0x47b   : > { %6898 = vmatprep.mubr.bf16.mxu0 %v16206_v23  ;;  %v14739_v21 = vadd.f32 %v9164_v19, %v9163_v41  ;;  %v7527_v46 = vsel %vm1250_vm12, %v7522_v56, %v7526_v59  ;;  %v6528_v42 = vrot.slane %v6526_v60, 1  ;;  %vm16218_vm1 = vcmp.ne.s16.totalorder %v16071_v53, 0  ;;  %v16221_v60 = vld [vmem:[#allocation85_spill] sm:$0xff] }
 0x47c   : > { %v4939_v15 = vsel %vm16218_vm1, %v14640_v35, %v16212_v24  ;;  %v7538_v13 = vor.u32 %v7536_v55, %v7526_v59  ;;  %v7227_v40 = vor.u32 %v7225_v54, %v7224_v1  ;;  %v6538_v5 = vshrl.u32 %v4938_v37, 16  ;;  %v16219_v35 = vld [vmem:[#allocation73_spill] sm:$0xff] }
 0x47d   : > { %v6529_v23 = vsel %vm1250_vm12, %v6524_v47, %v6528_v42  ;;  %v6542_v3 = vshll.u32 %v4939_v15, 16  ;;  %vm16220_vm6 = vsmask.f32 256  ;;  %v6554_v47 = vshrl.u32 %v4939_v15, 16 }
 0x47e   : > { %v6540_v41 = vor.u32 %v6538_v5, %v6528_v42  ;;  %v7543_v53 = vsel %vm1250_vm12, %v7538_v13, %v14392_v52  ;;  %v7228_v24 = vsel %vm16220_vm6, %v16219_v35, %v7227_v40  ;;  %v16222_v52 = vld [vmem:[#allocation51_spill] sm:$0xff]  ;;  %vm16227_vm14 = vcmp.ne.s16.totalorder %v16085_v32, 0 }
 0x47f   : > { %7913 = vmatmul.mubr.bf16.gmra.mrb[172].mxu1 %v7527_v46  ;;  %v6544_v62 = vrot.slane %v6542_v3, 1  ;;  %v7577_v37 = vshll.u32 %v7228_v24, 16  ;;  %v6579_v55 = vshll.u32 %v16222_v52, 16  ;;  %v7597_v3 = vshrl.u32 %v7228_v24, 16 }
 0x480   : > { %7920 = vmatprep.mubr.bf16.mxu1 %v16217_v34  ;;  %v9166_v57 = vpop.f32.mrb[176].mxu0 }
 0x481   : > { %v9167_v45 = vpop.f32.mrb[177].mxu0  ;;  %v7579_v42 = vrot.slane %v7577_v37, 1  ;;  %v6556_v13 = vor.u32 %v6554_v47, %v6544_v62  ;;  %v6581_v15 = vrot.slane %v6579_v55, 1 }
 0x482   : > { %6899 = vmatmul.mubr.bf16.gmra.mrb[16].mxu0 %v6529_v23  ;;  %v14750_v56 = vadd.f32 %v9167_v45, %v9166_v57  ;;  %v9169_v27 = vpop.f32.mrb[178].mxu0  ;;  %v16223_v57 = vld [vmem:[#allocation81_spill] sm:$0xff] }
 0x483   : > { %6906 = vmatprep.mubr.bf16.mxu0 %v16215_v28  ;;  %v9170_v11 = vpop.f32.mrb[179].mxu0  ;;  %v6545_v28 = vsel %vm1250_vm12, %v6540_v41, %v6544_v62  ;;  %v7580_v45 = vsel %vm1250_vm12, %v16223_v57, %v7579_v42  ;;  %v16225_v41 = vld [vmem:[#allocation31_spill] sm:$0xff]  ;;  %v7599_v35 = vor.u32 %v7597_v3, %v7579_v42 }
 0x484   : > { %v14756_v19 = vadd.f32 %v9170_v11, %v9169_v27  ;;  %v16224_v27 = vld [vmem:[#allocation34_spill] sm:$0xff] }
 0x485   : > { %v6561_v11 = vsel %vm1250_vm12, %v6556_v13, %v16224_v27 }
 0x487   : > { %7921 = vmatmul.mubr.bf16.gmra.mrb[176].mxu1 %v7543_v53  ;;  %v6582_v53 = vsel %vm1250_vm12, %v16225_v41, %v6581_v15 }
 0x488   : > { %7928 = vmatprep.mubr.bf16.mxu1 %v16221_v60  ;;  %v16226_v60 = vrot.slane %v14388_v12, 7 }
 0x48a   : > { %6907 = vmatmul.mubr.bf16.gmra.mrb[20].mxu0 %v6545_v28  ;;  %v9172_v59 = vpop.f32.mrb[180].mxu0  ;;  %v7136_v37 = vsel %vm16227_vm14, %v14491_v43, %v16226_v60 }
 0x48b   : > { %6914 = vmatprep.mubr.bf16.mxu0 %v16217_v34  ;;  %v9173_v46 = vpop.f32.mrb[181].mxu0  ;;  %v7601_v34 = vshll.u32 %v7224_v1, 16  ;;  %v7593_v42 = vshll.u32 %v7136_v37, 16 }
 0x48c   : > { %v14762_v54 = vadd.f32 %v9173_v46, %v9172_v59  ;;  %v9175_v23 = vpop.f32.mrb[182].mxu0  ;;  %v7589_v46 = vshrl.u32 %v14432_v7, 16 }
 0x48d   : > { %v9176_v40 = vpop.f32.mrb[183].mxu0  ;;  %v7595_v32 = vrot.slane %v7593_v42, 1 }
 0x48e   : > { %v14767_v5 = vadd.f32 %v9176_v40, %v9175_v23  ;;  %v7591_v12 = vor.u32 %v7589_v46, %v14463_v2  ;;  %v7609_v46 = vshll.u32 %v7277_v0, 16 }
 0x48f   : > { %7929 = vmatmul.mubr.bf16.gmra.mrb[180].mxu1 %v14411_v9  ;;  %v7603_v9 = vrot.slane %v7601_v34, 1 }
 0x490   : > { %7936 = vmatprep.mubr.bf16.mxu1 %v7580_v45  ;;  %v7596_v43 = vsel %vm1250_vm12, %v7591_v12, %v7595_v32 }
 0x491   : > { %v7604_v59 = vsel %vm1250_vm12, %v7599_v35, %v7603_v9 }
 0x492   : > { %6915 = vmatmul.mubr.bf16.gmra.mrb[24].mxu0 %v6561_v11 }
 0x493   : > { %6922 = vmatprep.mubr.bf16.mxu0 %v6582_v53  ;;  %v9178_v62 = vpop.f32.mrb[184].mxu0 }
 0x494   : > { %v9179_v28 = vpop.f32.mrb[185].mxu0 }
 0x495   : > { %v14778_v24 = vadd.f32 %v9179_v28, %v9178_v62  ;;  %v9181_v1 = vpop.f32.mrb[186].mxu0 }
 0x496   : > { %v9182_v47 = vpop.f32.mrb[187].mxu0 }
 0x497   : > { %7937 = vmatmul.mubr.bf16.gmra.mrb[184].mxu1 %v14481_v26  ;;  %v14783_v52 = vadd.f32 %v9182_v47, %v9181_v1 }
 0x498   : > { %7944 = vmatprep.mubr.bf16.mxu1 %v7604_v59 }
 0x49a   : > { %6923 = vmatmul.mubr.bf16.gmra.mrb[28].mxu0 %v14489_v29 }
 0x49f   : > { %7945 = vmatmul.mubr.bf16.gmra.mrb[188].mxu1 %v7596_v43 }
 0x4a0   : > { %9790 = vmatprep.mubr.bf16.mxu1 %v14538_v14  ;;  %v9184_v26 = vpop.f32.mrb[188].mxu0 }
 0x4a1   : > { %v9185_v55 = vpop.f32.mrb[189].mxu0 }
 0x4a2   : > { %v14789_v23 = vadd.f32 %v9185_v55, %v9184_v26  ;;  %v9187_v13 = vpop.f32.mrb[190].mxu0 }
 0x4a3   : > { %v9188_v40 = vpop.f32.mrb[191].mxu0 }
 0x4a4   : > { %v14791_v7 = vadd.f32 %v9188_v40, %v9187_v13 }
 0x4a7   : > { %9791 = vmatmul.mubr.bf16.vlgmr.msra.gmra.mrb[96].mxu1 %v14551_v16 }
 0x4a8   : > { %9794 = vmatprep.mubr.bf16.mxu1 %v14560_v36 }
 0x4aa   : > { %v9190_v2 = vpop.f32.mrb[192].mxu0 }
 0x4ab   : > { %v9191_v29 = vpop.f32.mrb[193].mxu0 }
 0x4ac   : > { %v14795_v57 = vadd.f32 %v9191_v29, %v9190_v2  ;;  %v9193_v45 = vpop.f32.mrb[194].mxu0 }
 0x4ad   : > { %v9194_v14 = vpop.f32.mrb[195].mxu0 }
 0x4ae   : > { %v14799_v15 = vadd.f32 %v9194_v14, %v9193_v45 }
 0x4af   : > { %9795 = vmatmul.mubr.bf16.gmra.mrb[100].mxu1 %v14566_v25 }
 0x4b0   : > { %9798 = vmatprep.mubr.bf16.mxu1 %v14589_v44 }
 0x4b2   : > { %v9196_v3 = vpop.f32.mrb[196].mxu0 }
 0x4b3   : > { %v9197_v34 = vpop.f32.mrb[197].mxu0 }
 0x4b4   : > { %v14801_v27 = vadd.f32 %v9197_v34, %v9196_v3  ;;  %v9199_v11 = vpop.f32.mrb[198].mxu0 }
 0x4b5   : > { %v9200_v16 = vpop.f32.mrb[199].mxu0 }
 0x4b6   : > { %v14805_v36 = vadd.f32 %v9200_v16, %v9199_v11 }
 0x4b7   : > { %9799 = vmatmul.mubr.bf16.gmra.mrb[104].mxu1 %v14605_v61 }
 0x4b8   : > { %9802 = vmatprep.mubr.bf16.mxu1 %v14615_v6 }
 0x4bc   : > { %v9202_v41 = vpop.f32.mrb[200].mxu0 }
 0x4bd   : > { %v9203_v53 = vpop.f32.mrb[201].mxu0 }
 0x4be   : > { %v14808_v25 = vadd.f32 %v9203_v53, %v9202_v41  ;;  %v9205_v44 = vpop.f32.mrb[202].mxu0 }
 0x4bf   : > { %9803 = vmatmul.mubr.bf16.gmra.mrb[108].mxu1 %v14635_v18  ;;  %v9206_v35 = vpop.f32.mrb[203].mxu0 }
 0x4c0   : > { %9806 = vmatprep.mubr.bf16.mxu1 %v14646_v20  ;;  %v14811_v62 = vadd.f32 %v9206_v35, %v9205_v44 }
 0x4c5   : > { %v9208_v61 = vpop.f32.mrb[204].mxu0 }
 0x4c6   : > { %v9209_v6 = vpop.f32.mrb[205].mxu0 }
 0x4c7   : > { %9807 = vmatmul.mubr.bf16.gmra.mrb[112].mxu1 %v14660_v50  ;;  %v14815_v9 = vadd.f32 %v9209_v6, %v9208_v61  ;;  %v9211_v60 = vpop.f32.mrb[206].mxu0 }
 0x4c8   : > { %9810 = vmatprep.mubr.bf16.mxu1 %v14682_v30  ;;  %v9212_v37 = vpop.f32.mrb[207].mxu0  ;;  %v7605_v30 = vshrl.u32 %v14701_v63, 16 }
 0x4c9   : > { %v14817_v28 = vadd.f32 %v9212_v37, %v9211_v60 }
 0x4cf   : > { %9811 = vmatmul.mubr.bf16.gmra.mrb[116].mxu1 %v14690_v48  ;;  %v9214_v18 = vpop.f32.mrb[208].mxu0  ;;  %v7607_v48 = vor.u32 %v7605_v30, %v14721_v49 }
 0x4d0   : > { %9814 = vmatprep.mubr.bf16.mxu1 %v14706_v33  ;;  %v9215_v20 = vpop.f32.mrb[209].mxu0  ;;  %v7611_v33 = vrot.slane %v7609_v46, 1 }
 0x4d1   : > { %v14821_v1 = vadd.f32 %v9215_v20, %v9214_v18  ;;  %v9217_v59 = vpop.f32.mrb[210].mxu0 }
 0x4d2   : > { %v9218_v50 = vpop.f32.mrb[211].mxu0  ;;  %v7612_v12 = vsel %vm1250_vm12, %v7607_v48, %v7611_v33 }
 0x4d3   : > { %v14823_v47 = vadd.f32 %v9218_v50, %v9217_v59 }
 0x4d7   : > { %9815 = vmatmul.mubr.bf16.gmra.mrb[120].mxu1 %v14717_v38 }
 0x4d8   : > { %9818 = vmatprep.mubr.bf16.mxu1 %v14727_v31  ;;  %v9220_v42 = vpop.f32.mrb[212].mxu0 }
 0x4d9   : > { %v9221_v32 = vpop.f32.mrb[213].mxu0 }
 0x4da   : > { %v14832_v43 = vadd.f32 %v9221_v32, %v9220_v42  ;;  %v9223_v26 = vpop.f32.mrb[214].mxu0 }
 0x4db   : > { %v9224_v55 = vpop.f32.mrb[215].mxu0 }
 0x4dc   : > { %v14834_v38 = vadd.f32 %v9224_v55, %v9223_v26 }
 0x4df   : > { %9819 = vmatmul.mubr.bf16.gmra.mrb[124].mxu1 %v7612_v12 }
 0x4e1   : > { %v9226_v31 = vpop.f32.mrb[216].mxu0 }
 0x4e2   : > { %v9227_v13 = vpop.f32.mrb[217].mxu0 }
 0x4e3   : > { %v14836_v63 = vadd.f32 %v9227_v13, %v9226_v31  ;;  %v9229_v51 = vpop.f32.mrb[218].mxu0 }
 0x4e4   : > { %v9230_v0 = vpop.f32.mrb[219].mxu0 }
 0x4e5   : > { %v14838_v40 = vadd.f32 %v9230_v0, %v9229_v51 }
 0x4e9   : > { %v9232_v49 = vpop.f32.mrb[220].mxu0 }
 0x4ea   : > { %v9233_v2 = vpop.f32.mrb[221].mxu0 }
 0x4eb   : > { %v14840_v29 = vadd.f32 %v9233_v2, %v9232_v49  ;;  %v9235_v45 = vpop.f32.mrb[222].mxu0 }
 0x4ec   : > { %v9236_v14 = vpop.f32.mrb[223].mxu0 }
 0x4ed   : > { %v14842_v3 = vadd.f32 %v9236_v14, %v9235_v45 }
 0x4f3   : > { %v9278_v34 = vpop.f32.mrb[224].mxu0 }
 0x4f4   : > { %v9279_v11 = vpop.f32.mrb[225].mxu0 }
 0x4f5   : > { %v9280_v16 = vadd.f32 %v9279_v11, %v9278_v34  ;;  %v9281_v41 = vpop.f32.mrb[226].mxu0 }
 0x4f6   : > { %v9282_v53 = vpop.f32.mrb[227].mxu0  ;;  %v9414_v35 = vpop.f32.mrb[128].mxu1 }
 0x4f7   : > { %v9953_v44 = vadd.f32 %v9280_v16, %v14593_v8  ;;  %v9283_v61 = vadd.f32 %v9282_v53, %v9281_v41  ;;  %v9415_v6 = vpop.f32.mrb[129].mxu1 }
 0x4f8   : > { %v9416_v60 = vadd.f32 %v9415_v6, %v9414_v35  ;;  %v9417_v18 = vpop.f32.mrb[130].mxu1 }
 0x4f9   : > { %v9959_v37 = vadd.f32 %v9283_v61, %v14600_v10  ;;  %v9418_v20 = vpop.f32.mrb[131].mxu1 }
 0x4fa   : > { %v9419_v59 = vadd.f32 %v9418_v20, %v9417_v18  ;;  %v14846_v30 = vadd.f32 %v9953_v44, %v9416_v60 }
 0x4fb   : > { %v9284_v50 = vpop.f32.mrb[228].mxu0 }
 0x4fc   : > { %v9285_v46 = vpop.f32.mrb[229].mxu0  ;;  %v14848_v42 = vadd.f32 %v9959_v37, %v9419_v59 }
 0x4fd   : > { %v9286_v48 = vadd.f32 %v9285_v46, %v9284_v50  ;;  %v9287_v33 = vpop.f32.mrb[230].mxu0 }
 0x4fe   : > { %v9288_v12 = vpop.f32.mrb[231].mxu0  ;;  %v9420_v32 = vpop.f32.mrb[132].mxu1 }
 0x4ff   : > { %v9950_v8 = vadd.f32 %v9286_v48, %v14638_v4  ;;  %v9289_v26 = vadd.f32 %v9288_v12, %v9287_v33  ;;  %v9421_v55 = vpop.f32.mrb[133].mxu1 }
 0x500   : > { %v9422_v31 = vadd.f32 %v9421_v55, %v9420_v32  ;;  %v9423_v13 = vpop.f32.mrb[134].mxu1 }
 0x501   : > { %v9956_v10 = vadd.f32 %v9289_v26, %v14648_v22  ;;  %v9424_v51 = vpop.f32.mrb[135].mxu1 }
 0x502   : > { %v9425_v0 = vadd.f32 %v9424_v51, %v9423_v13  ;;  %v14852_v2 = vadd.f32 %v9950_v8, %v9422_v31 }
 0x503   : > { %v9290_v49 = vpop.f32.mrb[232].mxu0 }
 0x504   : > { %v9291_v45 = vpop.f32.mrb[233].mxu0  ;;  %v14854_v11 = vadd.f32 %v9956_v10, %v9425_v0 }
 0x505   : > { %v9292_v14 = vadd.f32 %v9291_v45, %v9290_v49  ;;  %v9293_v34 = vpop.f32.mrb[234].mxu0 }
 0x506   : > { %v9294_v16 = vpop.f32.mrb[235].mxu0  ;;  %v9426_v41 = vpop.f32.mrb[136].mxu1 }
 0x507   : > { %v9965_v4 = vadd.f32 %v9292_v14, %v14687_v17  ;;  %v9295_v53 = vadd.f32 %v9294_v16, %v9293_v34  ;;  %v9427_v44 = vpop.f32.mrb[137].mxu1 }
 0x508   : > { %v9428_v35 = vadd.f32 %v9427_v44, %v9426_v41  ;;  %v9429_v61 = vpop.f32.mrb[138].mxu1 }
 0x509   : > { %v9971_v22 = vadd.f32 %v9295_v53, %v14703_v58  ;;  %v9430_v6 = vpop.f32.mrb[139].mxu1 }
 0x50a   : > { %v9431_v60 = vadd.f32 %v9430_v6, %v9429_v61  ;;  %v14858_v18 = vadd.f32 %v9965_v4, %v9428_v35 }
 0x50b   : > { %v9296_v37 = vpop.f32.mrb[236].mxu0 }
 0x50c   : > { %v9297_v20 = vpop.f32.mrb[237].mxu0  ;;  %v14860_v46 = vadd.f32 %v9971_v22, %v9431_v60 }
 0x50d   : > { %v9298_v59 = vadd.f32 %v9297_v20, %v9296_v37  ;;  %v9299_v50 = vpop.f32.mrb[238].mxu0 }
 0x50e   : > { %v9300_v48 = vpop.f32.mrb[239].mxu0  ;;  %v9432_v33 = vpop.f32.mrb[140].mxu1 }
 0x50f   : > { %v9962_v17 = vadd.f32 %v9298_v59, %v14735_v39  ;;  %v9301_v12 = vadd.f32 %v9300_v48, %v9299_v50  ;;  %v9433_v8 = vpop.f32.mrb[141].mxu1 }
 0x510   : > { %v9434_v32 = vadd.f32 %v9433_v8, %v9432_v33  ;;  %v9435_v26 = vpop.f32.mrb[142].mxu1 }
 0x511   : > { %v9968_v58 = vadd.f32 %v9301_v12, %v14739_v21  ;;  %v9436_v55 = vpop.f32.mrb[143].mxu1 }
 0x512   : > { %v9437_v31 = vadd.f32 %v9436_v55, %v9435_v26  ;;  %v14864_v13 = vadd.f32 %v9962_v17, %v9434_v32 }
 0x513   : > { %v9302_v10 = vpop.f32.mrb[240].mxu0 }
 0x514   : > { %v9303_v51 = vpop.f32.mrb[241].mxu0  ;;  %v14866_v45 = vadd.f32 %v9968_v58, %v9437_v31 }
 0x515   : > { %v9304_v0 = vadd.f32 %v9303_v51, %v9302_v10  ;;  %v9305_v49 = vpop.f32.mrb[242].mxu0 }
 0x516   : > { %v9306_v14 = vpop.f32.mrb[243].mxu0  ;;  %v9438_v34 = vpop.f32.mrb[144].mxu1 }
 0x517   : > { %v9977_v39 = vadd.f32 %v9304_v0, %v14750_v56  ;;  %v9307_v16 = vadd.f32 %v9306_v14, %v9305_v49  ;;  %v9439_v4 = vpop.f32.mrb[145].mxu1 }
 0x518   : > { %v9440_v41 = vadd.f32 %v9439_v4, %v9438_v34  ;;  %v9441_v53 = vpop.f32.mrb[146].mxu1 }
 0x519   : > { %v9983_v21 = vadd.f32 %v9307_v16, %v14756_v19  ;;  %v9442_v44 = vpop.f32.mrb[147].mxu1 }
 0x51a   : > { %v9443_v35 = vadd.f32 %v9442_v44, %v9441_v53  ;;  %v14870_v61 = vadd.f32 %v9977_v39, %v9440_v41 }
 0x51b   : > { %v9308_v22 = vpop.f32.mrb[244].mxu0 }
 0x51c   : > { %v9309_v6 = vpop.f32.mrb[245].mxu0  ;;  %v14872_v20 = vadd.f32 %v9983_v21, %v9443_v35 }
 0x51d   : > { %v9310_v60 = vadd.f32 %v9309_v6, %v9308_v22  ;;  %v9311_v37 = vpop.f32.mrb[246].mxu0 }
 0x51e   : > { %v9312_v59 = vpop.f32.mrb[247].mxu0  ;;  %v9444_v50 = vpop.f32.mrb[148].mxu1 }
 0x51f   : > { %v9974_v56 = vadd.f32 %v9310_v60, %v14762_v54  ;;  %v9313_v48 = vadd.f32 %v9312_v59, %v9311_v37  ;;  %v9445_v17 = vpop.f32.mrb[149].mxu1 }
 0x520   : > { %v9446_v33 = vadd.f32 %v9445_v17, %v9444_v50  ;;  %v9447_v12 = vpop.f32.mrb[150].mxu1 }
 0x521   : > { %v9980_v19 = vadd.f32 %v9313_v48, %v14767_v5  ;;  %v9448_v8 = vpop.f32.mrb[151].mxu1 }
 0x522   : > { %v9449_v32 = vadd.f32 %v9448_v8, %v9447_v12  ;;  %v14876_v26 = vadd.f32 %v9974_v56, %v9446_v33 }
 0x523   : > { %v9314_v58 = vpop.f32.mrb[248].mxu0 }
 0x524   : > { %v9315_v55 = vpop.f32.mrb[249].mxu0  ;;  %v14878_v51 = vadd.f32 %v9980_v19, %v9449_v32 }
 0x525   : > { %v9316_v31 = vadd.f32 %v9315_v55, %v9314_v58  ;;  %v9317_v10 = vpop.f32.mrb[250].mxu0 }
 0x526   : > { %v9318_v0 = vpop.f32.mrb[251].mxu0  ;;  %v9450_v49 = vpop.f32.mrb[152].mxu1 }
 0x527   : > { %v9989_v54 = vadd.f32 %v9316_v31, %v14778_v24  ;;  %v9319_v14 = vadd.f32 %v9318_v0, %v9317_v10  ;;  %v9451_v39 = vpop.f32.mrb[153].mxu1 }
 0x528   : > { %v9452_v34 = vadd.f32 %v9451_v39, %v9450_v49  ;;  %v9453_v16 = vpop.f32.mrb[154].mxu1 }
 0x529   : > { %v9995_v5 = vadd.f32 %v9319_v14, %v14783_v52  ;;  %v9454_v4 = vpop.f32.mrb[155].mxu1 }
 0x52a   : > { %v9455_v41 = vadd.f32 %v9454_v4, %v9453_v16  ;;  %v14882_v53 = vadd.f32 %v9989_v54, %v9452_v34 }
 0x52b   : > { %v9320_v21 = vpop.f32.mrb[252].mxu0 }
 0x52c   : > { %v9321_v44 = vpop.f32.mrb[253].mxu0  ;;  %v14884_v6 = vadd.f32 %v9995_v5, %v9455_v41 }
 0x52d   : > { %v9322_v35 = vadd.f32 %v9321_v44, %v9320_v21  ;;  %v9323_v22 = vpop.f32.mrb[254].mxu0 }
 0x52e   : > { %v9324_v60 = vpop.f32.mrb[255].mxu0  ;;  %v9456_v37 = vpop.f32.mrb[156].mxu1 }
 0x52f   : > { %v9986_v24 = vadd.f32 %v9322_v35, %v14789_v23  ;;  %v9325_v59 = vadd.f32 %v9324_v60, %v9323_v22  ;;  %v9457_v56 = vpop.f32.mrb[157].mxu1 }
 0x530   : > { %v9458_v50 = vadd.f32 %v9457_v56, %v9456_v37  ;;  %v9459_v48 = vpop.f32.mrb[158].mxu1 }
 0x531   : > { %v9992_v52 = vadd.f32 %v9325_v59, %v14791_v7  ;;  %v9460_v17 = vpop.f32.mrb[159].mxu1 }
 0x532   : > { %v9461_v33 = vadd.f32 %v9460_v17, %v9459_v48  ;;  %v14888_v12 = vadd.f32 %v9986_v24, %v9458_v50 }
 0x533   : > { %v9326_v19 = vpop.f32.mrb[0].mxu0 }
 0x534   : > { %v9327_v8 = vpop.f32.mrb[1].mxu0  ;;  %v14890_v55 = vadd.f32 %v9992_v52, %v9461_v33 }
 0x535   : > { %v9328_v32 = vadd.f32 %v9327_v8, %v9326_v19  ;;  %v9329_v58 = vpop.f32.mrb[2].mxu0 }
 0x536   : > { %v9330_v31 = vpop.f32.mrb[3].mxu0  ;;  %v9462_v10 = vpop.f32.mrb[160].mxu1 }
 0x537   : > { %v10001_v23 = vadd.f32 %v9328_v32, %v14795_v57  ;;  %v9331_v0 = vadd.f32 %v9330_v31, %v9329_v58  ;;  %v9463_v54 = vpop.f32.mrb[161].mxu1 }
 0x538   : > { %v9464_v49 = vadd.f32 %v9463_v54, %v9462_v10  ;;  %v9465_v14 = vpop.f32.mrb[162].mxu1 }
 0x539   : > { %v10007_v7 = vadd.f32 %v9331_v0, %v14799_v15  ;;  %v9466_v39 = vpop.f32.mrb[163].mxu1 }
 0x53a   : > { %v9467_v34 = vadd.f32 %v9466_v39, %v9465_v14  ;;  %v14894_v16 = vadd.f32 %v10001_v23, %v9464_v49 }
 0x53b   : > { %v9332_v5 = vpop.f32.mrb[4].mxu0 }
 0x53c   : > { %v9333_v4 = vpop.f32.mrb[5].mxu0  ;;  %v14896_v44 = vadd.f32 %v10007_v7, %v9467_v34 }
 0x53d   : > { %v9334_v41 = vadd.f32 %v9333_v4, %v9332_v5  ;;  %v9335_v21 = vpop.f32.mrb[6].mxu0 }
 0x53e   : > { %v9336_v35 = vpop.f32.mrb[7].mxu0  ;;  %v9468_v22 = vpop.f32.mrb[164].mxu1 }
 0x53f   : > { %v9998_v57 = vadd.f32 %v9334_v41, %v14801_v27  ;;  %v9337_v60 = vadd.f32 %v9336_v35, %v9335_v21  ;;  %v9469_v24 = vpop.f32.mrb[165].mxu1 }
 0x540   : > { %v9470_v37 = vadd.f32 %v9469_v24, %v9468_v22  ;;  %v9471_v59 = vpop.f32.mrb[166].mxu1 }
 0x541   : > { %v10004_v15 = vadd.f32 %v9337_v60, %v14805_v36  ;;  %v9472_v56 = vpop.f32.mrb[167].mxu1 }
 0x542   : > { %v9473_v50 = vadd.f32 %v9472_v56, %v9471_v59  ;;  %v14900_v48 = vadd.f32 %v9998_v57, %v9470_v37 }
 0x544   : > { %v14902_v8 = vadd.f32 %v10004_v15, %v9473_v50 }
 0x545   : > { %v9338_v52 = vpop.f32.mrb[8].mxu0 }
 0x546   : > { %v9339_v17 = vpop.f32.mrb[9].mxu0 }
 0x547   : > { %v9340_v33 = vadd.f32 %v9339_v17, %v9338_v52  ;;  %v9341_v19 = vpop.f32.mrb[10].mxu0 }
 0x548   : > { %v9342_v32 = vpop.f32.mrb[11].mxu0 }
 0x549   : > { %v10013_v27 = vadd.f32 %v9340_v33, %v14808_v25  ;;  %v9343_v31 = vadd.f32 %v9342_v32, %v9341_v19 }
 0x54a   : > { %v9474_v58 = vpop.f32.mrb[168].mxu1 }
 0x54b   : > { %v9475_v23 = vpop.f32.mrb[169].mxu1  ;;  %v10019_v36 = vadd.f32 %v9343_v31, %v14811_v62 }
 0x54c   : > { %v9476_v10 = vadd.f32 %v9475_v23, %v9474_v58  ;;  %v9477_v0 = vpop.f32.mrb[170].mxu1 }
 0x54d   : > { %v9478_v54 = vpop.f32.mrb[171].mxu1  ;;  %v9344_v7 = vpop.f32.mrb[12].mxu0 }
 0x54e   : > { %v9479_v49 = vadd.f32 %v9478_v54, %v9477_v0  ;;  %v14906_v14 = vadd.f32 %v10013_v27, %v9476_v10  ;;  %v9345_v39 = vpop.f32.mrb[13].mxu0 }
 0x54f   : > { %v9346_v34 = vadd.f32 %v9345_v39, %v9344_v7  ;;  %v9347_v5 = vpop.f32.mrb[14].mxu0 }
 0x550   : > { %v14908_v4 = vadd.f32 %v10019_v36, %v9479_v49  ;;  %v9348_v41 = vpop.f32.mrb[15].mxu0 }
 0x551   : > { %v10010_v25 = vadd.f32 %v9346_v34, %v14815_v9  ;;  %v9349_v35 = vadd.f32 %v9348_v41, %v9347_v5 }
 0x552   : > { %v9480_v21 = vpop.f32.mrb[172].mxu1 }
 0x553   : > { %v9481_v57 = vpop.f32.mrb[173].mxu1  ;;  %v10016_v62 = vadd.f32 %v9349_v35, %v14817_v28 }
 0x554   : > { %v9482_v22 = vadd.f32 %v9481_v57, %v9480_v21  ;;  %v9483_v60 = vpop.f32.mrb[174].mxu1 }
 0x555   : > { %v9484_v24 = vpop.f32.mrb[175].mxu1  ;;  %v9350_v15 = vpop.f32.mrb[16].mxu0 }
 0x556   : > { %v9485_v37 = vadd.f32 %v9484_v24, %v9483_v60  ;;  %v14912_v59 = vadd.f32 %v10010_v25, %v9482_v22  ;;  %v9351_v56 = vpop.f32.mrb[17].mxu0 }
 0x557   : > { %v9352_v50 = vadd.f32 %v9351_v56, %v9350_v15  ;;  %v9353_v52 = vpop.f32.mrb[18].mxu0 }
 0x558   : > { %v14914_v17 = vadd.f32 %v10016_v62, %v9485_v37  ;;  %v9354_v33 = vpop.f32.mrb[19].mxu0 }
 0x559   : > { %v10025_v9 = vadd.f32 %v9352_v50, %v14821_v1  ;;  %v9355_v32 = vadd.f32 %v9354_v33, %v9353_v52 }
 0x55a   : > { %v9486_v19 = vpop.f32.mrb[176].mxu1 }
 0x55b   : > { %v9487_v27 = vpop.f32.mrb[177].mxu1  ;;  %v10031_v28 = vadd.f32 %v9355_v32, %v14823_v47 }
 0x55c   : > { %v9488_v58 = vadd.f32 %v9487_v27, %v9486_v19  ;;  %v9489_v31 = vpop.f32.mrb[178].mxu1 }
 0x55d   : > { %v9490_v23 = vpop.f32.mrb[179].mxu1  ;;  %v9356_v36 = vpop.f32.mrb[20].mxu0 }
 0x55e   : > { %v9491_v10 = vadd.f32 %v9490_v23, %v9489_v31  ;;  %v14918_v0 = vadd.f32 %v10025_v9, %v9488_v58  ;;  %v9357_v54 = vpop.f32.mrb[21].mxu0 }
 0x55f   : > { %v9358_v49 = vadd.f32 %v9357_v54, %v9356_v36  ;;  %v9359_v7 = vpop.f32.mrb[22].mxu0 }
 0x560   : > { %v14920_v39 = vadd.f32 %v10031_v28, %v9491_v10  ;;  %v9360_v34 = vpop.f32.mrb[23].mxu0 }
 0x561   : > { %v10022_v1 = vadd.f32 %v9358_v49, %v14832_v43  ;;  %v9361_v41 = vadd.f32 %v9360_v34, %v9359_v7 }
 0x562   : > { %v9492_v5 = vpop.f32.mrb[180].mxu1 }
 0x563   : > { %v9493_v25 = vpop.f32.mrb[181].mxu1  ;;  %v10028_v47 = vadd.f32 %v9361_v41, %v14834_v38 }
 0x564   : > { %v9494_v21 = vadd.f32 %v9493_v25, %v9492_v5  ;;  %v9495_v35 = vpop.f32.mrb[182].mxu1 }
 0x565   : > { %v9496_v57 = vpop.f32.mrb[183].mxu1  ;;  %v9362_v62 = vpop.f32.mrb[24].mxu0 }
 0x566   : > { %v9497_v22 = vadd.f32 %v9496_v57, %v9495_v35  ;;  %v14924_v60 = vadd.f32 %v10022_v1, %v9494_v21  ;;  %v9363_v24 = vpop.f32.mrb[25].mxu0 }
 0x567   : > { %v9364_v37 = vadd.f32 %v9363_v24, %v9362_v62  ;;  %v9365_v15 = vpop.f32.mrb[26].mxu0 }
 0x568   : > { %v14926_v56 = vadd.f32 %v10028_v47, %v9497_v22  ;;  %v9366_v50 = vpop.f32.mrb[27].mxu0 }
 0x569   : > { %v10037_v43 = vadd.f32 %v9364_v37, %v14836_v63  ;;  %v9367_v33 = vadd.f32 %v9366_v50, %v9365_v15 }
 0x56a   : > { %v9498_v52 = vpop.f32.mrb[184].mxu1 }
 0x56b   : > { %v9499_v9 = vpop.f32.mrb[185].mxu1  ;;  %v10043_v38 = vadd.f32 %v9367_v33, %v14838_v40 }
 0x56c   : > { %v9500_v19 = vadd.f32 %v9499_v9, %v9498_v52  ;;  %v9501_v32 = vpop.f32.mrb[186].mxu1 }
 0x56d   : > { %v9502_v27 = vpop.f32.mrb[187].mxu1  ;;  %v9368_v28 = vpop.f32.mrb[28].mxu0 }
 0x56e   : > { %v9503_v58 = vadd.f32 %v9502_v27, %v9501_v32  ;;  %v14930_v31 = vadd.f32 %v10037_v43, %v9500_v19  ;;  %v9369_v23 = vpop.f32.mrb[29].mxu0 }
 0x56f   : > { %v9370_v10 = vadd.f32 %v9369_v23, %v9368_v28  ;;  %v9371_v36 = vpop.f32.mrb[30].mxu0 }
 0x570   : > { %v14932_v54 = vadd.f32 %v10043_v38, %v9503_v58  ;;  %v9372_v49 = vpop.f32.mrb[31].mxu0 }
 0x571   : > { %v10034_v63 = vadd.f32 %v9370_v10, %v14840_v29  ;;  %v9373_v34 = vadd.f32 %v9372_v49, %v9371_v36 }
 0x572   : > { %v9504_v7 = vpop.f32.mrb[188].mxu1 }
 0x573   : > { %v9505_v1 = vpop.f32.mrb[189].mxu1  ;;  %v10040_v40 = vadd.f32 %v9373_v34, %v14842_v3 }
 0x574   : > { %v9506_v5 = vadd.f32 %v9505_v1, %v9504_v7  ;;  %v9507_v41 = vpop.f32.mrb[190].mxu1 }
 0x575   : > { %v9508_v25 = vpop.f32.mrb[191].mxu1 }
 0x576   : > { %v9509_v21 = vadd.f32 %v9508_v25, %v9507_v41  ;;  %v14936_v47 = vadd.f32 %v10034_v63, %v9506_v5 }
 0x578   : > { %v14938_v35 = vadd.f32 %v10040_v40, %v9509_v21 }
 0x57a   : > { %v9792_v57 = vpop.f32.mrb[96].mxu1 }
 0x57b   : > { %v14941_v22 = vadd.f32 %v14852_v2, %v9792_v57  ;;  %v7987_v62 = vpop.f32.mrb[97].mxu1 }
 0x57c   : > { %v14944_v29 = vadd.f32 %v14846_v30, %v7987_v62  ;;  %v9793_v24 = vpop.f32.mrb[98].mxu1 }
 0x57d   : > { %v14947_v37 = vadd.f32 %v14854_v11, %v9793_v24  ;;  %v7990_v3 = vpop.f32.mrb[99].mxu1 }
 0x57e   : > { %v14950_v15 = vadd.f32 %v14848_v42, %v7990_v3 }
 0x580   : > { %v8146_v50 = vadd.f32 %v14950_v15, %v14944_v29 }
 0x582   : > { %v8147_v43 = vadd.f32 %v14941_v22, %v8146_v50  ;;  %v9796_v52 = vpop.f32.mrb[100].mxu1 }
 0x583   : > { %v14956_v2 = vadd.f32 %v14864_v13, %v9796_v52  ;;  %v8003_v33 = vpop.f32.mrb[101].mxu1 }
 0x584   : > { %v14959_v30 = vadd.f32 %v14858_v18, %v8003_v33  ;;  %v8148_v11 = vadd.f32 %v14947_v37, %v8147_v43  ;;  %v9797_v9 = vpop.f32.mrb[102].mxu1 }
 0x585   : > { %v14963_v19 = vadd.f32 %v14866_v45, %v9797_v9  ;;  %v8006_v42 = vpop.f32.mrb[103].mxu1 }
 0x586   : > { %v8149_v38 = vadd.f32 %v14959_v30, %v8148_v11  ;;  %v14967_v32 = vadd.f32 %v14860_v46, %v8006_v42 }
 0x588   : > { %v8150_v27 = vadd.f32 %v14967_v32, %v8149_v38 }
 0x58a   : > { %v8151_v13 = vadd.f32 %v14956_v2, %v8150_v27  ;;  %v9800_v58 = vpop.f32.mrb[104].mxu1 }
 0x58b   : > { %v14972_v18 = vadd.f32 %v14876_v26, %v9800_v58  ;;  %v8019_v28 = vpop.f32.mrb[105].mxu1 }
 0x58c   : > { %v14975_v23 = vadd.f32 %v14870_v61, %v8019_v28  ;;  %v8152_v45 = vadd.f32 %v14963_v19, %v8151_v13  ;;  %v9801_v10 = vpop.f32.mrb[106].mxu1 }
 0x58d   : > { %v14979_v36 = vadd.f32 %v14878_v51, %v9801_v10  ;;  %v8022_v46 = vpop.f32.mrb[107].mxu1 }
 0x58e   : > { %v8153_v49 = vadd.f32 %v14975_v23, %v8152_v45  ;;  %v14983_v63 = vadd.f32 %v14872_v20, %v8022_v46 }
 0x590   : > { %v8154_v7 = vadd.f32 %v14983_v63, %v8153_v49 }
 0x592   : > { %v8155_v26 = vadd.f32 %v14972_v18, %v8154_v7  ;;  %v9804_v34 = vpop.f32.mrb[108].mxu1 }
 0x593   : > { %v14988_v61 = vadd.f32 %v14888_v12, %v9804_v34  ;;  %v8035_v1 = vpop.f32.mrb[109].mxu1 }
 0x594   : > { %v14991_v5 = vadd.f32 %v14882_v53, %v8035_v1  ;;  %v8156_v51 = vadd.f32 %v14979_v36, %v8155_v26  ;;  %v9805_v40 = vpop.f32.mrb[110].mxu1 }
 0x595   : > { %v14995_v41 = vadd.f32 %v14890_v55, %v9805_v40  ;;  %v8038_v20 = vpop.f32.mrb[111].mxu1 }
 0x596   : > { %v8157_v25 = vadd.f32 %v14991_v5, %v8156_v51  ;;  %v14999_v21 = vadd.f32 %v14884_v6, %v8038_v20 }
 0x598   : > { %v8158_v57 = vadd.f32 %v14999_v21, %v8157_v25 }
 0x59a   : > { %v8159_v12 = vadd.f32 %v14988_v61, %v8158_v57  ;;  %v9808_v62 = vpop.f32.mrb[112].mxu1 }
 0x59b   : > { %v15004_v53 = vadd.f32 %v14900_v48, %v9808_v62  ;;  %v8051_v24 = vpop.f32.mrb[113].mxu1 }
 0x59c   : > { %v10003_v3 = vadd.f32 %v14894_v16, %v8051_v24  ;;  %v8160_v55 = vadd.f32 %v14995_v41, %v8159_v12  ;;  %v9809_v50 = vpop.f32.mrb[114].mxu1 }
 0x59d   : > { %v10006_v43 = vadd.f32 %v14902_v8, %v9809_v50  ;;  %v8054_v52 = vpop.f32.mrb[115].mxu1 }
 0x59e   : > { %v8161_v33 = vadd.f32 %v10003_v3, %v8160_v55  ;;  %v10009_v6 = vadd.f32 %v14896_v44, %v8054_v52 }
 0x5a0   : > { %v8162_v11 = vadd.f32 %v10009_v6, %v8161_v33 }
 0x5a2   : > { %v8163_v9 = vadd.f32 %v15004_v53, %v8162_v11  ;;  %v9812_v42 = vpop.f32.mrb[116].mxu1 }
 0x5a3   : > { %v10012_v38 = vadd.f32 %v14912_v59, %v9812_v42  ;;  %v8067_v48 = vpop.f32.mrb[117].mxu1 }
 0x5a4   : > { %v10015_v27 = vadd.f32 %v14906_v14, %v8067_v48  ;;  %v8164_v13 = vadd.f32 %v10006_v43, %v8163_v9  ;;  %v9813_v16 = vpop.f32.mrb[118].mxu1 }
 0x5a5   : > { %v10018_v58 = vadd.f32 %v14914_v17, %v9813_v16  ;;  %v8070_v28 = vpop.f32.mrb[119].mxu1 }
 0x5a6   : > { %v8165_v45 = vadd.f32 %v10015_v27, %v8164_v13  ;;  %v10021_v8 = vadd.f32 %v14908_v4, %v8070_v28 }
 0x5a8   : > { %v8166_v10 = vadd.f32 %v10021_v8, %v8165_v45 }
 0x5aa   : > { %v8167_v46 = vadd.f32 %v10012_v38, %v8166_v10  ;;  %v9816_v44 = vpop.f32.mrb[120].mxu1 }
 0x5ab   : > { %v10024_v49 = vadd.f32 %v14924_v60, %v9816_v44  ;;  %v8083_v7 = vpop.f32.mrb[121].mxu1 }
 0x5ac   : > { %v10027_v26 = vadd.f32 %v14918_v0, %v8083_v7  ;;  %v8168_v59 = vadd.f32 %v10018_v58, %v8167_v46  ;;  %v9817_v34 = vpop.f32.mrb[122].mxu1 }
 0x5ad   : > { %v10030_v14 = vadd.f32 %v14926_v56, %v9817_v34  ;;  %v8086_v1 = vpop.f32.mrb[123].mxu1 }
 0x5ae   : > { %v8169_v51 = vadd.f32 %v10027_v26, %v8168_v59  ;;  %v10033_v17 = vadd.f32 %v14920_v39, %v8086_v1 }
 0x5b0   : > { %v8170_v40 = vadd.f32 %v10033_v17, %v8169_v51 }
 0x5b2   : > { %v8171_v20 = vadd.f32 %v10024_v49, %v8170_v40  ;;  %v9820_v25 = vpop.f32.mrb[124].mxu1 }
 0x5b3   : > { %v10036_v4 = vadd.f32 %v14936_v47, %v9820_v25  ;;  %v8099_v57 = vpop.f32.mrb[125].mxu1 }
 0x5b4   : > { %v10039_v12 = vadd.f32 %v14930_v31, %v8099_v57  ;;  %v8172_v60 = vadd.f32 %v10030_v14, %v8171_v20  ;;  %v9821_v62 = vpop.f32.mrb[126].mxu1 }
 0x5b5   : > { %v10042_v0 = vadd.f32 %v14938_v35, %v9821_v62  ;;  %v8102_v24 = vpop.f32.mrb[127].mxu1 }
 0x5b6   : > { %v8173_v55 = vadd.f32 %v10039_v12, %v8172_v60  ;;  %v10045_v56 = vadd.f32 %v14932_v54, %v8102_v24 }
 0x5b8   : > { %v8174_v50 = vadd.f32 %v10045_v56, %v8173_v55 }
 0x5ba   : > { %v8175_v52 = vadd.f32 %v10036_v4, %v8174_v50 }
 0x5bc   : > { %v8176_v33 = vadd.f32 %v10042_v0, %v8175_v52 }
 0x5be   : > { %v8177_v39 = vrot.slane %v8176_v33, 4 }
 0x5c0   : > { %v8178_v11 = vadd.f32 %v8177_v39, %v8176_v33 }
 0x5c2   : > { %v8179_v9 = vrot.slane %v8178_v11, 2 }
 0x5c4   : > { %v8180_v42 = vadd.f32 %v8179_v9, %v8178_v11 }
 0x5c6   : > { %v8181_v48 = vrot.slane %v8180_v42, 1 }
 0x5c8   : > { %v8182_v47 = vadd.f32 %v8181_v48, %v8180_v42 }
 0x5ca   : > { %v8183_v13 = vmul.f32 0.00390625, %v8182_v47 }
 0x5cc   : > { %v15024_v31 = vsub.f32 %v14975_v23, %v8183_v13  ;;  %v15027_v16 = vsub.f32 %v14983_v63, %v8183_v13  ;;  %v15030_v35 = vsub.f32 %v14972_v18, %v8183_v13  ;;  %v15033_v54 = vsub.f32 %v14979_v36, %v8183_v13 }
 0x5cd   : > { %v15036_v28 = vsub.f32 %v14991_v5, %v8183_v13  ;;  %v15039_v45 = vsub.f32 %v14999_v21, %v8183_v13  ;;  %v15042_v10 = vsub.f32 %v14988_v61, %v8183_v13  ;;  %v15045_v23 = vsub.f32 %v14995_v41, %v8183_v13 }
 0x5ce   : > { %v15047_v63 = vsub.f32 %v10003_v3, %v8183_v13  ;;  %v15049_v46 = vsub.f32 %v10009_v6, %v8183_v13  ;;  %v15052_v18 = vsub.f32 %v15004_v53, %v8183_v13  ;;  %v15054_v36 = vsub.f32 %v10006_v43, %v8183_v13 }
 0x5cf   : > { %v15056_v5 = vsub.f32 %v10015_v27, %v8183_v13  ;;  %v15058_v44 = vsub.f32 %v10021_v8, %v8183_v13  ;;  %v15060_v21 = vsub.f32 %v10012_v38, %v8183_v13  ;;  %v15062_v61 = vsub.f32 %v10018_v58, %v8183_v13 }
 0x5d0   : > { %v15064_v7 = vsub.f32 %v10027_v26, %v8183_v13  ;;  %v15066_v41 = vsub.f32 %v10033_v17, %v8183_v13  ;;  %v15068_v3 = vsub.f32 %v10024_v49, %v8183_v13  ;;  %v15070_v6 = vsub.f32 %v10030_v14, %v8183_v13 }
 0x5d1   : > { %v15072_v53 = vsub.f32 %v10039_v12, %v8183_v13  ;;  %v15074_v43 = vsub.f32 %v10045_v56, %v8183_v13  ;;  %v15076_v27 = vsub.f32 %v10036_v4, %v8183_v13  ;;  %v15078_v8 = vsub.f32 %v10042_v0, %v8183_v13 }
 0x5d2   : > { %v15081_v38 = vsub.f32 %v14944_v29, %v8183_v13  ;;  %v15084_v58 = vsub.f32 %v14950_v15, %v8183_v13  ;;  %v15087_v26 = vsub.f32 %v14941_v22, %v8183_v13  ;;  %v15094_v34 = vsub.f32 %v14947_v37, %v8183_v13 }
 0x5d3   : > { %v15097_v14 = vsub.f32 %v14959_v30, %v8183_v13  ;;  %v15102_v1 = vsub.f32 %v14967_v32, %v8183_v13  ;;  %v15107_v17 = vsub.f32 %v14956_v2, %v8183_v13  ;;  %v15112_v30 = vsub.f32 %v14963_v19, %v8183_v13 }
 0x5d4   : > { %v8216_v49 = vmul.f32 %v15081_v38, %v15081_v38  ;;  %v8217_v59 = vmul.f32 %v15084_v58, %v15084_v58  ;;  %v8218_v29 = vmul.f32 %v15087_v26, %v15087_v26  ;;  %v8219_v22 = vmul.f32 %v15094_v34, %v15094_v34 }
 0x5d5   : > { %v8220_v37 = vmul.f32 %v15097_v14, %v15097_v14  ;;  %v8221_v20 = vmul.f32 %v15102_v1, %v15102_v1  ;;  %v8222_v32 = vmul.f32 %v15107_v17, %v15107_v17  ;;  %v8223_v57 = vmul.f32 %v15112_v30, %v15112_v30 }
 0x5d6   : > { %v8248_v15 = vadd.f32 %v8217_v59, %v8216_v49  ;;  %v8224_v12 = vmul.f32 %v15024_v31, %v15024_v31  ;;  %v8225_v19 = vmul.f32 %v15027_v16, %v15027_v16  ;;  %v8226_v0 = vmul.f32 %v15030_v35, %v15030_v35 }
 0x5d7   : > { %v8227_v55 = vmul.f32 %v15033_v54, %v15033_v54  ;;  %v8228_v50 = vmul.f32 %v15036_v28, %v15036_v28  ;;  %v8229_v33 = vmul.f32 %v15039_v45, %v15039_v45  ;;  %v8230_v11 = vmul.f32 %v15042_v10, %v15042_v10 }
 0x5d8   : > { %v8249_v51 = vadd.f32 %v8248_v15, %v8218_v29  ;;  %v8231_v42 = vmul.f32 %v15045_v23, %v15045_v23  ;;  %v8232_v47 = vmul.f32 %v15047_v63, %v15047_v63  ;;  %v8233_v49 = vmul.f32 %v15049_v46, %v15049_v46 }
 0x5d9   : > { %v8234_v29 = vmul.f32 %v15052_v18, %v15052_v18 }
 0x5da   : > { %v8250_v40 = vadd.f32 %v8249_v51, %v8219_v22  ;;  %v8235_v22 = vmul.f32 %v15054_v36, %v15054_v36 }
 0x5dc   : > { %v8251_v25 = vadd.f32 %v8250_v40, %v8220_v37  ;;  %v8236_v37 = vmul.f32 %v15056_v5, %v15056_v5 }
 0x5de   : > { %v8252_v4 = vadd.f32 %v8251_v25, %v8221_v20  ;;  %v8237_v20 = vmul.f32 %v15058_v44, %v15058_v44 }
 0x5e0   : > { %v8253_v2 = vadd.f32 %v8252_v4, %v8222_v32  ;;  %v8238_v32 = vmul.f32 %v15060_v21, %v15060_v21 }
 0x5e2   : > { %v8254_v60 = vadd.f32 %v8253_v2, %v8223_v57  ;;  %v8239_v57 = vmul.f32 %v15062_v61, %v15062_v61 }
 0x5e4   : > { %v8255_v62 = vadd.f32 %v8254_v60, %v8224_v12  ;;  %v8240_v12 = vmul.f32 %v15064_v7, %v15064_v7 }
 0x5e6   : > { %v8256_v24 = vadd.f32 %v8255_v62, %v8225_v19  ;;  %v8241_v19 = vmul.f32 %v15066_v41, %v15066_v41 }
 0x5e8   : > { %v8257_v56 = vadd.f32 %v8256_v24, %v8226_v0  ;;  %v8242_v0 = vmul.f32 %v15068_v3, %v15068_v3 }
 0x5ea   : > { %v8258_v52 = vadd.f32 %v8257_v56, %v8227_v55  ;;  %v8243_v55 = vmul.f32 %v15070_v6, %v15070_v6 }
 0x5ec   : > { %v8259_v39 = vadd.f32 %v8258_v52, %v8228_v50  ;;  %v8244_v50 = vmul.f32 %v15072_v53, %v15072_v53 }
 0x5ee   : > { %v8260_v9 = vadd.f32 %v8259_v39, %v8229_v33  ;;  %v8245_v33 = vmul.f32 %v15074_v43, %v15074_v43 }
 0x5f0   : > { %v8261_v48 = vadd.f32 %v8260_v9, %v8230_v11  ;;  %v8246_v11 = vmul.f32 %v15076_v27, %v15076_v27 }
 0x5f2   : > { %v8262_v13 = vadd.f32 %v8261_v48, %v8231_v42  ;;  %v8247_v42 = vmul.f32 %v15078_v8, %v15078_v8 }
 0x5f4   : > { %v8263_v59 = vadd.f32 %v8262_v13, %v8232_v47 }
 0x5f6   : > { %v8264_v15 = vadd.f32 %v8263_v59, %v8233_v49 }
 0x5f8   : > { %v8265_v51 = vadd.f32 %v8264_v15, %v8234_v29 }
 0x5fa   : > { %v8266_v40 = vadd.f32 %v8265_v51, %v8235_v22 }
 0x5fc   : > { %v8267_v25 = vadd.f32 %v8266_v40, %v8236_v37 }
 0x5fe   : > { %v8268_v4 = vadd.f32 %v8267_v25, %v8237_v20  ;;  %v8349_v20 = vld [vmem:[%s10781_s30 + $0xe8] sm:$0xff] }
 0x600   : > { %v8269_v2 = vadd.f32 %v8268_v4, %v8238_v32 }
 0x602   : > { %v8270_v60 = vadd.f32 %v8269_v2, %v8239_v57 }
 0x604   : > { %v8271_v62 = vadd.f32 %v8270_v60, %v8240_v12 }
 0x606   : > { %v8272_v24 = vadd.f32 %v8271_v62, %v8241_v19 }
 0x608   : > { %v8273_v56 = vadd.f32 %v8272_v24, %v8242_v0  ;;  %v8320_v0 = vld [vmem:[%s10781_s30] sm:$0xff]  ;;  %v8323_v24 = vld [vmem:[%s10781_s30 + $0x18] sm:$0xff] }
 0x60a   : > { %v8274_v52 = vadd.f32 %v8273_v56, %v8243_v55  ;;  %v8326_v55 = vld [vmem:[%s10781_s30 + $0x30] sm:$0xff]  ;;  %v8325_v56 = vld [vmem:[%s10781_s30 + $0x28] sm:$0xff] }
 0x60c   : > { %v8275_v39 = vadd.f32 %v8274_v52, %v8244_v50  ;;  %v8330_v50 = vld [vmem:[%s10781_s30 + $0x50] sm:$0xff]  ;;  %v8328_v52 = vld [vmem:[%s10781_s30 + $0x40] sm:$0xff] }
 0x60e   : > { %v8276_v9 = vadd.f32 %v8275_v39, %v8245_v33  ;;  %v8329_v39 = vld [vmem:[%s10781_s30 + $0x48] sm:$0xff] }
 0x610   : > { %v8277_v48 = vadd.f32 %v8276_v9, %v8246_v11  ;;  %v8334_v11 = vld [vmem:[%s10781_s30 + $0x70] sm:$0xff] }
 0x612   : > { %v8278_v47 = vadd.f32 %v8277_v48, %v8247_v42  ;;  %v8333_v48 = vld [vmem:[%s10781_s30 + $0x68] sm:$0xff] }
 0x614   : > { %v8279_v13 = vrot.slane %v8278_v47, 4 }
 0x616   : > { %v8280_v49 = vadd.f32 %v8279_v13, %v8278_v47  ;;  %v8336_v13 = vld [vmem:[%s10781_s30 + $0x80] sm:$0xff] }
 0x618   : > { %v8281_v59 = vrot.slane %v8280_v49, 2 }
 0x61a   : > { %v8282_v29 = vadd.f32 %v8281_v59, %v8280_v49  ;;  %v8339_v49 = vld [vmem:[%s10781_s30 + $0x98] sm:$0xff] }
 0x61c   : > { %v8283_v15 = vrot.slane %v8282_v29, 1 }
 0x61e   : > { %v8284_v22 = vadd.f32 %v8283_v15, %v8282_v29  ;;  %v8337_v15 = vld [vmem:[%s10781_s30 + $0x88] sm:$0xff] }
 0x620   : > { %v8285_v51 = vmul.f32 0.00390625, %v8284_v22  ;;  %v8340_v22 = vld [vmem:[%s10781_s30 + $0xa0] sm:$0xff] }
 0x622   : > { %v8286_v37 = vadd.f32 1e-05, %v8285_v51 }
 0x624   : > { %10363 = vrsqrt.f32 %v8286_v37 }
 0x62e   : > { %v10364_v40 = vpop.eup %10363 }
 0x62f   : > { %v8317_v25 = vmul.f32 %v10364_v40, %v15074_v43  ;;  %v8288_v32 = vmul.f32 %v10364_v40, %v15081_v38  ;;  %v8289_v4 = vmul.f32 %v10364_v40, %v15084_v58  ;;  %v8290_v57 = vmul.f32 %v10364_v40, %v15087_v26  ;;  %v8322_v26 = vld [vmem:[%s10781_s30 + $0x10] sm:$0xff] }
 0x630   : > { %v8291_v2 = vmul.f32 %v10364_v40, %v15094_v34  ;;  %v8292_v12 = vmul.f32 %v10364_v40, %v15097_v14  ;;  %v8293_v60 = vmul.f32 %v10364_v40, %v15102_v1  ;;  %v8294_v19 = vmul.f32 %v10364_v40, %v15107_v17 }
 0x631   : > { %v8381_v43 = vadd.f32 %v8349_v20, %v8317_v25  ;;  %v8295_v38 = vmul.f32 %v10364_v40, %v15112_v30  ;;  %v8296_v58 = vmul.f32 %v10364_v40, %v15024_v31  ;;  %v8297_v62 = vmul.f32 %v10364_v40, %v15027_v16  ;;  %v8321_v30 = vld [vmem:[%s10781_s30 + $0x8] sm:$0xff]  ;;  %v8324_v31 = vld [vmem:[%s10781_s30 + $0x20] sm:$0xff]  ;;  %v8343_v25 = vld [vmem:[%s10781_s30 + $0xb8] sm:$0xff] }
 0x632   : > { %v8298_v34 = vmul.f32 %v10364_v40, %v15030_v35  ;;  %v8299_v14 = vmul.f32 %v10364_v40, %v15033_v54  ;;  %v8300_v1 = vmul.f32 %v10364_v40, %v15036_v28  ;;  %v8301_v17 = vmul.f32 %v10364_v40, %v15039_v45  ;;  %v8327_v45 = vld [vmem:[%s10781_s30 + $0x38] sm:$0xff] }
 0x633   : > { %8413 = vst [vmem:[%s15192_s18 + $0xe8] sm:$0xff] %v8381_v43  ;;  %v8302_v16 = vmul.f32 %v10364_v40, %v15042_v10  ;;  %v15197_v35 = vmul.f32 %v10364_v40, %v15045_v23  ;;  %v15200_v54 = vmul.f32 %v10364_v40, %v15047_v63  ;;  %v15203_v28 = vmul.f32 %v10364_v40, %v15049_v46  ;;  %v8331_v46 = vld [vmem:[%s10781_s30 + $0x58] sm:$0xff]  ;;  %v8341_v43 = vld [vmem:[%s10781_s30 + $0xa8] sm:$0xff] }
 0x634   : > { %v8306_v33 = vmul.f32 %v10364_v40, %v15052_v18  ;;  %v15211_v10 = vmul.f32 %v10364_v40, %v15054_v36  ;;  %v15214_v23 = vmul.f32 %v10364_v40, %v15056_v5  ;;  %v15217_v63 = vmul.f32 %v10364_v40, %v15058_v44  ;;  %v8332_v5 = vld [vmem:[%s10781_s30 + $0x60] sm:$0xff]  ;;  %v8335_v44 = vld [vmem:[%s10781_s30 + $0x78] sm:$0xff] }
 0x635   : > { %v8310_v9 = vmul.f32 %v10364_v40, %v15060_v21  ;;  %v15224_v42 = vmul.f32 %v10364_v40, %v15062_v61  ;;  %v15227_v18 = vmul.f32 %v10364_v40, %v15064_v7  ;;  %v15230_v36 = vmul.f32 %v10364_v40, %v15066_v41  ;;  %v8338_v41 = vld [vmem:[%s10781_s30 + $0x90] sm:$0xff] }
 0x636   : > { %v15236_v47 = vmul.f32 %v10364_v40, %v15068_v3  ;;  %v15239_v21 = vmul.f32 %v10364_v40, %v15070_v6  ;;  %v15242_v61 = vmul.f32 %v10364_v40, %v15072_v53  ;;  %v15245_v7 = vmul.f32 %v10364_v40, %v15076_v27  ;;  %v8342_v53 = vld [vmem:[%s10781_s30 + $0xb0] sm:$0xff] }
 0x637   : > { %v15251_v59 = vmul.f32 %v10364_v40, %v15078_v8  ;;  %v8352_v3 = vadd.f32 %v8320_v0, %v8288_v32  ;;  %v8353_v29 = vadd.f32 %v8321_v30, %v8289_v4  ;;  %v8354_v6 = vadd.f32 %v8322_v26, %v8290_v57  ;;  %v8346_v8 = vld [vmem:[%s10781_s30 + $0xd0] sm:$0xff]  ;;  %v8348_v0 = vld [vmem:[%s10781_s30 + $0xe0] sm:$0xff] }
 0x638   : > { %v8355_v27 = vadd.f32 %v8323_v24, %v8291_v2  ;;  %v8356_v51 = vadd.f32 %v8324_v31, %v8292_v12  ;;  %v8357_v37 = vadd.f32 %v8325_v56, %v8293_v60  ;;  %v8358_v20 = vadd.f32 %v8326_v55, %v8294_v19  ;;  %v8344_v2 = vld [vmem:[%s10781_s30 + $0xc0] sm:$0xff]  ;;  %v8347_v12 = vld [vmem:[%s10781_s30 + $0xd8] sm:$0xff]  ;;  %v8345_v60 = vld [vmem:[%s10781_s30 + $0xc8] sm:$0xff] }
 0x639   : > { %v8359_v40 = vadd.f32 %v8327_v45, %v8295_v38  ;;  %v8360_v32 = vadd.f32 %v8328_v52, %v8296_v58  ;;  %v8361_v4 = vadd.f32 %v8329_v39, %v8297_v62  ;;  %v8362_v57 = vadd.f32 %v8330_v50, %v8298_v34  ;;  %8384 = vst [vmem:[%s15192_s18] sm:$0xff] %v8352_v3  ;;  %v8350_v62 = vld [vmem:[%s10781_s30 + $0xf0] sm:$0xff]  ;;  %v8351_v34 = vld [vmem:[%s10781_s30 + $0xf8] sm:$0xff] }
 0x63a   : > { %8385 = vst [vmem:[%s15192_s18 + $0x8] sm:$0xff] %v8353_v29  ;;  %8386 = vst [vmem:[%s15192_s18 + $0x10] sm:$0xff] %v8354_v6  ;;  %v8363_v19 = vadd.f32 %v8331_v46, %v8299_v14  ;;  %v8364_v26 = vadd.f32 %v8332_v5, %v8300_v1  ;;  %v8365_v38 = vadd.f32 %v8333_v48, %v8301_v17 }
 0x63b   : > { %v8366_v58 = vadd.f32 %v8334_v11, %v8302_v16  ;;  %8387 = vst [vmem:[%s15192_s18 + $0x18] sm:$0xff] %v8355_v27  ;;  %8388 = vst [vmem:[%s15192_s18 + $0x20] sm:$0xff] %v8356_v51  ;;  %v8367_v14 = vadd.f32 %v8335_v44, %v15197_v35  ;;  %v8368_v1 = vadd.f32 %v8336_v13, %v15200_v54 }
 0x63c   : > { %8389 = vst [vmem:[%s15192_s18 + $0x28] sm:$0xff] %v8357_v37  ;;  %8390 = vst [vmem:[%s15192_s18 + $0x30] sm:$0xff] %v8358_v20  ;;  %v8369_v17 = vadd.f32 %v8337_v15, %v15203_v28  ;;  %v8370_v24 = vadd.f32 %v8338_v41, %v8306_v33  ;;  %v8371_v30 = vadd.f32 %v8339_v49, %v15211_v10 }
 0x63d   : > { %8391 = vst [vmem:[%s15192_s18 + $0x38] sm:$0xff] %v8359_v40  ;;  %8392 = vst [vmem:[%s15192_s18 + $0x40] sm:$0xff] %v8360_v32  ;;  %v8372_v55 = vadd.f32 %v8340_v22, %v15214_v23  ;;  %v8373_v31 = vadd.f32 %v8341_v43, %v15217_v63  ;;  %v8374_v16 = vadd.f32 %v8342_v53, %v8310_v9 }
 0x63e   : > { %8393 = vst [vmem:[%s15192_s18 + $0x48] sm:$0xff] %v8361_v4  ;;  %8394 = vst [vmem:[%s15192_s18 + $0x50] sm:$0xff] %v8362_v57  ;;  %v8375_v35 = vadd.f32 %v8343_v25, %v15224_v42  ;;  %v8376_v54 = vadd.f32 %v8344_v2, %v15227_v18  ;;  %v8377_v28 = vadd.f32 %v8345_v60, %v15230_v36 }
 0x63f   : > { %8395 = vst [vmem:[%s15192_s18 + $0x58] sm:$0xff] %v8363_v19  ;;  %8396 = vst [vmem:[%s15192_s18 + $0x60] sm:$0xff] %v8364_v26  ;;  %v8378_v45 = vadd.f32 %v8346_v8, %v15236_v47  ;;  %v8379_v56 = vadd.f32 %v8347_v12, %v15239_v21  ;;  %v8380_v50 = vadd.f32 %v8348_v0, %v15242_v61 }
 0x640   : > { %8397 = vst [vmem:[%s15192_s18 + $0x68] sm:$0xff] %v8365_v38  ;;  %8398 = vst [vmem:[%s15192_s18 + $0x70] sm:$0xff] %v8366_v58  ;;  %v8382_v52 = vadd.f32 %v8350_v62, %v15245_v7  ;;  %v8383_v33 = vadd.f32 %v8351_v34, %v15251_v59 }
 0x641   : > { %8399 = vst [vmem:[%s15192_s18 + $0x78] sm:$0xff] %v8367_v14  ;;  %8400 = vst [vmem:[%s15192_s18 + $0x80] sm:$0xff] %v8368_v1 }
 0x642   : > { %8401 = vst [vmem:[%s15192_s18 + $0x88] sm:$0xff] %v8369_v17  ;;  %8402 = vst [vmem:[%s15192_s18 + $0x90] sm:$0xff] %v8370_v24 }
 0x643   : > { %8403 = vst [vmem:[%s15192_s18 + $0x98] sm:$0xff] %v8371_v30  ;;  %8404 = vst [vmem:[%s15192_s18 + $0xa0] sm:$0xff] %v8372_v55 }
 0x644   : > { %8405 = vst [vmem:[%s15192_s18 + $0xa8] sm:$0xff] %v8373_v31  ;;  %8406 = vst [vmem:[%s15192_s18 + $0xb0] sm:$0xff] %v8374_v16 }
 0x645   : > { %8407 = vst [vmem:[%s15192_s18 + $0xb8] sm:$0xff] %v8375_v35  ;;  %8408 = vst [vmem:[%s15192_s18 + $0xc0] sm:$0xff] %v8376_v54 }
 0x646   : > { %8409 = vst [vmem:[%s15192_s18 + $0xc8] sm:$0xff] %v8377_v28  ;;  %8410 = vst [vmem:[%s15192_s18 + $0xd0] sm:$0xff] %v8378_v45 }
 0x647   : > { %8411 = vst [vmem:[%s15192_s18 + $0xd8] sm:$0xff] %v8379_v56  ;;  %8412 = vst [vmem:[%s15192_s18 + $0xe0] sm:$0xff] %v8380_v50 }
 0x648   : > { %8414 = vst [vmem:[%s15192_s18 + $0xf0] sm:$0xff] %v8382_v52  ;;  %8415 = vst [vmem:[%s15192_s18 + $0xf8] sm:$0xff] %v8383_v33 }
 0x649   : > { %10512 = shalt.err (!%p10509_p2)
}
 0x64a   : > { %s10513_s25 = scalar_lea.hbm %s15301_s27, 4096  ;;  %s10517_s21 = scalar_lea.hbm %s15368_s3, 8192 }
 0x64b   : > { %p10514_p13 = scmp.ne.s32.totalorder %s15301_s27, %s10513_s25  ;;  %p10518_p4 = scmp.lt.u32.totalorder %s15301_s27, %s15368_s3 }
 0x64c   : > { %p10519_p5 = scmp.lt.u32.totalorder %s10517_s21, %s10513_s25  ;;  %p10521_p11 = scmp.lt.u32.totalorder %s10513_s25, %s15301_s27 }
 0x64d   : > { %p10515_p6 = pnand %p10514_p13, %p16228_p0 }
 0x64e   : > { %p10520_p8 = por %p10519_p5, %p10518_p4 }
 0x64f   : > { %p10516_p10 = pneg %p10515_p6 }
 0x650   : > { %p10522_p1 = por %p10521_p11, %p10520_p8 }
 0x652   : > { %p10523_p3 = pnand %p10522_p1, %p10516_p10 }
 0x654   : > { %10526 = shalt.err (!%p10523_p3)
}
 0x655   : > { %s10581_s30 = smov 128   ;;  %s10582_s18 = smov 8  }
 0x656   : > { %10152 = dma.vmem_to_hbm [thread:$0]  (%p16228_p0), %s15305_s17, 4096, %s15301_s27, %s8417_s16, %s10581_s30, %s10581_s30, %s10582_s18  }
 0x657 PF: > { %s8445_s20 = sand.u32 1, %s10557_s12   ;;  %p16229_p7 = scmp.ne.s32.totalorder %s15596_s19, 0 }
 0x658   : > { %p16230_p9 = scmp.ge.s32.totalorder %s10569_s15, 2  ;;  %s8446_s24 = scalar_lea.sflag [#allocation5], %s8445_s20 }
 0x65a   : > { %p10166_p12 = pnand %p16230_p9, %p16229_p7 }
 0x65c   : > { %10552 = dma.done.wait (!%p10166_p12), %s8446_s24, 4096  }
 0x65d   : > { %10554 = vsyncadd (!%p10166_p12), %s8446_s24, 4294963200  ;;  %p17_p2 = scmp.ge.s32.totalorder %s10713_s4, 4   ;;  %s16231_s12 = smov %s10561_s13 }
 0x65e   : > { %s16232_s13 = smov %s10565_s14  ;;  %s16233_s14 = smov %s10729_s9 }
 0x65f   : > { %s16234_s15 = smov %s10713_s4  ;;  %19 = sbr.rel (!%p17_p2) target bundleno = 6 (0x6), region = 89 }
 0x666   :  { %8451 = vsyncpa [#allocation4], 1 }
 0x667   :  { %8453 = vsyncpa [#allocation4 + $0x1], 1 }
 0x668   :  { %8454 = vsyncpa [#allocation7], 1 }
 0x669   :  { %8455 = vsyncpa [#allocation5], 1 }
 0x66a   :  { %8457 = vsyncpa [#allocation5 + $0x1], 1 }

</bundles_post_ra>
